<compile_context>
chip_gen: v7x
topology: tpu7x:2x2x1
jax: 0.10.0
libtpu: 0.0.40
codegen_flags: <defaults>
</compile_context>

<pallas_src>
import jax
import jax.numpy as jnp
from jax.experimental import pallas as pl
from jax.experimental.pallas import tpu as pltpu

_VMEM_LIMIT = 32 * 1024 * 1024
_BN_EPS = 1e-5


# ----------------------------------------------------------------------------
# helpers
# ----------------------------------------------------------------------------
def _pick_tile(dim, candidates):
    """Largest candidate that evenly divides dim, else the full extent."""
    for c in candidates:
        if dim % c == 0:
            return c
    return dim


def _vmem_full():
    return pl.BlockSpec(memory_space=pltpu.MemorySpace.VMEM)


# ----------------------------------------------------------------------------
# Fused conv matmul: bf16 MXU, f32 accumulate, epilogue emits per-channel
# partial sum / sum-of-squares for train-mode BatchNorm statistics.
# ----------------------------------------------------------------------------
def _conv_matmul_kernel(a_ref, b_ref, y_ref, s_ref, q_ref, acc_ref):
    k = pl.program_id(2)

    @pl.when(k == 0)
    def _():
        acc_ref[...] = jnp.zeros_like(acc_ref)

    acc_ref[...] += jnp.dot(a_ref[...], b_ref[...],
                            preferred_element_type=jnp.float32)

    @pl.when(k == pl.num_programs(2) - 1)
    def _():
        acc = acc_ref[...]
        y_ref[...] = acc
        s_ref[...] = jnp.sum(acc, axis=0, keepdims=True)[None]          # (1,1,tn)
        q_ref[...] = jnp.sum(acc * acc, axis=0, keepdims=True)[None]    # (1,1,tn)


def conv_matmul_with_stats(a_bf16, b_bf16):
    """a:(M,K) bf16 @ b:(K,N) bf16 -> (y f32 (M,N), psum (Mt,1,N), psq (Mt,1,N))."""
    M, K = a_bf16.shape
    _, N = b_bf16.shape
    tm = _pick_tile(M, (256, 128, 64, 32, 16, 8))
    tn = _pick_tile(N, (256, 128))
    tk = _pick_tile(K, (512, 256))
    mt, nt, kt = M // tm, N // tn, K // tk
    cost = pl.CostEstimate(flops=2 * M * N * K, transcendentals=0,
                           bytes_accessed=M * K * 2 + K * N * 2 + M * N * 4)
    return pl.pallas_call(
        _conv_matmul_kernel,
        out_shape=(jax.ShapeDtypeStruct((M, N), jnp.float32),
                   jax.ShapeDtypeStruct((mt, 1, N), jnp.float32),
                   jax.ShapeDtypeStruct((mt, 1, N), jnp.float32)),
        grid_spec=pltpu.PrefetchScalarGridSpec(
            num_scalar_prefetch=0,
            grid=(mt, nt, kt),
            in_specs=[pl.BlockSpec((tm, tk), lambda i, j, k: (i, k)),
                      pl.BlockSpec((tk, tn), lambda i, j, k: (k, j))],
            out_specs=[pl.BlockSpec((tm, tn), lambda i, j, k: (i, j)),
                       pl.BlockSpec((1, 1, tn), lambda i, j, k: (i, 0, j)),
                       pl.BlockSpec((1, 1, tn), lambda i, j, k: (i, 0, j))],
            scratch_shapes=[pltpu.VMEM((tm, tn), jnp.float32)]),
        compiler_params=pltpu.CompilerParams(
            dimension_semantics=("parallel", "parallel", "arbitrary"),
            vmem_limit_bytes=_VMEM_LIMIT),
        cost_estimate=cost,
    )(a_bf16, b_bf16)


# ----------------------------------------------------------------------------
# Fused BN-affine (+ optional ReLU, + optional residual add then ReLU)
# ----------------------------------------------------------------------------
def _affine_kernel(y_ref, s_ref, b_ref, o_ref):
    o_ref[...] = y_ref[...] * s_ref[...] + b_ref[...]


def _affine_relu_kernel(y_ref, s_ref, b_ref, o_ref):
    o_ref[...] = jnp.maximum(y_ref[...] * s_ref[...] + b_ref[...], 0.0)


def _affine_add_relu_kernel(y_ref, s_ref, b_ref, r_ref, o_ref):
    o_ref[...] = jnp.maximum(
        y_ref[...] * s_ref[...] + b_ref[...] + r_ref[...], 0.0)


def bn_affine_apply(y, scale, bias, relu, residual=None):
    M, C = y.shape
    tm = _pick_tile(M, (512, 256, 128, 64, 32, 16, 8))
    row_spec = pl.BlockSpec((tm, C), lambda i: (i, 0))
    vec_spec = pl.BlockSpec((1, C), lambda i: (0, 0))
    if residual is not None:
        kernel = _affine_add_relu_kernel        # ReLU after residual add
        in_specs = [row_spec, vec_spec, vec_spec, row_spec]
        args = (y, scale, bias, residual)
    else:
        kernel = _affine_relu_kernel if relu else _affine_kernel
        in_specs = [row_spec, vec_spec, vec_spec]
        args = (y, scale, bias)
    return pl.pallas_call(
        kernel,
        out_shape=jax.ShapeDtypeStruct((M, C), jnp.float32),
        grid_spec=pltpu.PrefetchScalarGridSpec(
            num_scalar_prefetch=0, grid=(M // tm,),
            in_specs=in_specs, out_specs=row_spec),
        compiler_params=pltpu.CompilerParams(
            dimension_semantics=("parallel",),
            vmem_limit_bytes=_VMEM_LIMIT),
    )(*args)


def _bn_scale_bias(psum, psq, m_rows, gamma, beta):
    """Finish the (tiny) cross-tile reduction and fold BN into (scale, bias)."""
    total = jnp.sum(psum[:, 0, :], axis=0)
    total_sq = jnp.sum(psq[:, 0, :], axis=0)
    mean = total / m_rows
    var = jnp.maximum(total_sq / m_rows - mean * mean, 0.0)   # biased var
    scale = gamma * jax.lax.rsqrt(var + _BN_EPS)
    bias = beta - mean * scale
    c = gamma.shape[0]
    return scale.reshape(1, c), bias.reshape(1, c)


# ----------------------------------------------------------------------------
# Conv (im2col glue in XLA, bf16) + BN + activation (+ residual)
# ----------------------------------------------------------------------------
# TODO(synk): fully in-kernel im2col (gathering the KH*KW taps from a VMEM tile
# of the padded input) would avoid materializing the KH*KW-inflated patch
# matrix in HBM; the strided tap windows are not expressible with BlockSpec
# index maps, so this revision keeps the patch build as XLA glue (in bf16).
def _im2col(x, kh_sz, kw_sz, stride, padding):
    N, H, W, Cin = x.shape
    xb = x.astype(jnp.bfloat16)
    xp = jnp.pad(xb, ((0, 0), (padding, padding), (padding, padding), (0, 0)))
    Ho = (H + 2 * padding - kh_sz) // stride + 1
    Wo = (W + 2 * padding - kw_sz) // stride + 1
    taps = [xp[:, kh:kh + stride * Ho:stride, kw:kw + stride * Wo:stride, :]
            for kh in range(kh_sz) for kw in range(kw_sz)]
    patches = jnp.concatenate(taps, axis=-1)          # (N,Ho,Wo,KH*KW*Cin)
    return patches.reshape(N * Ho * Wo, kh_sz * kw_sz * Cin), Ho, Wo


def conv_bn_act(x, p, stride, padding, relu, residual=None):
    w = p["w"]                                        # (Cout, Cin, KH, KW)
    cout, cin, kh_sz, kw_sz = w.shape
    n = x.shape[0]
    patches, ho, wo = _im2col(x, kh_sz, kw_sz, stride, padding)
    wmat = jnp.transpose(w, (2, 3, 1, 0)).reshape(kh_sz * kw_sz * cin, cout)
    y, psum, psq = conv_matmul_with_stats(patches, wmat.astype(jnp.bfloat16))
    scale, bias = _bn_scale_bias(psum, psq, patches.shape[0],
                                 p["gamma"], p["beta"])
    res = None if residual is None else residual.reshape(-1, cout)
    out = bn_affine_apply(y, scale, bias, relu=relu, residual=res)
    return out.reshape(n, ho, wo, cout)


# ----------------------------------------------------------------------------
# Max pool 3x3 / stride 2 / pad 1 : VPU maximum tree over the 9 taps
# ----------------------------------------------------------------------------
def _maxpool9_kernel(t0, t1, t2, t3, t4, t5, t6, t7, t8, o_ref):
    m = t0[...]
    for t in (t1, t2, t3, t4, t5, t6, t7, t8):
        m = jnp.maximum(m, t[...])
    o_ref[...] = m


def maxpool_3x3_s2_p1(x):
    N, H, W, C = x.shape
    xp = jnp.pad(x, ((0, 0), (1, 1), (1, 1), (0, 0)),
                 constant_values=-jnp.inf)
    Ho = (H + 2 - 3) // 2 + 1
    Wo = (W + 2 - 3) // 2 + 1
    M = N * Ho * Wo
    taps = [xp[:, kh:kh + 2 * Ho:2, kw:kw + 2 * Wo:2, :].reshape(M, C)
            for kh in range(3) for kw in range(3)]
    tm = _pick_tile(M, (512, 256, 128, 64, 32, 16, 8))
    spec = pl.BlockSpec((tm, C), lambda i: (i, 0))
    out = pl.pallas_call(
        _maxpool9_kernel,
        out_shape=jax.ShapeDtypeStruct((M, C), jnp.float32),
        grid_spec=pltpu.PrefetchScalarGridSpec(
            num_scalar_prefetch=0, grid=(M // tm,),
            in_specs=[spec] * 9, out_specs=spec),
        compiler_params=pltpu.CompilerParams(
            dimension_semantics=("parallel",),
            vmem_limit_bytes=_VMEM_LIMIT),
    )(*taps)
    return out.reshape(N, Ho, Wo, C)


# ----------------------------------------------------------------------------
# Global average pool + final Linear
# ----------------------------------------------------------------------------
def _gap_kernel(x_ref, o_ref):
    o_ref[...] = jnp.mean(x_ref[...], axis=1)


def global_avg_pool(x):
    N, H, W, C = x.shape
    xf = x.reshape(N, H * W, C)
    return pl.pallas_call(
        _gap_kernel,
        out_shape=jax.ShapeDtypeStruct((N, C), jnp.float32),
        in_specs=[_vmem_full()],
        out_specs=_vmem_full(),
    )(xf)


def _linear_kernel(a_ref, b_ref, bias_ref, o_ref, acc_ref):
    k = pl.program_id(2)

    @pl.when(k == 0)
    def _():
        acc_ref[...] = jnp.zeros_like(acc_ref)

    acc_ref[...] += jnp.dot(a_ref[...], b_ref[...],
                            preferred_element_type=jnp.float32)

    @pl.when(k == pl.num_programs(2) - 1)
    def _():
        o_ref[...] = acc_ref[...] + bias_ref[...]


def pallas_linear(x, w_t, b):
    """x:(M,K) f32, w_t:(K,N) pre-transposed, b:(N,) -> (M,N) f32."""
    M, K = x.shape
    N = w_t.shape[1]
    tm = _pick_tile(M, (256, 128, 64, 32, 16, 8))
    tn = _pick_tile(N, (256, 128))
    tk = _pick_tile(K, (512, 256))
    mt, nt, kt = M // tm, N // tn, K // tk
    return pl.pallas_call(
        _linear_kernel,
        out_shape=jax.ShapeDtypeStruct((M, N), jnp.float32),
        grid_spec=pltpu.PrefetchScalarGridSpec(
            num_scalar_prefetch=0, grid=(mt, nt, kt),
            in_specs=[pl.BlockSpec((tm, tk), lambda i, j, k: (i, k)),
                      pl.BlockSpec((tk, tn), lambda i, j, k: (k, j)),
                      pl.BlockSpec((1, tn), lambda i, j, k: (0, j))],
            out_specs=pl.BlockSpec((tm, tn), lambda i, j, k: (i, j)),
            scratch_shapes=[pltpu.VMEM((tm, tn), jnp.float32)]),
        compiler_params=pltpu.CompilerParams(
            dimension_semantics=("parallel", "parallel", "arbitrary"),
            vmem_limit_bytes=_VMEM_LIMIT),
        cost_estimate=pl.CostEstimate(
            flops=2 * M * N * K, transcendentals=0,
            bytes_accessed=M * K * 2 + K * N * 2 + M * N * 4),
    )(x.astype(jnp.bfloat16), w_t.astype(jnp.bfloat16),
      b.reshape(1, N).astype(jnp.float32))


# ----------------------------------------------------------------------------
# ResNet-18 (num_classes=6) parameters + forward
# ----------------------------------------------------------------------------
class _KeyGen:
    def __init__(self, key):
        self._key = key

    def __call__(self):
        self._key, sub = jax.random.split(self._key)
        return sub


def _init_conv_bn(kg, cin, cout, k):
    fan_in = cin * k * k
    return {
        "w": jax.random.normal(kg(), (cout, cin, k, k), jnp.float32)
        * (2.0 / fan_in) ** 0.5,
        "gamma": jnp.ones((cout,), jnp.float32),
        "beta": jnp.zeros((cout,), jnp.float32),
    }


def _init_basic_block(kg, cin, cout, stride):
    p = {
        "conv1": _init_conv_bn(kg, cin, cout, 3),
        "conv2": _init_conv_bn(kg, cout, cout, 3),
    }
    if stride != 1 or cin != cout:
        p["down"] = _init_conv_bn(kg, cin, cout, 1)
    return p


# (cin, cout, stride) for the 8 BasicBlocks of ResNet-18.
_BLOCK_CFG = [(64, 64, 1), (64, 64, 1),
              (64, 128, 2), (128, 128, 1),
              (128, 256, 2), (256, 256, 1),
              (256, 512, 2), (512, 512, 1)]


def init_classifier_net(key, num_classes=6):
    kg = _KeyGen(key)
    params = {"stem": _init_conv_bn(kg, 3, 64, 7)}
    params["blocks"] = [_init_basic_block(kg, cin, cout, s)
                        for cin, cout, s in _BLOCK_CFG]
    bound = 1.0 / (512 ** 0.5)
    # fc weight stored pre-transposed: (512, num_classes)
    params["fc_w_t"] = jax.random.uniform(kg(), (512, num_classes), jnp.float32,
                                          -bound, bound)
    params["fc_b"] = jax.random.uniform(kg(), (num_classes,), jnp.float32,
                                        -bound, bound)
    return params


def _basic_block(x, p, stride):
    if "down" in p:
        identity = conv_bn_act(x, p["down"], stride, 0, relu=False)
    else:
        identity = x
    out = conv_bn_act(x, p["conv1"], stride, 1, relu=True)
    # BN affine + residual add + ReLU fused into one kernel.
    out = conv_bn_act(out, p["conv2"], 1, 1, relu=True, residual=identity)
    return out


@jax.jit
def classifier_net_forward(params, x_nchw):
    """ClassifierNet(net_type='resnet18', num_classes=6).forward(x)."""
    x = jnp.transpose(x_nchw.astype(jnp.float32), (0, 2, 3, 1))  # NCHW -> NHWC
    x = conv_bn_act(x, params["stem"], stride=2, padding=3, relu=True)
    x = maxpool_3x3_s2_p1(x)
    for bp, (_, _, s) in zip(params["blocks"], _BLOCK_CFG):
        x = _basic_block(x, bp, s)
    x = global_avg_pool(x)                                        # (N, 512)
    return pallas_linear(x, params["fc_w_t"], params["fc_b"])     # (N, 6)


# ----------------------------------------------------------------------------
# main
# ----------------------------------------------------------------------------
if __name__ == "__main__":
    key = jax.random.PRNGKey(0)
    pkey, xkey = jax.random.split(key)
    params = init_classifier_net(pkey, num_classes=6)
    # Small spatial size; ResNet-18 downsampling still works (32 -> 1x1 at layer4).
    x = jax.random.normal(xkey, (2, 3, 32, 32), jnp.float32)      # NCHW input
    logits = classifier_net_forward(params, x)
    logits = jax.block_until_ready(logits)
    assert logits.shape == (2, 6) and logits.dtype == jnp.float32
    assert bool(jnp.all(jnp.isfinite(logits)))
    print("KERNEL_OK")
</pallas_src>

<mosaic_0001>
module attributes {stable_mosaic.version = 11 : i64} {
  func.func @_conv_matmul_kernel(%arg0: i32, %arg1: i32, %arg2: i32, %arg3: memref<256x147xbf16, #tpu.memory_space<vmem>>, %arg4: memref<147x64xbf16, #tpu.memory_space<vmem>>, %arg5: memref<256x64xf32, #tpu.memory_space<vmem>>, %arg6: memref<1x1x64xf32, #tpu.memory_space<vmem>>, %arg7: memref<1x1x64xf32, #tpu.memory_space<vmem>>, %arg8: memref<256x64xf32, #tpu.memory_space<vmem>>) attributes {dimension_semantics = [#tpu.dimension_semantics<parallel>, #tpu.dimension_semantics<parallel>, #tpu.dimension_semantics<arbitrary>], iteration_bounds = array<i64: 2, 1, 1>, scalar_prefetch = 0 : i64, scratch_operands = 1 : i64, tpu.core_type = #tpu.core_type<tc>, window_params = [{transform_indices = @transform_0, window_bounds = array<i64: 256, 147>}, {transform_indices = @transform_1, window_bounds = array<i64: 147, 64>}, {transform_indices = @transform_2, window_bounds = array<i64: 256, 64>}, {transform_indices = @transform_3, window_bounds = array<i64: 1, 1, 64>}, {transform_indices = @transform_4, window_bounds = array<i64: 1, 1, 64>}]} {
    %c0_i32 = arith.constant 0 : i32
    %0 = arith.cmpi eq, %arg2, %c0_i32 : i32
    %1 = arith.extui %0 : i1 to i32
    %c0_i32_0 = arith.constant 0 : i32
    %2 = arith.cmpi ne, %1, %c0_i32_0 : i32
    scf.if %2 {
      %cst_10 = arith.constant 0.000000e+00 : f32
      %12 = vector.broadcast %cst_10 : f32 to vector<256x64xf32>
      %c0_11 = arith.constant 0 : index
      %c0_12 = arith.constant 0 : index
      %13 = vector.load %arg8[%c0_11, %c0_12] : memref<256x64xf32, #tpu.memory_space<vmem>>, vector<256x64xf32>
      tpu.vector_store %arg8[%c0_11, %c0_12], %12 {strides = array<i32>} : memref<256x64xf32, #tpu.memory_space<vmem>>, vector<256x64xf32>,
    } else {
    }
    %c0 = arith.constant 0 : index
    %c0_1 = arith.constant 0 : index
    %3 = vector.load %arg8[%c0, %c0_1] : memref<256x64xf32, #tpu.memory_space<vmem>>, vector<256x64xf32>
    %c0_2 = arith.constant 0 : index
    %c0_3 = arith.constant 0 : index
    %4 = vector.load %arg3[%c0_2, %c0_3] : memref<256x147xbf16, #tpu.memory_space<vmem>>, vector<256x147xbf16>
    %c0_4 = arith.constant 0 : index
    %c0_5 = arith.constant 0 : index
    %5 = vector.load %arg4[%c0_4, %c0_5] : memref<147x64xbf16, #tpu.memory_space<vmem>>, vector<147x64xbf16>
    %cst = arith.constant dense<0.000000e+00> : vector<256x64xf32>
    %6 = tpu.matmul %4, %5, %cst {dimension_numbers = #tpu.dot_dimension_numbers<[1], [0], [0], [1], [0, 0, 1, 1], [], []>} : vector<256x147xbf16>, vector<147x64xbf16>, vector<256x64xf32> -> vector<256x64xf32>
    %7 = arith.addf %3, %6 : vector<256x64xf32>
    %c0_6 = arith.constant 0 : index
    %c0_7 = arith.constant 0 : index
    %8 = vector.load %arg8[%c0_6, %c0_7] : memref<256x64xf32, #tpu.memory_space<vmem>>, vector<256x64xf32>
    tpu.vector_store %arg8[%c0_6, %c0_7], %7 {strides = array<i32>} : memref<256x64xf32, #tpu.memory_space<vmem>>, vector<256x64xf32>,
    %c0_i32_8 = arith.constant 0 : i32
    %9 = arith.cmpi eq, %arg2, %c0_i32_8 : i32
    %10 = arith.extui %9 : i1 to i32
    %c0_i32_9 = arith.constant 0 : i32
    %11 = arith.cmpi ne, %10, %c0_i32_9 : i32
    scf.if %11 {
      %c0_10 = arith.constant 0 : index
      %c0_11 = arith.constant 0 : index
      %12 = vector.load %arg8[%c0_10, %c0_11] : memref<256x64xf32, #tpu.memory_space<vmem>>, vector<256x64xf32>
      %c0_12 = arith.constant 0 : index
      %c0_13 = arith.constant 0 : index
      %13 = vector.load %arg5[%c0_12, %c0_13] : memref<256x64xf32, #tpu.memory_space<vmem>>, vector<256x64xf32>
      tpu.vector_store %arg5[%c0_12, %c0_13], %12 {strides = array<i32>} : memref<256x64xf32, #tpu.memory_space<vmem>>, vector<256x64xf32>,
      %cst_14 = arith.constant dense<0.000000e+00> : vector<64xf32>
      %14 = vector.multi_reduction <add>, %12, %cst_14 [0] : vector<256x64xf32> to vector<64xf32>
      %15 = vector.shape_cast %14 : vector<64xf32> to vector<1x64xf32>
      %16 = vector.shape_cast %15 : vector<1x64xf32> to vector<1x1x64xf32>
      %c0_15 = arith.constant 0 : index
      %c0_16 = arith.constant 0 : index
      %c0_17 = arith.constant 0 : index
      %17 = vector.load %arg6[%c0_15, %c0_16, %c0_17] : memref<1x1x64xf32, #tpu.memory_space<vmem>>, vector<1x1x64xf32>
      tpu.vector_store %arg6[%c0_15, %c0_16, %c0_17], %16 {strides = array<i32>} : memref<1x1x64xf32, #tpu.memory_space<vmem>>, vector<1x1x64xf32>,
      %18 = arith.mulf %12, %12 : vector<256x64xf32>
      %cst_18 = arith.constant dense<0.000000e+00> : vector<64xf32>
      %19 = vector.multi_reduction <add>, %18, %cst_18 [0] : vector<256x64xf32> to vector<64xf32>
      %20 = vector.shape_cast %19 : vector<64xf32> to vector<1x64xf32>
      %21 = vector.shape_cast %20 : vector<1x64xf32> to vector<1x1x64xf32>
      %c0_19 = arith.constant 0 : index
      %c0_20 = arith.constant 0 : index
      %c0_21 = arith.constant 0 : index
      %22 = vector.load %arg7[%c0_19, %c0_20, %c0_21] : memref<1x1x64xf32, #tpu.memory_space<vmem>>, vector<1x1x64xf32>
      tpu.vector_store %arg7[%c0_19, %c0_20, %c0_21], %21 {strides = array<i32>} : memref<1x1x64xf32, #tpu.memory_space<vmem>>, vector<1x1x64xf32>,
    } else {
    }
    return
  }
  func.func @transform_0(%arg0: i32, %arg1: i32, %arg2: i32) -> (i32, i32) {
    %c0_i32 = arith.constant 0 : i32
    return %arg0, %arg2 : i32, i32
  }
  func.func @transform_1(%arg0: i32, %arg1: i32, %arg2: i32) -> (i32, i32) {
    %c0_i32 = arith.constant 0 : i32
    return %arg2, %arg1 : i32, i32
  }
  func.func @transform_2(%arg0: i32, %arg1: i32, %arg2: i32) -> (i32, i32) {
    %c0_i32 = arith.constant 0 : i32
    return %arg0, %arg1 : i32, i32
  }
  func.func @transform_3(%arg0: i32, %arg1: i32, %arg2: i32) -> (i32, i32, i32) {
    %c0_i32 = arith.constant 0 : i32
    %c0_i32_0 = arith.constant 0 : i32
    return %arg0, %c0_i32, %arg1 : i32, i32, i32
  }
  func.func @transform_4(%arg0: i32, %arg1: i32, %arg2: i32) -> (i32, i32, i32) {
    %c0_i32 = arith.constant 0 : i32
    %c0_i32_0 = arith.constant 0 : i32
    return %arg0, %c0_i32, %arg1 : i32, i32, i32
  }
}

module attributes {stable_mosaic.version = 11 : i64} {
  func.func @_affine_relu_kernel(%arg0: i32, %arg1: memref<512x64xf32, #tpu.memory_space<vmem>>, %arg2: memref<1x64xf32, #tpu.memory_space<vmem>>, %arg3: memref<1x64xf32, #tpu.memory_space<vmem>>, %arg4: memref<512x64xf32, #tpu.memory_space<vmem>>) attributes {dimension_semantics = [#tpu.dimension_semantics<parallel>], iteration_bounds = array<i64: 1>, scalar_prefetch = 0 : i64, scratch_operands = 0 : i64, tpu.core_type = #tpu.core_type<tc>, window_params = [{transform_indices = @transform_0, window_bounds = array<i64: 512, 64>}, {pipeline_mode = #tpu.pipeline_mode<synchronous>, transform_indices = @transform_1, window_bounds = array<i64: 1, 64>}, {pipeline_mode = #tpu.pipeline_mode<synchronous>, transform_indices = @transform_2, window_bounds = array<i64: 1, 64>}, {transform_indices = @transform_3, window_bounds = array<i64: 512, 64>}]} {
    %c0 = arith.constant 0 : index
    %c0_0 = arith.constant 0 : index
    %0 = vector.load %arg1[%c0, %c0_0] : memref<512x64xf32, #tpu.memory_space<vmem>>, vector<512x64xf32>
    %c0_1 = arith.constant 0 : index
    %c0_2 = arith.constant 0 : index
    %1 = vector.load %arg2[%c0_1, %c0_2] : memref<1x64xf32, #tpu.memory_space<vmem>>, vector<1x64xf32>
    %2 = vector.broadcast %1 : vector<1x64xf32> to vector<512x64xf32>
    %3 = arith.mulf %0, %2 : vector<512x64xf32>
    %c0_3 = arith.constant 0 : index
    %c0_4 = arith.constant 0 : index
    %4 = vector.load %arg3[%c0_3, %c0_4] : memref<1x64xf32, #tpu.memory_space<vmem>>, vector<1x64xf32>
    %5 = vector.broadcast %4 : vector<1x64xf32> to vector<512x64xf32>
    %6 = arith.addf %3, %5 : vector<512x64xf32>
    %cst = arith.constant 0.000000e+00 : f32
    %7 = vector.broadcast %cst : f32 to vector<512x64xf32>
    %8 = arith.maximumf %6, %7 : vector<512x64xf32>
    %c0_5 = arith.constant 0 : index
    %c0_6 = arith.constant 0 : index
    %9 = vector.load %arg4[%c0_5, %c0_6] : memref<512x64xf32, #tpu.memory_space<vmem>>, vector<512x64xf32>
    tpu.vector_store %arg4[%c0_5, %c0_6], %8 {strides = array<i32>} : memref<512x64xf32, #tpu.memory_space<vmem>>, vector<512x64xf32>,
    return
  }
  func.func @transform_0(%arg0: i32) -> (i32, i32) {
    %c0_i32 = arith.constant 0 : i32
    %c0_i32_0 = arith.constant 0 : i32
    return %arg0, %c0_i32 : i32, i32
  }
  func.func @transform_1(%arg0: i32) -> (i32, i32) {
    %c0_i32 = arith.constant 0 : i32
    %c0_i32_0 = arith.constant 0 : i32
    %c0_i32_1 = arith.constant 0 : i32
    return %c0_i32, %c0_i32_0 : i32, i32
  }
  func.func @transform_2(%arg0: i32) -> (i32, i32) {
    %c0_i32 = arith.constant 0 : i32
    %c0_i32_0 = arith.constant 0 : i32
    %c0_i32_1 = arith.constant 0 : i32
    return %c0_i32, %c0_i32_0 : i32, i32
  }
  func.func @transform_3(%arg0: i32) -> (i32, i32) {
    %c0_i32 = arith.constant 0 : i32
    %c0_i32_0 = arith.constant 0 : i32
    return %arg0, %c0_i32 : i32, i32
  }
}

module attributes {stable_mosaic.version = 11 : i64} {
  func.func @_maxpool9_kernel(%arg0: i32, %arg1: memref<128x64xf32, #tpu.memory_space<vmem>>, %arg2: memref<128x64xf32, #tpu.memory_space<vmem>>, %arg3: memref<128x64xf32, #tpu.memory_space<vmem>>, %arg4: memref<128x64xf32, #tpu.memory_space<vmem>>, %arg5: memref<128x64xf32, #tpu.memory_space<vmem>>, %arg6: memref<128x64xf32, #tpu.memory_space<vmem>>, %arg7: memref<128x64xf32, #tpu.memory_space<vmem>>, %arg8: memref<128x64xf32, #tpu.memory_space<vmem>>, %arg9: memref<128x64xf32, #tpu.memory_space<vmem>>, %arg10: memref<128x64xf32, #tpu.memory_space<vmem>>) attributes {dimension_semantics = [#tpu.dimension_semantics<parallel>], iteration_bounds = array<i64: 1>, scalar_prefetch = 0 : i64, scratch_operands = 0 : i64, tpu.core_type = #tpu.core_type<tc>, window_params = [{transform_indices = @transform_0, window_bounds = array<i64: 128, 64>}, {transform_indices = @transform_1, window_bounds = array<i64: 128, 64>}, {transform_indices = @transform_2, window_bounds = array<i64: 128, 64>}, {transform_indices = @transform_3, window_bounds = array<i64: 128, 64>}, {transform_indices = @transform_4, window_bounds = array<i64: 128, 64>}, {transform_indices = @transform_5, window_bounds = array<i64: 128, 64>}, {transform_indices = @transform_6, window_bounds = array<i64: 128, 64>}, {transform_indices = @transform_7, window_bounds = array<i64: 128, 64>}, {transform_indices = @transform_8, window_bounds = array<i64: 128, 64>}, {transform_indices = @transform_9, window_bounds = array<i64: 128, 64>}]} {
    %c0 = arith.constant 0 : index
    %c0_0 = arith.constant 0 : index
    %0 = vector.load %arg1[%c0, %c0_0] : memref<128x64xf32, #tpu.memory_space<vmem>>, vector<128x64xf32>
    %c0_1 = arith.constant 0 : index
    %c0_2 = arith.constant 0 : index
    %1 = vector.load %arg2[%c0_1, %c0_2] : memref<128x64xf32, #tpu.memory_space<vmem>>, vector<128x64xf32>
    %2 = arith.maximumf %0, %1 : vector<128x64xf32>
    %c0_3 = arith.constant 0 : index
    %c0_4 = arith.constant 0 : index
    %3 = vector.load %arg3[%c0_3, %c0_4] : memref<128x64xf32, #tpu.memory_space<vmem>>, vector<128x64xf32>
    %4 = arith.maximumf %2, %3 : vector<128x64xf32>
    %c0_5 = arith.constant 0 : index
    %c0_6 = arith.constant 0 : index
    %5 = vector.load %arg4[%c0_5, %c0_6] : memref<128x64xf32, #tpu.memory_space<vmem>>, vector<128x64xf32>
    %6 = arith.maximumf %4, %5 : vector<128x64xf32>
    %c0_7 = arith.constant 0 : index
    %c0_8 = arith.constant 0 : index
    %7 = vector.load %arg5[%c0_7, %c0_8] : memref<128x64xf32, #tpu.memory_space<vmem>>, vector<128x64xf32>
    %8 = arith.maximumf %6, %7 : vector<128x64xf32>
    %c0_9 = arith.constant 0 : index
    %c0_10 = arith.constant 0 : index
    %9 = vector.load %arg6[%c0_9, %c0_10] : memref<128x64xf32, #tpu.memory_space<vmem>>, vector<128x64xf32>
    %10 = arith.maximumf %8, %9 : vector<128x64xf32>
    %c0_11 = arith.constant 0 : index
    %c0_12 = arith.constant 0 : index
    %11 = vector.load %arg7[%c0_11, %c0_12] : memref<128x64xf32, #tpu.memory_space<vmem>>, vector<128x64xf32>
    %12 = arith.maximumf %10, %11 : vector<128x64xf32>
    %c0_13 = arith.constant 0 : index
    %c0_14 = arith.constant 0 : index
    %13 = vector.load %arg8[%c0_13, %c0_14] : memref<128x64xf32, #tpu.memory_space<vmem>>, vector<128x64xf32>
    %14 = arith.maximumf %12, %13 : vector<128x64xf32>
    %c0_15 = arith.constant 0 : index
    %c0_16 = arith.constant 0 : index
    %15 = vector.load %arg9[%c0_15, %c0_16] : memref<128x64xf32, #tpu.memory_space<vmem>>, vector<128x64xf32>
    %16 = arith.maximumf %14, %15 : vector<128x64xf32>
    %c0_17 = arith.constant 0 : index
    %c0_18 = arith.constant 0 : index
    %17 = vector.load %arg10[%c0_17, %c0_18] : memref<128x64xf32, #tpu.memory_space<vmem>>, vector<128x64xf32>
    tpu.vector_store %arg10[%c0_17, %c0_18], %16 {strides = array<i32>} : memref<128x64xf32, #tpu.memory_space<vmem>>, vector<128x64xf32>,
    return
  }
  func.func @transform_0(%arg0: i32) -> (i32, i32) {
    %c0_i32 = arith.constant 0 : i32
    %c0_i32_0 = arith.constant 0 : i32
    return %arg0, %c0_i32 : i32, i32
  }
  func.func @transform_1(%arg0: i32) -> (i32, i32) {
    %c0_i32 = arith.constant 0 : i32
    %c0_i32_0 = arith.constant 0 : i32
    return %arg0, %c0_i32 : i32, i32
  }
  func.func @transform_2(%arg0: i32) -> (i32, i32) {
    %c0_i32 = arith.constant 0 : i32
    %c0_i32_0 = arith.constant 0 : i32
    return %arg0, %c0_i32 : i32, i32
  }
  func.func @transform_3(%arg0: i32) -> (i32, i32) {
    %c0_i32 = arith.constant 0 : i32
    %c0_i32_0 = arith.constant 0 : i32
    return %arg0, %c0_i32 : i32, i32
  }
  func.func @transform_4(%arg0: i32) -> (i32, i32) {
    %c0_i32 = arith.constant 0 : i32
    %c0_i32_0 = arith.constant 0 : i32
    return %arg0, %c0_i32 : i32, i32
  }
  func.func @transform_5(%arg0: i32) -> (i32, i32) {
    %c0_i32 = arith.constant 0 : i32
    %c0_i32_0 = arith.constant 0 : i32
    return %arg0, %c0_i32 : i32, i32
  }
  func.func @transform_6(%arg0: i32) -> (i32, i32) {
    %c0_i32 = arith.constant 0 : i32
    %c0_i32_0 = arith.constant 0 : i32
    return %arg0, %c0_i32 : i32, i32
  }
  func.func @transform_7(%arg0: i32) -> (i32, i32) {
    %c0_i32 = arith.constant 0 : i32
    %c0_i32_0 = arith.constant 0 : i32
    return %arg0, %c0_i32 : i32, i32
  }
  func.func @transform_8(%arg0: i32) -> (i32, i32) {
    %c0_i32 = arith.constant 0 : i32
    %c0_i32_0 = arith.constant 0 : i32
    return %arg0, %c0_i32 : i32, i32
  }
  func.func @transform_9(%arg0: i32) -> (i32, i32) {
    %c0_i32 = arith.constant 0 : i32
    %c0_i32_0 = arith.constant 0 : i32
    return %arg0, %c0_i32 : i32, i32
  }
}

module attributes {stable_mosaic.version = 11 : i64} {
  func.func @_affine_relu_kernel(%arg0: i32, %arg1: memref<128x64xf32, #tpu.memory_space<vmem>>, %arg2: memref<1x64xf32, #tpu.memory_space<vmem>>, %arg3: memref<1x64xf32, #tpu.memory_space<vmem>>, %arg4: memref<128x64xf32, #tpu.memory_space<vmem>>) attributes {dimension_semantics = [#tpu.dimension_semantics<parallel>], iteration_bounds = array<i64: 1>, scalar_prefetch = 0 : i64, scratch_operands = 0 : i64, tpu.core_type = #tpu.core_type<tc>, window_params = [{transform_indices = @transform_0, window_bounds = array<i64: 128, 64>}, {pipeline_mode = #tpu.pipeline_mode<synchronous>, transform_indices = @transform_1, window_bounds = array<i64: 1, 64>}, {pipeline_mode = #tpu.pipeline_mode<synchronous>, transform_indices = @transform_2, window_bounds = array<i64: 1, 64>}, {transform_indices = @transform_3, window_bounds = array<i64: 128, 64>}]} {
    %c0 = arith.constant 0 : index
    %c0_0 = arith.constant 0 : index
    %0 = vector.load %arg1[%c0, %c0_0] : memref<128x64xf32, #tpu.memory_space<vmem>>, vector<128x64xf32>
    %c0_1 = arith.constant 0 : index
    %c0_2 = arith.constant 0 : index
    %1 = vector.load %arg2[%c0_1, %c0_2] : memref<1x64xf32, #tpu.memory_space<vmem>>, vector<1x64xf32>
    %2 = vector.broadcast %1 : vector<1x64xf32> to vector<128x64xf32>
    %3 = arith.mulf %0, %2 : vector<128x64xf32>
    %c0_3 = arith.constant 0 : index
    %c0_4 = arith.constant 0 : index
    %4 = vector.load %arg3[%c0_3, %c0_4] : memref<1x64xf32, #tpu.memory_space<vmem>>, vector<1x64xf32>
    %5 = vector.broadcast %4 : vector<1x64xf32> to vector<128x64xf32>
    %6 = arith.addf %3, %5 : vector<128x64xf32>
    %cst = arith.constant 0.000000e+00 : f32
    %7 = vector.broadcast %cst : f32 to vector<128x64xf32>
    %8 = arith.maximumf %6, %7 : vector<128x64xf32>
    %c0_5 = arith.constant 0 : index
    %c0_6 = arith.constant 0 : index
    %9 = vector.load %arg4[%c0_5, %c0_6] : memref<128x64xf32, #tpu.memory_space<vmem>>, vector<128x64xf32>
    tpu.vector_store %arg4[%c0_5, %c0_6], %8 {strides = array<i32>} : memref<128x64xf32, #tpu.memory_space<vmem>>, vector<128x64xf32>,
    return
  }
  func.func @transform_0(%arg0: i32) -> (i32, i32) {
    %c0_i32 = arith.constant 0 : i32
    %c0_i32_0 = arith.constant 0 : i32
    return %arg0, %c0_i32 : i32, i32
  }
  func.func @transform_1(%arg0: i32) -> (i32, i32) {
    %c0_i32 = arith.constant 0 : i32
    %c0_i32_0 = arith.constant 0 : i32
    %c0_i32_1 = arith.constant 0 : i32
    return %c0_i32, %c0_i32_0 : i32, i32
  }
  func.func @transform_2(%arg0: i32) -> (i32, i32) {
    %c0_i32 = arith.constant 0 : i32
    %c0_i32_0 = arith.constant 0 : i32
    %c0_i32_1 = arith.constant 0 : i32
    return %c0_i32, %c0_i32_0 : i32, i32
  }
  func.func @transform_3(%arg0: i32) -> (i32, i32) {
    %c0_i32 = arith.constant 0 : i32
    %c0_i32_0 = arith.constant 0 : i32
    return %arg0, %c0_i32 : i32, i32
  }
}

module attributes {stable_mosaic.version = 11 : i64} {
  func.func @_conv_matmul_kernel(%arg0: i32, %arg1: i32, %arg2: i32, %arg3: memref<128x576xbf16, #tpu.memory_space<vmem>>, %arg4: memref<576x64xbf16, #tpu.memory_space<vmem>>, %arg5: memref<128x64xf32, #tpu.memory_space<vmem>>, %arg6: memref<1x1x64xf32, #tpu.memory_space<vmem>>, %arg7: memref<1x1x64xf32, #tpu.memory_space<vmem>>, %arg8: memref<128x64xf32, #tpu.memory_space<vmem>>) attributes {dimension_semantics = [#tpu.dimension_semantics<parallel>, #tpu.dimension_semantics<parallel>, #tpu.dimension_semantics<arbitrary>], iteration_bounds = array<i64: 1, 1, 1>, scalar_prefetch = 0 : i64, scratch_operands = 1 : i64, tpu.core_type = #tpu.core_type<tc>, window_params = [{transform_indices = @transform_0, window_bounds = array<i64: 128, 576>}, {transform_indices = @transform_1, window_bounds = array<i64: 576, 64>}, {transform_indices = @transform_2, window_bounds = array<i64: 128, 64>}, {transform_indices = @transform_3, window_bounds = array<i64: 1, 1, 64>}, {transform_indices = @transform_4, window_bounds = array<i64: 1, 1, 64>}]} {
    %c0_i32 = arith.constant 0 : i32
    %0 = arith.cmpi eq, %arg2, %c0_i32 : i32
    %1 = arith.extui %0 : i1 to i32
    %c0_i32_0 = arith.constant 0 : i32
    %2 = arith.cmpi ne, %1, %c0_i32_0 : i32
    scf.if %2 {
      %cst_10 = arith.constant 0.000000e+00 : f32
      %12 = vector.broadcast %cst_10 : f32 to vector<128x64xf32>
      %c0_11 = arith.constant 0 : index
      %c0_12 = arith.constant 0 : index
      %13 = vector.load %arg8[%c0_11, %c0_12] : memref<128x64xf32, #tpu.memory_space<vmem>>, vector<128x64xf32>
      tpu.vector_store %arg8[%c0_11, %c0_12], %12 {strides = array<i32>} : memref<128x64xf32, #tpu.memory_space<vmem>>, vector<128x64xf32>,
    } else {
    }
    %c0 = arith.constant 0 : index
    %c0_1 = arith.constant 0 : index
    %3 = vector.load %arg8[%c0, %c0_1] : memref<128x64xf32, #tpu.memory_space<vmem>>, vector<128x64xf32>
    %c0_2 = arith.constant 0 : index
    %c0_3 = arith.constant 0 : index
    %4 = vector.load %arg3[%c0_2, %c0_3] : memref<128x576xbf16, #tpu.memory_space<vmem>>, vector<128x576xbf16>
    %c0_4 = arith.constant 0 : index
    %c0_5 = arith.constant 0 : index
    %5 = vector.load %arg4[%c0_4, %c0_5] : memref<576x64xbf16, #tpu.memory_space<vmem>>, vector<576x64xbf16>
    %cst = arith.constant dense<0.000000e+00> : vector<128x64xf32>
    %6 = tpu.matmul %4, %5, %cst {dimension_numbers = #tpu.dot_dimension_numbers<[1], [0], [0], [1], [0, 0, 1, 1], [], []>} : vector<128x576xbf16>, vector<576x64xbf16>, vector<128x64xf32> -> vector<128x64xf32>
    %7 = arith.addf %3, %6 : vector<128x64xf32>
    %c0_6 = arith.constant 0 : index
    %c0_7 = arith.constant 0 : index
    %8 = vector.load %arg8[%c0_6, %c0_7] : memref<128x64xf32, #tpu.memory_space<vmem>>, vector<128x64xf32>
    tpu.vector_store %arg8[%c0_6, %c0_7], %7 {strides = array<i32>} : memref<128x64xf32, #tpu.memory_space<vmem>>, vector<128x64xf32>,
    %c0_i32_8 = arith.constant 0 : i32
    %9 = arith.cmpi eq, %arg2, %c0_i32_8 : i32
    %10 = arith.extui %9 : i1 to i32
    %c0_i32_9 = arith.constant 0 : i32
    %11 = arith.cmpi ne, %10, %c0_i32_9 : i32
    scf.if %11 {
      %c0_10 = arith.constant 0 : index
      %c0_11 = arith.constant 0 : index
      %12 = vector.load %arg8[%c0_10, %c0_11] : memref<128x64xf32, #tpu.memory_space<vmem>>, vector<128x64xf32>
      %c0_12 = arith.constant 0 : index
      %c0_13 = arith.constant 0 : index
      %13 = vector.load %arg5[%c0_12, %c0_13] : memref<128x64xf32, #tpu.memory_space<vmem>>, vector<128x64xf32>
      tpu.vector_store %arg5[%c0_12, %c0_13], %12 {strides = array<i32>} : memref<128x64xf32, #tpu.memory_space<vmem>>, vector<128x64xf32>,
      %cst_14 = arith.constant dense<0.000000e+00> : vector<64xf32>
      %14 = vector.multi_reduction <add>, %12, %cst_14 [0] : vector<128x64xf32> to vector<64xf32>
      %15 = vector.shape_cast %14 : vector<64xf32> to vector<1x64xf32>
      %16 = vector.shape_cast %15 : vector<1x64xf32> to vector<1x1x64xf32>
      %c0_15 = arith.constant 0 : index
      %c0_16 = arith.constant 0 : index
      %c0_17 = arith.constant 0 : index
      %17 = vector.load %arg6[%c0_15, %c0_16, %c0_17] : memref<1x1x64xf32, #tpu.memory_space<vmem>>, vector<1x1x64xf32>
      tpu.vector_store %arg6[%c0_15, %c0_16, %c0_17], %16 {strides = array<i32>} : memref<1x1x64xf32, #tpu.memory_space<vmem>>, vector<1x1x64xf32>,
      %18 = arith.mulf %12, %12 : vector<128x64xf32>
      %cst_18 = arith.constant dense<0.000000e+00> : vector<64xf32>
      %19 = vector.multi_reduction <add>, %18, %cst_18 [0] : vector<128x64xf32> to vector<64xf32>
      %20 = vector.shape_cast %19 : vector<64xf32> to vector<1x64xf32>
      %21 = vector.shape_cast %20 : vector<1x64xf32> to vector<1x1x64xf32>
      %c0_19 = arith.constant 0 : index
      %c0_20 = arith.constant 0 : index
      %c0_21 = arith.constant 0 : index
      %22 = vector.load %arg7[%c0_19, %c0_20, %c0_21] : memref<1x1x64xf32, #tpu.memory_space<vmem>>, vector<1x1x64xf32>
      tpu.vector_store %arg7[%c0_19, %c0_20, %c0_21], %21 {strides = array<i32>} : memref<1x1x64xf32, #tpu.memory_space<vmem>>, vector<1x1x64xf32>,
    } else {
    }
    return
  }
  func.func @transform_0(%arg0: i32, %arg1: i32, %arg2: i32) -> (i32, i32) {
    %c0_i32 = arith.constant 0 : i32
    return %arg0, %arg2 : i32, i32
  }
  func.func @transform_1(%arg0: i32, %arg1: i32, %arg2: i32) -> (i32, i32) {
    %c0_i32 = arith.constant 0 : i32
    return %arg2, %arg1 : i32, i32
  }
  func.func @transform_2(%arg0: i32, %arg1: i32, %arg2: i32) -> (i32, i32) {
    %c0_i32 = arith.constant 0 : i32
    return %arg0, %arg1 : i32, i32
  }
  func.func @transform_3(%arg0: i32, %arg1: i32, %arg2: i32) -> (i32, i32, i32) {
    %c0_i32 = arith.constant 0 : i32
    %c0_i32_0 = arith.constant 0 : i32
    return %arg0, %c0_i32, %arg1 : i32, i32, i32
  }
  func.func @transform_4(%arg0: i32, %arg1: i32, %arg2: i32) -> (i32, i32, i32) {
    %c0_i32 = arith.constant 0 : i32
    %c0_i32_0 = arith.constant 0 : i32
    return %arg0, %c0_i32, %arg1 : i32, i32, i32
  }
}

module attributes {stable_mosaic.version = 11 : i64} {
  func.func @_affine_add_relu_kernel(%arg0: i32, %arg1: memref<128x64xf32, #tpu.memory_space<vmem>>, %arg2: memref<1x64xf32, #tpu.memory_space<vmem>>, %arg3: memref<1x64xf32, #tpu.memory_space<vmem>>, %arg4: memref<128x64xf32, #tpu.memory_space<vmem>>, %arg5: memref<128x64xf32, #tpu.memory_space<vmem>>) attributes {dimension_semantics = [#tpu.dimension_semantics<parallel>], iteration_bounds = array<i64: 1>, scalar_prefetch = 0 : i64, scratch_operands = 0 : i64, tpu.core_type = #tpu.core_type<tc>, window_params = [{transform_indices = @transform_0, window_bounds = array<i64: 128, 64>}, {pipeline_mode = #tpu.pipeline_mode<synchronous>, transform_indices = @transform_1, window_bounds = array<i64: 1, 64>}, {pipeline_mode = #tpu.pipeline_mode<synchronous>, transform_indices = @transform_2, window_bounds = array<i64: 1, 64>}, {transform_indices = @transform_3, window_bounds = array<i64: 128, 64>}, {transform_indices = @transform_4, window_bounds = array<i64: 128, 64>}]} {
    %c0 = arith.constant 0 : index
    %c0_0 = arith.constant 0 : index
    %0 = vector.load %arg1[%c0, %c0_0] : memref<128x64xf32, #tpu.memory_space<vmem>>, vector<128x64xf32>
    %c0_1 = arith.constant 0 : index
    %c0_2 = arith.constant 0 : index
    %1 = vector.load %arg2[%c0_1, %c0_2] : memref<1x64xf32, #tpu.memory_space<vmem>>, vector<1x64xf32>
    %2 = vector.broadcast %1 : vector<1x64xf32> to vector<128x64xf32>
    %3 = arith.mulf %0, %2 : vector<128x64xf32>
    %c0_3 = arith.constant 0 : index
    %c0_4 = arith.constant 0 : index
    %4 = vector.load %arg3[%c0_3, %c0_4] : memref<1x64xf32, #tpu.memory_space<vmem>>, vector<1x64xf32>
    %5 = vector.broadcast %4 : vector<1x64xf32> to vector<128x64xf32>
    %6 = arith.addf %3, %5 : vector<128x64xf32>
    %c0_5 = arith.constant 0 : index
    %c0_6 = arith.constant 0 : index
    %7 = vector.load %arg4[%c0_5, %c0_6] : memref<128x64xf32, #tpu.memory_space<vmem>>, vector<128x64xf32>
    %8 = arith.addf %6, %7 : vector<128x64xf32>
    %cst = arith.constant 0.000000e+00 : f32
    %9 = vector.broadcast %cst : f32 to vector<128x64xf32>
    %10 = arith.maximumf %8, %9 : vector<128x64xf32>
    %c0_7 = arith.constant 0 : index
    %c0_8 = arith.constant 0 : index
    %11 = vector.load %arg5[%c0_7, %c0_8] : memref<128x64xf32, #tpu.memory_space<vmem>>, vector<128x64xf32>
    tpu.vector_store %arg5[%c0_7, %c0_8], %10 {strides = array<i32>} : memref<128x64xf32, #tpu.memory_space<vmem>>, vector<128x64xf32>,
    return
  }
  func.func @transform_0(%arg0: i32) -> (i32, i32) {
    %c0_i32 = arith.constant 0 : i32
    %c0_i32_0 = arith.constant 0 : i32
    return %arg0, %c0_i32 : i32, i32
  }
  func.func @transform_1(%arg0: i32) -> (i32, i32) {
    %c0_i32 = arith.constant 0 : i32
    %c0_i32_0 = arith.constant 0 : i32
    %c0_i32_1 = arith.constant 0 : i32
    return %c0_i32, %c0_i32_0 : i32, i32
  }
  func.func @transform_2(%arg0: i32) -> (i32, i32) {
    %c0_i32 = arith.constant 0 : i32
    %c0_i32_0 = arith.constant 0 : i32
    %c0_i32_1 = arith.constant 0 : i32
    return %c0_i32, %c0_i32_0 : i32, i32
  }
  func.func @transform_3(%arg0: i32) -> (i32, i32) {
    %c0_i32 = arith.constant 0 : i32
    %c0_i32_0 = arith.constant 0 : i32
    return %arg0, %c0_i32 : i32, i32
  }
  func.func @transform_4(%arg0: i32) -> (i32, i32) {
    %c0_i32 = arith.constant 0 : i32
    %c0_i32_0 = arith.constant 0 : i32
    return %arg0, %c0_i32 : i32, i32
  }
}

module attributes {stable_mosaic.version = 11 : i64} {
  func.func @_conv_matmul_kernel(%arg0: i32, %arg1: i32, %arg2: i32, %arg3: memref<32x64xbf16, #tpu.memory_space<vmem>>, %arg4: memref<64x128xbf16, #tpu.memory_space<vmem>>, %arg5: memref<32x128xf32, #tpu.memory_space<vmem>>, %arg6: memref<1x1x128xf32, #tpu.memory_space<vmem>>, %arg7: memref<1x1x128xf32, #tpu.memory_space<vmem>>, %arg8: memref<32x128xf32, #tpu.memory_space<vmem>>) attributes {dimension_semantics = [#tpu.dimension_semantics<parallel>, #tpu.dimension_semantics<parallel>, #tpu.dimension_semantics<arbitrary>], iteration_bounds = array<i64: 1, 1, 1>, scalar_prefetch = 0 : i64, scratch_operands = 1 : i64, tpu.core_type = #tpu.core_type<tc>, window_params = [{transform_indices = @transform_0, window_bounds = array<i64: 32, 64>}, {transform_indices = @transform_1, window_bounds = array<i64: 64, 128>}, {transform_indices = @transform_2, window_bounds = array<i64: 32, 128>}, {transform_indices = @transform_3, window_bounds = array<i64: 1, 1, 128>}, {transform_indices = @transform_4, window_bounds = array<i64: 1, 1, 128>}]} {
    %c0_i32 = arith.constant 0 : i32
    %0 = arith.cmpi eq, %arg2, %c0_i32 : i32
    %1 = arith.extui %0 : i1 to i32
    %c0_i32_0 = arith.constant 0 : i32
    %2 = arith.cmpi ne, %1, %c0_i32_0 : i32
    scf.if %2 {
      %cst_10 = arith.constant 0.000000e+00 : f32
      %12 = vector.broadcast %cst_10 : f32 to vector<32x128xf32>
      %c0_11 = arith.constant 0 : index
      %c0_12 = arith.constant 0 : index
      %13 = vector.load %arg8[%c0_11, %c0_12] : memref<32x128xf32, #tpu.memory_space<vmem>>, vector<32x128xf32>
      tpu.vector_store %arg8[%c0_11, %c0_12], %12 {strides = array<i32>} : memref<32x128xf32, #tpu.memory_space<vmem>>, vector<32x128xf32>,
    } else {
    }
    %c0 = arith.constant 0 : index
    %c0_1 = arith.constant 0 : index
    %3 = vector.load %arg8[%c0, %c0_1] : memref<32x128xf32, #tpu.memory_space<vmem>>, vector<32x128xf32>
    %c0_2 = arith.constant 0 : index
    %c0_3 = arith.constant 0 : index
    %4 = vector.load %arg3[%c0_2, %c0_3] : memref<32x64xbf16, #tpu.memory_space<vmem>>, vector<32x64xbf16>
    %c0_4 = arith.constant 0 : index
    %c0_5 = arith.constant 0 : index
    %5 = vector.load %arg4[%c0_4, %c0_5] : memref<64x128xbf16, #tpu.memory_space<vmem>>, vector<64x128xbf16>
    %cst = arith.constant dense<0.000000e+00> : vector<32x128xf32>
    %6 = tpu.matmul %4, %5, %cst {dimension_numbers = #tpu.dot_dimension_numbers<[1], [0], [0], [1], [0, 0, 1, 1], [], []>} : vector<32x64xbf16>, vector<64x128xbf16>, vector<32x128xf32> -> vector<32x128xf32>
    %7 = arith.addf %3, %6 : vector<32x128xf32>
    %c0_6 = arith.constant 0 : index
    %c0_7 = arith.constant 0 : index
    %8 = vector.load %arg8[%c0_6, %c0_7] : memref<32x128xf32, #tpu.memory_space<vmem>>, vector<32x128xf32>
    tpu.vector_store %arg8[%c0_6, %c0_7], %7 {strides = array<i32>} : memref<32x128xf32, #tpu.memory_space<vmem>>, vector<32x128xf32>,
    %c0_i32_8 = arith.constant 0 : i32
    %9 = arith.cmpi eq, %arg2, %c0_i32_8 : i32
    %10 = arith.extui %9 : i1 to i32
    %c0_i32_9 = arith.constant 0 : i32
    %11 = arith.cmpi ne, %10, %c0_i32_9 : i32
    scf.if %11 {
      %c0_10 = arith.constant 0 : index
      %c0_11 = arith.constant 0 : index
      %12 = vector.load %arg8[%c0_10, %c0_11] : memref<32x128xf32, #tpu.memory_space<vmem>>, vector<32x128xf32>
      %c0_12 = arith.constant 0 : index
      %c0_13 = arith.constant 0 : index
      %13 = vector.load %arg5[%c0_12, %c0_13] : memref<32x128xf32, #tpu.memory_space<vmem>>, vector<32x128xf32>
      tpu.vector_store %arg5[%c0_12, %c0_13], %12 {strides = array<i32>} : memref<32x128xf32, #tpu.memory_space<vmem>>, vector<32x128xf32>,
      %cst_14 = arith.constant dense<0.000000e+00> : vector<128xf32>
      %14 = vector.multi_reduction <add>, %12, %cst_14 [0] : vector<32x128xf32> to vector<128xf32>
      %15 = vector.shape_cast %14 : vector<128xf32> to vector<1x128xf32>
      %16 = vector.shape_cast %15 : vector<1x128xf32> to vector<1x1x128xf32>
      %c0_15 = arith.constant 0 : index
      %c0_16 = arith.constant 0 : index
      %c0_17 = arith.constant 0 : index
      %17 = vector.load %arg6[%c0_15, %c0_16, %c0_17] : memref<1x1x128xf32, #tpu.memory_space<vmem>>, vector<1x1x128xf32>
      tpu.vector_store %arg6[%c0_15, %c0_16, %c0_17], %16 {strides = array<i32>} : memref<1x1x128xf32, #tpu.memory_space<vmem>>, vector<1x1x128xf32>,
      %18 = arith.mulf %12, %12 : vector<32x128xf32>
      %cst_18 = arith.constant dense<0.000000e+00> : vector<128xf32>
      %19 = vector.multi_reduction <add>, %18, %cst_18 [0] : vector<32x128xf32> to vector<128xf32>
      %20 = vector.shape_cast %19 : vector<128xf32> to vector<1x128xf32>
      %21 = vector.shape_cast %20 : vector<1x128xf32> to vector<1x1x128xf32>
      %c0_19 = arith.constant 0 : index
      %c0_20 = arith.constant 0 : index
      %c0_21 = arith.constant 0 : index
      %22 = vector.load %arg7[%c0_19, %c0_20, %c0_21] : memref<1x1x128xf32, #tpu.memory_space<vmem>>, vector<1x1x128xf32>
      tpu.vector_store %arg7[%c0_19, %c0_20, %c0_21], %21 {strides = array<i32>} : memref<1x1x128xf32, #tpu.memory_space<vmem>>, vector<1x1x128xf32>,
    } else {
    }
    return
  }
  func.func @transform_0(%arg0: i32, %arg1: i32, %arg2: i32) -> (i32, i32) {
    %c0_i32 = arith.constant 0 : i32
    return %arg0, %arg2 : i32, i32
  }
  func.func @transform_1(%arg0: i32, %arg1: i32, %arg2: i32) -> (i32, i32) {
    %c0_i32 = arith.constant 0 : i32
    return %arg2, %arg1 : i32, i32
  }
  func.func @transform_2(%arg0: i32, %arg1: i32, %arg2: i32) -> (i32, i32) {
    %c0_i32 = arith.constant 0 : i32
    return %arg0, %arg1 : i32, i32
  }
  func.func @transform_3(%arg0: i32, %arg1: i32, %arg2: i32) -> (i32, i32, i32) {
    %c0_i32 = arith.constant 0 : i32
    %c0_i32_0 = arith.constant 0 : i32
    return %arg0, %c0_i32, %arg1 : i32, i32, i32
  }
  func.func @transform_4(%arg0: i32, %arg1: i32, %arg2: i32) -> (i32, i32, i32) {
    %c0_i32 = arith.constant 0 : i32
    %c0_i32_0 = arith.constant 0 : i32
    return %arg0, %c0_i32, %arg1 : i32, i32, i32
  }
}

module attributes {stable_mosaic.version = 11 : i64} {
  func.func @_affine_kernel(%arg0: i32, %arg1: memref<32x128xf32, #tpu.memory_space<vmem>>, %arg2: memref<1x128xf32, #tpu.memory_space<vmem>>, %arg3: memref<1x128xf32, #tpu.memory_space<vmem>>, %arg4: memref<32x128xf32, #tpu.memory_space<vmem>>) attributes {dimension_semantics = [#tpu.dimension_semantics<parallel>], iteration_bounds = array<i64: 1>, scalar_prefetch = 0 : i64, scratch_operands = 0 : i64, tpu.core_type = #tpu.core_type<tc>, window_params = [{transform_indices = @transform_0, window_bounds = array<i64: 32, 128>}, {pipeline_mode = #tpu.pipeline_mode<synchronous>, transform_indices = @transform_1, window_bounds = array<i64: 1, 128>}, {pipeline_mode = #tpu.pipeline_mode<synchronous>, transform_indices = @transform_2, window_bounds = array<i64: 1, 128>}, {transform_indices = @transform_3, window_bounds = array<i64: 32, 128>}]} {
    %c0 = arith.constant 0 : index
    %c0_0 = arith.constant 0 : index
    %0 = vector.load %arg1[%c0, %c0_0] : memref<32x128xf32, #tpu.memory_space<vmem>>, vector<32x128xf32>
    %c0_1 = arith.constant 0 : index
    %c0_2 = arith.constant 0 : index
    %1 = vector.load %arg2[%c0_1, %c0_2] : memref<1x128xf32, #tpu.memory_space<vmem>>, vector<1x128xf32>
    %2 = vector.broadcast %1 : vector<1x128xf32> to vector<32x128xf32>
    %3 = arith.mulf %0, %2 : vector<32x128xf32>
    %c0_3 = arith.constant 0 : index
    %c0_4 = arith.constant 0 : index
    %4 = vector.load %arg3[%c0_3, %c0_4] : memref<1x128xf32, #tpu.memory_space<vmem>>, vector<1x128xf32>
    %5 = vector.broadcast %4 : vector<1x128xf32> to vector<32x128xf32>
    %6 = arith.addf %3, %5 : vector<32x128xf32>
    %c0_5 = arith.constant 0 : index
    %c0_6 = arith.constant 0 : index
    %7 = vector.load %arg4[%c0_5, %c0_6] : memref<32x128xf32, #tpu.memory_space<vmem>>, vector<32x128xf32>
    tpu.vector_store %arg4[%c0_5, %c0_6], %6 {strides = array<i32>} : memref<32x128xf32, #tpu.memory_space<vmem>>, vector<32x128xf32>,
    return
  }
  func.func @transform_0(%arg0: i32) -> (i32, i32) {
    %c0_i32 = arith.constant 0 : i32
    %c0_i32_0 = arith.constant 0 : i32
    return %arg0, %c0_i32 : i32, i32
  }
  func.func @transform_1(%arg0: i32) -> (i32, i32) {
    %c0_i32 = arith.constant 0 : i32
    %c0_i32_0 = arith.constant 0 : i32
    %c0_i32_1 = arith.constant 0 : i32
    return %c0_i32, %c0_i32_0 : i32, i32
  }
  func.func @transform_2(%arg0: i32) -> (i32, i32) {
    %c0_i32 = arith.constant 0 : i32
    %c0_i32_0 = arith.constant 0 : i32
    %c0_i32_1 = arith.constant 0 : i32
    return %c0_i32, %c0_i32_0 : i32, i32
  }
  func.func @transform_3(%arg0: i32) -> (i32, i32) {
    %c0_i32 = arith.constant 0 : i32
    %c0_i32_0 = arith.constant 0 : i32
    return %arg0, %c0_i32 : i32, i32
  }
}

module attributes {stable_mosaic.version = 11 : i64} {
  func.func @_affine_relu_kernel(%arg0: i32, %arg1: memref<32x128xf32, #tpu.memory_space<vmem>>, %arg2: memref<1x128xf32, #tpu.memory_space<vmem>>, %arg3: memref<1x128xf32, #tpu.memory_space<vmem>>, %arg4: memref<32x128xf32, #tpu.memory_space<vmem>>) attributes {dimension_semantics = [#tpu.dimension_semantics<parallel>], iteration_bounds = array<i64: 1>, scalar_prefetch = 0 : i64, scratch_operands = 0 : i64, tpu.core_type = #tpu.core_type<tc>, window_params = [{transform_indices = @transform_0, window_bounds = array<i64: 32, 128>}, {pipeline_mode = #tpu.pipeline_mode<synchronous>, transform_indices = @transform_1, window_bounds = array<i64: 1, 128>}, {pipeline_mode = #tpu.pipeline_mode<synchronous>, transform_indices = @transform_2, window_bounds = array<i64: 1, 128>}, {transform_indices = @transform_3, window_bounds = array<i64: 32, 128>}]} {
    %c0 = arith.constant 0 : index
    %c0_0 = arith.constant 0 : index
    %0 = vector.load %arg1[%c0, %c0_0] : memref<32x128xf32, #tpu.memory_space<vmem>>, vector<32x128xf32>
    %c0_1 = arith.constant 0 : index
    %c0_2 = arith.constant 0 : index
    %1 = vector.load %arg2[%c0_1, %c0_2] : memref<1x128xf32, #tpu.memory_space<vmem>>, vector<1x128xf32>
    %2 = vector.broadcast %1 : vector<1x128xf32> to vector<32x128xf32>
    %3 = arith.mulf %0, %2 : vector<32x128xf32>
    %c0_3 = arith.constant 0 : index
    %c0_4 = arith.constant 0 : index
    %4 = vector.load %arg3[%c0_3, %c0_4] : memref<1x128xf32, #tpu.memory_space<vmem>>, vector<1x128xf32>
    %5 = vector.broadcast %4 : vector<1x128xf32> to vector<32x128xf32>
    %6 = arith.addf %3, %5 : vector<32x128xf32>
    %cst = arith.constant 0.000000e+00 : f32
    %7 = vector.broadcast %cst : f32 to vector<32x128xf32>
    %8 = arith.maximumf %6, %7 : vector<32x128xf32>
    %c0_5 = arith.constant 0 : index
    %c0_6 = arith.constant 0 : index
    %9 = vector.load %arg4[%c0_5, %c0_6] : memref<32x128xf32, #tpu.memory_space<vmem>>, vector<32x128xf32>
    tpu.vector_store %arg4[%c0_5, %c0_6], %8 {strides = array<i32>} : memref<32x128xf32, #tpu.memory_space<vmem>>, vector<32x128xf32>,
    return
  }
  func.func @transform_0(%arg0: i32) -> (i32, i32) {
    %c0_i32 = arith.constant 0 : i32
    %c0_i32_0 = arith.constant 0 : i32
    return %arg0, %c0_i32 : i32, i32
  }
  func.func @transform_1(%arg0: i32) -> (i32, i32) {
    %c0_i32 = arith.constant 0 : i32
    %c0_i32_0 = arith.constant 0 : i32
    %c0_i32_1 = arith.constant 0 : i32
    return %c0_i32, %c0_i32_0 : i32, i32
  }
  func.func @transform_2(%arg0: i32) -> (i32, i32) {
    %c0_i32 = arith.constant 0 : i32
    %c0_i32_0 = arith.constant 0 : i32
    %c0_i32_1 = arith.constant 0 : i32
    return %c0_i32, %c0_i32_0 : i32, i32
  }
  func.func @transform_3(%arg0: i32) -> (i32, i32) {
    %c0_i32 = arith.constant 0 : i32
    %c0_i32_0 = arith.constant 0 : i32
    return %arg0, %c0_i32 : i32, i32
  }
}

module attributes {stable_mosaic.version = 11 : i64} {
  func.func @_conv_matmul_kernel(%arg0: i32, %arg1: i32, %arg2: i32, %arg3: memref<32x576xbf16, #tpu.memory_space<vmem>>, %arg4: memref<576x128xbf16, #tpu.memory_space<vmem>>, %arg5: memref<32x128xf32, #tpu.memory_space<vmem>>, %arg6: memref<1x1x128xf32, #tpu.memory_space<vmem>>, %arg7: memref<1x1x128xf32, #tpu.memory_space<vmem>>, %arg8: memref<32x128xf32, #tpu.memory_space<vmem>>) attributes {dimension_semantics = [#tpu.dimension_semantics<parallel>, #tpu.dimension_semantics<parallel>, #tpu.dimension_semantics<arbitrary>], iteration_bounds = array<i64: 1, 1, 1>, scalar_prefetch = 0 : i64, scratch_operands = 1 : i64, tpu.core_type = #tpu.core_type<tc>, window_params = [{transform_indices = @transform_0, window_bounds = array<i64: 32, 576>}, {transform_indices = @transform_1, window_bounds = array<i64: 576, 128>}, {transform_indices = @transform_2, window_bounds = array<i64: 32, 128>}, {transform_indices = @transform_3, window_bounds = array<i64: 1, 1, 128>}, {transform_indices = @transform_4, window_bounds = array<i64: 1, 1, 128>}]} {
    %c0_i32 = arith.constant 0 : i32
    %0 = arith.cmpi eq, %arg2, %c0_i32 : i32
    %1 = arith.extui %0 : i1 to i32
    %c0_i32_0 = arith.constant 0 : i32
    %2 = arith.cmpi ne, %1, %c0_i32_0 : i32
    scf.if %2 {
      %cst_10 = arith.constant 0.000000e+00 : f32
      %12 = vector.broadcast %cst_10 : f32 to vector<32x128xf32>
      %c0_11 = arith.constant 0 : index
      %c0_12 = arith.constant 0 : index
      %13 = vector.load %arg8[%c0_11, %c0_12] : memref<32x128xf32, #tpu.memory_space<vmem>>, vector<32x128xf32>
      tpu.vector_store %arg8[%c0_11, %c0_12], %12 {strides = array<i32>} : memref<32x128xf32, #tpu.memory_space<vmem>>, vector<32x128xf32>,
    } else {
    }
    %c0 = arith.constant 0 : index
    %c0_1 = arith.constant 0 : index
    %3 = vector.load %arg8[%c0, %c0_1] : memref<32x128xf32, #tpu.memory_space<vmem>>, vector<32x128xf32>
    %c0_2 = arith.constant 0 : index
    %c0_3 = arith.constant 0 : index
    %4 = vector.load %arg3[%c0_2, %c0_3] : memref<32x576xbf16, #tpu.memory_space<vmem>>, vector<32x576xbf16>
    %c0_4 = arith.constant 0 : index
    %c0_5 = arith.constant 0 : index
    %5 = vector.load %arg4[%c0_4, %c0_5] : memref<576x128xbf16, #tpu.memory_space<vmem>>, vector<576x128xbf16>
    %cst = arith.constant dense<0.000000e+00> : vector<32x128xf32>
    %6 = tpu.matmul %4, %5, %cst {dimension_numbers = #tpu.dot_dimension_numbers<[1], [0], [0], [1], [0, 0, 1, 1], [], []>} : vector<32x576xbf16>, vector<576x128xbf16>, vector<32x128xf32> -> vector<32x128xf32>
    %7 = arith.addf %3, %6 : vector<32x128xf32>
    %c0_6 = arith.constant 0 : index
    %c0_7 = arith.constant 0 : index
    %8 = vector.load %arg8[%c0_6, %c0_7] : memref<32x128xf32, #tpu.memory_space<vmem>>, vector<32x128xf32>
    tpu.vector_store %arg8[%c0_6, %c0_7], %7 {strides = array<i32>} : memref<32x128xf32, #tpu.memory_space<vmem>>, vector<32x128xf32>,
    %c0_i32_8 = arith.constant 0 : i32
    %9 = arith.cmpi eq, %arg2, %c0_i32_8 : i32
    %10 = arith.extui %9 : i1 to i32
    %c0_i32_9 = arith.constant 0 : i32
    %11 = arith.cmpi ne, %10, %c0_i32_9 : i32
    scf.if %11 {
      %c0_10 = arith.constant 0 : index
      %c0_11 = arith.constant 0 : index
      %12 = vector.load %arg8[%c0_10, %c0_11] : memref<32x128xf32, #tpu.memory_space<vmem>>, vector<32x128xf32>
      %c0_12 = arith.constant 0 : index
      %c0_13 = arith.constant 0 : index
      %13 = vector.load %arg5[%c0_12, %c0_13] : memref<32x128xf32, #tpu.memory_space<vmem>>, vector<32x128xf32>
      tpu.vector_store %arg5[%c0_12, %c0_13], %12 {strides = array<i32>} : memref<32x128xf32, #tpu.memory_space<vmem>>, vector<32x128xf32>,
      %cst_14 = arith.constant dense<0.000000e+00> : vector<128xf32>
      %14 = vector.multi_reduction <add>, %12, %cst_14 [0] : vector<32x128xf32> to vector<128xf32>
      %15 = vector.shape_cast %14 : vector<128xf32> to vector<1x128xf32>
      %16 = vector.shape_cast %15 : vector<1x128xf32> to vector<1x1x128xf32>
      %c0_15 = arith.constant 0 : index
      %c0_16 = arith.constant 0 : index
      %c0_17 = arith.constant 0 : index
      %17 = vector.load %arg6[%c0_15, %c0_16, %c0_17] : memref<1x1x128xf32, #tpu.memory_space<vmem>>, vector<1x1x128xf32>
      tpu.vector_store %arg6[%c0_15, %c0_16, %c0_17], %16 {strides = array<i32>} : memref<1x1x128xf32, #tpu.memory_space<vmem>>, vector<1x1x128xf32>,
      %18 = arith.mulf %12, %12 : vector<32x128xf32>
      %cst_18 = arith.constant dense<0.000000e+00> : vector<128xf32>
      %19 = vector.multi_reduction <add>, %18, %cst_18 [0] : vector<32x128xf32> to vector<128xf32>
      %20 = vector.shape_cast %19 : vector<128xf32> to vector<1x128xf32>
      %21 = vector.shape_cast %20 : vector<1x128xf32> to vector<1x1x128xf32>
      %c0_19 = arith.constant 0 : index
      %c0_20 = arith.constant 0 : index
      %c0_21 = arith.constant 0 : index
      %22 = vector.load %arg7[%c0_19, %c0_20, %c0_21] : memref<1x1x128xf32, #tpu.memory_space<vmem>>, vector<1x1x128xf32>
      tpu.vector_store %arg7[%c0_19, %c0_20, %c0_21], %21 {strides = array<i32>} : memref<1x1x128xf32, #tpu.memory_space<vmem>>, vector<1x1x128xf32>,
    } else {
    }
    return
  }
  func.func @transform_0(%arg0: i32, %arg1: i32, %arg2: i32) -> (i32, i32) {
    %c0_i32 = arith.constant 0 : i32
    return %arg0, %arg2 : i32, i32
  }
  func.func @transform_1(%arg0: i32, %arg1: i32, %arg2: i32) -> (i32, i32) {
    %c0_i32 = arith.constant 0 : i32
    return %arg2, %arg1 : i32, i32
  }
  func.func @transform_2(%arg0: i32, %arg1: i32, %arg2: i32) -> (i32, i32) {
    %c0_i32 = arith.constant 0 : i32
    return %arg0, %arg1 : i32, i32
  }
  func.func @transform_3(%arg0: i32, %arg1: i32, %arg2: i32) -> (i32, i32, i32) {
    %c0_i32 = arith.constant 0 : i32
    %c0_i32_0 = arith.constant 0 : i32
    return %arg0, %c0_i32, %arg1 : i32, i32, i32
  }
  func.func @transform_4(%arg0: i32, %arg1: i32, %arg2: i32) -> (i32, i32, i32) {
    %c0_i32 = arith.constant 0 : i32
    %c0_i32_0 = arith.constant 0 : i32
    return %arg0, %c0_i32, %arg1 : i32, i32, i32
  }
}

module attributes {stable_mosaic.version = 11 : i64} {
  func.func @_conv_matmul_kernel(%arg0: i32, %arg1: i32, %arg2: i32, %arg3: memref<32x1152xbf16, #tpu.memory_space<vmem>>, %arg4: memref<1152x128xbf16, #tpu.memory_space<vmem>>, %arg5: memref<32x128xf32, #tpu.memory_space<vmem>>, %arg6: memref<1x1x128xf32, #tpu.memory_space<vmem>>, %arg7: memref<1x1x128xf32, #tpu.memory_space<vmem>>, %arg8: memref<32x128xf32, #tpu.memory_space<vmem>>) attributes {dimension_semantics = [#tpu.dimension_semantics<parallel>, #tpu.dimension_semantics<parallel>, #tpu.dimension_semantics<arbitrary>], iteration_bounds = array<i64: 1, 1, 1>, scalar_prefetch = 0 : i64, scratch_operands = 1 : i64, tpu.core_type = #tpu.core_type<tc>, window_params = [{transform_indices = @transform_0, window_bounds = array<i64: 32, 1152>}, {transform_indices = @transform_1, window_bounds = array<i64: 1152, 128>}, {transform_indices = @transform_2, window_bounds = array<i64: 32, 128>}, {transform_indices = @transform_3, window_bounds = array<i64: 1, 1, 128>}, {transform_indices = @transform_4, window_bounds = array<i64: 1, 1, 128>}]} {
    %c0_i32 = arith.constant 0 : i32
    %0 = arith.cmpi eq, %arg2, %c0_i32 : i32
    %1 = arith.extui %0 : i1 to i32
    %c0_i32_0 = arith.constant 0 : i32
    %2 = arith.cmpi ne, %1, %c0_i32_0 : i32
    scf.if %2 {
      %cst_10 = arith.constant 0.000000e+00 : f32
      %12 = vector.broadcast %cst_10 : f32 to vector<32x128xf32>
      %c0_11 = arith.constant 0 : index
      %c0_12 = arith.constant 0 : index
      %13 = vector.load %arg8[%c0_11, %c0_12] : memref<32x128xf32, #tpu.memory_space<vmem>>, vector<32x128xf32>
      tpu.vector_store %arg8[%c0_11, %c0_12], %12 {strides = array<i32>} : memref<32x128xf32, #tpu.memory_space<vmem>>, vector<32x128xf32>,
    } else {
    }
    %c0 = arith.constant 0 : index
    %c0_1 = arith.constant 0 : index
    %3 = vector.load %arg8[%c0, %c0_1] : memref<32x128xf32, #tpu.memory_space<vmem>>, vector<32x128xf32>
    %c0_2 = arith.constant 0 : index
    %c0_3 = arith.constant 0 : index
    %4 = vector.load %arg3[%c0_2, %c0_3] : memref<32x1152xbf16, #tpu.memory_space<vmem>>, vector<32x1152xbf16>
    %c0_4 = arith.constant 0 : index
    %c0_5 = arith.constant 0 : index
    %5 = vector.load %arg4[%c0_4, %c0_5] : memref<1152x128xbf16, #tpu.memory_space<vmem>>, vector<1152x128xbf16>
    %cst = arith.constant dense<0.000000e+00> : vector<32x128xf32>
    %6 = tpu.matmul %4, %5, %cst {dimension_numbers = #tpu.dot_dimension_numbers<[1], [0], [0], [1], [0, 0, 1, 1], [], []>} : vector<32x1152xbf16>, vector<1152x128xbf16>, vector<32x128xf32> -> vector<32x128xf32>
    %7 = arith.addf %3, %6 : vector<32x128xf32>
    %c0_6 = arith.constant 0 : index
    %c0_7 = arith.constant 0 : index
    %8 = vector.load %arg8[%c0_6, %c0_7] : memref<32x128xf32, #tpu.memory_space<vmem>>, vector<32x128xf32>
    tpu.vector_store %arg8[%c0_6, %c0_7], %7 {strides = array<i32>} : memref<32x128xf32, #tpu.memory_space<vmem>>, vector<32x128xf32>,
    %c0_i32_8 = arith.constant 0 : i32
    %9 = arith.cmpi eq, %arg2, %c0_i32_8 : i32
    %10 = arith.extui %9 : i1 to i32
    %c0_i32_9 = arith.constant 0 : i32
    %11 = arith.cmpi ne, %10, %c0_i32_9 : i32
    scf.if %11 {
      %c0_10 = arith.constant 0 : index
      %c0_11 = arith.constant 0 : index
      %12 = vector.load %arg8[%c0_10, %c0_11] : memref<32x128xf32, #tpu.memory_space<vmem>>, vector<32x128xf32>
      %c0_12 = arith.constant 0 : index
      %c0_13 = arith.constant 0 : index
      %13 = vector.load %arg5[%c0_12, %c0_13] : memref<32x128xf32, #tpu.memory_space<vmem>>, vector<32x128xf32>
      tpu.vector_store %arg5[%c0_12, %c0_13], %12 {strides = array<i32>} : memref<32x128xf32, #tpu.memory_space<vmem>>, vector<32x128xf32>,
      %cst_14 = arith.constant dense<0.000000e+00> : vector<128xf32>
      %14 = vector.multi_reduction <add>, %12, %cst_14 [0] : vector<32x128xf32> to vector<128xf32>
      %15 = vector.shape_cast %14 : vector<128xf32> to vector<1x128xf32>
      %16 = vector.shape_cast %15 : vector<1x128xf32> to vector<1x1x128xf32>
      %c0_15 = arith.constant 0 : index
      %c0_16 = arith.constant 0 : index
      %c0_17 = arith.constant 0 : index
      %17 = vector.load %arg6[%c0_15, %c0_16, %c0_17] : memref<1x1x128xf32, #tpu.memory_space<vmem>>, vector<1x1x128xf32>
      tpu.vector_store %arg6[%c0_15, %c0_16, %c0_17], %16 {strides = array<i32>} : memref<1x1x128xf32, #tpu.memory_space<vmem>>, vector<1x1x128xf32>,
      %18 = arith.mulf %12, %12 : vector<32x128xf32>
      %cst_18 = arith.constant dense<0.000000e+00> : vector<128xf32>
      %19 = vector.multi_reduction <add>, %18, %cst_18 [0] : vector<32x128xf32> to vector<128xf32>
      %20 = vector.shape_cast %19 : vector<128xf32> to vector<1x128xf32>
      %21 = vector.shape_cast %20 : vector<1x128xf32> to vector<1x1x128xf32>
      %c0_19 = arith.constant 0 : index
      %c0_20 = arith.constant 0 : index
      %c0_21 = arith.constant 0 : index
      %22 = vector.load %arg7[%c0_19, %c0_20, %c0_21] : memref<1x1x128xf32, #tpu.memory_space<vmem>>, vector<1x1x128xf32>
      tpu.vector_store %arg7[%c0_19, %c0_20, %c0_21], %21 {strides = array<i32>} : memref<1x1x128xf32, #tpu.memory_space<vmem>>, vector<1x1x128xf32>,
    } else {
    }
    return
  }
  func.func @transform_0(%arg0: i32, %arg1: i32, %arg2: i32) -> (i32, i32) {
    %c0_i32 = arith.constant 0 : i32
    return %arg0, %arg2 : i32, i32
  }
  func.func @transform_1(%arg0: i32, %arg1: i32, %arg2: i32) -> (i32, i32) {
    %c0_i32 = arith.constant 0 : i32
    return %arg2, %arg1 : i32, i32
  }
  func.func @transform_2(%arg0: i32, %arg1: i32, %arg2: i32) -> (i32, i32) {
    %c0_i32 = arith.constant 0 : i32
    return %arg0, %arg1 : i32, i32
  }
  func.func @transform_3(%arg0: i32, %arg1: i32, %arg2: i32) -> (i32, i32, i32) {
    %c0_i32 = arith.constant 0 : i32
    %c0_i32_0 = arith.constant 0 : i32
    return %arg0, %c0_i32, %arg1 : i32, i32, i32
  }
  func.func @transform_4(%arg0: i32, %arg1: i32, %arg2: i32) -> (i32, i32, i32) {
    %c0_i32 = arith.constant 0 : i32
    %c0_i32_0 = arith.constant 0 : i32
    return %arg0, %c0_i32, %arg1 : i32, i32, i32
  }
}

module attributes {stable_mosaic.version = 11 : i64} {
  func.func @_affine_add_relu_kernel(%arg0: i32, %arg1: memref<32x128xf32, #tpu.memory_space<vmem>>, %arg2: memref<1x128xf32, #tpu.memory_space<vmem>>, %arg3: memref<1x128xf32, #tpu.memory_space<vmem>>, %arg4: memref<32x128xf32, #tpu.memory_space<vmem>>, %arg5: memref<32x128xf32, #tpu.memory_space<vmem>>) attributes {dimension_semantics = [#tpu.dimension_semantics<parallel>], iteration_bounds = array<i64: 1>, scalar_prefetch = 0 : i64, scratch_operands = 0 : i64, tpu.core_type = #tpu.core_type<tc>, window_params = [{transform_indices = @transform_0, window_bounds = array<i64: 32, 128>}, {pipeline_mode = #tpu.pipeline_mode<synchronous>, transform_indices = @transform_1, window_bounds = array<i64: 1, 128>}, {pipeline_mode = #tpu.pipeline_mode<synchronous>, transform_indices = @transform_2, window_bounds = array<i64: 1, 128>}, {transform_indices = @transform_3, window_bounds = array<i64: 32, 128>}, {transform_indices = @transform_4, window_bounds = array<i64: 32, 128>}]} {
    %c0 = arith.constant 0 : index
    %c0_0 = arith.constant 0 : index
    %0 = vector.load %arg1[%c0, %c0_0] : memref<32x128xf32, #tpu.memory_space<vmem>>, vector<32x128xf32>
    %c0_1 = arith.constant 0 : index
    %c0_2 = arith.constant 0 : index
    %1 = vector.load %arg2[%c0_1, %c0_2] : memref<1x128xf32, #tpu.memory_space<vmem>>, vector<1x128xf32>
    %2 = vector.broadcast %1 : vector<1x128xf32> to vector<32x128xf32>
    %3 = arith.mulf %0, %2 : vector<32x128xf32>
    %c0_3 = arith.constant 0 : index
    %c0_4 = arith.constant 0 : index
    %4 = vector.load %arg3[%c0_3, %c0_4] : memref<1x128xf32, #tpu.memory_space<vmem>>, vector<1x128xf32>
    %5 = vector.broadcast %4 : vector<1x128xf32> to vector<32x128xf32>
    %6 = arith.addf %3, %5 : vector<32x128xf32>
    %c0_5 = arith.constant 0 : index
    %c0_6 = arith.constant 0 : index
    %7 = vector.load %arg4[%c0_5, %c0_6] : memref<32x128xf32, #tpu.memory_space<vmem>>, vector<32x128xf32>
    %8 = arith.addf %6, %7 : vector<32x128xf32>
    %cst = arith.constant 0.000000e+00 : f32
    %9 = vector.broadcast %cst : f32 to vector<32x128xf32>
    %10 = arith.maximumf %8, %9 : vector<32x128xf32>
    %c0_7 = arith.constant 0 : index
    %c0_8 = arith.constant 0 : index
    %11 = vector.load %arg5[%c0_7, %c0_8] : memref<32x128xf32, #tpu.memory_space<vmem>>, vector<32x128xf32>
    tpu.vector_store %arg5[%c0_7, %c0_8], %10 {strides = array<i32>} : memref<32x128xf32, #tpu.memory_space<vmem>>, vector<32x128xf32>,
    return
  }
  func.func @transform_0(%arg0: i32) -> (i32, i32) {
    %c0_i32 = arith.constant 0 : i32
    %c0_i32_0 = arith.constant 0 : i32
    return %arg0, %c0_i32 : i32, i32
  }
  func.func @transform_1(%arg0: i32) -> (i32, i32) {
    %c0_i32 = arith.constant 0 : i32
    %c0_i32_0 = arith.constant 0 : i32
    %c0_i32_1 = arith.constant 0 : i32
    return %c0_i32, %c0_i32_0 : i32, i32
  }
  func.func @transform_2(%arg0: i32) -> (i32, i32) {
    %c0_i32 = arith.constant 0 : i32
    %c0_i32_0 = arith.constant 0 : i32
    %c0_i32_1 = arith.constant 0 : i32
    return %c0_i32, %c0_i32_0 : i32, i32
  }
  func.func @transform_3(%arg0: i32) -> (i32, i32) {
    %c0_i32 = arith.constant 0 : i32
    %c0_i32_0 = arith.constant 0 : i32
    return %arg0, %c0_i32 : i32, i32
  }
  func.func @transform_4(%arg0: i32) -> (i32, i32) {
    %c0_i32 = arith.constant 0 : i32
    %c0_i32_0 = arith.constant 0 : i32
    return %arg0, %c0_i32 : i32, i32
  }
}

module attributes {stable_mosaic.version = 11 : i64} {
  func.func @_affine_kernel(%arg0: i32, %arg1: memref<8x256xf32, #tpu.memory_space<vmem>>, %arg2: memref<1x256xf32, #tpu.memory_space<vmem>>, %arg3: memref<1x256xf32, #tpu.memory_space<vmem>>, %arg4: memref<8x256xf32, #tpu.memory_space<vmem>>) attributes {dimension_semantics = [#tpu.dimension_semantics<parallel>], iteration_bounds = array<i64: 1>, scalar_prefetch = 0 : i64, scratch_operands = 0 : i64, tpu.core_type = #tpu.core_type<tc>, window_params = [{transform_indices = @transform_0, window_bounds = array<i64: 8, 256>}, {pipeline_mode = #tpu.pipeline_mode<synchronous>, transform_indices = @transform_1, window_bounds = array<i64: 1, 256>}, {pipeline_mode = #tpu.pipeline_mode<synchronous>, transform_indices = @transform_2, window_bounds = array<i64: 1, 256>}, {transform_indices = @transform_3, window_bounds = array<i64: 8, 256>}]} {
    %c0 = arith.constant 0 : index
    %c0_0 = arith.constant 0 : index
    %0 = vector.load %arg1[%c0, %c0_0] : memref<8x256xf32, #tpu.memory_space<vmem>>, vector<8x256xf32>
    %c0_1 = arith.constant 0 : index
    %c0_2 = arith.constant 0 : index
    %1 = vector.load %arg2[%c0_1, %c0_2] : memref<1x256xf32, #tpu.memory_space<vmem>>, vector<1x256xf32>
    %2 = vector.broadcast %1 : vector<1x256xf32> to vector<8x256xf32>
    %3 = arith.mulf %0, %2 : vector<8x256xf32>
    %c0_3 = arith.constant 0 : index
    %c0_4 = arith.constant 0 : index
    %4 = vector.load %arg3[%c0_3, %c0_4] : memref<1x256xf32, #tpu.memory_space<vmem>>, vector<1x256xf32>
    %5 = vector.broadcast %4 : vector<1x256xf32> to vector<8x256xf32>
    %6 = arith.addf %3, %5 : vector<8x256xf32>
    %c0_5 = arith.constant 0 : index
    %c0_6 = arith.constant 0 : index
    %7 = vector.load %arg4[%c0_5, %c0_6] : memref<8x256xf32, #tpu.memory_space<vmem>>, vector<8x256xf32>
    tpu.vector_store %arg4[%c0_5, %c0_6], %6 {strides = array<i32>} : memref<8x256xf32, #tpu.memory_space<vmem>>, vector<8x256xf32>,
    return
  }
  func.func @transform_0(%arg0: i32) -> (i32, i32) {
    %c0_i32 = arith.constant 0 : i32
    %c0_i32_0 = arith.constant 0 : i32
    return %arg0, %c0_i32 : i32, i32
  }
  func.func @transform_1(%arg0: i32) -> (i32, i32) {
    %c0_i32 = arith.constant 0 : i32
    %c0_i32_0 = arith.constant 0 : i32
    %c0_i32_1 = arith.constant 0 : i32
    return %c0_i32, %c0_i32_0 : i32, i32
  }
  func.func @transform_2(%arg0: i32) -> (i32, i32) {
    %c0_i32 = arith.constant 0 : i32
    %c0_i32_0 = arith.constant 0 : i32
    %c0_i32_1 = arith.constant 0 : i32
    return %c0_i32, %c0_i32_0 : i32, i32
  }
  func.func @transform_3(%arg0: i32) -> (i32, i32) {
    %c0_i32 = arith.constant 0 : i32
    %c0_i32_0 = arith.constant 0 : i32
    return %arg0, %c0_i32 : i32, i32
  }
}

module attributes {stable_mosaic.version = 11 : i64} {
  func.func @_conv_matmul_kernel(%arg0: i32, %arg1: i32, %arg2: i32, %arg3: memref<8x128xbf16, #tpu.memory_space<vmem>>, %arg4: memref<128x256xbf16, #tpu.memory_space<vmem>>, %arg5: memref<8x256xf32, #tpu.memory_space<vmem>>, %arg6: memref<1x1x256xf32, #tpu.memory_space<vmem>>, %arg7: memref<1x1x256xf32, #tpu.memory_space<vmem>>, %arg8: memref<8x256xf32, #tpu.memory_space<vmem>>) attributes {dimension_semantics = [#tpu.dimension_semantics<parallel>, #tpu.dimension_semantics<parallel>, #tpu.dimension_semantics<arbitrary>], iteration_bounds = array<i64: 1, 1, 1>, scalar_prefetch = 0 : i64, scratch_operands = 1 : i64, tpu.core_type = #tpu.core_type<tc>, window_params = [{transform_indices = @transform_0, window_bounds = array<i64: 8, 128>}, {transform_indices = @transform_1, window_bounds = array<i64: 128, 256>}, {transform_indices = @transform_2, window_bounds = array<i64: 8, 256>}, {transform_indices = @transform_3, window_bounds = array<i64: 1, 1, 256>}, {transform_indices = @transform_4, window_bounds = array<i64: 1, 1, 256>}]} {
    %c0_i32 = arith.constant 0 : i32
    %0 = arith.cmpi eq, %arg2, %c0_i32 : i32
    %1 = arith.extui %0 : i1 to i32
    %c0_i32_0 = arith.constant 0 : i32
    %2 = arith.cmpi ne, %1, %c0_i32_0 : i32
    scf.if %2 {
      %cst_10 = arith.constant 0.000000e+00 : f32
      %12 = vector.broadcast %cst_10 : f32 to vector<8x256xf32>
      %c0_11 = arith.constant 0 : index
      %c0_12 = arith.constant 0 : index
      %13 = vector.load %arg8[%c0_11, %c0_12] : memref<8x256xf32, #tpu.memory_space<vmem>>, vector<8x256xf32>
      tpu.vector_store %arg8[%c0_11, %c0_12], %12 {strides = array<i32>} : memref<8x256xf32, #tpu.memory_space<vmem>>, vector<8x256xf32>,
    } else {
    }
    %c0 = arith.constant 0 : index
    %c0_1 = arith.constant 0 : index
    %3 = vector.load %arg8[%c0, %c0_1] : memref<8x256xf32, #tpu.memory_space<vmem>>, vector<8x256xf32>
    %c0_2 = arith.constant 0 : index
    %c0_3 = arith.constant 0 : index
    %4 = vector.load %arg3[%c0_2, %c0_3] : memref<8x128xbf16, #tpu.memory_space<vmem>>, vector<8x128xbf16>
    %c0_4 = arith.constant 0 : index
    %c0_5 = arith.constant 0 : index
    %5 = vector.load %arg4[%c0_4, %c0_5] : memref<128x256xbf16, #tpu.memory_space<vmem>>, vector<128x256xbf16>
    %cst = arith.constant dense<0.000000e+00> : vector<8x256xf32>
    %6 = tpu.matmul %4, %5, %cst {dimension_numbers = #tpu.dot_dimension_numbers<[1], [0], [0], [1], [0, 0, 1, 1], [], []>} : vector<8x128xbf16>, vector<128x256xbf16>, vector<8x256xf32> -> vector<8x256xf32>
    %7 = arith.addf %3, %6 : vector<8x256xf32>
    %c0_6 = arith.constant 0 : index
    %c0_7 = arith.constant 0 : index
    %8 = vector.load %arg8[%c0_6, %c0_7] : memref<8x256xf32, #tpu.memory_space<vmem>>, vector<8x256xf32>
    tpu.vector_store %arg8[%c0_6, %c0_7], %7 {strides = array<i32>} : memref<8x256xf32, #tpu.memory_space<vmem>>, vector<8x256xf32>,
    %c0_i32_8 = arith.constant 0 : i32
    %9 = arith.cmpi eq, %arg2, %c0_i32_8 : i32
    %10 = arith.extui %9 : i1 to i32
    %c0_i32_9 = arith.constant 0 : i32
    %11 = arith.cmpi ne, %10, %c0_i32_9 : i32
    scf.if %11 {
      %c0_10 = arith.constant 0 : index
      %c0_11 = arith.constant 0 : index
      %12 = vector.load %arg8[%c0_10, %c0_11] : memref<8x256xf32, #tpu.memory_space<vmem>>, vector<8x256xf32>
      %c0_12 = arith.constant 0 : index
      %c0_13 = arith.constant 0 : index
      %13 = vector.load %arg5[%c0_12, %c0_13] : memref<8x256xf32, #tpu.memory_space<vmem>>, vector<8x256xf32>
      tpu.vector_store %arg5[%c0_12, %c0_13], %12 {strides = array<i32>} : memref<8x256xf32, #tpu.memory_space<vmem>>, vector<8x256xf32>,
      %cst_14 = arith.constant dense<0.000000e+00> : vector<256xf32>
      %14 = vector.multi_reduction <add>, %12, %cst_14 [0] : vector<8x256xf32> to vector<256xf32>
      %15 = vector.shape_cast %14 : vector<256xf32> to vector<1x256xf32>
      %16 = vector.shape_cast %15 : vector<1x256xf32> to vector<1x1x256xf32>
      %c0_15 = arith.constant 0 : index
      %c0_16 = arith.constant 0 : index
      %c0_17 = arith.constant 0 : index
      %17 = vector.load %arg6[%c0_15, %c0_16, %c0_17] : memref<1x1x256xf32, #tpu.memory_space<vmem>>, vector<1x1x256xf32>
      tpu.vector_store %arg6[%c0_15, %c0_16, %c0_17], %16 {strides = array<i32>} : memref<1x1x256xf32, #tpu.memory_space<vmem>>, vector<1x1x256xf32>,
      %18 = arith.mulf %12, %12 : vector<8x256xf32>
      %cst_18 = arith.constant dense<0.000000e+00> : vector<256xf32>
      %19 = vector.multi_reduction <add>, %18, %cst_18 [0] : vector<8x256xf32> to vector<256xf32>
      %20 = vector.shape_cast %19 : vector<256xf32> to vector<1x256xf32>
      %21 = vector.shape_cast %20 : vector<1x256xf32> to vector<1x1x256xf32>
      %c0_19 = arith.constant 0 : index
      %c0_20 = arith.constant 0 : index
      %c0_21 = arith.constant 0 : index
      %22 = vector.load %arg7[%c0_19, %c0_20, %c0_21] : memref<1x1x256xf32, #tpu.memory_space<vmem>>, vector<1x1x256xf32>
      tpu.vector_store %arg7[%c0_19, %c0_20, %c0_21], %21 {strides = array<i32>} : memref<1x1x256xf32, #tpu.memory_space<vmem>>, vector<1x1x256xf32>,
    } else {
    }
    return
  }
  func.func @transform_0(%arg0: i32, %arg1: i32, %arg2: i32) -> (i32, i32) {
    %c0_i32 = arith.constant 0 : i32
    return %arg0, %arg2 : i32, i32
  }
  func.func @transform_1(%arg0: i32, %arg1: i32, %arg2: i32) -> (i32, i32) {
    %c0_i32 = arith.constant 0 : i32
    return %arg2, %arg1 : i32, i32
  }
  func.func @transform_2(%arg0: i32, %arg1: i32, %arg2: i32) -> (i32, i32) {
    %c0_i32 = arith.constant 0 : i32
    return %arg0, %arg1 : i32, i32
  }
  func.func @transform_3(%arg0: i32, %arg1: i32, %arg2: i32) -> (i32, i32, i32) {
    %c0_i32 = arith.constant 0 : i32
    %c0_i32_0 = arith.constant 0 : i32
    return %arg0, %c0_i32, %arg1 : i32, i32, i32
  }
  func.func @transform_4(%arg0: i32, %arg1: i32, %arg2: i32) -> (i32, i32, i32) {
    %c0_i32 = arith.constant 0 : i32
    %c0_i32_0 = arith.constant 0 : i32
    return %arg0, %c0_i32, %arg1 : i32, i32, i32
  }
}

module attributes {stable_mosaic.version = 11 : i64} {
  func.func @_conv_matmul_kernel(%arg0: i32, %arg1: i32, %arg2: i32, %arg3: memref<8x1152xbf16, #tpu.memory_space<vmem>>, %arg4: memref<1152x256xbf16, #tpu.memory_space<vmem>>, %arg5: memref<8x256xf32, #tpu.memory_space<vmem>>, %arg6: memref<1x1x256xf32, #tpu.memory_space<vmem>>, %arg7: memref<1x1x256xf32, #tpu.memory_space<vmem>>, %arg8: memref<8x256xf32, #tpu.memory_space<vmem>>) attributes {dimension_semantics = [#tpu.dimension_semantics<parallel>, #tpu.dimension_semantics<parallel>, #tpu.dimension_semantics<arbitrary>], iteration_bounds = array<i64: 1, 1, 1>, scalar_prefetch = 0 : i64, scratch_operands = 1 : i64, tpu.core_type = #tpu.core_type<tc>, window_params = [{transform_indices = @transform_0, window_bounds = array<i64: 8, 1152>}, {transform_indices = @transform_1, window_bounds = array<i64: 1152, 256>}, {transform_indices = @transform_2, window_bounds = array<i64: 8, 256>}, {transform_indices = @transform_3, window_bounds = array<i64: 1, 1, 256>}, {transform_indices = @transform_4, window_bounds = array<i64: 1, 1, 256>}]} {
    %c0_i32 = arith.constant 0 : i32
    %0 = arith.cmpi eq, %arg2, %c0_i32 : i32
    %1 = arith.extui %0 : i1 to i32
    %c0_i32_0 = arith.constant 0 : i32
    %2 = arith.cmpi ne, %1, %c0_i32_0 : i32
    scf.if %2 {
      %cst_10 = arith.constant 0.000000e+00 : f32
      %12 = vector.broadcast %cst_10 : f32 to vector<8x256xf32>
      %c0_11 = arith.constant 0 : index
      %c0_12 = arith.constant 0 : index
      %13 = vector.load %arg8[%c0_11, %c0_12] : memref<8x256xf32, #tpu.memory_space<vmem>>, vector<8x256xf32>
      tpu.vector_store %arg8[%c0_11, %c0_12], %12 {strides = array<i32>} : memref<8x256xf32, #tpu.memory_space<vmem>>, vector<8x256xf32>,
    } else {
    }
    %c0 = arith.constant 0 : index
    %c0_1 = arith.constant 0 : index
    %3 = vector.load %arg8[%c0, %c0_1] : memref<8x256xf32, #tpu.memory_space<vmem>>, vector<8x256xf32>
    %c0_2 = arith.constant 0 : index
    %c0_3 = arith.constant 0 : index
    %4 = vector.load %arg3[%c0_2, %c0_3] : memref<8x1152xbf16, #tpu.memory_space<vmem>>, vector<8x1152xbf16>
    %c0_4 = arith.constant 0 : index
    %c0_5 = arith.constant 0 : index
    %5 = vector.load %arg4[%c0_4, %c0_5] : memref<1152x256xbf16, #tpu.memory_space<vmem>>, vector<1152x256xbf16>
    %cst = arith.constant dense<0.000000e+00> : vector<8x256xf32>
    %6 = tpu.matmul %4, %5, %cst {dimension_numbers = #tpu.dot_dimension_numbers<[1], [0], [0], [1], [0, 0, 1, 1], [], []>} : vector<8x1152xbf16>, vector<1152x256xbf16>, vector<8x256xf32> -> vector<8x256xf32>
    %7 = arith.addf %3, %6 : vector<8x256xf32>
    %c0_6 = arith.constant 0 : index
    %c0_7 = arith.constant 0 : index
    %8 = vector.load %arg8[%c0_6, %c0_7] : memref<8x256xf32, #tpu.memory_space<vmem>>, vector<8x256xf32>
    tpu.vector_store %arg8[%c0_6, %c0_7], %7 {strides = array<i32>} : memref<8x256xf32, #tpu.memory_space<vmem>>, vector<8x256xf32>,
    %c0_i32_8 = arith.constant 0 : i32
    %9 = arith.cmpi eq, %arg2, %c0_i32_8 : i32
    %10 = arith.extui %9 : i1 to i32
    %c0_i32_9 = arith.constant 0 : i32
    %11 = arith.cmpi ne, %10, %c0_i32_9 : i32
    scf.if %11 {
      %c0_10 = arith.constant 0 : index
      %c0_11 = arith.constant 0 : index
      %12 = vector.load %arg8[%c0_10, %c0_11] : memref<8x256xf32, #tpu.memory_space<vmem>>, vector<8x256xf32>
      %c0_12 = arith.constant 0 : index
      %c0_13 = arith.constant 0 : index
      %13 = vector.load %arg5[%c0_12, %c0_13] : memref<8x256xf32, #tpu.memory_space<vmem>>, vector<8x256xf32>
      tpu.vector_store %arg5[%c0_12, %c0_13], %12 {strides = array<i32>} : memref<8x256xf32, #tpu.memory_space<vmem>>, vector<8x256xf32>,
      %cst_14 = arith.constant dense<0.000000e+00> : vector<256xf32>
      %14 = vector.multi_reduction <add>, %12, %cst_14 [0] : vector<8x256xf32> to vector<256xf32>
      %15 = vector.shape_cast %14 : vector<256xf32> to vector<1x256xf32>
      %16 = vector.shape_cast %15 : vector<1x256xf32> to vector<1x1x256xf32>
      %c0_15 = arith.constant 0 : index
      %c0_16 = arith.constant 0 : index
      %c0_17 = arith.constant 0 : index
      %17 = vector.load %arg6[%c0_15, %c0_16, %c0_17] : memref<1x1x256xf32, #tpu.memory_space<vmem>>, vector<1x1x256xf32>
      tpu.vector_store %arg6[%c0_15, %c0_16, %c0_17], %16 {strides = array<i32>} : memref<1x1x256xf32, #tpu.memory_space<vmem>>, vector<1x1x256xf32>,
      %18 = arith.mulf %12, %12 : vector<8x256xf32>
      %cst_18 = arith.constant dense<0.000000e+00> : vector<256xf32>
      %19 = vector.multi_reduction <add>, %18, %cst_18 [0] : vector<8x256xf32> to vector<256xf32>
      %20 = vector.shape_cast %19 : vector<256xf32> to vector<1x256xf32>
      %21 = vector.shape_cast %20 : vector<1x256xf32> to vector<1x1x256xf32>
      %c0_19 = arith.constant 0 : index
      %c0_20 = arith.constant 0 : index
      %c0_21 = arith.constant 0 : index
      %22 = vector.load %arg7[%c0_19, %c0_20, %c0_21] : memref<1x1x256xf32, #tpu.memory_space<vmem>>, vector<1x1x256xf32>
      tpu.vector_store %arg7[%c0_19, %c0_20, %c0_21], %21 {strides = array<i32>} : memref<1x1x256xf32, #tpu.memory_space<vmem>>, vector<1x1x256xf32>,
    } else {
    }
    return
  }
  func.func @transform_0(%arg0: i32, %arg1: i32, %arg2: i32) -> (i32, i32) {
    %c0_i32 = arith.constant 0 : i32
    return %arg0, %arg2 : i32, i32
  }
  func.func @transform_1(%arg0: i32, %arg1: i32, %arg2: i32) -> (i32, i32) {
    %c0_i32 = arith.constant 0 : i32
    return %arg2, %arg1 : i32, i32
  }
  func.func @transform_2(%arg0: i32, %arg1: i32, %arg2: i32) -> (i32, i32) {
    %c0_i32 = arith.constant 0 : i32
    return %arg0, %arg1 : i32, i32
  }
  func.func @transform_3(%arg0: i32, %arg1: i32, %arg2: i32) -> (i32, i32, i32) {
    %c0_i32 = arith.constant 0 : i32
    %c0_i32_0 = arith.constant 0 : i32
    return %arg0, %c0_i32, %arg1 : i32, i32, i32
  }
  func.func @transform_4(%arg0: i32, %arg1: i32, %arg2: i32) -> (i32, i32, i32) {
    %c0_i32 = arith.constant 0 : i32
    %c0_i32_0 = arith.constant 0 : i32
    return %arg0, %c0_i32, %arg1 : i32, i32, i32
  }
}

module attributes {stable_mosaic.version = 11 : i64} {
  func.func @_affine_relu_kernel(%arg0: i32, %arg1: memref<8x256xf32, #tpu.memory_space<vmem>>, %arg2: memref<1x256xf32, #tpu.memory_space<vmem>>, %arg3: memref<1x256xf32, #tpu.memory_space<vmem>>, %arg4: memref<8x256xf32, #tpu.memory_space<vmem>>) attributes {dimension_semantics = [#tpu.dimension_semantics<parallel>], iteration_bounds = array<i64: 1>, scalar_prefetch = 0 : i64, scratch_operands = 0 : i64, tpu.core_type = #tpu.core_type<tc>, window_params = [{transform_indices = @transform_0, window_bounds = array<i64: 8, 256>}, {pipeline_mode = #tpu.pipeline_mode<synchronous>, transform_indices = @transform_1, window_bounds = array<i64: 1, 256>}, {pipeline_mode = #tpu.pipeline_mode<synchronous>, transform_indices = @transform_2, window_bounds = array<i64: 1, 256>}, {transform_indices = @transform_3, window_bounds = array<i64: 8, 256>}]} {
    %c0 = arith.constant 0 : index
    %c0_0 = arith.constant 0 : index
    %0 = vector.load %arg1[%c0, %c0_0] : memref<8x256xf32, #tpu.memory_space<vmem>>, vector<8x256xf32>
    %c0_1 = arith.constant 0 : index
    %c0_2 = arith.constant 0 : index
    %1 = vector.load %arg2[%c0_1, %c0_2] : memref<1x256xf32, #tpu.memory_space<vmem>>, vector<1x256xf32>
    %2 = vector.broadcast %1 : vector<1x256xf32> to vector<8x256xf32>
    %3 = arith.mulf %0, %2 : vector<8x256xf32>
    %c0_3 = arith.constant 0 : index
    %c0_4 = arith.constant 0 : index
    %4 = vector.load %arg3[%c0_3, %c0_4] : memref<1x256xf32, #tpu.memory_space<vmem>>, vector<1x256xf32>
    %5 = vector.broadcast %4 : vector<1x256xf32> to vector<8x256xf32>
    %6 = arith.addf %3, %5 : vector<8x256xf32>
    %cst = arith.constant 0.000000e+00 : f32
    %7 = vector.broadcast %cst : f32 to vector<8x256xf32>
    %8 = arith.maximumf %6, %7 : vector<8x256xf32>
    %c0_5 = arith.constant 0 : index
    %c0_6 = arith.constant 0 : index
    %9 = vector.load %arg4[%c0_5, %c0_6] : memref<8x256xf32, #tpu.memory_space<vmem>>, vector<8x256xf32>
    tpu.vector_store %arg4[%c0_5, %c0_6], %8 {strides = array<i32>} : memref<8x256xf32, #tpu.memory_space<vmem>>, vector<8x256xf32>,
    return
  }
  func.func @transform_0(%arg0: i32) -> (i32, i32) {
    %c0_i32 = arith.constant 0 : i32
    %c0_i32_0 = arith.constant 0 : i32
    return %arg0, %c0_i32 : i32, i32
  }
  func.func @transform_1(%arg0: i32) -> (i32, i32) {
    %c0_i32 = arith.constant 0 : i32
    %c0_i32_0 = arith.constant 0 : i32
    %c0_i32_1 = arith.constant 0 : i32
    return %c0_i32, %c0_i32_0 : i32, i32
  }
  func.func @transform_2(%arg0: i32) -> (i32, i32) {
    %c0_i32 = arith.constant 0 : i32
    %c0_i32_0 = arith.constant 0 : i32
    %c0_i32_1 = arith.constant 0 : i32
    return %c0_i32, %c0_i32_0 : i32, i32
  }
  func.func @transform_3(%arg0: i32) -> (i32, i32) {
    %c0_i32 = arith.constant 0 : i32
    %c0_i32_0 = arith.constant 0 : i32
    return %arg0, %c0_i32 : i32, i32
  }
}

module attributes {stable_mosaic.version = 11 : i64} {
  func.func @_conv_matmul_kernel(%arg0: i32, %arg1: i32, %arg2: i32, %arg3: memref<8x256xbf16, #tpu.memory_space<vmem>>, %arg4: memref<256x256xbf16, #tpu.memory_space<vmem>>, %arg5: memref<8x256xf32, #tpu.memory_space<vmem>>, %arg6: memref<1x1x256xf32, #tpu.memory_space<vmem>>, %arg7: memref<1x1x256xf32, #tpu.memory_space<vmem>>, %arg8: memref<8x256xf32, #tpu.memory_space<vmem>>) attributes {dimension_semantics = [#tpu.dimension_semantics<parallel>, #tpu.dimension_semantics<parallel>, #tpu.dimension_semantics<arbitrary>], iteration_bounds = array<i64: 1, 1, 9>, scalar_prefetch = 0 : i64, scratch_operands = 1 : i64, tpu.core_type = #tpu.core_type<tc>, window_params = [{transform_indices = @transform_0, window_bounds = array<i64: 8, 256>}, {transform_indices = @transform_1, window_bounds = array<i64: 256, 256>}, {transform_indices = @transform_2, window_bounds = array<i64: 8, 256>}, {transform_indices = @transform_3, window_bounds = array<i64: 1, 1, 256>}, {transform_indices = @transform_4, window_bounds = array<i64: 1, 1, 256>}]} {
    %c0_i32 = arith.constant 0 : i32
    %0 = arith.cmpi eq, %arg2, %c0_i32 : i32
    %1 = arith.extui %0 : i1 to i32
    %c0_i32_0 = arith.constant 0 : i32
    %2 = arith.cmpi ne, %1, %c0_i32_0 : i32
    scf.if %2 {
      %cst_9 = arith.constant 0.000000e+00 : f32
      %12 = vector.broadcast %cst_9 : f32 to vector<8x256xf32>
      %c0_10 = arith.constant 0 : index
      %c0_11 = arith.constant 0 : index
      %13 = vector.load %arg8[%c0_10, %c0_11] : memref<8x256xf32, #tpu.memory_space<vmem>>, vector<8x256xf32>
      tpu.vector_store %arg8[%c0_10, %c0_11], %12 {strides = array<i32>} : memref<8x256xf32, #tpu.memory_space<vmem>>, vector<8x256xf32>,
    } else {
    }
    %c0 = arith.constant 0 : index
    %c0_1 = arith.constant 0 : index
    %3 = vector.load %arg8[%c0, %c0_1] : memref<8x256xf32, #tpu.memory_space<vmem>>, vector<8x256xf32>
    %c0_2 = arith.constant 0 : index
    %c0_3 = arith.constant 0 : index
    %4 = vector.load %arg3[%c0_2, %c0_3] : memref<8x256xbf16, #tpu.memory_space<vmem>>, vector<8x256xbf16>
    %c0_4 = arith.constant 0 : index
    %c0_5 = arith.constant 0 : index
    %5 = vector.load %arg4[%c0_4, %c0_5] : memref<256x256xbf16, #tpu.memory_space<vmem>>, vector<256x256xbf16>
    %cst = arith.constant dense<0.000000e+00> : vector<8x256xf32>
    %6 = tpu.matmul %4, %5, %cst {dimension_numbers = #tpu.dot_dimension_numbers<[1], [0], [0], [1], [0, 0, 1, 1], [], []>} : vector<8x256xbf16>, vector<256x256xbf16>, vector<8x256xf32> -> vector<8x256xf32>
    %7 = arith.addf %3, %6 : vector<8x256xf32>
    %c0_6 = arith.constant 0 : index
    %c0_7 = arith.constant 0 : index
    %8 = vector.load %arg8[%c0_6, %c0_7] : memref<8x256xf32, #tpu.memory_space<vmem>>, vector<8x256xf32>
    tpu.vector_store %arg8[%c0_6, %c0_7], %7 {strides = array<i32>} : memref<8x256xf32, #tpu.memory_space<vmem>>, vector<8x256xf32>,
    %c8_i32 = arith.constant 8 : i32
    %9 = arith.cmpi eq, %arg2, %c8_i32 : i32
    %10 = arith.extui %9 : i1 to i32
    %c0_i32_8 = arith.constant 0 : i32
    %11 = arith.cmpi ne, %10, %c0_i32_8 : i32
    scf.if %11 {
      %c0_9 = arith.constant 0 : index
      %c0_10 = arith.constant 0 : index
      %12 = vector.load %arg8[%c0_9, %c0_10] : memref<8x256xf32, #tpu.memory_space<vmem>>, vector<8x256xf32>
      %c0_11 = arith.constant 0 : index
      %c0_12 = arith.constant 0 : index
      %13 = vector.load %arg5[%c0_11, %c0_12] : memref<8x256xf32, #tpu.memory_space<vmem>>, vector<8x256xf32>
      tpu.vector_store %arg5[%c0_11, %c0_12], %12 {strides = array<i32>} : memref<8x256xf32, #tpu.memory_space<vmem>>, vector<8x256xf32>,
      %cst_13 = arith.constant dense<0.000000e+00> : vector<256xf32>
      %14 = vector.multi_reduction <add>, %12, %cst_13 [0] : vector<8x256xf32> to vector<256xf32>
      %15 = vector.shape_cast %14 : vector<256xf32> to vector<1x256xf32>
      %16 = vector.shape_cast %15 : vector<1x256xf32> to vector<1x1x256xf32>
      %c0_14 = arith.constant 0 : index
      %c0_15 = arith.constant 0 : index
      %c0_16 = arith.constant 0 : index
      %17 = vector.load %arg6[%c0_14, %c0_15, %c0_16] : memref<1x1x256xf32, #tpu.memory_space<vmem>>, vector<1x1x256xf32>
      tpu.vector_store %arg6[%c0_14, %c0_15, %c0_16], %16 {strides = array<i32>} : memref<1x1x256xf32, #tpu.memory_space<vmem>>, vector<1x1x256xf32>,
      %18 = arith.mulf %12, %12 : vector<8x256xf32>
      %cst_17 = arith.constant dense<0.000000e+00> : vector<256xf32>
      %19 = vector.multi_reduction <add>, %18, %cst_17 [0] : vector<8x256xf32> to vector<256xf32>
      %20 = vector.shape_cast %19 : vector<256xf32> to vector<1x256xf32>
      %21 = vector.shape_cast %20 : vector<1x256xf32> to vector<1x1x256xf32>
      %c0_18 = arith.constant 0 : index
      %c0_19 = arith.constant 0 : index
      %c0_20 = arith.constant 0 : index
      %22 = vector.load %arg7[%c0_18, %c0_19, %c0_20] : memref<1x1x256xf32, #tpu.memory_space<vmem>>, vector<1x1x256xf32>
      tpu.vector_store %arg7[%c0_18, %c0_19, %c0_20], %21 {strides = array<i32>} : memref<1x1x256xf32, #tpu.memory_space<vmem>>, vector<1x1x256xf32>,
    } else {
    }
    return
  }
  func.func @transform_0(%arg0: i32, %arg1: i32, %arg2: i32) -> (i32, i32) {
    %c0_i32 = arith.constant 0 : i32
    return %arg0, %arg2 : i32, i32
  }
  func.func @transform_1(%arg0: i32, %arg1: i32, %arg2: i32) -> (i32, i32) {
    %c0_i32 = arith.constant 0 : i32
    return %arg2, %arg1 : i32, i32
  }
  func.func @transform_2(%arg0: i32, %arg1: i32, %arg2: i32) -> (i32, i32) {
    %c0_i32 = arith.constant 0 : i32
    return %arg0, %arg1 : i32, i32
  }
  func.func @transform_3(%arg0: i32, %arg1: i32, %arg2: i32) -> (i32, i32, i32) {
    %c0_i32 = arith.constant 0 : i32
    %c0_i32_0 = arith.constant 0 : i32
    return %arg0, %c0_i32, %arg1 : i32, i32, i32
  }
  func.func @transform_4(%arg0: i32, %arg1: i32, %arg2: i32) -> (i32, i32, i32) {
    %c0_i32 = arith.constant 0 : i32
    %c0_i32_0 = arith.constant 0 : i32
    return %arg0, %c0_i32, %arg1 : i32, i32, i32
  }
}

module attributes {stable_mosaic.version = 11 : i64} {
  func.func @_affine_add_relu_kernel(%arg0: i32, %arg1: memref<8x256xf32, #tpu.memory_space<vmem>>, %arg2: memref<1x256xf32, #tpu.memory_space<vmem>>, %arg3: memref<1x256xf32, #tpu.memory_space<vmem>>, %arg4: memref<8x256xf32, #tpu.memory_space<vmem>>, %arg5: memref<8x256xf32, #tpu.memory_space<vmem>>) attributes {dimension_semantics = [#tpu.dimension_semantics<parallel>], iteration_bounds = array<i64: 1>, scalar_prefetch = 0 : i64, scratch_operands = 0 : i64, tpu.core_type = #tpu.core_type<tc>, window_params = [{transform_indices = @transform_0, window_bounds = array<i64: 8, 256>}, {pipeline_mode = #tpu.pipeline_mode<synchronous>, transform_indices = @transform_1, window_bounds = array<i64: 1, 256>}, {pipeline_mode = #tpu.pipeline_mode<synchronous>, transform_indices = @transform_2, window_bounds = array<i64: 1, 256>}, {transform_indices = @transform_3, window_bounds = array<i64: 8, 256>}, {transform_indices = @transform_4, window_bounds = array<i64: 8, 256>}]} {
    %c0 = arith.constant 0 : index
    %c0_0 = arith.constant 0 : index
    %0 = vector.load %arg1[%c0, %c0_0] : memref<8x256xf32, #tpu.memory_space<vmem>>, vector<8x256xf32>
    %c0_1 = arith.constant 0 : index
    %c0_2 = arith.constant 0 : index
    %1 = vector.load %arg2[%c0_1, %c0_2] : memref<1x256xf32, #tpu.memory_space<vmem>>, vector<1x256xf32>
    %2 = vector.broadcast %1 : vector<1x256xf32> to vector<8x256xf32>
    %3 = arith.mulf %0, %2 : vector<8x256xf32>
    %c0_3 = arith.constant 0 : index
    %c0_4 = arith.constant 0 : index
    %4 = vector.load %arg3[%c0_3, %c0_4] : memref<1x256xf32, #tpu.memory_space<vmem>>, vector<1x256xf32>
    %5 = vector.broadcast %4 : vector<1x256xf32> to vector<8x256xf32>
    %6 = arith.addf %3, %5 : vector<8x256xf32>
    %c0_5 = arith.constant 0 : index
    %c0_6 = arith.constant 0 : index
    %7 = vector.load %arg4[%c0_5, %c0_6] : memref<8x256xf32, #tpu.memory_space<vmem>>, vector<8x256xf32>
    %8 = arith.addf %6, %7 : vector<8x256xf32>
    %cst = arith.constant 0.000000e+00 : f32
    %9 = vector.broadcast %cst : f32 to vector<8x256xf32>
    %10 = arith.maximumf %8, %9 : vector<8x256xf32>
    %c0_7 = arith.constant 0 : index
    %c0_8 = arith.constant 0 : index
    %11 = vector.load %arg5[%c0_7, %c0_8] : memref<8x256xf32, #tpu.memory_space<vmem>>, vector<8x256xf32>
    tpu.vector_store %arg5[%c0_7, %c0_8], %10 {strides = array<i32>} : memref<8x256xf32, #tpu.memory_space<vmem>>, vector<8x256xf32>,
    return
  }
  func.func @transform_0(%arg0: i32) -> (i32, i32) {
    %c0_i32 = arith.constant 0 : i32
    %c0_i32_0 = arith.constant 0 : i32
    return %arg0, %c0_i32 : i32, i32
  }
  func.func @transform_1(%arg0: i32) -> (i32, i32) {
    %c0_i32 = arith.constant 0 : i32
    %c0_i32_0 = arith.constant 0 : i32
    %c0_i32_1 = arith.constant 0 : i32
    return %c0_i32, %c0_i32_0 : i32, i32
  }
  func.func @transform_2(%arg0: i32) -> (i32, i32) {
    %c0_i32 = arith.constant 0 : i32
    %c0_i32_0 = arith.constant 0 : i32
    %c0_i32_1 = arith.constant 0 : i32
    return %c0_i32, %c0_i32_0 : i32, i32
  }
  func.func @transform_3(%arg0: i32) -> (i32, i32) {
    %c0_i32 = arith.constant 0 : i32
    %c0_i32_0 = arith.constant 0 : i32
    return %arg0, %c0_i32 : i32, i32
  }
  func.func @transform_4(%arg0: i32) -> (i32, i32) {
    %c0_i32 = arith.constant 0 : i32
    %c0_i32_0 = arith.constant 0 : i32
    return %arg0, %c0_i32 : i32, i32
  }
}

module attributes {stable_mosaic.version = 11 : i64} {
  func.func @_conv_matmul_kernel(%arg0: i32, %arg1: i32, %arg2: i32, %arg3: memref<2x256xbf16, #tpu.memory_space<vmem>>, %arg4: memref<256x256xbf16, #tpu.memory_space<vmem>>, %arg5: memref<2x256xf32, #tpu.memory_space<vmem>>, %arg6: memref<1x1x256xf32, #tpu.memory_space<vmem>>, %arg7: memref<1x1x256xf32, #tpu.memory_space<vmem>>, %arg8: memref<2x256xf32, #tpu.memory_space<vmem>>) attributes {dimension_semantics = [#tpu.dimension_semantics<parallel>, #tpu.dimension_semantics<parallel>, #tpu.dimension_semantics<arbitrary>], iteration_bounds = array<i64: 1, 2, 1>, scalar_prefetch = 0 : i64, scratch_operands = 1 : i64, tpu.core_type = #tpu.core_type<tc>, window_params = [{transform_indices = @transform_0, window_bounds = array<i64: 2, 256>}, {transform_indices = @transform_1, window_bounds = array<i64: 256, 256>}, {transform_indices = @transform_2, window_bounds = array<i64: 2, 256>}, {transform_indices = @transform_3, window_bounds = array<i64: 1, 1, 256>}, {transform_indices = @transform_4, window_bounds = array<i64: 1, 1, 256>}]} {
    %c0_i32 = arith.constant 0 : i32
    %0 = arith.cmpi eq, %arg2, %c0_i32 : i32
    %1 = arith.extui %0 : i1 to i32
    %c0_i32_0 = arith.constant 0 : i32
    %2 = arith.cmpi ne, %1, %c0_i32_0 : i32
    scf.if %2 {
      %cst_10 = arith.constant 0.000000e+00 : f32
      %12 = vector.broadcast %cst_10 : f32 to vector<2x256xf32>
      %c0_11 = arith.constant 0 : index
      %c0_12 = arith.constant 0 : index
      %13 = vector.load %arg8[%c0_11, %c0_12] : memref<2x256xf32, #tpu.memory_space<vmem>>, vector<2x256xf32>
      tpu.vector_store %arg8[%c0_11, %c0_12], %12 {strides = array<i32>} : memref<2x256xf32, #tpu.memory_space<vmem>>, vector<2x256xf32>,
    } else {
    }
    %c0 = arith.constant 0 : index
    %c0_1 = arith.constant 0 : index
    %3 = vector.load %arg8[%c0, %c0_1] : memref<2x256xf32, #tpu.memory_space<vmem>>, vector<2x256xf32>
    %c0_2 = arith.constant 0 : index
    %c0_3 = arith.constant 0 : index
    %4 = vector.load %arg3[%c0_2, %c0_3] : memref<2x256xbf16, #tpu.memory_space<vmem>>, vector<2x256xbf16>
    %c0_4 = arith.constant 0 : index
    %c0_5 = arith.constant 0 : index
    %5 = vector.load %arg4[%c0_4, %c0_5] : memref<256x256xbf16, #tpu.memory_space<vmem>>, vector<256x256xbf16>
    %cst = arith.constant dense<0.000000e+00> : vector<2x256xf32>
    %6 = tpu.matmul %4, %5, %cst {dimension_numbers = #tpu.dot_dimension_numbers<[1], [0], [0], [1], [0, 0, 1, 1], [], []>} : vector<2x256xbf16>, vector<256x256xbf16>, vector<2x256xf32> -> vector<2x256xf32>
    %7 = arith.addf %3, %6 : vector<2x256xf32>
    %c0_6 = arith.constant 0 : index
    %c0_7 = arith.constant 0 : index
    %8 = vector.load %arg8[%c0_6, %c0_7] : memref<2x256xf32, #tpu.memory_space<vmem>>, vector<2x256xf32>
    tpu.vector_store %arg8[%c0_6, %c0_7], %7 {strides = array<i32>} : memref<2x256xf32, #tpu.memory_space<vmem>>, vector<2x256xf32>,
    %c0_i32_8 = arith.constant 0 : i32
    %9 = arith.cmpi eq, %arg2, %c0_i32_8 : i32
    %10 = arith.extui %9 : i1 to i32
    %c0_i32_9 = arith.constant 0 : i32
    %11 = arith.cmpi ne, %10, %c0_i32_9 : i32
    scf.if %11 {
      %c0_10 = arith.constant 0 : index
      %c0_11 = arith.constant 0 : index
      %12 = vector.load %arg8[%c0_10, %c0_11] : memref<2x256xf32, #tpu.memory_space<vmem>>, vector<2x256xf32>
      %c0_12 = arith.constant 0 : index
      %c0_13 = arith.constant 0 : index
      %13 = vector.load %arg5[%c0_12, %c0_13] : memref<2x256xf32, #tpu.memory_space<vmem>>, vector<2x256xf32>
      tpu.vector_store %arg5[%c0_12, %c0_13], %12 {strides = array<i32>} : memref<2x256xf32, #tpu.memory_space<vmem>>, vector<2x256xf32>,
      %cst_14 = arith.constant dense<0.000000e+00> : vector<256xf32>
      %14 = vector.multi_reduction <add>, %12, %cst_14 [0] : vector<2x256xf32> to vector<256xf32>
      %15 = vector.shape_cast %14 : vector<256xf32> to vector<1x256xf32>
      %16 = vector.shape_cast %15 : vector<1x256xf32> to vector<1x1x256xf32>
      %c0_15 = arith.constant 0 : index
      %c0_16 = arith.constant 0 : index
      %c0_17 = arith.constant 0 : index
      %17 = vector.load %arg6[%c0_15, %c0_16, %c0_17] : memref<1x1x256xf32, #tpu.memory_space<vmem>>, vector<1x1x256xf32>
      tpu.vector_store %arg6[%c0_15, %c0_16, %c0_17], %16 {strides = array<i32>} : memref<1x1x256xf32, #tpu.memory_space<vmem>>, vector<1x1x256xf32>,
      %18 = arith.mulf %12, %12 : vector<2x256xf32>
      %cst_18 = arith.constant dense<0.000000e+00> : vector<256xf32>
      %19 = vector.multi_reduction <add>, %18, %cst_18 [0] : vector<2x256xf32> to vector<256xf32>
      %20 = vector.shape_cast %19 : vector<256xf32> to vector<1x256xf32>
      %21 = vector.shape_cast %20 : vector<1x256xf32> to vector<1x1x256xf32>
      %c0_19 = arith.constant 0 : index
      %c0_20 = arith.constant 0 : index
      %c0_21 = arith.constant 0 : index
      %22 = vector.load %arg7[%c0_19, %c0_20, %c0_21] : memref<1x1x256xf32, #tpu.memory_space<vmem>>, vector<1x1x256xf32>
      tpu.vector_store %arg7[%c0_19, %c0_20, %c0_21], %21 {strides = array<i32>} : memref<1x1x256xf32, #tpu.memory_space<vmem>>, vector<1x1x256xf32>,
    } else {
    }
    return
  }
  func.func @transform_0(%arg0: i32, %arg1: i32, %arg2: i32) -> (i32, i32) {
    %c0_i32 = arith.constant 0 : i32
    return %arg0, %arg2 : i32, i32
  }
  func.func @transform_1(%arg0: i32, %arg1: i32, %arg2: i32) -> (i32, i32) {
    %c0_i32 = arith.constant 0 : i32
    return %arg2, %arg1 : i32, i32
  }
  func.func @transform_2(%arg0: i32, %arg1: i32, %arg2: i32) -> (i32, i32) {
    %c0_i32 = arith.constant 0 : i32
    return %arg0, %arg1 : i32, i32
  }
  func.func @transform_3(%arg0: i32, %arg1: i32, %arg2: i32) -> (i32, i32, i32) {
    %c0_i32 = arith.constant 0 : i32
    %c0_i32_0 = arith.constant 0 : i32
    return %arg0, %c0_i32, %arg1 : i32, i32, i32
  }
  func.func @transform_4(%arg0: i32, %arg1: i32, %arg2: i32) -> (i32, i32, i32) {
    %c0_i32 = arith.constant 0 : i32
    %c0_i32_0 = arith.constant 0 : i32
    return %arg0, %c0_i32, %arg1 : i32, i32, i32
  }
}

module attributes {stable_mosaic.version = 11 : i64} {
  func.func @_affine_kernel(%arg0: i32, %arg1: memref<2x512xf32, #tpu.memory_space<vmem>>, %arg2: memref<1x512xf32, #tpu.memory_space<vmem>>, %arg3: memref<1x512xf32, #tpu.memory_space<vmem>>, %arg4: memref<2x512xf32, #tpu.memory_space<vmem>>) attributes {dimension_semantics = [#tpu.dimension_semantics<parallel>], iteration_bounds = array<i64: 1>, scalar_prefetch = 0 : i64, scratch_operands = 0 : i64, tpu.core_type = #tpu.core_type<tc>, window_params = [{transform_indices = @transform_0, window_bounds = array<i64: 2, 512>}, {pipeline_mode = #tpu.pipeline_mode<synchronous>, transform_indices = @transform_1, window_bounds = array<i64: 1, 512>}, {pipeline_mode = #tpu.pipeline_mode<synchronous>, transform_indices = @transform_2, window_bounds = array<i64: 1, 512>}, {transform_indices = @transform_3, window_bounds = array<i64: 2, 512>}]} {
    %c0 = arith.constant 0 : index
    %c0_0 = arith.constant 0 : index
    %0 = vector.load %arg1[%c0, %c0_0] : memref<2x512xf32, #tpu.memory_space<vmem>>, vector<2x512xf32>
    %c0_1 = arith.constant 0 : index
    %c0_2 = arith.constant 0 : index
    %1 = vector.load %arg2[%c0_1, %c0_2] : memref<1x512xf32, #tpu.memory_space<vmem>>, vector<1x512xf32>
    %2 = vector.broadcast %1 : vector<1x512xf32> to vector<2x512xf32>
    %3 = arith.mulf %0, %2 : vector<2x512xf32>
    %c0_3 = arith.constant 0 : index
    %c0_4 = arith.constant 0 : index
    %4 = vector.load %arg3[%c0_3, %c0_4] : memref<1x512xf32, #tpu.memory_space<vmem>>, vector<1x512xf32>
    %5 = vector.broadcast %4 : vector<1x512xf32> to vector<2x512xf32>
    %6 = arith.addf %3, %5 : vector<2x512xf32>
    %c0_5 = arith.constant 0 : index
    %c0_6 = arith.constant 0 : index
    %7 = vector.load %arg4[%c0_5, %c0_6] : memref<2x512xf32, #tpu.memory_space<vmem>>, vector<2x512xf32>
    tpu.vector_store %arg4[%c0_5, %c0_6], %6 {strides = array<i32>} : memref<2x512xf32, #tpu.memory_space<vmem>>, vector<2x512xf32>,
    return
  }
  func.func @transform_0(%arg0: i32) -> (i32, i32) {
    %c0_i32 = arith.constant 0 : i32
    %c0_i32_0 = arith.constant 0 : i32
    return %arg0, %c0_i32 : i32, i32
  }
  func.func @transform_1(%arg0: i32) -> (i32, i32) {
    %c0_i32 = arith.constant 0 : i32
    %c0_i32_0 = arith.constant 0 : i32
    %c0_i32_1 = arith.constant 0 : i32
    return %c0_i32, %c0_i32_0 : i32, i32
  }
  func.func @transform_2(%arg0: i32) -> (i32, i32) {
    %c0_i32 = arith.constant 0 : i32
    %c0_i32_0 = arith.constant 0 : i32
    %c0_i32_1 = arith.constant 0 : i32
    return %c0_i32, %c0_i32_0 : i32, i32
  }
  func.func @transform_3(%arg0: i32) -> (i32, i32) {
    %c0_i32 = arith.constant 0 : i32
    %c0_i32_0 = arith.constant 0 : i32
    return %arg0, %c0_i32 : i32, i32
  }
}

module attributes {stable_mosaic.version = 11 : i64} {
  func.func @_affine_relu_kernel(%arg0: i32, %arg1: memref<2x512xf32, #tpu.memory_space<vmem>>, %arg2: memref<1x512xf32, #tpu.memory_space<vmem>>, %arg3: memref<1x512xf32, #tpu.memory_space<vmem>>, %arg4: memref<2x512xf32, #tpu.memory_space<vmem>>) attributes {dimension_semantics = [#tpu.dimension_semantics<parallel>], iteration_bounds = array<i64: 1>, scalar_prefetch = 0 : i64, scratch_operands = 0 : i64, tpu.core_type = #tpu.core_type<tc>, window_params = [{transform_indices = @transform_0, window_bounds = array<i64: 2, 512>}, {pipeline_mode = #tpu.pipeline_mode<synchronous>, transform_indices = @transform_1, window_bounds = array<i64: 1, 512>}, {pipeline_mode = #tpu.pipeline_mode<synchronous>, transform_indices = @transform_2, window_bounds = array<i64: 1, 512>}, {transform_indices = @transform_3, window_bounds = array<i64: 2, 512>}]} {
    %c0 = arith.constant 0 : index
    %c0_0 = arith.constant 0 : index
    %0 = vector.load %arg1[%c0, %c0_0] : memref<2x512xf32, #tpu.memory_space<vmem>>, vector<2x512xf32>
    %c0_1 = arith.constant 0 : index
    %c0_2 = arith.constant 0 : index
    %1 = vector.load %arg2[%c0_1, %c0_2] : memref<1x512xf32, #tpu.memory_space<vmem>>, vector<1x512xf32>
    %2 = vector.broadcast %1 : vector<1x512xf32> to vector<2x512xf32>
    %3 = arith.mulf %0, %2 : vector<2x512xf32>
    %c0_3 = arith.constant 0 : index
    %c0_4 = arith.constant 0 : index
    %4 = vector.load %arg3[%c0_3, %c0_4] : memref<1x512xf32, #tpu.memory_space<vmem>>, vector<1x512xf32>
    %5 = vector.broadcast %4 : vector<1x512xf32> to vector<2x512xf32>
    %6 = arith.addf %3, %5 : vector<2x512xf32>
    %cst = arith.constant 0.000000e+00 : f32
    %7 = vector.broadcast %cst : f32 to vector<2x512xf32>
    %8 = arith.maximumf %6, %7 : vector<2x512xf32>
    %c0_5 = arith.constant 0 : index
    %c0_6 = arith.constant 0 : index
    %9 = vector.load %arg4[%c0_5, %c0_6] : memref<2x512xf32, #tpu.memory_space<vmem>>, vector<2x512xf32>
    tpu.vector_store %arg4[%c0_5, %c0_6], %8 {strides = array<i32>} : memref<2x512xf32, #tpu.memory_space<vmem>>, vector<2x512xf32>,
    return
  }
  func.func @transform_0(%arg0: i32) -> (i32, i32) {
    %c0_i32 = arith.constant 0 : i32
    %c0_i32_0 = arith.constant 0 : i32
    return %arg0, %c0_i32 : i32, i32
  }
  func.func @transform_1(%arg0: i32) -> (i32, i32) {
    %c0_i32 = arith.constant 0 : i32
    %c0_i32_0 = arith.constant 0 : i32
    %c0_i32_1 = arith.constant 0 : i32
    return %c0_i32, %c0_i32_0 : i32, i32
  }
  func.func @transform_2(%arg0: i32) -> (i32, i32) {
    %c0_i32 = arith.constant 0 : i32
    %c0_i32_0 = arith.constant 0 : i32
    %c0_i32_1 = arith.constant 0 : i32
    return %c0_i32, %c0_i32_0 : i32, i32
  }
  func.func @transform_3(%arg0: i32) -> (i32, i32) {
    %c0_i32 = arith.constant 0 : i32
    %c0_i32_0 = arith.constant 0 : i32
    return %arg0, %c0_i32 : i32, i32
  }
}

module attributes {stable_mosaic.version = 11 : i64} {
  func.func @_conv_matmul_kernel(%arg0: i32, %arg1: i32, %arg2: i32, %arg3: memref<2x256xbf16, #tpu.memory_space<vmem>>, %arg4: memref<256x256xbf16, #tpu.memory_space<vmem>>, %arg5: memref<2x256xf32, #tpu.memory_space<vmem>>, %arg6: memref<1x1x256xf32, #tpu.memory_space<vmem>>, %arg7: memref<1x1x256xf32, #tpu.memory_space<vmem>>, %arg8: memref<2x256xf32, #tpu.memory_space<vmem>>) attributes {dimension_semantics = [#tpu.dimension_semantics<parallel>, #tpu.dimension_semantics<parallel>, #tpu.dimension_semantics<arbitrary>], iteration_bounds = array<i64: 1, 2, 9>, scalar_prefetch = 0 : i64, scratch_operands = 1 : i64, tpu.core_type = #tpu.core_type<tc>, window_params = [{transform_indices = @transform_0, window_bounds = array<i64: 2, 256>}, {transform_indices = @transform_1, window_bounds = array<i64: 256, 256>}, {transform_indices = @transform_2, window_bounds = array<i64: 2, 256>}, {transform_indices = @transform_3, window_bounds = array<i64: 1, 1, 256>}, {transform_indices = @transform_4, window_bounds = array<i64: 1, 1, 256>}]} {
    %c0_i32 = arith.constant 0 : i32
    %0 = arith.cmpi eq, %arg2, %c0_i32 : i32
    %1 = arith.extui %0 : i1 to i32
    %c0_i32_0 = arith.constant 0 : i32
    %2 = arith.cmpi ne, %1, %c0_i32_0 : i32
    scf.if %2 {
      %cst_9 = arith.constant 0.000000e+00 : f32
      %12 = vector.broadcast %cst_9 : f32 to vector<2x256xf32>
      %c0_10 = arith.constant 0 : index
      %c0_11 = arith.constant 0 : index
      %13 = vector.load %arg8[%c0_10, %c0_11] : memref<2x256xf32, #tpu.memory_space<vmem>>, vector<2x256xf32>
      tpu.vector_store %arg8[%c0_10, %c0_11], %12 {strides = array<i32>} : memref<2x256xf32, #tpu.memory_space<vmem>>, vector<2x256xf32>,
    } else {
    }
    %c0 = arith.constant 0 : index
    %c0_1 = arith.constant 0 : index
    %3 = vector.load %arg8[%c0, %c0_1] : memref<2x256xf32, #tpu.memory_space<vmem>>, vector<2x256xf32>
    %c0_2 = arith.constant 0 : index
    %c0_3 = arith.constant 0 : index
    %4 = vector.load %arg3[%c0_2, %c0_3] : memref<2x256xbf16, #tpu.memory_space<vmem>>, vector<2x256xbf16>
    %c0_4 = arith.constant 0 : index
    %c0_5 = arith.constant 0 : index
    %5 = vector.load %arg4[%c0_4, %c0_5] : memref<256x256xbf16, #tpu.memory_space<vmem>>, vector<256x256xbf16>
    %cst = arith.constant dense<0.000000e+00> : vector<2x256xf32>
    %6 = tpu.matmul %4, %5, %cst {dimension_numbers = #tpu.dot_dimension_numbers<[1], [0], [0], [1], [0, 0, 1, 1], [], []>} : vector<2x256xbf16>, vector<256x256xbf16>, vector<2x256xf32> -> vector<2x256xf32>
    %7 = arith.addf %3, %6 : vector<2x256xf32>
    %c0_6 = arith.constant 0 : index
    %c0_7 = arith.constant 0 : index
    %8 = vector.load %arg8[%c0_6, %c0_7] : memref<2x256xf32, #tpu.memory_space<vmem>>, vector<2x256xf32>
    tpu.vector_store %arg8[%c0_6, %c0_7], %7 {strides = array<i32>} : memref<2x256xf32, #tpu.memory_space<vmem>>, vector<2x256xf32>,
    %c8_i32 = arith.constant 8 : i32
    %9 = arith.cmpi eq, %arg2, %c8_i32 : i32
    %10 = arith.extui %9 : i1 to i32
    %c0_i32_8 = arith.constant 0 : i32
    %11 = arith.cmpi ne, %10, %c0_i32_8 : i32
    scf.if %11 {
      %c0_9 = arith.constant 0 : index
      %c0_10 = arith.constant 0 : index
      %12 = vector.load %arg8[%c0_9, %c0_10] : memref<2x256xf32, #tpu.memory_space<vmem>>, vector<2x256xf32>
      %c0_11 = arith.constant 0 : index
      %c0_12 = arith.constant 0 : index
      %13 = vector.load %arg5[%c0_11, %c0_12] : memref<2x256xf32, #tpu.memory_space<vmem>>, vector<2x256xf32>
      tpu.vector_store %arg5[%c0_11, %c0_12], %12 {strides = array<i32>} : memref<2x256xf32, #tpu.memory_space<vmem>>, vector<2x256xf32>,
      %cst_13 = arith.constant dense<0.000000e+00> : vector<256xf32>
      %14 = vector.multi_reduction <add>, %12, %cst_13 [0] : vector<2x256xf32> to vector<256xf32>
      %15 = vector.shape_cast %14 : vector<256xf32> to vector<1x256xf32>
      %16 = vector.shape_cast %15 : vector<1x256xf32> to vector<1x1x256xf32>
      %c0_14 = arith.constant 0 : index
      %c0_15 = arith.constant 0 : index
      %c0_16 = arith.constant 0 : index
      %17 = vector.load %arg6[%c0_14, %c0_15, %c0_16] : memref<1x1x256xf32, #tpu.memory_space<vmem>>, vector<1x1x256xf32>
      tpu.vector_store %arg6[%c0_14, %c0_15, %c0_16], %16 {strides = array<i32>} : memref<1x1x256xf32, #tpu.memory_space<vmem>>, vector<1x1x256xf32>,
      %18 = arith.mulf %12, %12 : vector<2x256xf32>
      %cst_17 = arith.constant dense<0.000000e+00> : vector<256xf32>
      %19 = vector.multi_reduction <add>, %18, %cst_17 [0] : vector<2x256xf32> to vector<256xf32>
      %20 = vector.shape_cast %19 : vector<256xf32> to vector<1x256xf32>
      %21 = vector.shape_cast %20 : vector<1x256xf32> to vector<1x1x256xf32>
      %c0_18 = arith.constant 0 : index
      %c0_19 = arith.constant 0 : index
      %c0_20 = arith.constant 0 : index
      %22 = vector.load %arg7[%c0_18, %c0_19, %c0_20] : memref<1x1x256xf32, #tpu.memory_space<vmem>>, vector<1x1x256xf32>
      tpu.vector_store %arg7[%c0_18, %c0_19, %c0_20], %21 {strides = array<i32>} : memref<1x1x256xf32, #tpu.memory_space<vmem>>, vector<1x1x256xf32>,
    } else {
    }
    return
  }
  func.func @transform_0(%arg0: i32, %arg1: i32, %arg2: i32) -> (i32, i32) {
    %c0_i32 = arith.constant 0 : i32
    return %arg0, %arg2 : i32, i32
  }
  func.func @transform_1(%arg0: i32, %arg1: i32, %arg2: i32) -> (i32, i32) {
    %c0_i32 = arith.constant 0 : i32
    return %arg2, %arg1 : i32, i32
  }
  func.func @transform_2(%arg0: i32, %arg1: i32, %arg2: i32) -> (i32, i32) {
    %c0_i32 = arith.constant 0 : i32
    return %arg0, %arg1 : i32, i32
  }
  func.func @transform_3(%arg0: i32, %arg1: i32, %arg2: i32) -> (i32, i32, i32) {
    %c0_i32 = arith.constant 0 : i32
    %c0_i32_0 = arith.constant 0 : i32
    return %arg0, %c0_i32, %arg1 : i32, i32, i32
  }
  func.func @transform_4(%arg0: i32, %arg1: i32, %arg2: i32) -> (i32, i32, i32) {
    %c0_i32 = arith.constant 0 : i32
    %c0_i32_0 = arith.constant 0 : i32
    return %arg0, %c0_i32, %arg1 : i32, i32, i32
  }
}

module attributes {stable_mosaic.version = 11 : i64} {
  func.func @_conv_matmul_kernel(%arg0: i32, %arg1: i32, %arg2: i32, %arg3: memref<2x512xbf16, #tpu.memory_space<vmem>>, %arg4: memref<512x256xbf16, #tpu.memory_space<vmem>>, %arg5: memref<2x256xf32, #tpu.memory_space<vmem>>, %arg6: memref<1x1x256xf32, #tpu.memory_space<vmem>>, %arg7: memref<1x1x256xf32, #tpu.memory_space<vmem>>, %arg8: memref<2x256xf32, #tpu.memory_space<vmem>>) attributes {dimension_semantics = [#tpu.dimension_semantics<parallel>, #tpu.dimension_semantics<parallel>, #tpu.dimension_semantics<arbitrary>], iteration_bounds = array<i64: 1, 2, 9>, scalar_prefetch = 0 : i64, scratch_operands = 1 : i64, tpu.core_type = #tpu.core_type<tc>, window_params = [{transform_indices = @transform_0, window_bounds = array<i64: 2, 512>}, {transform_indices = @transform_1, window_bounds = array<i64: 512, 256>}, {transform_indices = @transform_2, window_bounds = array<i64: 2, 256>}, {transform_indices = @transform_3, window_bounds = array<i64: 1, 1, 256>}, {transform_indices = @transform_4, window_bounds = array<i64: 1, 1, 256>}]} {
    %c0_i32 = arith.constant 0 : i32
    %0 = arith.cmpi eq, %arg2, %c0_i32 : i32
    %1 = arith.extui %0 : i1 to i32
    %c0_i32_0 = arith.constant 0 : i32
    %2 = arith.cmpi ne, %1, %c0_i32_0 : i32
    scf.if %2 {
      %cst_9 = arith.constant 0.000000e+00 : f32
      %12 = vector.broadcast %cst_9 : f32 to vector<2x256xf32>
      %c0_10 = arith.constant 0 : index
      %c0_11 = arith.constant 0 : index
      %13 = vector.load %arg8[%c0_10, %c0_11] : memref<2x256xf32, #tpu.memory_space<vmem>>, vector<2x256xf32>
      tpu.vector_store %arg8[%c0_10, %c0_11], %12 {strides = array<i32>} : memref<2x256xf32, #tpu.memory_space<vmem>>, vector<2x256xf32>,
    } else {
    }
    %c0 = arith.constant 0 : index
    %c0_1 = arith.constant 0 : index
    %3 = vector.load %arg8[%c0, %c0_1] : memref<2x256xf32, #tpu.memory_space<vmem>>, vector<2x256xf32>
    %c0_2 = arith.constant 0 : index
    %c0_3 = arith.constant 0 : index
    %4 = vector.load %arg3[%c0_2, %c0_3] : memref<2x512xbf16, #tpu.memory_space<vmem>>, vector<2x512xbf16>
    %c0_4 = arith.constant 0 : index
    %c0_5 = arith.constant 0 : index
    %5 = vector.load %arg4[%c0_4, %c0_5] : memref<512x256xbf16, #tpu.memory_space<vmem>>, vector<512x256xbf16>
    %cst = arith.constant dense<0.000000e+00> : vector<2x256xf32>
    %6 = tpu.matmul %4, %5, %cst {dimension_numbers = #tpu.dot_dimension_numbers<[1], [0], [0], [1], [0, 0, 1, 1], [], []>} : vector<2x512xbf16>, vector<512x256xbf16>, vector<2x256xf32> -> vector<2x256xf32>
    %7 = arith.addf %3, %6 : vector<2x256xf32>
    %c0_6 = arith.constant 0 : index
    %c0_7 = arith.constant 0 : index
    %8 = vector.load %arg8[%c0_6, %c0_7] : memref<2x256xf32, #tpu.memory_space<vmem>>, vector<2x256xf32>
    tpu.vector_store %arg8[%c0_6, %c0_7], %7 {strides = array<i32>} : memref<2x256xf32, #tpu.memory_space<vmem>>, vector<2x256xf32>,
    %c8_i32 = arith.constant 8 : i32
    %9 = arith.cmpi eq, %arg2, %c8_i32 : i32
    %10 = arith.extui %9 : i1 to i32
    %c0_i32_8 = arith.constant 0 : i32
    %11 = arith.cmpi ne, %10, %c0_i32_8 : i32
    scf.if %11 {
      %c0_9 = arith.constant 0 : index
      %c0_10 = arith.constant 0 : index
      %12 = vector.load %arg8[%c0_9, %c0_10] : memref<2x256xf32, #tpu.memory_space<vmem>>, vector<2x256xf32>
      %c0_11 = arith.constant 0 : index
      %c0_12 = arith.constant 0 : index
      %13 = vector.load %arg5[%c0_11, %c0_12] : memref<2x256xf32, #tpu.memory_space<vmem>>, vector<2x256xf32>
      tpu.vector_store %arg5[%c0_11, %c0_12], %12 {strides = array<i32>} : memref<2x256xf32, #tpu.memory_space<vmem>>, vector<2x256xf32>,
      %cst_13 = arith.constant dense<0.000000e+00> : vector<256xf32>
      %14 = vector.multi_reduction <add>, %12, %cst_13 [0] : vector<2x256xf32> to vector<256xf32>
      %15 = vector.shape_cast %14 : vector<256xf32> to vector<1x256xf32>
      %16 = vector.shape_cast %15 : vector<1x256xf32> to vector<1x1x256xf32>
      %c0_14 = arith.constant 0 : index
      %c0_15 = arith.constant 0 : index
      %c0_16 = arith.constant 0 : index
      %17 = vector.load %arg6[%c0_14, %c0_15, %c0_16] : memref<1x1x256xf32, #tpu.memory_space<vmem>>, vector<1x1x256xf32>
      tpu.vector_store %arg6[%c0_14, %c0_15, %c0_16], %16 {strides = array<i32>} : memref<1x1x256xf32, #tpu.memory_space<vmem>>, vector<1x1x256xf32>,
      %18 = arith.mulf %12, %12 : vector<2x256xf32>
      %cst_17 = arith.constant dense<0.000000e+00> : vector<256xf32>
      %19 = vector.multi_reduction <add>, %18, %cst_17 [0] : vector<2x256xf32> to vector<256xf32>
      %20 = vector.shape_cast %19 : vector<256xf32> to vector<1x256xf32>
      %21 = vector.shape_cast %20 : vector<1x256xf32> to vector<1x1x256xf32>
      %c0_18 = arith.constant 0 : index
      %c0_19 = arith.constant 0 : index
      %c0_20 = arith.constant 0 : index
      %22 = vector.load %arg7[%c0_18, %c0_19, %c0_20] : memref<1x1x256xf32, #tpu.memory_space<vmem>>, vector<1x1x256xf32>
      tpu.vector_store %arg7[%c0_18, %c0_19, %c0_20], %21 {strides = array<i32>} : memref<1x1x256xf32, #tpu.memory_space<vmem>>, vector<1x1x256xf32>,
    } else {
    }
    return
  }
  func.func @transform_0(%arg0: i32, %arg1: i32, %arg2: i32) -> (i32, i32) {
    %c0_i32 = arith.constant 0 : i32
    return %arg0, %arg2 : i32, i32
  }
  func.func @transform_1(%arg0: i32, %arg1: i32, %arg2: i32) -> (i32, i32) {
    %c0_i32 = arith.constant 0 : i32
    return %arg2, %arg1 : i32, i32
  }
  func.func @transform_2(%arg0: i32, %arg1: i32, %arg2: i32) -> (i32, i32) {
    %c0_i32 = arith.constant 0 : i32
    return %arg0, %arg1 : i32, i32
  }
  func.func @transform_3(%arg0: i32, %arg1: i32, %arg2: i32) -> (i32, i32, i32) {
    %c0_i32 = arith.constant 0 : i32
    %c0_i32_0 = arith.constant 0 : i32
    return %arg0, %c0_i32, %arg1 : i32, i32, i32
  }
  func.func @transform_4(%arg0: i32, %arg1: i32, %arg2: i32) -> (i32, i32, i32) {
    %c0_i32 = arith.constant 0 : i32
    %c0_i32_0 = arith.constant 0 : i32
    return %arg0, %c0_i32, %arg1 : i32, i32, i32
  }
}

module attributes {stable_mosaic.version = 11 : i64} {
  func.func @_affine_add_relu_kernel(%arg0: i32, %arg1: memref<2x512xf32, #tpu.memory_space<vmem>>, %arg2: memref<1x512xf32, #tpu.memory_space<vmem>>, %arg3: memref<1x512xf32, #tpu.memory_space<vmem>>, %arg4: memref<2x512xf32, #tpu.memory_space<vmem>>, %arg5: memref<2x512xf32, #tpu.memory_space<vmem>>) attributes {dimension_semantics = [#tpu.dimension_semantics<parallel>], iteration_bounds = array<i64: 1>, scalar_prefetch = 0 : i64, scratch_operands = 0 : i64, tpu.core_type = #tpu.core_type<tc>, window_params = [{transform_indices = @transform_0, window_bounds = array<i64: 2, 512>}, {pipeline_mode = #tpu.pipeline_mode<synchronous>, transform_indices = @transform_1, window_bounds = array<i64: 1, 512>}, {pipeline_mode = #tpu.pipeline_mode<synchronous>, transform_indices = @transform_2, window_bounds = array<i64: 1, 512>}, {transform_indices = @transform_3, window_bounds = array<i64: 2, 512>}, {transform_indices = @transform_4, window_bounds = array<i64: 2, 512>}]} {
    %c0 = arith.constant 0 : index
    %c0_0 = arith.constant 0 : index
    %0 = vector.load %arg1[%c0, %c0_0] : memref<2x512xf32, #tpu.memory_space<vmem>>, vector<2x512xf32>
    %c0_1 = arith.constant 0 : index
    %c0_2 = arith.constant 0 : index
    %1 = vector.load %arg2[%c0_1, %c0_2] : memref<1x512xf32, #tpu.memory_space<vmem>>, vector<1x512xf32>
    %2 = vector.broadcast %1 : vector<1x512xf32> to vector<2x512xf32>
    %3 = arith.mulf %0, %2 : vector<2x512xf32>
    %c0_3 = arith.constant 0 : index
    %c0_4 = arith.constant 0 : index
    %4 = vector.load %arg3[%c0_3, %c0_4] : memref<1x512xf32, #tpu.memory_space<vmem>>, vector<1x512xf32>
    %5 = vector.broadcast %4 : vector<1x512xf32> to vector<2x512xf32>
    %6 = arith.addf %3, %5 : vector<2x512xf32>
    %c0_5 = arith.constant 0 : index
    %c0_6 = arith.constant 0 : index
    %7 = vector.load %arg4[%c0_5, %c0_6] : memref<2x512xf32, #tpu.memory_space<vmem>>, vector<2x512xf32>
    %8 = arith.addf %6, %7 : vector<2x512xf32>
    %cst = arith.constant 0.000000e+00 : f32
    %9 = vector.broadcast %cst : f32 to vector<2x512xf32>
    %10 = arith.maximumf %8, %9 : vector<2x512xf32>
    %c0_7 = arith.constant 0 : index
    %c0_8 = arith.constant 0 : index
    %11 = vector.load %arg5[%c0_7, %c0_8] : memref<2x512xf32, #tpu.memory_space<vmem>>, vector<2x512xf32>
    tpu.vector_store %arg5[%c0_7, %c0_8], %10 {strides = array<i32>} : memref<2x512xf32, #tpu.memory_space<vmem>>, vector<2x512xf32>,
    return
  }
  func.func @transform_0(%arg0: i32) -> (i32, i32) {
    %c0_i32 = arith.constant 0 : i32
    %c0_i32_0 = arith.constant 0 : i32
    return %arg0, %c0_i32 : i32, i32
  }
  func.func @transform_1(%arg0: i32) -> (i32, i32) {
    %c0_i32 = arith.constant 0 : i32
    %c0_i32_0 = arith.constant 0 : i32
    %c0_i32_1 = arith.constant 0 : i32
    return %c0_i32, %c0_i32_0 : i32, i32
  }
  func.func @transform_2(%arg0: i32) -> (i32, i32) {
    %c0_i32 = arith.constant 0 : i32
    %c0_i32_0 = arith.constant 0 : i32
    %c0_i32_1 = arith.constant 0 : i32
    return %c0_i32, %c0_i32_0 : i32, i32
  }
  func.func @transform_3(%arg0: i32) -> (i32, i32) {
    %c0_i32 = arith.constant 0 : i32
    %c0_i32_0 = arith.constant 0 : i32
    return %arg0, %c0_i32 : i32, i32
  }
  func.func @transform_4(%arg0: i32) -> (i32, i32) {
    %c0_i32 = arith.constant 0 : i32
    %c0_i32_0 = arith.constant 0 : i32
    return %arg0, %c0_i32 : i32, i32
  }
}

module attributes {stable_mosaic.version = 11 : i64} {
  func.func @_gap_kernel(%arg0: memref<2x1x512xf32, #tpu.memory_space<vmem>>, %arg1: memref<2x512xf32, #tpu.memory_space<vmem>>) attributes {dimension_semantics = [], scalar_prefetch = 0 : i64, scratch_operands = 0 : i64, tpu.core_type = #tpu.core_type<tc>} {
    %c0 = arith.constant 0 : index
    %c0_0 = arith.constant 0 : index
    %c0_1 = arith.constant 0 : index
    %0 = vector.load %arg0[%c0, %c0_0, %c0_1] : memref<2x1x512xf32, #tpu.memory_space<vmem>>, vector<2x1x512xf32>
    %cst = arith.constant dense<0.000000e+00> : vector<2x512xf32>
    %1 = vector.multi_reduction <add>, %0, %cst [1] : vector<2x1x512xf32> to vector<2x512xf32>
    %cst_2 = arith.constant 1.000000e+00 : f32
    %2 = vector.broadcast %cst_2 : f32 to vector<2x512xf32>
    %3 = arith.divf %1, %2 : vector<2x512xf32>
    %c0_3 = arith.constant 0 : index
    %c0_4 = arith.constant 0 : index
    %4 = vector.load %arg1[%c0_3, %c0_4] : memref<2x512xf32, #tpu.memory_space<vmem>>, vector<2x512xf32>
    tpu.vector_store %arg1[%c0_3, %c0_4], %3 {strides = array<i32>} : memref<2x512xf32, #tpu.memory_space<vmem>>, vector<2x512xf32>,
    return
  }
}

module attributes {stable_mosaic.version = 11 : i64} {
  func.func @_linear_kernel(%arg0: i32, %arg1: i32, %arg2: i32, %arg3: memref<2x512xbf16, #tpu.memory_space<vmem>>, %arg4: memref<512x6xbf16, #tpu.memory_space<vmem>>, %arg5: memref<1x6xf32, #tpu.memory_space<vmem>>, %arg6: memref<2x6xf32, #tpu.memory_space<vmem>>, %arg7: memref<2x6xf32, #tpu.memory_space<vmem>>) attributes {dimension_semantics = [#tpu.dimension_semantics<parallel>, #tpu.dimension_semantics<parallel>, #tpu.dimension_semantics<arbitrary>], iteration_bounds = array<i64: 1, 1, 1>, scalar_prefetch = 0 : i64, scratch_operands = 1 : i64, tpu.core_type = #tpu.core_type<tc>, window_params = [{transform_indices = @transform_0, window_bounds = array<i64: 2, 512>}, {transform_indices = @transform_1, window_bounds = array<i64: 512, 6>}, {transform_indices = @transform_2, window_bounds = array<i64: 1, 6>}, {transform_indices = @transform_3, window_bounds = array<i64: 2, 6>}]} {
    %c0_i32 = arith.constant 0 : i32
    %0 = arith.cmpi eq, %arg2, %c0_i32 : i32
    %1 = arith.extui %0 : i1 to i32
    %c0_i32_0 = arith.constant 0 : i32
    %2 = arith.cmpi ne, %1, %c0_i32_0 : i32
    scf.if %2 {
      %cst_10 = arith.constant 0.000000e+00 : f32
      %12 = vector.broadcast %cst_10 : f32 to vector<2x6xf32>
      %c0_11 = arith.constant 0 : index
      %c0_12 = arith.constant 0 : index
      %13 = vector.load %arg7[%c0_11, %c0_12] : memref<2x6xf32, #tpu.memory_space<vmem>>, vector<2x6xf32>
      tpu.vector_store %arg7[%c0_11, %c0_12], %12 {strides = array<i32>} : memref<2x6xf32, #tpu.memory_space<vmem>>, vector<2x6xf32>,
    } else {
    }
    %c0 = arith.constant 0 : index
    %c0_1 = arith.constant 0 : index
    %3 = vector.load %arg7[%c0, %c0_1] : memref<2x6xf32, #tpu.memory_space<vmem>>, vector<2x6xf32>
    %c0_2 = arith.constant 0 : index
    %c0_3 = arith.constant 0 : index
    %4 = vector.load %arg3[%c0_2, %c0_3] : memref<2x512xbf16, #tpu.memory_space<vmem>>, vector<2x512xbf16>
    %c0_4 = arith.constant 0 : index
    %c0_5 = arith.constant 0 : index
    %5 = vector.load %arg4[%c0_4, %c0_5] : memref<512x6xbf16, #tpu.memory_space<vmem>>, vector<512x6xbf16>
    %cst = arith.constant dense<0.000000e+00> : vector<2x6xf32>
    %6 = tpu.matmul %4, %5, %cst {dimension_numbers = #tpu.dot_dimension_numbers<[1], [0], [0], [1], [0, 0, 1, 1], [], []>} : vector<2x512xbf16>, vector<512x6xbf16>, vector<2x6xf32> -> vector<2x6xf32>
    %7 = arith.addf %3, %6 : vector<2x6xf32>
    %c0_6 = arith.constant 0 : index
    %c0_7 = arith.constant 0 : index
    %8 = vector.load %arg7[%c0_6, %c0_7] : memref<2x6xf32, #tpu.memory_space<vmem>>, vector<2x6xf32>
    tpu.vector_store %arg7[%c0_6, %c0_7], %7 {strides = array<i32>} : memref<2x6xf32, #tpu.memory_space<vmem>>, vector<2x6xf32>,
    %c0_i32_8 = arith.constant 0 : i32
    %9 = arith.cmpi eq, %arg2, %c0_i32_8 : i32
    %10 = arith.extui %9 : i1 to i32
    %c0_i32_9 = arith.constant 0 : i32
    %11 = arith.cmpi ne, %10, %c0_i32_9 : i32
    scf.if %11 {
      %c0_10 = arith.constant 0 : index
      %c0_11 = arith.constant 0 : index
      %12 = vector.load %arg7[%c0_10, %c0_11] : memref<2x6xf32, #tpu.memory_space<vmem>>, vector<2x6xf32>
      %c0_12 = arith.constant 0 : index
      %c0_13 = arith.constant 0 : index
      %13 = vector.load %arg5[%c0_12, %c0_13] : memref<1x6xf32, #tpu.memory_space<vmem>>, vector<1x6xf32>
      %14 = vector.broadcast %13 : vector<1x6xf32> to vector<2x6xf32>
      %15 = arith.addf %12, %14 : vector<2x6xf32>
      %c0_14 = arith.constant 0 : index
      %c0_15 = arith.constant 0 : index
      %16 = vector.load %arg6[%c0_14, %c0_15] : memref<2x6xf32, #tpu.memory_space<vmem>>, vector<2x6xf32>
      tpu.vector_store %arg6[%c0_14, %c0_15], %15 {strides = array<i32>} : memref<2x6xf32, #tpu.memory_space<vmem>>, vector<2x6xf32>,
    } else {
    }
    return
  }
  func.func @transform_0(%arg0: i32, %arg1: i32, %arg2: i32) -> (i32, i32) {
    %c0_i32 = arith.constant 0 : i32
    return %arg0, %arg2 : i32, i32
  }
  func.func @transform_1(%arg0: i32, %arg1: i32, %arg2: i32) -> (i32, i32) {
    %c0_i32 = arith.constant 0 : i32
    return %arg2, %arg1 : i32, i32
  }
  func.func @transform_2(%arg0: i32, %arg1: i32, %arg2: i32) -> (i32, i32) {
    %c0_i32 = arith.constant 0 : i32
    %c0_i32_0 = arith.constant 0 : i32
    return %c0_i32, %arg1 : i32, i32
  }
  func.func @transform_3(%arg0: i32, %arg1: i32, %arg2: i32) -> (i32, i32) {
    %c0_i32 = arith.constant 0 : i32
    return %arg0, %arg1 : i32, i32
  }
}

</mosaic_0001>

<bundles_post_ra>
// kernel: classifier_net_forward.44
= control target key start
LH: loop header
LB: loop body
LE: loop exit
PB: predicated region body
PF: predicated region fallthrough
CT: control target
= control target key end

     0   :  { %vm284_vm0 = vcmask 523264   ;;  %s961_s0 = inlined_call_operand.vmem [shape: f32[512,64], index: 0, kind: input, shape index: {}]   ;;  %s962_s1 = inlined_call_operand.vmem [shape: f32[1,64], index: 1, kind: input, shape index: {}]   ;;  %s963_s2 = inlined_call_operand.vmem [shape: f32[1,64], index: 2, kind: input, shape index: {}]   ;;  %s964_s3 = inlined_call_operand.vmem [shape: f32[512,64], index: 3, kind: output, shape index: {}]  }
   0x1   :  { %v14_v0 = vld [vmem:[%s961_s0] sm:$0xff]  ;;  %v15_v4 = vld [vmem:[%s961_s0 + $0x8] sm:$0xff]  ;;  %v16_v5 = vld [vmem:[%s961_s0 + $0x10] sm:$0xff] }
   0x2   :  { %v381_v1 = vld [vmem:[%s962_s1] ss:$0 sm:$0xff]  ;;  %v17_v6 = vld [vmem:[%s961_s0 + $0x18] sm:$0xff]  ;;  %v19_v11 = vld [vmem:[%s961_s0 + $0x28] sm:$0xff] }
   0x3   :  { %v386_v2 = vld [vmem:[%s963_s2] ss:$0 sm:$0xff]  ;;  %v85_v3 = vmul.f32 %v381_v1, %v14_v0  ;;  %v86_v7 = vmul.f32 %v381_v1, %v15_v4  ;;  %v87_v8 = vmul.f32 %v381_v1, %v16_v5  ;;  %v88_v9 = vmul.f32 %v381_v1, %v17_v6  ;;  %v20_v12 = vld [vmem:[%s961_s0 + $0x30] sm:$0xff]  ;;  %v21_v17 = vld [vmem:[%s961_s0 + $0x38] sm:$0xff] }
   0x4   :  { %v18_v10 = vld [vmem:[%s961_s0 + $0x20] sm:$0xff]  ;;  %v90_v15 = vmul.f32 %v381_v1, %v19_v11  ;;  %v91_v16 = vmul.f32 %v381_v1, %v20_v12  ;;  %v92_v21 = vmul.f32 %v381_v1, %v21_v17  ;;  %v23_v27 = vld [vmem:[%s961_s0 + $0x48] sm:$0xff]  ;;  %v24_v28 = vld [vmem:[%s961_s0 + $0x50] sm:$0xff] }
   0x5   :  { %v156_v13 = vadd.f32 %v386_v2, %v85_v3  ;;  %v89_v14 = vmul.f32 %v381_v1, %v18_v10  ;;  %v157_v18 = vadd.f32 %v386_v2, %v86_v7  ;;  %v158_v19 = vadd.f32 %v386_v2, %v87_v8  ;;  %v22_v22 = vld [vmem:[%s961_s0 + $0x40] sm:$0xff]  ;;  %v25_v29 = vld [vmem:[%s961_s0 + $0x58] sm:$0xff]  ;;  %v27_v35 = vld [vmem:[%s961_s0 + $0x68] sm:$0xff] }
   0x6   :  { %v159_v20 = vadd.f32 %v386_v2, %v88_v9  ;;  %v161_v25 = vadd.f32 %v386_v2, %v90_v15  ;;  %v162_v26 = vadd.f32 %v386_v2, %v91_v16  ;;  %v163_v33 = vadd.f32 %v386_v2, %v92_v21  ;;  %v26_v34 = vld [vmem:[%s961_s0 + $0x60] sm:$0xff]  ;;  %v28_v36 = vld [vmem:[%s961_s0 + $0x70] sm:$0xff]  ;;  %v29_v41 = vld [vmem:[%s961_s0 + $0x78] sm:$0xff] }
   0x7   :  { %v220_v23 = vmax.f32 %v156_v13, 0.0  ;;  %v160_v24 = vadd.f32 %v386_v2, %v89_v14  ;;  %v221_v30 = vmax.f32 %v157_v18, 0.0  ;;  %v222_v31 = vmax.f32 %v158_v19, 0.0  ;;  %v30_v54 = vld [vmem:[%s961_s0 + $0x80] sm:$0xff]  ;;  %v31_v59 = vld [vmem:[%s961_s0 + $0x88] sm:$0xff]  ;;  %v32_v60 = vld [vmem:[%s961_s0 + $0x90] sm:$0xff] }
   0x8   :  { %v223_v32 = vmax.f32 %v159_v20, 0.0  ;;  %v225_v38 = vmax.f32 %v161_v25, 0.0  ;;  %v226_v39 = vmax.f32 %v162_v26, 0.0  ;;  %v93_v40 = vmul.f32 %v381_v1, %v22_v22  ;;  %v33_v61 = vld [vmem:[%s961_s0 + $0x98] sm:$0xff]  ;;  %v34_v4 = vld [vmem:[%s961_s0 + $0xa0] sm:$0xff]  ;;  %v35_v5 = vld [vmem:[%s961_s0 + $0xa8] sm:$0xff] }
   0x9   :  { %285 = vst.msk [vmem:[%s964_s3] sm:$0xff] %vm284_vm0, %v220_v23  ;;  %v224_v37 = vmax.f32 %v160_v24, 0.0  ;;  %286 = vst.msk [vmem:[%s964_s3 + $0x8] sm:$0xff] %vm284_vm0, %v221_v30  ;;  %v227_v42 = vmax.f32 %v163_v33, 0.0  ;;  %v94_v43 = vmul.f32 %v381_v1, %v23_v27  ;;  %v95_v44 = vmul.f32 %v381_v1, %v24_v28  ;;  %v36_v6 = vld [vmem:[%s961_s0 + $0xb0] sm:$0xff]  ;;  %v37_v11 = vld [vmem:[%s961_s0 + $0xb8] sm:$0xff] }
   0xa   :  { %287 = vst.msk [vmem:[%s964_s3 + $0x10] sm:$0xff] %vm284_vm0, %v222_v31  ;;  %288 = vst.msk [vmem:[%s964_s3 + $0x18] sm:$0xff] %vm284_vm0, %v223_v32  ;;  %v96_v45 = vmul.f32 %v381_v1, %v25_v29  ;;  %v164_v46 = vadd.f32 %v386_v2, %v93_v40  ;;  %v97_v47 = vmul.f32 %v381_v1, %v26_v34  ;;  %v38_v24 = vld [vmem:[%s961_s0 + $0xc0] sm:$0xff]  ;;  %v39_v29 = vld [vmem:[%s961_s0 + $0xc8] sm:$0xff] }
   0xb   :  { %289 = vst.msk [vmem:[%s964_s3 + $0x20] sm:$0xff] %vm284_vm0, %v224_v37  ;;  %290 = vst.msk [vmem:[%s964_s3 + $0x28] sm:$0xff] %vm284_vm0, %v225_v38  ;;  %v98_v48 = vmul.f32 %v381_v1, %v27_v35  ;;  %v99_v49 = vmul.f32 %v381_v1, %v28_v36  ;;  %v165_v50 = vadd.f32 %v386_v2, %v94_v43  ;;  %v40_v30 = vld [vmem:[%s961_s0 + $0xd0] sm:$0xff]  ;;  %v41_v31 = vld [vmem:[%s961_s0 + $0xd8] sm:$0xff] }
   0xc   :  { %291 = vst.msk [vmem:[%s964_s3 + $0x30] sm:$0xff] %vm284_vm0, %v226_v39  ;;  %292 = vst.msk [vmem:[%s964_s3 + $0x38] sm:$0xff] %vm284_vm0, %v227_v42  ;;  %v166_v51 = vadd.f32 %v386_v2, %v95_v44  ;;  %v167_v52 = vadd.f32 %v386_v2, %v96_v45  ;;  %v100_v53 = vmul.f32 %v381_v1, %v29_v41  ;;  %v228_v55 = vmax.f32 %v164_v46, 0.0  ;;  %v42_v36 = vld [vmem:[%s961_s0 + $0xe0] sm:$0xff]  ;;  %v43_v37 = vld [vmem:[%s961_s0 + $0xe8] sm:$0xff] }
   0xd   :  { %v168_v56 = vadd.f32 %v386_v2, %v97_v47  ;;  %v169_v57 = vadd.f32 %v386_v2, %v98_v48  ;;  %v170_v58 = vadd.f32 %v386_v2, %v99_v49  ;;  %v229_v62 = vmax.f32 %v165_v50, 0.0  ;;  %v44_v38 = vld [vmem:[%s961_s0 + $0xf0] sm:$0xff]  ;;  %v45_v43 = vld [vmem:[%s961_s0 + $0xf8] sm:$0xff] }
   0xe   :  { %v230_v63 = vmax.f32 %v166_v51, 0.0  ;;  %v231_v0 = vmax.f32 %v167_v52, 0.0  ;;  %v171_v3 = vadd.f32 %v386_v2, %v100_v53  ;;  %293 = vst.msk [vmem:[%s964_s3 + $0x40] sm:$0xff] %vm284_vm0, %v228_v55  ;;  %v101_v10 = vmul.f32 %v381_v1, %v30_v54 }
   0xf   :  { %v232_v7 = vmax.f32 %v168_v56, 0.0  ;;  %v233_v8 = vmax.f32 %v169_v57, 0.0  ;;  %v234_v9 = vmax.f32 %v170_v58, 0.0  ;;  %294 = vst.msk [vmem:[%s964_s3 + $0x48] sm:$0xff] %vm284_vm0, %v229_v62  ;;  %v102_v13 = vmul.f32 %v381_v1, %v31_v59  ;;  %v46_v56 = vld [vmem:[%s961_s0 + $0x100] sm:$0xff]  ;;  %v48_v62 = vld [vmem:[%s961_s0 + $0x110] sm:$0xff] }
  0x10   :  { %295 = vst.msk [vmem:[%s964_s3 + $0x50] sm:$0xff] %vm284_vm0, %v230_v63  ;;  %296 = vst.msk [vmem:[%s964_s3 + $0x58] sm:$0xff] %vm284_vm0, %v231_v0  ;;  %v235_v12 = vmax.f32 %v171_v3, 0.0  ;;  %v103_v14 = vmul.f32 %v381_v1, %v32_v60  ;;  %v104_v15 = vmul.f32 %v381_v1, %v33_v61  ;;  %v172_v16 = vadd.f32 %v386_v2, %v101_v10  ;;  %v47_v61 = vld [vmem:[%s961_s0 + $0x108] sm:$0xff]  ;;  %v49_v63 = vld [vmem:[%s961_s0 + $0x118] sm:$0xff] }
  0x11   :  { %297 = vst.msk [vmem:[%s964_s3 + $0x60] sm:$0xff] %vm284_vm0, %v232_v7  ;;  %298 = vst.msk [vmem:[%s964_s3 + $0x68] sm:$0xff] %vm284_vm0, %v233_v8  ;;  %v105_v17 = vmul.f32 %v381_v1, %v34_v4  ;;  %v106_v18 = vmul.f32 %v381_v1, %v35_v5  ;;  %v107_v19 = vmul.f32 %v381_v1, %v36_v6  ;;  %v50_v6 = vld [vmem:[%s961_s0 + $0x120] sm:$0xff]  ;;  %v51_v7 = vld [vmem:[%s961_s0 + $0x128] sm:$0xff] }
  0x12   :  { %299 = vst.msk [vmem:[%s964_s3 + $0x70] sm:$0xff] %vm284_vm0, %v234_v9  ;;  %300 = vst.msk [vmem:[%s964_s3 + $0x78] sm:$0xff] %vm284_vm0, %v235_v12  ;;  %v173_v20 = vadd.f32 %v386_v2, %v102_v13  ;;  %v174_v21 = vadd.f32 %v386_v2, %v103_v14  ;;  %v175_v22 = vadd.f32 %v386_v2, %v104_v15  ;;  %v236_v25 = vmax.f32 %v172_v16, 0.0  ;;  %v52_v8 = vld [vmem:[%s961_s0 + $0x130] sm:$0xff]  ;;  %v53_v13 = vld [vmem:[%s961_s0 + $0x138] sm:$0xff] }
  0x13   :  { %v108_v23 = vmul.f32 %v381_v1, %v37_v11  ;;  %v176_v26 = vadd.f32 %v386_v2, %v105_v17  ;;  %v177_v27 = vadd.f32 %v386_v2, %v106_v18  ;;  %v178_v28 = vadd.f32 %v386_v2, %v107_v19 }
  0x14   :  { %v237_v32 = vmax.f32 %v173_v20, 0.0  ;;  %v238_v33 = vmax.f32 %v174_v21, 0.0  ;;  %v239_v34 = vmax.f32 %v175_v22, 0.0  ;;  %301 = vst.msk [vmem:[%s964_s3 + $0x80] sm:$0xff] %vm284_vm0, %v236_v25  ;;  %v109_v42 = vmul.f32 %v381_v1, %v38_v24 }
  0x15   :  { %v179_v35 = vadd.f32 %v386_v2, %v108_v23  ;;  %v240_v39 = vmax.f32 %v176_v26, 0.0  ;;  %v241_v40 = vmax.f32 %v177_v27, 0.0  ;;  %v242_v41 = vmax.f32 %v178_v28, 0.0  ;;  %v54_v26 = vld [vmem:[%s961_s0 + $0x140] sm:$0xff] }
  0x16   :  { %302 = vst.msk [vmem:[%s964_s3 + $0x88] sm:$0xff] %vm284_vm0, %v237_v32  ;;  %303 = vst.msk [vmem:[%s964_s3 + $0x90] sm:$0xff] %vm284_vm0, %v238_v33  ;;  %v110_v45 = vmul.f32 %v381_v1, %v39_v29  ;;  %v111_v46 = vmul.f32 %v381_v1, %v40_v30  ;;  %v112_v47 = vmul.f32 %v381_v1, %v41_v31  ;;  %v55_v31 = vld [vmem:[%s961_s0 + $0x148] sm:$0xff]  ;;  %v56_v32 = vld [vmem:[%s961_s0 + $0x150] sm:$0xff] }
  0x17   :  { %304 = vst.msk [vmem:[%s964_s3 + $0x98] sm:$0xff] %vm284_vm0, %v239_v34  ;;  %v243_v44 = vmax.f32 %v179_v35, 0.0  ;;  %305 = vst.msk [vmem:[%s964_s3 + $0xa0] sm:$0xff] %vm284_vm0, %v240_v39  ;;  %v180_v48 = vadd.f32 %v386_v2, %v109_v42  ;;  %v113_v49 = vmul.f32 %v381_v1, %v42_v36  ;;  %v114_v50 = vmul.f32 %v381_v1, %v43_v37  ;;  %v57_v33 = vld [vmem:[%s961_s0 + $0x158] sm:$0xff]  ;;  %v59_v39 = vld [vmem:[%s961_s0 + $0x168] sm:$0xff] }
  0x18   :  { %306 = vst.msk [vmem:[%s964_s3 + $0xa8] sm:$0xff] %vm284_vm0, %v241_v40  ;;  %307 = vst.msk [vmem:[%s964_s3 + $0xb0] sm:$0xff] %vm284_vm0, %v242_v41  ;;  %v115_v51 = vmul.f32 %v381_v1, %v44_v38  ;;  %v181_v52 = vadd.f32 %v386_v2, %v110_v45  ;;  %v182_v53 = vadd.f32 %v386_v2, %v111_v46  ;;  %v58_v38 = vld [vmem:[%s961_s0 + $0x160] sm:$0xff]  ;;  %v60_v40 = vld [vmem:[%s961_s0 + $0x170] sm:$0xff] }
  0x19   :  { %308 = vst.msk [vmem:[%s964_s3 + $0xb8] sm:$0xff] %vm284_vm0, %v243_v44  ;;  %v183_v54 = vadd.f32 %v386_v2, %v112_v47  ;;  %v116_v55 = vmul.f32 %v381_v1, %v45_v43  ;;  %v244_v57 = vmax.f32 %v180_v48, 0.0  ;;  %v184_v58 = vadd.f32 %v386_v2, %v113_v49  ;;  %v61_v45 = vld [vmem:[%s961_s0 + $0x178] sm:$0xff] }
  0x1a   :  { %v185_v59 = vadd.f32 %v386_v2, %v114_v50  ;;  %v186_v60 = vadd.f32 %v386_v2, %v115_v51  ;;  %v245_v0 = vmax.f32 %v181_v52, 0.0  ;;  %v246_v3 = vmax.f32 %v182_v53, 0.0 }
  0x1b   :  { %v247_v4 = vmax.f32 %v183_v54, 0.0  ;;  %v187_v5 = vadd.f32 %v386_v2, %v116_v55  ;;  %309 = vst.msk [vmem:[%s964_s3 + $0xc0] sm:$0xff] %vm284_vm0, %v244_v57  ;;  %v248_v9 = vmax.f32 %v184_v58, 0.0  ;;  %v117_v12 = vmul.f32 %v381_v1, %v46_v56  ;;  %v62_v58 = vld [vmem:[%s961_s0 + $0x180] sm:$0xff] }
  0x1c   :  { %v249_v10 = vmax.f32 %v185_v59, 0.0  ;;  %v250_v11 = vmax.f32 %v186_v60, 0.0  ;;  %310 = vst.msk [vmem:[%s964_s3 + $0xc8] sm:$0xff] %vm284_vm0, %v245_v0  ;;  %311 = vst.msk [vmem:[%s964_s3 + $0xd0] sm:$0xff] %vm284_vm0, %v246_v3  ;;  %v118_v15 = vmul.f32 %v381_v1, %v47_v61  ;;  %v119_v16 = vmul.f32 %v381_v1, %v48_v62  ;;  %v64_v0 = vld [vmem:[%s961_s0 + $0x190] sm:$0xff]  ;;  %v65_v3 = vld [vmem:[%s961_s0 + $0x198] sm:$0xff] }
  0x1d   :  { %312 = vst.msk [vmem:[%s964_s3 + $0xd8] sm:$0xff] %vm284_vm0, %v247_v4  ;;  %v251_v14 = vmax.f32 %v187_v5, 0.0  ;;  %v120_v17 = vmul.f32 %v381_v1, %v49_v63  ;;  %313 = vst.msk [vmem:[%s964_s3 + $0xe0] sm:$0xff] %vm284_vm0, %v248_v9  ;;  %v188_v18 = vadd.f32 %v386_v2, %v117_v12  ;;  %v121_v19 = vmul.f32 %v381_v1, %v50_v6  ;;  %v63_v63 = vld [vmem:[%s961_s0 + $0x188] sm:$0xff] }
  0x1e   :  { %314 = vst.msk [vmem:[%s964_s3 + $0xe8] sm:$0xff] %vm284_vm0, %v249_v10  ;;  %315 = vst.msk [vmem:[%s964_s3 + $0xf0] sm:$0xff] %vm284_vm0, %v250_v11  ;;  %v122_v20 = vmul.f32 %v381_v1, %v51_v7  ;;  %v123_v21 = vmul.f32 %v381_v1, %v52_v8  ;;  %v189_v22 = vadd.f32 %v386_v2, %v118_v15  ;;  %v66_v8 = vld [vmem:[%s961_s0 + $0x1a0] sm:$0xff]  ;;  %v67_v9 = vld [vmem:[%s961_s0 + $0x1a8] sm:$0xff] }
  0x1f   :  { %316 = vst.msk [vmem:[%s964_s3 + $0xf8] sm:$0xff] %vm284_vm0, %v251_v14  ;;  %v190_v23 = vadd.f32 %v386_v2, %v119_v16  ;;  %v191_v24 = vadd.f32 %v386_v2, %v120_v17  ;;  %v124_v25 = vmul.f32 %v381_v1, %v53_v13  ;;  %v252_v27 = vmax.f32 %v188_v18, 0.0  ;;  %v68_v10 = vld [vmem:[%s961_s0 + $0x1b0] sm:$0xff]  ;;  %v69_v15 = vld [vmem:[%s961_s0 + $0x1b8] sm:$0xff] }
  0x20   :  { %v192_v28 = vadd.f32 %v386_v2, %v121_v19  ;;  %v193_v29 = vadd.f32 %v386_v2, %v122_v20  ;;  %v194_v30 = vadd.f32 %v386_v2, %v123_v21  ;;  %v253_v34 = vmax.f32 %v189_v22, 0.0 }
  0x21   :  { %v254_v35 = vmax.f32 %v190_v23, 0.0  ;;  %v255_v36 = vmax.f32 %v191_v24, 0.0  ;;  %v195_v37 = vadd.f32 %v386_v2, %v124_v25  ;;  %317 = vst.msk [vmem:[%s964_s3 + $0x100] sm:$0xff] %vm284_vm0, %v252_v27  ;;  %v125_v44 = vmul.f32 %v381_v1, %v54_v26 }
  0x22   :  { %v256_v41 = vmax.f32 %v192_v28, 0.0  ;;  %v257_v42 = vmax.f32 %v193_v29, 0.0  ;;  %v258_v43 = vmax.f32 %v194_v30, 0.0  ;;  %318 = vst.msk [vmem:[%s964_s3 + $0x108] sm:$0xff] %vm284_vm0, %v253_v34  ;;  %v126_v47 = vmul.f32 %v381_v1, %v55_v31  ;;  %v70_v28 = vld [vmem:[%s961_s0 + $0x1c0] sm:$0xff]  ;;  %v72_v34 = vld [vmem:[%s961_s0 + $0x1d0] sm:$0xff] }
  0x23   :  { %319 = vst.msk [vmem:[%s964_s3 + $0x110] sm:$0xff] %vm284_vm0, %v254_v35  ;;  %320 = vst.msk [vmem:[%s964_s3 + $0x118] sm:$0xff] %vm284_vm0, %v255_v36  ;;  %v259_v46 = vmax.f32 %v195_v37, 0.0  ;;  %v127_v48 = vmul.f32 %v381_v1, %v56_v32  ;;  %v128_v49 = vmul.f32 %v381_v1, %v57_v33  ;;  %v196_v50 = vadd.f32 %v386_v2, %v125_v44  ;;  %v71_v33 = vld [vmem:[%s961_s0 + $0x1c8] sm:$0xff]  ;;  %v73_v35 = vld [vmem:[%s961_s0 + $0x1d8] sm:$0xff] }
  0x24   :  { %321 = vst.msk [vmem:[%s964_s3 + $0x120] sm:$0xff] %vm284_vm0, %v256_v41  ;;  %322 = vst.msk [vmem:[%s964_s3 + $0x128] sm:$0xff] %vm284_vm0, %v257_v42  ;;  %v129_v51 = vmul.f32 %v381_v1, %v58_v38  ;;  %v130_v52 = vmul.f32 %v381_v1, %v59_v39  ;;  %v131_v53 = vmul.f32 %v381_v1, %v60_v40  ;;  %v74_v40 = vld [vmem:[%s961_s0 + $0x1e0] sm:$0xff]  ;;  %v75_v41 = vld [vmem:[%s961_s0 + $0x1e8] sm:$0xff] }
  0x25   :  { %323 = vst.msk [vmem:[%s964_s3 + $0x130] sm:$0xff] %vm284_vm0, %v258_v43  ;;  %324 = vst.msk [vmem:[%s964_s3 + $0x138] sm:$0xff] %vm284_vm0, %v259_v46  ;;  %v197_v54 = vadd.f32 %v386_v2, %v126_v47  ;;  %v198_v55 = vadd.f32 %v386_v2, %v127_v48  ;;  %v199_v56 = vadd.f32 %v386_v2, %v128_v49  ;;  %v260_v59 = vmax.f32 %v196_v50, 0.0  ;;  %v76_v42 = vld [vmem:[%s961_s0 + $0x1f0] sm:$0xff]  ;;  %v77_v47 = vld [vmem:[%s961_s0 + $0x1f8] sm:$0xff] }
  0x26   :  { %v132_v57 = vmul.f32 %v381_v1, %v61_v45  ;;  %v200_v60 = vadd.f32 %v386_v2, %v129_v51  ;;  %v201_v61 = vadd.f32 %v386_v2, %v130_v52  ;;  %v202_v62 = vadd.f32 %v386_v2, %v131_v53 }
  0x27   :  { %v261_v4 = vmax.f32 %v197_v54, 0.0  ;;  %v262_v5 = vmax.f32 %v198_v55, 0.0  ;;  %v263_v6 = vmax.f32 %v199_v56, 0.0  ;;  %325 = vst.msk [vmem:[%s964_s3 + $0x140] sm:$0xff] %vm284_vm0, %v260_v59  ;;  %v133_v14 = vmul.f32 %v381_v1, %v62_v58 }
  0x28   :  { %v203_v7 = vadd.f32 %v386_v2, %v132_v57  ;;  %v264_v11 = vmax.f32 %v200_v60, 0.0  ;;  %v265_v12 = vmax.f32 %v201_v61, 0.0  ;;  %v266_v13 = vmax.f32 %v202_v62, 0.0 }
  0x29   :  { %326 = vst.msk [vmem:[%s964_s3 + $0x148] sm:$0xff] %vm284_vm0, %v261_v4  ;;  %327 = vst.msk [vmem:[%s964_s3 + $0x150] sm:$0xff] %vm284_vm0, %v262_v5  ;;  %v134_v17 = vmul.f32 %v381_v1, %v63_v63  ;;  %v135_v18 = vmul.f32 %v381_v1, %v64_v0  ;;  %v136_v19 = vmul.f32 %v381_v1, %v65_v3 }
  0x2a   :  { %328 = vst.msk [vmem:[%s964_s3 + $0x158] sm:$0xff] %vm284_vm0, %v263_v6  ;;  %v267_v16 = vmax.f32 %v203_v7, 0.0  ;;  %329 = vst.msk [vmem:[%s964_s3 + $0x160] sm:$0xff] %vm284_vm0, %v264_v11  ;;  %v204_v20 = vadd.f32 %v386_v2, %v133_v14  ;;  %v137_v21 = vmul.f32 %v381_v1, %v66_v8  ;;  %v138_v22 = vmul.f32 %v381_v1, %v67_v9 }
  0x2b   :  { %330 = vst.msk [vmem:[%s964_s3 + $0x168] sm:$0xff] %vm284_vm0, %v265_v12  ;;  %331 = vst.msk [vmem:[%s964_s3 + $0x170] sm:$0xff] %vm284_vm0, %v266_v13  ;;  %v139_v23 = vmul.f32 %v381_v1, %v68_v10  ;;  %v205_v24 = vadd.f32 %v386_v2, %v134_v17  ;;  %v206_v25 = vadd.f32 %v386_v2, %v135_v18 }
  0x2c   :  { %332 = vst.msk [vmem:[%s964_s3 + $0x178] sm:$0xff] %vm284_vm0, %v267_v16  ;;  %v207_v26 = vadd.f32 %v386_v2, %v136_v19  ;;  %v140_v27 = vmul.f32 %v381_v1, %v69_v15  ;;  %v268_v29 = vmax.f32 %v204_v20, 0.0  ;;  %v208_v30 = vadd.f32 %v386_v2, %v137_v21 }
  0x2d   :  { %v209_v31 = vadd.f32 %v386_v2, %v138_v22  ;;  %v210_v32 = vadd.f32 %v386_v2, %v139_v23  ;;  %v269_v36 = vmax.f32 %v205_v24, 0.0  ;;  %v270_v37 = vmax.f32 %v206_v25, 0.0 }
  0x2e   :  { %v271_v38 = vmax.f32 %v207_v26, 0.0  ;;  %v211_v39 = vadd.f32 %v386_v2, %v140_v27  ;;  %333 = vst.msk [vmem:[%s964_s3 + $0x180] sm:$0xff] %vm284_vm0, %v268_v29  ;;  %v272_v43 = vmax.f32 %v208_v30, 0.0  ;;  %v141_v46 = vmul.f32 %v381_v1, %v70_v28 }
  0x2f   :  { %v273_v44 = vmax.f32 %v209_v31, 0.0  ;;  %v274_v45 = vmax.f32 %v210_v32, 0.0  ;;  %334 = vst.msk [vmem:[%s964_s3 + $0x188] sm:$0xff] %vm284_vm0, %v269_v36  ;;  %335 = vst.msk [vmem:[%s964_s3 + $0x190] sm:$0xff] %vm284_vm0, %v270_v37  ;;  %v142_v49 = vmul.f32 %v381_v1, %v71_v33  ;;  %v143_v50 = vmul.f32 %v381_v1, %v72_v34 }
  0x30   :  { %336 = vst.msk [vmem:[%s964_s3 + $0x198] sm:$0xff] %vm284_vm0, %v271_v38  ;;  %v275_v48 = vmax.f32 %v211_v39, 0.0  ;;  %v144_v51 = vmul.f32 %v381_v1, %v73_v35  ;;  %337 = vst.msk [vmem:[%s964_s3 + $0x1a0] sm:$0xff] %vm284_vm0, %v272_v43  ;;  %v212_v52 = vadd.f32 %v386_v2, %v141_v46  ;;  %v145_v53 = vmul.f32 %v381_v1, %v74_v40 }
  0x31   :  { %338 = vst.msk [vmem:[%s964_s3 + $0x1a8] sm:$0xff] %vm284_vm0, %v273_v44  ;;  %339 = vst.msk [vmem:[%s964_s3 + $0x1b0] sm:$0xff] %vm284_vm0, %v274_v45  ;;  %v146_v54 = vmul.f32 %v381_v1, %v75_v41  ;;  %v147_v55 = vmul.f32 %v381_v1, %v76_v42  ;;  %v213_v56 = vadd.f32 %v386_v2, %v142_v49 }
  0x32   :  { %340 = vst.msk [vmem:[%s964_s3 + $0x1b8] sm:$0xff] %vm284_vm0, %v275_v48  ;;  %v214_v57 = vadd.f32 %v386_v2, %v143_v50  ;;  %v215_v58 = vadd.f32 %v386_v2, %v144_v51  ;;  %v148_v59 = vmul.f32 %v381_v1, %v77_v47  ;;  %v276_v60 = vmax.f32 %v212_v52, 0.0 }
  0x33   :  { %v216_v61 = vadd.f32 %v386_v2, %v145_v53  ;;  %v217_v62 = vadd.f32 %v386_v2, %v146_v54  ;;  %v218_v63 = vadd.f32 %v386_v2, %v147_v55  ;;  %v277_v0 = vmax.f32 %v213_v56, 0.0 }
  0x34   :  { %v278_v3 = vmax.f32 %v214_v57, 0.0  ;;  %v279_v4 = vmax.f32 %v215_v58, 0.0  ;;  %v219_v5 = vadd.f32 %v386_v2, %v148_v59  ;;  %341 = vst.msk [vmem:[%s964_s3 + $0x1c0] sm:$0xff] %vm284_vm0, %v276_v60 }
  0x35   :  { %v280_v6 = vmax.f32 %v216_v61, 0.0  ;;  %v281_v7 = vmax.f32 %v217_v62, 0.0  ;;  %v282_v1 = vmax.f32 %v218_v63, 0.0  ;;  %342 = vst.msk [vmem:[%s964_s3 + $0x1c8] sm:$0xff] %vm284_vm0, %v277_v0 }
  0x36   :  { %343 = vst.msk [vmem:[%s964_s3 + $0x1d0] sm:$0xff] %vm284_vm0, %v278_v3  ;;  %344 = vst.msk [vmem:[%s964_s3 + $0x1d8] sm:$0xff] %vm284_vm0, %v279_v4  ;;  %v283_v2 = vmax.f32 %v219_v5, 0.0 }
  0x37   :  { %345 = vst.msk [vmem:[%s964_s3 + $0x1e0] sm:$0xff] %vm284_vm0, %v280_v6  ;;  %346 = vst.msk [vmem:[%s964_s3 + $0x1e8] sm:$0xff] %vm284_vm0, %v281_v7 }
  0x38   :  { %347 = vst.msk [vmem:[%s964_s3 + $0x1f0] sm:$0xff] %vm284_vm0, %v282_v1  ;;  %348 = vst.msk [vmem:[%s964_s3 + $0x1f8] sm:$0xff] %vm284_vm0, %v283_v2 }

// kernel: classifier_net_forward.43
= control target key start
LH: loop header
LB: loop body
LE: loop exit
PB: predicated region body
PF: predicated region fallthrough
CT: control target
= control target key end

     0   :  { %s1558_s15 = smov 0   ;;  %s1560_s16 = smov 0   ;;  %s2005_s0 = inlined_call_operand.vmem [shape: bf16[512,147], index: 0, kind: input, shape index: {}]   ;;  %s2006_s1 = inlined_call_operand.vmem [shape: bf16[147,64], index: 1, kind: input, shape index: {}]   ;;  %s2007_s2 = inlined_call_operand.vmem [shape: f32[512,64], index: 2, kind: output, shape index: {0}]   ;;  %s2008_s3 = inlined_call_operand.vmem [shape: f32[2,1,64], index: 3, kind: output, shape index: {1}]   ;;  %s2009_s4 = inlined_call_operand.vmem [shape: f32[2,1,64], index: 4, kind: output, shape index: {2}]  }
   0x1   :  { %s1562_s17 = smov 0  }
   0x2 LB: > { %s34_s18 = sadd.s32 1, %s1524_s16  ;;  %p1334_p0 = scmp.ge.s32.totalorder %s1528_s17, 1  ;;  %s1528_s17 = sphi %s1562_s17, %s15_s17   ;;  %s1524_s16 = sphi %s1560_s16, %s2011_s16   ;;  %s1520_s15 = sphi %s1558_s15, %s2010_s15  }
   0x3   : > { %p36_p1 = scmp.ge.s32.totalorder %s34_s18, 2  ;;  %p217_p2 = scmp.lt.s32.totalorder %s1528_s17, 3 }
   0x5   : > { %s2013_s18 = smov (%p36_p1, %s34_s18), 0  ;;  %p218_p3 = pnand %p1334_p0, %p217_p2 }
   0x6   : > { %v1448_v0 = vld [vmem:[%s2006_s1] sm:$0xff] (!%p218_p3)   ;;  %v1530_v1 = vmov (!%p218_p3), 0   ;;  %v1449_v2 = vld [vmem:[%s2006_s1 + $0x8] sm:$0xff] (!%p218_p3)   ;;  %v1450_v3 = vld [vmem:[%s2006_s1 + $0x10] sm:$0xff] (!%p218_p3)   ;;  %s1335_s25 = sshll.u32 (!%p218_p3), %s1520_s15, 5  ;;  %vm318_vm0 = vcmask (!%p218_p3), 523264  }
   0x7   : > { %221 = sbr.rel (%p218_p3) target bundleno = 377 (0x179), region = 28  ;;  %691 = vmatprep.subr.bf16.mxu0 (!%p218_p3), %v1530_v1  ;;  %1401 = vmatprep.subr.bf16.mxu1 (!%p218_p3), %v1530_v1  ;;  %p273_p4 = scmp.lt.s32.totalorder (!%p218_p3), %s1335_s25, 63  ;;  %v1451_v4 = vld [vmem:[%s2006_s1 + $0x18] sm:$0xff] (!%p218_p3)   ;;  %v1531_v5 = vmov (!%p218_p3), 0.0   ;;  %v1452_v6 = vld [vmem:[%s2006_s1 + $0x20] sm:$0xff] (!%p218_p3)   ;;  %vm635_vm1 = vcmask (!%p218_p3), 154624  }
   0x8   : > { %692 = vmatpush1.bf16.msra.mxu0 (!%p218_p3), %v1448_v0  ;;  %1411 = vmatpush1.bf16.msra.mxu1 (!%p218_p3), %v1448_v0  ;;  %319 = vst.msk [vmem:[#allocation2] sm:$0xff] (!%p218_p3), %vm318_vm0, %v1531_v5  ;;  %320 = vst.msk [vmem:[#allocation2 + $0x8] sm:$0xff] (!%p218_p3), %vm318_vm0, %v1531_v5  ;;  %v1453_v8 = vld [vmem:[%s2006_s1 + $0x28] sm:$0xff] (!%p218_p3)   ;;  %v1454_v10 = vld [vmem:[%s2006_s1 + $0x30] sm:$0xff] (!%p218_p3)   ;;  %vm684_vm2 = vcmask (!%p218_p3), 1040384   ;;  %vm685_vm3 = vcmask (!%p218_p3), 1041408  }
   0x9   : > { %693 = vmatprep.subr.bf16.mxu0 (!%p218_p3), %v1530_v1  ;;  %1402 = vmatprep.subr.bf16.mxu1 (!%p218_p3), %v1530_v1  ;;  %321 = vst.msk [vmem:[#allocation2 + $0x10] sm:$0xff] (!%p218_p3), %vm318_vm0, %v1531_v5  ;;  %322 = vst.msk [vmem:[#allocation2 + $0x18] sm:$0xff] (!%p218_p3), %vm318_vm0, %v1531_v5  ;;  %v1455_v11 = vld [vmem:[%s2006_s1 + $0x38] sm:$0xff] (!%p218_p3)   ;;  %v1532_v12 = vmov (!%p218_p3), 65535   ;;  %v1456_v14 = vld [vmem:[%s2006_s1 + $0x40] sm:$0xff] (!%p218_p3)   ;;  %p301_p5 = scmp.lt.s32.totalorder (!%p218_p3), %s1520_s15, 1 }
   0xa   : > { %323 = vst.msk [vmem:[#allocation2 + $0x20] sm:$0xff] (!%p218_p3), %vm318_vm0, %v1531_v5  ;;  %324 = vst.msk [vmem:[#allocation2 + $0x28] sm:$0xff] (!%p218_p3), %vm318_vm0, %v1531_v5  ;;  %v686_v13 = vsel (!%p218_p3), %vm684_vm2, 4294967295, %v1532_v12  ;;  %v1457_v15 = vld [vmem:[%s2006_s1 + $0x48] ss:$0 sps:$4 sm:$0x33] (!%p218_p3)  }
   0xb   : > { %325 = vst.msk [vmem:[#allocation2 + $0x30] sm:$0xff] (!%p218_p3), %vm318_vm0, %v1531_v5  ;;  %326 = vst.msk [vmem:[#allocation2 + $0x38] sm:$0xff] (!%p218_p3), %vm318_vm0, %v1531_v5  ;;  %v687_v16 = vsel (!%p218_p3), %vm685_vm3, %v686_v13, 0  ;;  %vm1053_vm4 = vcmask (!%p218_p3), 516096  }
   0xc   : > { %694 = vmatpush1.bf16.msra.mxu0 (!%p218_p3), %v1449_v2  ;;  %1412 = vmatpush1.bf16.msra.mxu1 (!%p218_p3), %v1449_v2  ;;  %327 = vst.msk [vmem:[#allocation2 + $0x40] sm:$0xff] (!%p218_p3), %vm318_vm0, %v1531_v5  ;;  %328 = vst.msk [vmem:[#allocation2 + $0x48] sm:$0xff] (!%p218_p3), %vm318_vm0, %v1531_v5  ;;  %v689_v17 = vand.u32 (!%p218_p3), %v1457_v15, %v687_v16 }
   0xd   : > { %695 = vmatprep.subr.bf16.mxu0 (!%p218_p3), %v1530_v1  ;;  %1403 = vmatprep.subr.bf16.mxu1 (!%p218_p3), %v1530_v1  ;;  %329 = vst.msk [vmem:[#allocation2 + $0x50] sm:$0xff] (!%p218_p3), %vm318_vm0, %v1531_v5  ;;  %330 = vst.msk [vmem:[#allocation2 + $0x58] sm:$0xff] (!%p218_p3), %vm318_vm0, %v1531_v5 }
   0xe   : > { %s2015_s25 = smov (!%p273_p4, %s1335_s25), 63  ;;  %331 = vst.msk [vmem:[#allocation2 + $0x60] sm:$0xff] %vm318_vm0, %v1531_v5  ;;  %332 = vst.msk [vmem:[#allocation2 + $0x68] sm:$0xff] %vm318_vm0, %v1531_v5  ;;  %s2017_s15 = smov (!%p301_p5, %s1520_s15), 1 }
   0xf   : > { %s1400_s28 = sshll.u32 %s2015_s25, 3  ;;  %333 = vst.msk [vmem:[#allocation2 + $0x70] sm:$0xff] %vm318_vm0, %v1531_v5  ;;  %334 = vst.msk [vmem:[#allocation2 + $0x78] sm:$0xff] %vm318_vm0, %v1531_v5  ;;  %v351_v48 = vld [vmem:[#allocation2] sm:$0xff]  ;;  %v352_v51 = vld [vmem:[#allocation2 + $0x8] sm:$0xff]  ;;  %s306_s27 = scalar_lea.vmem %s2008_s3, %s2017_s15 }
  0x10   : > { %696 = vmatpush1.bf16.msra.mxu0 %v1450_v3  ;;  %1413 = vmatpush1.bf16.msra.mxu1 %v1450_v3  ;;  %335 = vst.msk [vmem:[#allocation2 + $0x80] sm:$0xff] %vm318_vm0, %v1531_v5  ;;  %336 = vst.msk [vmem:[#allocation2 + $0x88] sm:$0xff] %vm318_vm0, %v1531_v5  ;;  %s1639_s5 = scalar_lea.vmem %s2005_s0, %s1400_s28  ;;  %v353_v0 = vld [vmem:[#allocation2 + $0x10] sm:$0xff]  ;;  %s1728_s24 = scalar_lea.vmem %s2007_s2, %s1400_s28  ;;  %v354_v3 = vld [vmem:[#allocation2 + $0x18] sm:$0xff] }
  0x11   : > { %697 = vmatprep.subr.bf16.mxu0 %v1530_v1  ;;  %1404 = vmatprep.subr.bf16.mxu1 %v1530_v1  ;;  %337 = vst.msk [vmem:[#allocation2 + $0x90] sm:$0xff] %vm318_vm0, %v1531_v5  ;;  %338 = vst.msk [vmem:[#allocation2 + $0x98] sm:$0xff] %vm318_vm0, %v1531_v5  ;;  %v1460_v7 = vld [vmem:[%s1639_s5 + $0x4] ss:$8 sps:$4 sm:$0xff]   ;;  %v1458_v18 = vld [vmem:[%s1639_s5] ss:$8 sps:$4 sm:$0xff]   ;;  %s312_s30 = scalar_lea.vmem %s2009_s4, %s2017_s15 }
  0x12   : > { %339 = vst.msk [vmem:[#allocation2 + $0xa0] sm:$0xff] %vm318_vm0, %v1531_v5  ;;  %340 = vst.msk [vmem:[#allocation2 + $0xa8] sm:$0xff] %vm318_vm0, %v1531_v5  ;;  %1382 = vmatprep.mubr.msk.bf16.mxu0 %vm635_vm1, %v1460_v7  ;;  %v1472_v9 = vld [vmem:[%s1639_s5 + $0x84] ss:$8 sps:$4 sm:$0xff]   ;;  %v1470_v19 = vld [vmem:[%s1639_s5 + $0x80] ss:$8 sps:$4 sm:$0xff]  }
  0x13   : > { %341 = vst.msk [vmem:[#allocation2 + $0xb0] sm:$0xff] %vm318_vm0, %v1531_v5  ;;  %342 = vst.msk [vmem:[#allocation2 + $0xb8] sm:$0xff] %vm318_vm0, %v1531_v5  ;;  %1390 = vmatprep.mubr.msk.bf16.mxu1 %vm635_vm1, %v1472_v9  ;;  %v1461_v20 = vld [vmem:[%s1639_s5 + $0x14] ss:$8 sps:$4 sm:$0xff]   ;;  %v1463_v22 = vld [vmem:[%s1639_s5 + $0x10] ss:$8 sps:$4 sm:$0xff]  }
  0x14   : > { %343 = vst.msk [vmem:[#allocation2 + $0xc0] sm:$0xff] %vm318_vm0, %v1531_v5  ;;  %344 = vst.msk [vmem:[#allocation2 + $0xc8] sm:$0xff] %vm318_vm0, %v1531_v5  ;;  %698 = vmatpush1.bf16.msra.mxu0 %v1451_v4  ;;  %1414 = vmatpush1.bf16.msra.mxu1 %v1451_v4  ;;  %v1476_v21 = vld [vmem:[%s1639_s5 + $0x94] ss:$8 sps:$4 sm:$0xff]   ;;  %v1478_v23 = vld [vmem:[%s1639_s5 + $0x90] ss:$8 sps:$4 sm:$0xff]  }
  0x15   : > { %345 = vst.msk [vmem:[#allocation2 + $0xd0] sm:$0xff] %vm318_vm0, %v1531_v5  ;;  %346 = vst.msk [vmem:[#allocation2 + $0xd8] sm:$0xff] %vm318_vm0, %v1531_v5  ;;  %699 = vmatprep.subr.bf16.mxu0 %v1530_v1  ;;  %1405 = vmatprep.subr.bf16.mxu1 %v1530_v1  ;;  %v1464_v24 = vld [vmem:[%s1639_s5 + $0x24] ss:$8 sps:$4 sm:$0xff]   ;;  %v1466_v26 = vld [vmem:[%s1639_s5 + $0x20] ss:$8 sps:$4 sm:$0xff]  }
  0x16   : > { %347 = vst.msk [vmem:[#allocation2 + $0xe0] sm:$0xff] %vm318_vm0, %v1531_v5  ;;  %348 = vst.msk [vmem:[#allocation2 + $0xe8] sm:$0xff] %vm318_vm0, %v1531_v5  ;;  %v1482_v25 = vld [vmem:[%s1639_s5 + $0xa4] ss:$8 sps:$4 sm:$0xff]   ;;  %v1484_v27 = vld [vmem:[%s1639_s5 + $0xa0] ss:$8 sps:$4 sm:$0xff]  }
  0x17   : > { %349 = vst.msk [vmem:[#allocation2 + $0xf0] sm:$0xff] %vm318_vm0, %v1531_v5  ;;  %350 = vst.msk [vmem:[#allocation2 + $0xf8] sm:$0xff] %vm318_vm0, %v1531_v5  ;;  %v1467_v28 = vld [vmem:[%s1639_s5 + $0x34] ss:$8 sps:$4 sm:$0xff]   ;;  %v1469_v30 = vld [vmem:[%s1639_s5 + $0x30] ss:$8 sps:$4 sm:$0xff]  }
  0x18   : > { %700 = vmatpush1.bf16.msra.mxu0 %v1452_v6  ;;  %1415 = vmatpush1.bf16.msra.mxu1 %v1452_v6  ;;  %v1488_v29 = vld [vmem:[%s1639_s5 + $0xb4] ss:$8 sps:$4 sm:$0xff]   ;;  %v1490_v31 = vld [vmem:[%s1639_s5 + $0xb0] ss:$8 sps:$4 sm:$0xff]   ;;  %v1473_v32 = vld [vmem:[%s1639_s5 + $0x44] ss:$8 sps:$4 sm:$0xff]  }
  0x19   : > { %701 = vmatprep.subr.bf16.mxu0 %v1530_v1  ;;  %1406 = vmatprep.subr.bf16.mxu1 %v1530_v1  ;;  %v1494_v33 = vld [vmem:[%s1639_s5 + $0xc4] ss:$8 sps:$4 sm:$0xff]   ;;  %v1475_v34 = vld [vmem:[%s1639_s5 + $0x40] ss:$8 sps:$4 sm:$0xff]   ;;  %v1479_v36 = vld [vmem:[%s1639_s5 + $0x54] ss:$8 sps:$4 sm:$0xff]  }
  0x1a   : > { %v1496_v35 = vld [vmem:[%s1639_s5 + $0xc0] ss:$8 sps:$4 sm:$0xff]   ;;  %v1497_v37 = vld [vmem:[%s1639_s5 + $0xd4] ss:$8 sps:$4 sm:$0xff]   ;;  %v1481_v38 = vld [vmem:[%s1639_s5 + $0x50] ss:$8 sps:$4 sm:$0xff]  }
  0x1b   : > { %v1499_v39 = vld [vmem:[%s1639_s5 + $0xd0] ss:$8 sps:$4 sm:$0xff]   ;;  %v1485_v40 = vld [vmem:[%s1639_s5 + $0x64] ss:$8 sps:$4 sm:$0xff]   ;;  %v1487_v42 = vld [vmem:[%s1639_s5 + $0x60] ss:$8 sps:$4 sm:$0xff]  }
  0x1c   : > { %702 = vmatpush1.bf16.msra.mxu0 %v1453_v8  ;;  %1416 = vmatpush1.bf16.msra.mxu1 %v1453_v8  ;;  %v1500_v41 = vld [vmem:[%s1639_s5 + $0xe4] ss:$8 sps:$4 sm:$0xff]   ;;  %v1502_v43 = vld [vmem:[%s1639_s5 + $0xe0] ss:$8 sps:$4 sm:$0xff]   ;;  %v1491_v44 = vld [vmem:[%s1639_s5 + $0x74] ss:$8 sps:$4 sm:$0xff]  }
  0x1d   : > { %703 = vmatprep.subr.bf16.mxu0 %v1530_v1  ;;  %1407 = vmatprep.subr.bf16.mxu1 %v1530_v1  ;;  %v1503_v45 = vld [vmem:[%s1639_s5 + $0xf4] ss:$8 sps:$4 sm:$0xff]   ;;  %v1493_v46 = vld [vmem:[%s1639_s5 + $0x70] ss:$8 sps:$4 sm:$0xff]   ;;  %v367_v49 = vld [vmem:[#allocation2 + $0x80] sm:$0xff] }
  0x1e   : > { %v1505_v47 = vld [vmem:[%s1639_s5 + $0xf0] ss:$8 sps:$4 sm:$0xff]   ;;  %v368_v53 = vld [vmem:[#allocation2 + $0x88] sm:$0xff] }
  0x1f   : > { %v370_v9 = vld [vmem:[#allocation2 + $0x98] sm:$0xff] }
  0x20   : > { %704 = vmatpush1.bf16.msra.mxu0 %v1454_v10  ;;  %1417 = vmatpush1.bf16.msra.mxu1 %v1454_v10 }
  0x21   : > { %705 = vmatprep.subr.bf16.mxu0 %v1530_v1  ;;  %1408 = vmatprep.subr.bf16.mxu1 %v1530_v1 }
  0x24   : > { %706 = vmatpush1.bf16.msra.mxu0 %v1455_v11  ;;  %1418 = vmatpush1.bf16.msra.mxu1 %v1455_v11 }
  0x25   : > { %707 = vmatprep.subr.bf16.mxu0 %v1530_v1  ;;  %1409 = vmatprep.subr.bf16.mxu1 %v1530_v1 }
  0x28   : > { %708 = vmatpush1.bf16.msra.mxu0 %v1456_v14  ;;  %1419 = vmatpush1.bf16.msra.mxu1 %v1456_v14 }
  0x29   : > { %709 = vmatprep.subr.bf16.mxu0 %v1530_v1  ;;  %1410 = vmatprep.subr.bf16.mxu1 %v1530_v1  ;;  %v369_v1 = vld [vmem:[#allocation2 + $0x90] sm:$0xff] }
  0x2c   : > { %710 = vmatpush1.bf16.msra.mxu0 %v689_v17  ;;  %1420 = vmatpush1.bf16.msra.mxu1 %v689_v17 }
  0x2f   : > { %724 = vmatmul.mubr.bf16.vlgmr.msra.gmra.mrb[0].mxu0 %v1458_v18  ;;  %788 = vmatmul.mubr.bf16.vlgmr.msra.gmra.mrb[0].mxu1 %v1470_v19 }
  0x30   : > { %1383 = vmatprep.mubr.msk.bf16.mxu0 %vm635_vm1, %v1461_v20  ;;  %1391 = vmatprep.mubr.msk.bf16.mxu1 %vm635_vm1, %v1476_v21  ;;  %v355_v20 = vld [vmem:[#allocation2 + $0x20] sm:$0xff] }
  0x31   : > { %v371_v21 = vld [vmem:[#allocation2 + $0xa0] sm:$0xff] }
  0x37   : > { %732 = vmatmul.mubr.bf16.gmra.mrb[4].mxu0 %v1463_v22  ;;  %796 = vmatmul.mubr.bf16.gmra.mrb[4].mxu1 %v1478_v23  ;;  %v356_v23 = vld [vmem:[#allocation2 + $0x28] sm:$0xff] }
  0x38   : > { %1384 = vmatprep.mubr.msk.bf16.mxu0 %vm635_vm1, %v1464_v24  ;;  %1392 = vmatprep.mubr.msk.bf16.mxu1 %vm635_vm1, %v1482_v25 }
  0x3f   : > { %740 = vmatmul.mubr.bf16.gmra.mrb[8].mxu0 %v1466_v26  ;;  %804 = vmatmul.mubr.bf16.gmra.mrb[8].mxu1 %v1484_v27 }
  0x40   : > { %1385 = vmatprep.mubr.msk.bf16.mxu0 %vm635_vm1, %v1467_v28  ;;  %1393 = vmatprep.mubr.msk.bf16.mxu1 %vm635_vm1, %v1488_v29  ;;  %v372_v29 = vld [vmem:[#allocation2 + $0xa8] sm:$0xff] }
  0x47   : > { %748 = vmatmul.mubr.bf16.gmra.mrb[12].mxu0 %v1469_v30  ;;  %812 = vmatmul.mubr.bf16.gmra.mrb[12].mxu1 %v1490_v31 }
  0x48   : > { %1386 = vmatprep.mubr.msk.bf16.mxu0 %vm635_vm1, %v1473_v32  ;;  %1394 = vmatprep.mubr.msk.bf16.mxu1 %vm635_vm1, %v1494_v33 }
  0x4f   : > { %756 = vmatmul.mubr.bf16.gmra.mrb[16].mxu0 %v1475_v34  ;;  %820 = vmatmul.mubr.bf16.gmra.mrb[16].mxu1 %v1496_v35 }
  0x50   : > { %1387 = vmatprep.mubr.msk.bf16.mxu0 %vm635_vm1, %v1479_v36  ;;  %1395 = vmatprep.mubr.msk.bf16.mxu1 %vm635_vm1, %v1497_v37 }
  0x57   : > { %764 = vmatmul.mubr.bf16.gmra.mrb[20].mxu0 %v1481_v38  ;;  %828 = vmatmul.mubr.bf16.gmra.mrb[20].mxu1 %v1499_v39 }
  0x58   : > { %1388 = vmatprep.mubr.msk.bf16.mxu0 %vm635_vm1, %v1485_v40  ;;  %1396 = vmatprep.mubr.msk.bf16.mxu1 %vm635_vm1, %v1500_v41  ;;  %v357_v40 = vld [vmem:[#allocation2 + $0x30] sm:$0xff] }
  0x59   : > { %v373_v41 = vld [vmem:[#allocation2 + $0xb0] sm:$0xff] }
  0x5f   : > { %772 = vmatmul.mubr.bf16.gmra.mrb[24].mxu0 %v1487_v42  ;;  %836 = vmatmul.mubr.bf16.gmra.mrb[24].mxu1 %v1502_v43  ;;  %v358_v43 = vld [vmem:[#allocation2 + $0x38] sm:$0xff] }
  0x60   : > { %1389 = vmatprep.mubr.msk.bf16.mxu0 %vm635_vm1, %v1491_v44  ;;  %1397 = vmatprep.mubr.msk.bf16.mxu1 %vm635_vm1, %v1503_v45 }
  0x67   : > { %780 = vmatmul.mubr.bf16.gmra.mrb[28].mxu0 %v1493_v46  ;;  %844 = vmatmul.mubr.bf16.gmra.mrb[28].mxu1 %v1505_v47 }
 0x102   : > { %v725_v50 = vpop.f32.mrb[0].mxu0  ;;  %v789_v52 = vpop.f32.mrb[0].mxu1 }
 0x103   : > { %v852_v54 = vadd.f32 %v725_v50, %v351_v48  ;;  %v727_v55 = vpop.f32.mrb[1].mxu0  ;;  %v868_v56 = vadd.f32 %v789_v52, %v367_v49  ;;  %v791_v57 = vpop.f32.mrb[1].mxu1  ;;  %v374_v50 = vld [vmem:[#allocation2 + $0xb8] sm:$0xff] }
 0x104   : > { %v728_v58 = vpop.f32.mrb[2].mxu0  ;;  %v792_v59 = vpop.f32.mrb[2].mxu1 }
 0x105   : > { %885 = vst.msk [vmem:[#allocation2] sm:$0xff] %vm318_vm0, %v852_v54  ;;  %v853_v60 = vadd.f32 %v728_v58, %v352_v51  ;;  %v730_v61 = vpop.f32.mrb[3].mxu0  ;;  %901 = vst.msk [vmem:[#allocation2 + $0x80] sm:$0xff] %vm318_vm0, %v868_v56  ;;  %v869_v62 = vadd.f32 %v792_v59, %v368_v53  ;;  %v794_v63 = vpop.f32.mrb[3].mxu1 }
 0x107   : > { %886 = vst.msk [vmem:[#allocation2 + $0x8] sm:$0xff] %vm318_vm0, %v853_v60  ;;  %902 = vst.msk [vmem:[#allocation2 + $0x88] sm:$0xff] %vm318_vm0, %v869_v62 }
 0x10a   : > { %v733_v2 = vpop.f32.mrb[4].mxu0  ;;  %v797_v4 = vpop.f32.mrb[4].mxu1 }
 0x10b   : > { %v854_v5 = vadd.f32 %v733_v2, %v353_v0  ;;  %v735_v6 = vpop.f32.mrb[5].mxu0  ;;  %v870_v7 = vadd.f32 %v797_v4, %v369_v1  ;;  %v799_v8 = vpop.f32.mrb[5].mxu1  ;;  %v359_v4 = vld [vmem:[#allocation2 + $0x40] sm:$0xff] }
 0x10c   : > { %v1730_v10 = vld [vmem:[#allocation2] sm:$0xff]  ;;  %v736_v11 = vpop.f32.mrb[6].mxu0  ;;  %v800_v13 = vpop.f32.mrb[6].mxu1 }
 0x10d   : > { %v1732_v12 = vld [vmem:[#allocation2 + $0x80] sm:$0xff]  ;;  %952 = vst.msk [vmem:[%s1728_s24] sm:$0xff] %vm318_vm0, %v1730_v10  ;;  %887 = vst.msk [vmem:[#allocation2 + $0x10] sm:$0xff] %vm318_vm0, %v854_v5  ;;  %v855_v14 = vadd.f32 %v736_v11, %v354_v3  ;;  %v738_v15 = vpop.f32.mrb[7].mxu0  ;;  %v802_v16 = vpop.f32.mrb[7].mxu1  ;;  %v871_v19 = vadd.f32 %v800_v13, %v370_v9  ;;  %v1055_v55 = vmul.f32 %v1730_v10, %v1730_v10  ;;  %v984_v63 = vsel %vm318_vm0, %v1730_v10, 0.0 }
 0x10e   : > { %968 = vst.msk [vmem:[%s1728_s24 + $0x80] sm:$0xff] %vm318_vm0, %v1732_v12  ;;  %903 = vst.msk [vmem:[#allocation2 + $0x90] sm:$0xff] %vm318_vm0, %v870_v7  ;;  %v921_v17 = vld [vmem:[#allocation2 + $0x8] sm:$0xff]  ;;  %v375_v5 = vld [vmem:[#allocation2 + $0xc0] sm:$0xff] }
 0x10f   : > { %v1742_v18 = vld [vmem:[#allocation2 + $0x88] sm:$0xff]  ;;  %953 = vst.msk [vmem:[%s1728_s24 + $0x8] sm:$0xff] %vm318_vm0, %v921_v17  ;;  %888 = vst.msk [vmem:[#allocation2 + $0x18] sm:$0xff] %vm318_vm0, %v855_v14  ;;  %v1056_v45 = vmul.f32 %v921_v17, %v921_v17  ;;  %v985_v56 = vsel %vm318_vm0, %v921_v17, 0.0  ;;  %v1087_v6 = vsel %vm318_vm0, %v1055_v55, 0.0 }
 0x110   : > { %969 = vst.msk [vmem:[%s1728_s24 + $0x88] sm:$0xff] %vm318_vm0, %v1742_v18  ;;  %904 = vst.msk [vmem:[#allocation2 + $0x98] sm:$0xff] %vm318_vm0, %v871_v19  ;;  %v986_v3 = vadd.f32 %v985_v56, %v984_v63  ;;  %v360_v13 = vld [vmem:[#allocation2 + $0x48] sm:$0xff] }
 0x111   : > { %v1088_v0 = vsel %vm318_vm0, %v1056_v45, 0.0 }
 0x112   : > { %v741_v22 = vpop.f32.mrb[8].mxu0  ;;  %v805_v24 = vpop.f32.mrb[8].mxu1  ;;  %v1089_v9 = vadd.f32 %v1088_v0, %v1087_v6 }
 0x113   : > { %v856_v25 = vadd.f32 %v741_v22, %v355_v20  ;;  %v743_v26 = vpop.f32.mrb[9].mxu0  ;;  %v872_v27 = vadd.f32 %v805_v24, %v371_v21  ;;  %v807_v28 = vpop.f32.mrb[9].mxu1  ;;  %v376_v22 = vld [vmem:[#allocation2 + $0xc8] sm:$0xff] }
 0x114   : > { %v922_v30 = vld [vmem:[#allocation2 + $0x10] sm:$0xff]  ;;  %v744_v31 = vpop.f32.mrb[10].mxu0  ;;  %v808_v33 = vpop.f32.mrb[10].mxu1 }
 0x115   : > { %v1751_v32 = vld [vmem:[#allocation2 + $0x90] sm:$0xff]  ;;  %954 = vst.msk [vmem:[%s1728_s24 + $0x10] sm:$0xff] %vm318_vm0, %v922_v30  ;;  %889 = vst.msk [vmem:[#allocation2 + $0x20] sm:$0xff] %vm318_vm0, %v856_v25  ;;  %v857_v34 = vadd.f32 %v744_v31, %v356_v23  ;;  %v746_v35 = vpop.f32.mrb[11].mxu0  ;;  %v810_v36 = vpop.f32.mrb[11].mxu1  ;;  %v873_v38 = vadd.f32 %v808_v33, %v372_v29  ;;  %v1057_v57 = vmul.f32 %v922_v30, %v922_v30  ;;  %v987_v1 = vsel %vm318_vm0, %v922_v30, 0.0 }
 0x116   : > { %970 = vst.msk [vmem:[%s1728_s24 + $0x90] sm:$0xff] %vm318_vm0, %v1751_v32  ;;  %905 = vst.msk [vmem:[#allocation2 + $0xa0] sm:$0xff] %vm318_vm0, %v872_v27  ;;  %v923_v37 = vld [vmem:[#allocation2 + $0x18] sm:$0xff]  ;;  %v988_v10 = vadd.f32 %v987_v1, %v986_v3 }
 0x117   : > { %955 = vst.msk [vmem:[%s1728_s24 + $0x18] sm:$0xff] %vm318_vm0, %v923_v37  ;;  %890 = vst.msk [vmem:[#allocation2 + $0x28] sm:$0xff] %vm318_vm0, %v857_v34  ;;  %v1763_v39 = vld [vmem:[#allocation2 + $0x98] sm:$0xff]  ;;  %v1090_v7 = vsel %vm318_vm0, %v1057_v57, 0.0  ;;  %v1058_v8 = vmul.f32 %v923_v37, %v923_v37  ;;  %v989_v15 = vsel %vm318_vm0, %v923_v37, 0.0 }
 0x118   : > { %971 = vst.msk [vmem:[%s1728_s24 + $0x98] sm:$0xff] %vm318_vm0, %v1763_v39  ;;  %906 = vst.msk [vmem:[#allocation2 + $0xa8] sm:$0xff] %vm318_vm0, %v873_v38  ;;  %v1091_v23 = vadd.f32 %v1090_v7, %v1089_v9  ;;  %v990_v34 = vadd.f32 %v989_v15, %v988_v10  ;;  %v363_v15 = vld [vmem:[#allocation2 + $0x60] sm:$0xff] }
 0x119   : > { %v1092_v28 = vsel %vm318_vm0, %v1058_v8, 0.0 }
 0x11a   : > { %v749_v42 = vpop.f32.mrb[12].mxu0  ;;  %v813_v44 = vpop.f32.mrb[12].mxu1 }
 0x11b   : > { %v858_v46 = vadd.f32 %v749_v42, %v357_v40  ;;  %v751_v47 = vpop.f32.mrb[13].mxu0  ;;  %v874_v48 = vadd.f32 %v813_v44, %v373_v41  ;;  %v815_v49 = vpop.f32.mrb[13].mxu1  ;;  %v1093_v41 = vadd.f32 %v1092_v28, %v1091_v23  ;;  %v377_v44 = vld [vmem:[#allocation2 + $0xd0] sm:$0xff] }
 0x11c   : > { %v924_v51 = vld [vmem:[#allocation2 + $0x20] sm:$0xff]  ;;  %v752_v52 = vpop.f32.mrb[14].mxu0  ;;  %v816_v54 = vpop.f32.mrb[14].mxu1  ;;  %v362_v49 = vld [vmem:[#allocation2 + $0x58] sm:$0xff] }
 0x11d   : > { %v1769_v53 = vld [vmem:[#allocation2 + $0xa0] sm:$0xff]  ;;  %956 = vst.msk [vmem:[%s1728_s24 + $0x20] sm:$0xff] %vm318_vm0, %v924_v51  ;;  %891 = vst.msk [vmem:[#allocation2 + $0x30] sm:$0xff] %vm318_vm0, %v858_v46  ;;  %v859_v58 = vadd.f32 %v752_v52, %v358_v43  ;;  %v754_v59 = vpop.f32.mrb[15].mxu0  ;;  %v818_v60 = vpop.f32.mrb[15].mxu1  ;;  %v875_v62 = vadd.f32 %v816_v54, %v374_v50  ;;  %v1059_v16 = vmul.f32 %v924_v51, %v924_v51  ;;  %v991_v29 = vsel %vm318_vm0, %v924_v51, 0.0 }
 0x11e   : > { %972 = vst.msk [vmem:[%s1728_s24 + $0xa0] sm:$0xff] %vm318_vm0, %v1769_v53  ;;  %907 = vst.msk [vmem:[#allocation2 + $0xb0] sm:$0xff] %vm318_vm0, %v874_v48  ;;  %v925_v61 = vld [vmem:[#allocation2 + $0x28] sm:$0xff]  ;;  %v992_v42 = vadd.f32 %v991_v29, %v990_v34  ;;  %v361_v43 = vld [vmem:[#allocation2 + $0x50] sm:$0xff] }
 0x11f   : > { %957 = vst.msk [vmem:[%s1728_s24 + $0x28] sm:$0xff] %vm318_vm0, %v925_v61  ;;  %892 = vst.msk [vmem:[#allocation2 + $0x38] sm:$0xff] %vm318_vm0, %v859_v58  ;;  %v1788_v2 = vld [vmem:[#allocation2 + $0xa8] sm:$0xff]  ;;  %v1094_v37 = vsel %vm318_vm0, %v1059_v16, 0.0  ;;  %v1060_v38 = vmul.f32 %v925_v61, %v925_v61  ;;  %v993_v45 = vsel %vm318_vm0, %v925_v61, 0.0  ;;  %v378_v58 = vld [vmem:[#allocation2 + $0xd8] sm:$0xff] }
 0x120   : > { %973 = vst.msk [vmem:[%s1728_s24 + $0xa8] sm:$0xff] %vm318_vm0, %v1788_v2  ;;  %908 = vst.msk [vmem:[#allocation2 + $0xb8] sm:$0xff] %vm318_vm0, %v875_v62  ;;  %v1095_v47 = vadd.f32 %v1094_v37, %v1093_v41  ;;  %v994_v59 = vadd.f32 %v993_v45, %v992_v42  ;;  %v379_v16 = vld [vmem:[#allocation2 + $0xe0] sm:$0xff] }
 0x121   : > { %v1096_v51 = vsel %vm318_vm0, %v1060_v38, 0.0 }
 0x122   : > { %v757_v11 = vpop.f32.mrb[16].mxu0  ;;  %v821_v14 = vpop.f32.mrb[16].mxu1  ;;  %v1097_v6 = vadd.f32 %v1096_v51, %v1095_v47 }
 0x123   : > { %v860_v17 = vadd.f32 %v757_v11, %v359_v4  ;;  %v759_v19 = vpop.f32.mrb[17].mxu0  ;;  %v876_v20 = vadd.f32 %v821_v14, %v375_v5  ;;  %v823_v21 = vpop.f32.mrb[17].mxu1 }
 0x124   : > { %v926_v24 = vld [vmem:[#allocation2 + $0x30] sm:$0xff]  ;;  %v760_v25 = vpop.f32.mrb[18].mxu0  ;;  %v824_v27 = vpop.f32.mrb[18].mxu1 }
 0x125   : > { %v1797_v26 = vld [vmem:[#allocation2 + $0xb0] sm:$0xff]  ;;  %958 = vst.msk [vmem:[%s1728_s24 + $0x30] sm:$0xff] %vm318_vm0, %v926_v24  ;;  %893 = vst.msk [vmem:[#allocation2 + $0x40] sm:$0xff] %vm318_vm0, %v860_v17  ;;  %v861_v30 = vadd.f32 %v760_v25, %v360_v13  ;;  %v762_v31 = vpop.f32.mrb[19].mxu0  ;;  %v826_v33 = vpop.f32.mrb[19].mxu1  ;;  %v877_v36 = vadd.f32 %v824_v27, %v376_v22  ;;  %v1061_v46 = vmul.f32 %v926_v24, %v926_v24  ;;  %v995_v52 = vsel %vm318_vm0, %v926_v24, 0.0 }
 0x126   : > { %974 = vst.msk [vmem:[%s1728_s24 + $0xb0] sm:$0xff] %vm318_vm0, %v1797_v26  ;;  %909 = vst.msk [vmem:[#allocation2 + $0xc0] sm:$0xff] %vm318_vm0, %v876_v20  ;;  %v927_v35 = vld [vmem:[#allocation2 + $0x38] sm:$0xff]  ;;  %v996_v7 = vadd.f32 %v995_v52, %v994_v59  ;;  %v364_v22 = vld [vmem:[#allocation2 + $0x68] sm:$0xff] }
 0x127   : > { %959 = vst.msk [vmem:[%s1728_s24 + $0x38] sm:$0xff] %vm318_vm0, %v927_v35  ;;  %894 = vst.msk [vmem:[#allocation2 + $0x48] sm:$0xff] %vm318_vm0, %v861_v30  ;;  %v1812_v40 = vld [vmem:[#allocation2 + $0xb8] sm:$0xff]  ;;  %v1098_v0 = vsel %vm318_vm0, %v1061_v46, 0.0  ;;  %v1062_v1 = vmul.f32 %v927_v35, %v927_v35  ;;  %v997_v10 = vsel %vm318_vm0, %v927_v35, 0.0  ;;  %v380_v31 = vld [vmem:[#allocation2 + $0xe8] sm:$0xff] }
 0x128   : > { %975 = vst.msk [vmem:[%s1728_s24 + $0xb8] sm:$0xff] %vm318_vm0, %v1812_v40  ;;  %910 = vst.msk [vmem:[#allocation2 + $0xc8] sm:$0xff] %vm318_vm0, %v877_v36  ;;  %v1099_v14 = vadd.f32 %v1098_v0, %v1097_v6  ;;  %v998_v20 = vadd.f32 %v997_v10, %v996_v7  ;;  %v382_v6 = vld [vmem:[#allocation2 + $0xf8] sm:$0xff] }
 0x129   : > { %v1100_v17 = vsel %vm318_vm0, %v1062_v1, 0.0 }
 0x12a   : > { %v765_v48 = vpop.f32.mrb[20].mxu0  ;;  %v829_v50 = vpop.f32.mrb[20].mxu1  ;;  %v1101_v33 = vadd.f32 %v1100_v17, %v1099_v14 }
 0x12b   : > { %v862_v54 = vadd.f32 %v765_v48, %v361_v43  ;;  %v767_v55 = vpop.f32.mrb[21].mxu0  ;;  %v878_v56 = vadd.f32 %v829_v50, %v377_v44  ;;  %v831_v57 = vpop.f32.mrb[21].mxu1 }
 0x12c   : > { %v928_v60 = vld [vmem:[#allocation2 + $0x40] sm:$0xff]  ;;  %v768_v62 = vpop.f32.mrb[22].mxu0  ;;  %v832_v63 = vpop.f32.mrb[22].mxu1  ;;  %v381_v55 = vld [vmem:[#allocation2 + $0xf0] sm:$0xff] }
 0x12d   : > { %v1821_v61 = vld [vmem:[#allocation2 + $0xc0] sm:$0xff]  ;;  %960 = vst.msk [vmem:[%s1728_s24 + $0x40] sm:$0xff] %vm318_vm0, %v928_v60  ;;  %895 = vst.msk [vmem:[#allocation2 + $0x50] sm:$0xff] %vm318_vm0, %v862_v54  ;;  %v863_v3 = vadd.f32 %v768_v62, %v362_v49  ;;  %v770_v4 = vpop.f32.mrb[23].mxu0  ;;  %v834_v5 = vpop.f32.mrb[23].mxu1  ;;  %v879_v9 = vadd.f32 %v832_v63, %v378_v58  ;;  %v1063_v11 = vmul.f32 %v928_v60, %v928_v60  ;;  %v999_v19 = vsel %vm318_vm0, %v928_v60, 0.0 }
 0x12e   : > { %976 = vst.msk [vmem:[%s1728_s24 + $0xc0] sm:$0xff] %vm318_vm0, %v1821_v61  ;;  %911 = vst.msk [vmem:[#allocation2 + $0xd0] sm:$0xff] %vm318_vm0, %v878_v56  ;;  %v929_v8 = vld [vmem:[#allocation2 + $0x48] sm:$0xff]  ;;  %v1000_v34 = vadd.f32 %v999_v19, %v998_v20  ;;  %v365_v54 = vld [vmem:[#allocation2 + $0x70] sm:$0xff] }
 0x12f   : > { %961 = vst.msk [vmem:[%s1728_s24 + $0x48] sm:$0xff] %vm318_vm0, %v929_v8  ;;  %896 = vst.msk [vmem:[#allocation2 + $0x58] sm:$0xff] %vm318_vm0, %v863_v3  ;;  %v1835_v13 = vld [vmem:[#allocation2 + $0xc8] sm:$0xff]  ;;  %v1102_v24 = vsel %vm318_vm0, %v1063_v11, 0.0  ;;  %v1064_v25 = vmul.f32 %v929_v8, %v929_v8  ;;  %v1001_v41 = vsel %vm318_vm0, %v929_v8, 0.0  ;;  %v366_v62 = vld [vmem:[#allocation2 + $0x78] sm:$0xff] }
 0x130   : > { %977 = vst.msk [vmem:[%s1728_s24 + $0xc8] sm:$0xff] %vm318_vm0, %v1835_v13  ;;  %912 = vst.msk [vmem:[#allocation2 + $0xd8] sm:$0xff] %vm318_vm0, %v879_v9  ;;  %v1103_v46 = vadd.f32 %v1102_v24, %v1101_v33  ;;  %v1002_v52 = vadd.f32 %v1001_v41, %v1000_v34 }
 0x131   : > { %v1104_v49 = vsel %vm318_vm0, %v1064_v25, 0.0 }
 0x132   : > { %v773_v21 = vpop.f32.mrb[24].mxu0  ;;  %v837_v23 = vpop.f32.mrb[24].mxu1  ;;  %v1105_v58 = vadd.f32 %v1104_v49, %v1103_v46 }
 0x133   : > { %v864_v27 = vadd.f32 %v773_v21, %v363_v15  ;;  %v775_v28 = vpop.f32.mrb[25].mxu0  ;;  %v880_v29 = vadd.f32 %v837_v23, %v379_v16  ;;  %v839_v30 = vpop.f32.mrb[25].mxu1 }
 0x134   : > { %v930_v35 = vld [vmem:[#allocation2 + $0x50] sm:$0xff]  ;;  %v776_v36 = vpop.f32.mrb[26].mxu0  ;;  %v840_v38 = vpop.f32.mrb[26].mxu1 }
 0x135   : > { %v1844_v37 = vld [vmem:[#allocation2 + $0xd0] sm:$0xff]  ;;  %962 = vst.msk [vmem:[%s1728_s24 + $0x50] sm:$0xff] %vm318_vm0, %v930_v35  ;;  %v1065_v42 = vmul.f32 %v930_v35, %v930_v35  ;;  %897 = vst.msk [vmem:[#allocation2 + $0x60] sm:$0xff] %vm318_vm0, %v864_v27  ;;  %v865_v43 = vadd.f32 %v776_v36, %v364_v22  ;;  %v778_v44 = vpop.f32.mrb[27].mxu0  ;;  %v842_v45 = vpop.f32.mrb[27].mxu1  ;;  %v881_v48 = vadd.f32 %v840_v38, %v380_v31  ;;  %v1003_v50 = vsel %vm318_vm0, %v930_v35, 0.0 }
 0x136   : > { %978 = vst.msk [vmem:[%s1728_s24 + $0xd0] sm:$0xff] %vm318_vm0, %v1844_v37  ;;  %913 = vst.msk [vmem:[#allocation2 + $0xe0] sm:$0xff] %vm318_vm0, %v880_v29  ;;  %v931_v47 = vld [vmem:[#allocation2 + $0x58] sm:$0xff]  ;;  %v1004_v59 = vadd.f32 %v1003_v50, %v1002_v52  ;;  %v1071_v45 = vmul.f32 %v1732_v12, %v1732_v12 }
 0x137   : > { %963 = vst.msk [vmem:[%s1728_s24 + $0x58] sm:$0xff] %vm318_vm0, %v931_v47  ;;  %898 = vst.msk [vmem:[#allocation2 + $0x68] sm:$0xff] %vm318_vm0, %v865_v43  ;;  %v1859_v51 = vld [vmem:[#allocation2 + $0xd8] sm:$0xff]  ;;  %v1106_v56 = vsel %vm318_vm0, %v1065_v42, 0.0  ;;  %v1066_v57 = vmul.f32 %v931_v47, %v931_v47  ;;  %v1005_v0 = vsel %vm318_vm0, %v931_v47, 0.0 }
 0x138   : > { %979 = vst.msk [vmem:[%s1728_s24 + $0xd8] sm:$0xff] %vm318_vm0, %v1859_v51  ;;  %914 = vst.msk [vmem:[#allocation2 + $0xe8] sm:$0xff] %vm318_vm0, %v881_v48  ;;  %v1107_v7 = vadd.f32 %v1106_v56, %v1105_v58  ;;  %v1006_v21 = vadd.f32 %v1005_v0, %v1004_v59  ;;  %v1118_v59 = vsel %vm318_vm0, %v1071_v45, 0.0 }
 0x139   : > { %v1108_v14 = vsel %vm318_vm0, %v1066_v57, 0.0 }
 0x13a   : > { %v781_v60 = vpop.f32.mrb[28].mxu0  ;;  %v845_v63 = vpop.f32.mrb[28].mxu1  ;;  %v1109_v28 = vadd.f32 %v1108_v14, %v1107_v7  ;;  %v1075_v7 = vmul.f32 %v1769_v53, %v1769_v53  ;;  %v1076_v14 = vmul.f32 %v1788_v2, %v1788_v2 }
 0x13b   : > { %v866_v1 = vadd.f32 %v781_v60, %v365_v54  ;;  %v783_v3 = vpop.f32.mrb[29].mxu0  ;;  %v882_v4 = vadd.f32 %v845_v63, %v381_v55  ;;  %v847_v5 = vpop.f32.mrb[29].mxu1  ;;  %v1015_v54 = vsel %vm318_vm0, %v1732_v12, 0.0  ;;  %v1072_v55 = vmul.f32 %v1742_v18, %v1742_v18 }
 0x13c   : > { %v932_v8 = vld [vmem:[#allocation2 + $0x60] sm:$0xff]  ;;  %v784_v9 = vpop.f32.mrb[30].mxu0  ;;  %v848_v11 = vpop.f32.mrb[30].mxu1  ;;  %v1017_v60 = vsel %vm318_vm0, %v1742_v18, 0.0  ;;  %v1019_v12 = vsel %vm318_vm0, %v1751_v32, 0.0  ;;  %v1074_v3 = vmul.f32 %v1763_v39, %v1763_v39  ;;  %v1021_v18 = vsel %vm318_vm0, %v1763_v39, 0.0 }
 0x13d   : > { %v1867_v10 = vld [vmem:[#allocation2 + $0xe0] sm:$0xff]  ;;  %964 = vst.msk [vmem:[%s1728_s24 + $0x60] sm:$0xff] %vm318_vm0, %v932_v8  ;;  %v1007_v15 = vsel %vm318_vm0, %v932_v8, 0.0  ;;  %v1067_v16 = vmul.f32 %v932_v8, %v932_v8  ;;  %899 = vst.msk [vmem:[#allocation2 + $0x70] sm:$0xff] %vm318_vm0, %v866_v1  ;;  %v867_v17 = vadd.f32 %v784_v9, %v366_v62  ;;  %v786_v19 = vpop.f32.mrb[31].mxu0  ;;  %v850_v20 = vpop.f32.mrb[31].mxu1  ;;  %v883_v23 = vadd.f32 %v848_v11, %v382_v6 }
 0x13e   : > { %980 = vst.msk [vmem:[%s1728_s24 + $0xe0] sm:$0xff] %vm318_vm0, %v1867_v10  ;;  %915 = vst.msk [vmem:[#allocation2 + $0xf0] sm:$0xff] %vm318_vm0, %v882_v4  ;;  %v933_v22 = vld [vmem:[#allocation2 + $0x68] sm:$0xff]  ;;  %v1008_v29 = vadd.f32 %v1007_v15, %v1006_v21  ;;  %v1073_v62 = vmul.f32 %v1751_v32, %v1751_v32  ;;  %v1120_v1 = vsel %vm318_vm0, %v1072_v55, 0.0  ;;  %v1124_v11 = vsel %vm318_vm0, %v1074_v3, 0.0 }
 0x13f   : > { %v1110_v24 = vsel %vm318_vm0, %v1067_v16, 0.0  ;;  %965 = vst.msk [vmem:[%s1728_s24 + $0x68] sm:$0xff] %vm318_vm0, %v933_v22  ;;  %v1068_v25 = vmul.f32 %v933_v22, %v933_v22  ;;  %900 = vst.msk [vmem:[#allocation2 + $0x78] sm:$0xff] %vm318_vm0, %v867_v17  ;;  %v1882_v27 = vld [vmem:[#allocation2 + $0xe8] sm:$0xff]  ;;  %v1009_v30 = vsel %vm318_vm0, %v933_v22, 0.0  ;;  %v1023_v32 = vsel %vm318_vm0, %v1769_v53, 0.0 }
 0x140   : > { %981 = vst.msk [vmem:[%s1728_s24 + $0xe8] sm:$0xff] %vm318_vm0, %v1882_v27  ;;  %916 = vst.msk [vmem:[#allocation2 + $0xf8] sm:$0xff] %vm318_vm0, %v883_v23  ;;  %v1111_v31 = vadd.f32 %v1110_v24, %v1109_v28  ;;  %v1010_v34 = vadd.f32 %v1009_v30, %v1008_v29  ;;  %v1122_v6 = vsel %vm318_vm0, %v1073_v62, 0.0  ;;  %v1126_v17 = vsel %vm318_vm0, %v1075_v7, 0.0 }
 0x141   : > { %v1112_v33 = vsel %vm318_vm0, %v1068_v25, 0.0  ;;  %v1025_v39 = vsel %vm318_vm0, %v1788_v2, 0.0  ;;  %v1077_v19 = vmul.f32 %v1797_v26, %v1797_v26  ;;  %v1128_v22 = vsel %vm318_vm0, %v1076_v14, 0.0 }
 0x142   : > { %v1113_v42 = vadd.f32 %v1112_v33, %v1111_v31  ;;  %v1027_v53 = vsel %vm318_vm0, %v1797_v26, 0.0  ;;  %v1078_v23 = vmul.f32 %v1812_v40, %v1812_v40  ;;  %v1029_v2 = vsel %vm318_vm0, %v1812_v40, 0.0 }
 0x143   : > { %v1130_v28 = vsel %vm318_vm0, %v1077_v19, 0.0  ;;  %v1079_v29 = vmul.f32 %v1821_v61, %v1821_v61  ;;  %v1031_v26 = vsel %vm318_vm0, %v1821_v61, 0.0  ;;  %v1033_v40 = vsel %vm318_vm0, %v1835_v13, 0.0 }
 0x144   : > { %v934_v35 = vld [vmem:[#allocation2 + $0x70] sm:$0xff]  ;;  %v1132_v33 = vsel %vm318_vm0, %v1078_v23, 0.0  ;;  %v1035_v61 = vsel %vm318_vm0, %v1844_v37, 0.0  ;;  %v1041_v62 = vsel %vm318_vm0, %v1882_v27, 0.0 }
 0x145   : > { %v1890_v36 = vld [vmem:[#allocation2 + $0xf0] sm:$0xff]  ;;  %966 = vst.msk [vmem:[%s1728_s24 + $0x70] sm:$0xff] %vm318_vm0, %v934_v35  ;;  %v1011_v38 = vsel %vm318_vm0, %v934_v35, 0.0  ;;  %v1069_v41 = vmul.f32 %v934_v35, %v934_v35 }
 0x146   : > { %982 = vst.msk [vmem:[%s1728_s24 + $0xf0] sm:$0xff] %vm318_vm0, %v1890_v36  ;;  %v1012_v43 = vadd.f32 %v1011_v38, %v1010_v34  ;;  %v935_v44 = vld [vmem:[#allocation2 + $0x78] sm:$0xff]  ;;  %v1080_v34 = vmul.f32 %v1835_v13, %v1835_v13  ;;  %v1037_v13 = vsel %vm318_vm0, %v1859_v51, 0.0 }
 0x147   : > { %v1114_v46 = vsel %vm318_vm0, %v1069_v41, 0.0  ;;  %967 = vst.msk [vmem:[%s1728_s24 + $0x78] sm:$0xff] %vm318_vm0, %v935_v44  ;;  %v1013_v47 = vsel %vm318_vm0, %v935_v44, 0.0  ;;  %v1070_v48 = vmul.f32 %v935_v44, %v935_v44  ;;  %v1904_v49 = vld [vmem:[#allocation2 + $0xf8] sm:$0xff]  ;;  %v1134_v41 = vsel %vm318_vm0, %v1079_v29, 0.0 }
 0x148   : > { %v1115_v50 = vadd.f32 %v1114_v46, %v1113_v42  ;;  %v1014_v52 = vadd.f32 %v1013_v47, %v1012_v43  ;;  %983 = vst.msk [vmem:[%s1728_s24 + $0xf8] sm:$0xff] %vm318_vm0, %v1904_v49  ;;  %v1081_v42 = vmul.f32 %v1844_v37, %v1844_v37  ;;  %v1136_v45 = vsel %vm318_vm0, %v1080_v34, 0.0 }
 0x149   : > { %v1116_v56 = vsel %vm318_vm0, %v1070_v48, 0.0  ;;  %v1082_v46 = vmul.f32 %v1859_v51, %v1859_v51  ;;  %v1039_v37 = vsel %vm318_vm0, %v1867_v10, 0.0  ;;  %v1086_v3 = vmul.f32 %v1904_v49, %v1904_v49 }
 0x14a   : > { %v1016_v57 = vadd.f32 %v1015_v54, %v1014_v52  ;;  %v1117_v58 = vadd.f32 %v1116_v56, %v1115_v50  ;;  %v1138_v50 = vsel %vm318_vm0, %v1081_v42, 0.0  ;;  %v1083_v52 = vmul.f32 %v1867_v10, %v1867_v10 }
 0x14b   : > { %v1140_v56 = vsel %vm318_vm0, %v1082_v46, 0.0  ;;  %v1148_v7 = vsel %vm318_vm0, %v1086_v3, 0.0 }
 0x14c   : > { %v1018_v63 = vadd.f32 %v1017_v60, %v1016_v57  ;;  %v1119_v0 = vadd.f32 %v1118_v59, %v1117_v58  ;;  %v1084_v57 = vmul.f32 %v1882_v27, %v1882_v27  ;;  %v1085_v58 = vmul.f32 %v1890_v36, %v1890_v36 }
 0x14d   : > { %v1142_v51 = vsel %vm318_vm0, %v1083_v52, 0.0 }
 0x14e   : > { %v1020_v4 = vadd.f32 %v1019_v12, %v1018_v63  ;;  %v1121_v5 = vadd.f32 %v1120_v1, %v1119_v0  ;;  %v1043_v63 = vsel %vm318_vm0, %v1890_v36, 0.0  ;;  %v1144_v10 = vsel %vm318_vm0, %v1084_v57, 0.0 }
 0x14f   : > { %v1146_v12 = vsel %vm318_vm0, %v1085_v58, 0.0 }
 0x150   : > { %v1022_v8 = vadd.f32 %v1021_v18, %v1020_v4  ;;  %v1123_v9 = vadd.f32 %v1122_v6, %v1121_v5  ;;  %v1045_v6 = vsel %vm318_vm0, %v1904_v49, 0.0 }
 0x152   : > { %v1125_v15 = vadd.f32 %v1124_v11, %v1123_v9  ;;  %v1024_v16 = vadd.f32 %v1023_v32, %v1022_v8 }
 0x154   : > { %v1026_v20 = vadd.f32 %v1025_v39, %v1024_v16  ;;  %v1127_v21 = vadd.f32 %v1126_v17, %v1125_v15 }
 0x156   : > { %v1028_v24 = vadd.f32 %v1027_v53, %v1026_v20  ;;  %v1129_v25 = vadd.f32 %v1128_v22, %v1127_v21 }
 0x158   : > { %v1030_v30 = vadd.f32 %v1029_v2, %v1028_v24  ;;  %v1131_v31 = vadd.f32 %v1130_v28, %v1129_v25 }
 0x15a   : > { %v1032_v35 = vadd.f32 %v1031_v26, %v1030_v30  ;;  %v1133_v38 = vadd.f32 %v1132_v33, %v1131_v31 }
 0x15c   : > { %v1135_v43 = vadd.f32 %v1134_v41, %v1133_v38  ;;  %v1034_v44 = vadd.f32 %v1033_v40, %v1032_v35 }
 0x15e   : > { %v1137_v47 = vadd.f32 %v1136_v45, %v1135_v43  ;;  %v1036_v48 = vadd.f32 %v1035_v61, %v1034_v44 }
 0x160   : > { %v1139_v54 = vadd.f32 %v1138_v50, %v1137_v47  ;;  %v1038_v55 = vadd.f32 %v1037_v13, %v1036_v48 }
 0x162   : > { %v1141_v59 = vadd.f32 %v1140_v56, %v1139_v54  ;;  %v1040_v60 = vadd.f32 %v1039_v37, %v1038_v55 }
 0x164   : > { %v1143_v0 = vadd.f32 %v1142_v51, %v1141_v59  ;;  %v1042_v1 = vadd.f32 %v1041_v62, %v1040_v60 }
 0x166   : > { %v1145_v4 = vadd.f32 %v1144_v10, %v1143_v0  ;;  %v1044_v5 = vadd.f32 %v1043_v63, %v1042_v1 }
 0x168   : > { %v1147_v18 = vadd.f32 %v1146_v12, %v1145_v4  ;;  %v1046_v27 = vadd.f32 %v1045_v6, %v1044_v5 }
 0x16a   : > { %v1047_v36 = vrot.slane %v1046_v27, 4  ;;  %v1149_v8 = vadd.f32 %v1148_v7, %v1147_v18 }
 0x16c   : > { %v1048_v9 = vadd.f32 %v1047_v36, %v1046_v27  ;;  %v1150_v11 = vrot.slane %v1149_v8, 4 }
 0x16e   : > { %v1049_v32 = vrot.slane %v1048_v9, 2  ;;  %v1151_v14 = vadd.f32 %v1150_v11, %v1149_v8 }
 0x170   : > { %v1050_v15 = vadd.f32 %v1049_v32, %v1048_v9  ;;  %v1152_v16 = vrot.slane %v1151_v14, 2 }
 0x172   : > { %v1051_v17 = vrot.slane %v1050_v15, 1  ;;  %v1153_v39 = vadd.f32 %v1152_v16, %v1151_v14 }
 0x174   : > { %v1052_v49 = vadd.f32 %v1051_v17, %v1050_v15  ;;  %v1154_v19 = vrot.slane %v1153_v39, 1 }
 0x176   : > { %1054 = vst.msk [vmem:[%s306_s27] sm:$0x1] %vm1053_vm4, %v1052_v49  ;;  %v1155_v20 = vadd.f32 %v1154_v19, %v1153_v39 }
 0x178   : > { %1156 = vst.msk [vmem:[%s312_s30] sm:$0x1] %vm1053_vm4, %v1155_v20 }
 0x179 PF: > { %s15_s17 = sadd.s32 1, %s1528_s17   ;;  %s2010_s15 = smov %s1524_s16 }
 0x17a   : > { %p12_p6 = scmp.ge.s32.totalorder %s15_s17, 4   ;;  %s2011_s16 = smov %s2013_s18 }
 0x17c   :  { %14 = sbr.rel (!%p12_p6) target bundleno = 2 (0x2), region = 93 }

// kernel: classifier_net_forward.45
= control target key start
LH: loop header
LB: loop body
LE: loop exit
PB: predicated region body
PF: predicated region fallthrough
CT: control target
= control target key end

     0   :  { %vm304_vm0 = vcmask 523264   ;;  %s871_s0 = inlined_call_operand.vmem [shape: f32[128,64], index: 0, kind: input, shape index: {}]   ;;  %s872_s1 = inlined_call_operand.vmem [shape: f32[128,64], index: 1, kind: input, shape index: {}]   ;;  %s873_s2 = inlined_call_operand.vmem [shape: f32[128,64], index: 2, kind: input, shape index: {}]   ;;  %s874_s3 = inlined_call_operand.vmem [shape: f32[128,64], index: 3, kind: input, shape index: {}]   ;;  %s875_s4 = inlined_call_operand.vmem [shape: f32[128,64], index: 4, kind: input, shape index: {}]   ;;  %s876_s5 = inlined_call_operand.vmem [shape: f32[128,64], index: 5, kind: input, shape index: {}]   ;;  %s877_s6 = inlined_call_operand.vmem [shape: f32[128,64], index: 6, kind: input, shape index: {}]   ;;  %s878_s7 = inlined_call_operand.vmem [shape: f32[128,64], index: 7, kind: input, shape index: {}]   ;;  %s879_s8 = inlined_call_operand.vmem [shape: f32[128,64], index: 8, kind: input, shape index: {}]   ;;  %s880_s9 = inlined_call_operand.vmem [shape: f32[128,64], index: 9, kind: output, shape index: {}]  }
   0x1   :  { %v32_v0 = vld [vmem:[%s871_s0] sm:$0xff]  ;;  %v33_v6 = vld [vmem:[%s871_s0 + $0x8] sm:$0xff]  ;;  %v34_v15 = vld [vmem:[%s871_s0 + $0x10] sm:$0xff] }
   0x2   :  { %v48_v1 = vld [vmem:[%s872_s1] sm:$0xff]  ;;  %v49_v7 = vld [vmem:[%s872_s1 + $0x8] sm:$0xff]  ;;  %v50_v16 = vld [vmem:[%s872_s1 + $0x10] sm:$0xff] }
   0x3   :  { %v80_v2 = vld [vmem:[%s873_s2] sm:$0xff]  ;;  %v64_v3 = vmax.f32 %v32_v0, %v48_v1  ;;  %v81_v8 = vld [vmem:[%s873_s2 + $0x8] sm:$0xff]  ;;  %v65_v10 = vmax.f32 %v33_v6, %v49_v7  ;;  %v82_v17 = vld [vmem:[%s873_s2 + $0x10] sm:$0xff]  ;;  %v66_v20 = vmax.f32 %v34_v15, %v50_v16 }
   0x4   :  { %v112_v4 = vld [vmem:[%s874_s3] sm:$0xff]  ;;  %v113_v13 = vld [vmem:[%s874_s3 + $0x8] sm:$0xff]  ;;  %v114_v24 = vld [vmem:[%s874_s3 + $0x10] sm:$0xff] }
   0x5   :  { %v96_v5 = vmax.f32 %v64_v3, %v80_v2  ;;  %v144_v9 = vld [vmem:[%s875_s4] sm:$0xff]  ;;  %v97_v14 = vmax.f32 %v65_v10, %v81_v8  ;;  %v145_v19 = vld [vmem:[%s875_s4 + $0x8] sm:$0xff]  ;;  %v98_v26 = vmax.f32 %v66_v20, %v82_v17  ;;  %v35_v27 = vld [vmem:[%s871_s0 + $0x18] sm:$0xff] }
   0x6   :  { %v176_v12 = vld [vmem:[%s876_s5] sm:$0xff]  ;;  %v177_v23 = vld [vmem:[%s876_s5 + $0x8] sm:$0xff]  ;;  %v51_v28 = vld [vmem:[%s872_s1 + $0x18] sm:$0xff] }
   0x7   :  { %v128_v11 = vmax.f32 %v96_v5, %v112_v4  ;;  %v208_v21 = vld [vmem:[%s877_s6] sm:$0xff]  ;;  %v129_v22 = vmax.f32 %v97_v14, %v113_v13  ;;  %v83_v29 = vld [vmem:[%s873_s2 + $0x18] sm:$0xff]  ;;  %v146_v33 = vld [vmem:[%s875_s4 + $0x10] sm:$0xff]  ;;  %v67_v34 = vmax.f32 %v35_v27, %v51_v28  ;;  %v130_v37 = vmax.f32 %v98_v26, %v114_v24 }
   0x8   :  { %v240_v30 = vld [vmem:[%s878_s7] sm:$0xff]  ;;  %v209_v36 = vld [vmem:[%s877_s6 + $0x8] sm:$0xff]  ;;  %v178_v38 = vld [vmem:[%s876_s5 + $0x10] sm:$0xff] }
   0x9   :  { %v160_v18 = vmax.f32 %v128_v11, %v144_v9  ;;  %v272_v31 = vld [vmem:[%s879_s8] sm:$0xff]  ;;  %v161_v32 = vmax.f32 %v129_v22, %v145_v19  ;;  %v115_v39 = vld [vmem:[%s874_s3 + $0x18] sm:$0xff]  ;;  %v99_v41 = vmax.f32 %v67_v34, %v83_v29  ;;  %v241_v46 = vld [vmem:[%s878_s7 + $0x8] sm:$0xff]  ;;  %v162_v48 = vmax.f32 %v130_v37, %v146_v33 }
   0xa   :  { %v36_v42 = vld [vmem:[%s871_s0 + $0x20] sm:$0xff]  ;;  %v273_v47 = vld [vmem:[%s879_s8 + $0x8] sm:$0xff]  ;;  %v147_v49 = vld [vmem:[%s875_s4 + $0x18] sm:$0xff] }
   0xb   :  { %v192_v25 = vmax.f32 %v160_v18, %v176_v12  ;;  %v193_v40 = vmax.f32 %v161_v32, %v177_v23  ;;  %v52_v43 = vld [vmem:[%s872_s1 + $0x20] sm:$0xff]  ;;  %v210_v52 = vld [vmem:[%s877_s6 + $0x10] sm:$0xff]  ;;  %v131_v53 = vmax.f32 %v99_v41, %v115_v39  ;;  %v179_v54 = vld [vmem:[%s876_s5 + $0x18] sm:$0xff]  ;;  %v194_v57 = vmax.f32 %v162_v48, %v178_v38 }
   0xc   :  { %v84_v44 = vld [vmem:[%s873_s2 + $0x20] sm:$0xff]  ;;  %v68_v50 = vmax.f32 %v36_v42, %v52_v43  ;;  %v37_v59 = vld [vmem:[%s871_s0 + $0x28] sm:$0xff]  ;;  %v242_v63 = vld [vmem:[%s878_s7 + $0x10] sm:$0xff] }
   0xd   :  { %v224_v35 = vmax.f32 %v192_v25, %v208_v21  ;;  %v225_v51 = vmax.f32 %v193_v40, %v209_v36  ;;  %v116_v55 = vld [vmem:[%s874_s3 + $0x20] sm:$0xff]  ;;  %v53_v60 = vld [vmem:[%s872_s1 + $0x28] sm:$0xff]  ;;  %v274_v0 = vld [vmem:[%s879_s8 + $0x10] sm:$0xff]  ;;  %v163_v1 = vmax.f32 %v131_v53, %v147_v49  ;;  %v226_v4 = vmax.f32 %v194_v57, %v210_v52 }
   0xe   :  { %v100_v58 = vmax.f32 %v68_v50, %v84_v44  ;;  %v85_v61 = vld [vmem:[%s873_s2 + $0x28] sm:$0xff]  ;;  %v148_v2 = vld [vmem:[%s875_s4 + $0x20] sm:$0xff]  ;;  %v69_v3 = vmax.f32 %v37_v59, %v53_v60  ;;  %v211_v5 = vld [vmem:[%s877_s6 + $0x18] sm:$0xff] }
   0xf   :  { %v256_v45 = vmax.f32 %v224_v35, %v240_v30  ;;  %v257_v62 = vmax.f32 %v225_v51, %v241_v46  ;;  %v180_v7 = vld [vmem:[%s876_s5 + $0x20] sm:$0xff]  ;;  %v117_v8 = vld [vmem:[%s874_s3 + $0x28] sm:$0xff]  ;;  %v195_v10 = vmax.f32 %v163_v1, %v179_v54  ;;  %v38_v12 = vld [vmem:[%s871_s0 + $0x30] sm:$0xff]  ;;  %v258_v15 = vmax.f32 %v226_v4, %v242_v63 }
  0x10   :  { %v132_v6 = vmax.f32 %v100_v58, %v116_v55  ;;  %v101_v11 = vmax.f32 %v69_v3, %v85_v61  ;;  %v54_v13 = vld [vmem:[%s872_s1 + $0x30] sm:$0xff]  ;;  %v243_v16 = vld [vmem:[%s878_s7 + $0x18] sm:$0xff]  ;;  %v149_v19 = vld [vmem:[%s875_s4 + $0x28] sm:$0xff] }
  0x11   :  { %v288_v56 = vmax.f32 %v256_v45, %v272_v31  ;;  %v289_v9 = vmax.f32 %v257_v62, %v273_v47  ;;  %v86_v14 = vld [vmem:[%s873_s2 + $0x30] sm:$0xff]  ;;  %v275_v17 = vld [vmem:[%s879_s8 + $0x18] sm:$0xff]  ;;  %v70_v20 = vmax.f32 %v38_v12, %v54_v13  ;;  %v227_v21 = vmax.f32 %v195_v10, %v211_v5  ;;  %v212_v22 = vld [vmem:[%s877_s6 + $0x20] sm:$0xff] }
  0x12   :  { %v164_v18 = vmax.f32 %v132_v6, %v148_v2  ;;  %v133_v23 = vmax.f32 %v101_v11, %v117_v8  ;;  %v181_v24 = vld [vmem:[%s876_s5 + $0x28] sm:$0xff]  ;;  %v118_v25 = vld [vmem:[%s874_s3 + $0x30] sm:$0xff]  ;;  %v290_v26 = vmax.f32 %v258_v15, %v274_v0  ;;  %v39_v29 = vld [vmem:[%s871_s0 + $0x38] sm:$0xff] }
  0x13   :  { %305 = vst.msk [vmem:[%s880_s9] sm:$0xff] %vm304_vm0, %v288_v56  ;;  %306 = vst.msk [vmem:[%s880_s9 + $0x8] sm:$0xff] %vm304_vm0, %v289_v9  ;;  %v102_v28 = vmax.f32 %v70_v20, %v86_v14  ;;  %v55_v30 = vld [vmem:[%s872_s1 + $0x38] sm:$0xff]  ;;  %v259_v32 = vmax.f32 %v227_v21, %v243_v16  ;;  %v244_v33 = vld [vmem:[%s878_s7 + $0x20] sm:$0xff] }
  0x14   :  { %v196_v27 = vmax.f32 %v164_v18, %v180_v7  ;;  %v87_v31 = vld [vmem:[%s873_s2 + $0x38] sm:$0xff]  ;;  %v276_v34 = vld [vmem:[%s879_s8 + $0x20] sm:$0xff]  ;;  %v165_v35 = vmax.f32 %v133_v23, %v149_v19  ;;  %v150_v36 = vld [vmem:[%s875_s4 + $0x30] sm:$0xff]  ;;  %v71_v37 = vmax.f32 %v39_v29, %v55_v30  ;;  %307 = vst.msk [vmem:[%s880_s9 + $0x10] sm:$0xff] %vm304_vm0, %v290_v26 }
  0x15   :  { %v213_v39 = vld [vmem:[%s877_s6 + $0x28] sm:$0xff]  ;;  %v134_v40 = vmax.f32 %v102_v28, %v118_v25  ;;  %v182_v41 = vld [vmem:[%s876_s5 + $0x30] sm:$0xff]  ;;  %v119_v42 = vld [vmem:[%s874_s3 + $0x38] sm:$0xff]  ;;  %v291_v43 = vmax.f32 %v259_v32, %v275_v17 }
  0x16   :  { %v228_v38 = vmax.f32 %v196_v27, %v212_v22  ;;  %v197_v44 = vmax.f32 %v165_v35, %v181_v24  ;;  %v103_v45 = vmax.f32 %v71_v37, %v87_v31  ;;  %v40_v46 = vld [vmem:[%s871_s0 + $0x40] sm:$0xff]  ;;  %v245_v50 = vld [vmem:[%s878_s7 + $0x28] sm:$0xff]  ;;  %v151_v53 = vld [vmem:[%s875_s4 + $0x38] sm:$0xff] }
  0x17   :  { %v56_v47 = vld [vmem:[%s872_s1 + $0x40] sm:$0xff]  ;;  %v277_v51 = vld [vmem:[%s879_s8 + $0x28] sm:$0xff]  ;;  %v166_v52 = vmax.f32 %v134_v40, %v150_v36  ;;  %308 = vst.msk [vmem:[%s880_s9 + $0x18] sm:$0xff] %vm304_vm0, %v291_v43  ;;  %v214_v56 = vld [vmem:[%s877_s6 + $0x30] sm:$0xff] }
  0x18   :  { %v88_v48 = vld [vmem:[%s873_s2 + $0x40] sm:$0xff]  ;;  %v260_v49 = vmax.f32 %v228_v38, %v244_v33  ;;  %v72_v54 = vmax.f32 %v40_v46, %v56_v47  ;;  %v229_v55 = vmax.f32 %v197_v44, %v213_v39  ;;  %v135_v57 = vmax.f32 %v103_v45, %v119_v42  ;;  %v183_v58 = vld [vmem:[%s876_s5 + $0x38] sm:$0xff]  ;;  %v41_v63 = vld [vmem:[%s871_s0 + $0x48] sm:$0xff] }
  0x19   :  { %v120_v59 = vld [vmem:[%s874_s3 + $0x40] sm:$0xff]  ;;  %v198_v61 = vmax.f32 %v166_v52, %v182_v41  ;;  %v57_v0 = vld [vmem:[%s872_s1 + $0x48] sm:$0xff]  ;;  %v246_v3 = vld [vmem:[%s878_s7 + $0x30] sm:$0xff] }
  0x1a   :  { %v292_v60 = vmax.f32 %v260_v49, %v276_v34  ;;  %v104_v62 = vmax.f32 %v72_v54, %v88_v48  ;;  %v89_v1 = vld [vmem:[%s873_s2 + $0x48] sm:$0xff]  ;;  %v261_v2 = vmax.f32 %v229_v55, %v245_v50  ;;  %v278_v4 = vld [vmem:[%s879_s8 + $0x30] sm:$0xff]  ;;  %v167_v5 = vmax.f32 %v135_v57, %v151_v53  ;;  %v152_v6 = vld [vmem:[%s875_s4 + $0x40] sm:$0xff] }
  0x1b   :  { %v73_v7 = vmax.f32 %v41_v63, %v57_v0  ;;  %v230_v8 = vmax.f32 %v198_v61, %v214_v56  ;;  %v215_v9 = vld [vmem:[%s877_s6 + $0x38] sm:$0xff]  ;;  %v184_v11 = vld [vmem:[%s876_s5 + $0x40] sm:$0xff]  ;;  %v121_v12 = vld [vmem:[%s874_s3 + $0x48] sm:$0xff] }
  0x1c   :  { %309 = vst.msk [vmem:[%s880_s9 + $0x20] sm:$0xff] %vm304_vm0, %v292_v60  ;;  %v136_v10 = vmax.f32 %v104_v62, %v120_v59  ;;  %v293_v13 = vmax.f32 %v261_v2, %v277_v51  ;;  %v199_v14 = vmax.f32 %v167_v5, %v183_v58  ;;  %v42_v16 = vld [vmem:[%s871_s0 + $0x50] sm:$0xff]  ;;  %v247_v20 = vld [vmem:[%s878_s7 + $0x38] sm:$0xff]  ;;  %v153_v23 = vld [vmem:[%s875_s4 + $0x48] sm:$0xff] }
  0x1d   :  { %v105_v15 = vmax.f32 %v73_v7, %v89_v1  ;;  %v58_v17 = vld [vmem:[%s872_s1 + $0x50] sm:$0xff]  ;;  %v262_v19 = vmax.f32 %v230_v8, %v246_v3  ;;  %v279_v21 = vld [vmem:[%s879_s8 + $0x38] sm:$0xff]  ;;  %v216_v26 = vld [vmem:[%s877_s6 + $0x40] sm:$0xff] }
  0x1e   :  { %v90_v18 = vld [vmem:[%s873_s2 + $0x50] sm:$0xff]  ;;  %v168_v22 = vmax.f32 %v136_v10, %v152_v6  ;;  %v74_v24 = vmax.f32 %v42_v16, %v58_v17  ;;  %310 = vst.msk [vmem:[%s880_s9 + $0x28] sm:$0xff] %vm304_vm0, %v293_v13  ;;  %v231_v25 = vmax.f32 %v199_v14, %v215_v9  ;;  %v185_v28 = vld [vmem:[%s876_s5 + $0x48] sm:$0xff]  ;;  %v43_v33 = vld [vmem:[%s871_s0 + $0x58] sm:$0xff] }
  0x1f   :  { %v137_v27 = vmax.f32 %v105_v15, %v121_v12  ;;  %v122_v29 = vld [vmem:[%s874_s3 + $0x50] sm:$0xff]  ;;  %v294_v30 = vmax.f32 %v262_v19, %v278_v4  ;;  %v59_v34 = vld [vmem:[%s872_s1 + $0x58] sm:$0xff]  ;;  %v248_v37 = vld [vmem:[%s878_s7 + $0x40] sm:$0xff] }
  0x20   :  { %v200_v31 = vmax.f32 %v168_v22, %v184_v11  ;;  %v106_v32 = vmax.f32 %v74_v24, %v90_v18  ;;  %v91_v35 = vld [vmem:[%s873_s2 + $0x58] sm:$0xff]  ;;  %v263_v36 = vmax.f32 %v231_v25, %v247_v20  ;;  %v280_v38 = vld [vmem:[%s879_s8 + $0x40] sm:$0xff]  ;;  %v154_v40 = vld [vmem:[%s875_s4 + $0x50] sm:$0xff]  ;;  %v75_v41 = vmax.f32 %v43_v33, %v59_v34 }
  0x21   :  { %v169_v39 = vmax.f32 %v137_v27, %v153_v23  ;;  %311 = vst.msk [vmem:[%s880_s9 + $0x30] sm:$0xff] %vm304_vm0, %v294_v30  ;;  %v217_v43 = vld [vmem:[%s877_s6 + $0x48] sm:$0xff]  ;;  %v186_v45 = vld [vmem:[%s876_s5 + $0x50] sm:$0xff]  ;;  %v123_v46 = vld [vmem:[%s874_s3 + $0x58] sm:$0xff] }
  0x22   :  { %v232_v42 = vmax.f32 %v200_v31, %v216_v26  ;;  %v138_v44 = vmax.f32 %v106_v32, %v122_v29  ;;  %v295_v47 = vmax.f32 %v263_v36, %v279_v21  ;;  %v107_v49 = vmax.f32 %v75_v41, %v91_v35  ;;  %v44_v50 = vld [vmem:[%s871_s0 + $0x60] sm:$0xff]  ;;  %v249_v54 = vld [vmem:[%s878_s7 + $0x48] sm:$0xff]  ;;  %v155_v57 = vld [vmem:[%s875_s4 + $0x58] sm:$0xff] }
  0x23   :  { %v201_v48 = vmax.f32 %v169_v39, %v185_v28  ;;  %v60_v51 = vld [vmem:[%s872_s1 + $0x60] sm:$0xff]  ;;  %v281_v55 = vld [vmem:[%s879_s8 + $0x48] sm:$0xff]  ;;  %v218_v60 = vld [vmem:[%s877_s6 + $0x50] sm:$0xff] }
  0x24   :  { %v92_v52 = vld [vmem:[%s873_s2 + $0x60] sm:$0xff]  ;;  %v264_v53 = vmax.f32 %v232_v42, %v248_v37  ;;  %v170_v56 = vmax.f32 %v138_v44, %v154_v40  ;;  %v76_v58 = vmax.f32 %v44_v50, %v60_v51  ;;  %312 = vst.msk [vmem:[%s880_s9 + $0x38] sm:$0xff] %vm304_vm0, %v295_v47  ;;  %v139_v61 = vmax.f32 %v107_v49, %v123_v46  ;;  %v187_v62 = vld [vmem:[%s876_s5 + $0x58] sm:$0xff]  ;;  %v45_v3 = vld [vmem:[%s871_s0 + $0x68] sm:$0xff] }
  0x25   :  { %v233_v59 = vmax.f32 %v201_v48, %v217_v43  ;;  %v124_v63 = vld [vmem:[%s874_s3 + $0x60] sm:$0xff]  ;;  %v61_v4 = vld [vmem:[%s872_s1 + $0x68] sm:$0xff]  ;;  %v250_v7 = vld [vmem:[%s878_s7 + $0x50] sm:$0xff] }
  0x26   :  { %v296_v0 = vmax.f32 %v264_v53, %v280_v38  ;;  %v202_v1 = vmax.f32 %v170_v56, %v186_v45  ;;  %v108_v2 = vmax.f32 %v76_v58, %v92_v52  ;;  %v93_v5 = vld [vmem:[%s873_s2 + $0x68] sm:$0xff]  ;;  %v282_v8 = vld [vmem:[%s879_s8 + $0x50] sm:$0xff]  ;;  %v171_v9 = vmax.f32 %v139_v61, %v155_v57  ;;  %v156_v10 = vld [vmem:[%s875_s4 + $0x60] sm:$0xff] }
  0x27   :  { %v265_v6 = vmax.f32 %v233_v59, %v249_v54  ;;  %v77_v11 = vmax.f32 %v45_v3, %v61_v4  ;;  %v219_v13 = vld [vmem:[%s877_s6 + $0x58] sm:$0xff]  ;;  %v188_v15 = vld [vmem:[%s876_s5 + $0x60] sm:$0xff]  ;;  %v125_v16 = vld [vmem:[%s874_s3 + $0x68] sm:$0xff] }
  0x28   :  { %313 = vst.msk [vmem:[%s880_s9 + $0x40] sm:$0xff] %vm304_vm0, %v296_v0  ;;  %v234_v12 = vmax.f32 %v202_v1, %v218_v60  ;;  %v140_v14 = vmax.f32 %v108_v2, %v124_v63  ;;  %v203_v18 = vmax.f32 %v171_v9, %v187_v62  ;;  %v46_v20 = vld [vmem:[%s871_s0 + $0x70] sm:$0xff]  ;;  %v251_v24 = vld [vmem:[%s878_s7 + $0x58] sm:$0xff]  ;;  %v157_v27 = vld [vmem:[%s875_s4 + $0x68] sm:$0xff] }
  0x29   :  { %v297_v17 = vmax.f32 %v265_v6, %v281_v55  ;;  %v109_v19 = vmax.f32 %v77_v11, %v93_v5  ;;  %v62_v21 = vld [vmem:[%s872_s1 + $0x70] sm:$0xff]  ;;  %v283_v25 = vld [vmem:[%s879_s8 + $0x58] sm:$0xff]  ;;  %v220_v30 = vld [vmem:[%s877_s6 + $0x60] sm:$0xff] }
  0x2a   :  { %v94_v22 = vld [vmem:[%s873_s2 + $0x70] sm:$0xff]  ;;  %v266_v23 = vmax.f32 %v234_v12, %v250_v7  ;;  %v172_v26 = vmax.f32 %v140_v14, %v156_v10  ;;  %v78_v28 = vmax.f32 %v46_v20, %v62_v21  ;;  %v235_v29 = vmax.f32 %v203_v18, %v219_v13  ;;  %v189_v32 = vld [vmem:[%s876_s5 + $0x68] sm:$0xff]  ;;  %v47_v37 = vld [vmem:[%s871_s0 + $0x78] sm:$0xff] }
  0x2b   :  { %314 = vst.msk [vmem:[%s880_s9 + $0x48] sm:$0xff] %vm304_vm0, %v297_v17  ;;  %v141_v31 = vmax.f32 %v109_v19, %v125_v16  ;;  %v126_v33 = vld [vmem:[%s874_s3 + $0x70] sm:$0xff]  ;;  %v63_v38 = vld [vmem:[%s872_s1 + $0x78] sm:$0xff]  ;;  %v252_v41 = vld [vmem:[%s878_s7 + $0x60] sm:$0xff] }
  0x2c   :  { %v298_v34 = vmax.f32 %v266_v23, %v282_v8  ;;  %v204_v35 = vmax.f32 %v172_v26, %v188_v15  ;;  %v110_v36 = vmax.f32 %v78_v28, %v94_v22  ;;  %v95_v39 = vld [vmem:[%s873_s2 + $0x78] sm:$0xff]  ;;  %v267_v40 = vmax.f32 %v235_v29, %v251_v24  ;;  %v158_v43 = vld [vmem:[%s875_s4 + $0x70] sm:$0xff]  ;;  %v221_v46 = vld [vmem:[%s877_s6 + $0x68] sm:$0xff] }
  0x2d   :  { %v173_v42 = vmax.f32 %v141_v31, %v157_v27  ;;  %v79_v44 = vmax.f32 %v47_v37, %v63_v38  ;;  %v127_v48 = vld [vmem:[%s874_s3 + $0x78] sm:$0xff]  ;;  %v284_v50 = vld [vmem:[%s879_s8 + $0x60] sm:$0xff]  ;;  %v190_v52 = vld [vmem:[%s876_s5 + $0x70] sm:$0xff] }
  0x2e   :  { %315 = vst.msk [vmem:[%s880_s9 + $0x50] sm:$0xff] %vm304_vm0, %v298_v34  ;;  %v236_v45 = vmax.f32 %v204_v35, %v220_v30  ;;  %v142_v47 = vmax.f32 %v110_v36, %v126_v33  ;;  %v299_v49 = vmax.f32 %v267_v40, %v283_v25  ;;  %v253_v55 = vld [vmem:[%s878_s7 + $0x68] sm:$0xff]  ;;  %v159_v57 = vld [vmem:[%s875_s4 + $0x78] sm:$0xff]  ;;  %v222_v59 = vld [vmem:[%s877_s6 + $0x70] sm:$0xff] }
  0x2f   :  { %v205_v51 = vmax.f32 %v173_v42, %v189_v32  ;;  %v111_v53 = vmax.f32 %v79_v44, %v95_v39  ;;  %v285_v62 = vld [vmem:[%s879_s8 + $0x68] sm:$0xff]  ;;  %v191_v0 = vld [vmem:[%s876_s5 + $0x78] sm:$0xff]  ;;  %v254_v2 = vld [vmem:[%s878_s7 + $0x70] sm:$0xff] }
  0x30   :  { %v268_v54 = vmax.f32 %v236_v45, %v252_v41  ;;  %v174_v56 = vmax.f32 %v142_v47, %v158_v43  ;;  %316 = vst.msk [vmem:[%s880_s9 + $0x58] sm:$0xff] %vm304_vm0, %v299_v49  ;;  %v223_v5 = vld [vmem:[%s877_s6 + $0x78] sm:$0xff]  ;;  %v286_v7 = vld [vmem:[%s879_s8 + $0x70] sm:$0xff] }
  0x31   :  { %v237_v58 = vmax.f32 %v205_v51, %v221_v46  ;;  %v143_v60 = vmax.f32 %v111_v53, %v127_v48  ;;  %v255_v10 = vld [vmem:[%s878_s7 + $0x78] sm:$0xff] }
  0x32   :  { %v300_v61 = vmax.f32 %v268_v54, %v284_v50  ;;  %v206_v63 = vmax.f32 %v174_v56, %v190_v52  ;;  %v287_v13 = vld [vmem:[%s879_s8 + $0x78] sm:$0xff] }
  0x33   :  { %v269_v1 = vmax.f32 %v237_v58, %v253_v55  ;;  %v175_v3 = vmax.f32 %v143_v60, %v159_v57 }
  0x34   :  { %317 = vst.msk [vmem:[%s880_s9 + $0x60] sm:$0xff] %vm304_vm0, %v300_v61  ;;  %v238_v4 = vmax.f32 %v206_v63, %v222_v59 }
  0x35   :  { %v301_v6 = vmax.f32 %v269_v1, %v285_v62  ;;  %v207_v8 = vmax.f32 %v175_v3, %v191_v0 }
  0x36   :  { %v270_v9 = vmax.f32 %v238_v4, %v254_v2 }
  0x37   :  { %318 = vst.msk [vmem:[%s880_s9 + $0x68] sm:$0xff] %vm304_vm0, %v301_v6  ;;  %v239_v11 = vmax.f32 %v207_v8, %v223_v5 }
  0x38   :  { %v302_v12 = vmax.f32 %v270_v9, %v286_v7 }
  0x39   :  { %v271_v14 = vmax.f32 %v239_v11, %v255_v10 }
  0x3a   :  { %319 = vst.msk [vmem:[%s880_s9 + $0x70] sm:$0xff] %vm304_vm0, %v302_v12 }
  0x3b   :  { %v303_v15 = vmax.f32 %v271_v14, %v287_v13 }
  0x3d   :  { %320 = vst.msk [vmem:[%s880_s9 + $0x78] sm:$0xff] %vm304_vm0, %v303_v15 }

// kernel: classifier_net_forward.47
= control target key start
LH: loop header
LB: loop body
LE: loop exit
PB: predicated region body
PF: predicated region fallthrough
CT: control target
= control target key end

     0   :  { %vm92_vm0 = vcmask 523264   ;;  %s271_s0 = inlined_call_operand.vmem [shape: f32[128,64], index: 0, kind: input, shape index: {}]   ;;  %s272_s1 = inlined_call_operand.vmem [shape: f32[1,64], index: 1, kind: input, shape index: {}]   ;;  %s273_s2 = inlined_call_operand.vmem [shape: f32[1,64], index: 2, kind: input, shape index: {}]   ;;  %s274_s3 = inlined_call_operand.vmem [shape: f32[128,64], index: 3, kind: output, shape index: {}]  }
   0x1   :  { %v14_v0 = vld [vmem:[%s271_s0] sm:$0xff]  ;;  %v15_v4 = vld [vmem:[%s271_s0 + $0x8] sm:$0xff]  ;;  %v16_v5 = vld [vmem:[%s271_s0 + $0x10] sm:$0xff] }
   0x2   :  { %v113_v1 = vld [vmem:[%s272_s1] ss:$0 sm:$0xff]  ;;  %v17_v6 = vld [vmem:[%s271_s0 + $0x18] sm:$0xff]  ;;  %v19_v11 = vld [vmem:[%s271_s0 + $0x28] sm:$0xff] }
   0x3   :  { %v144_v2 = vld [vmem:[%s273_s2] ss:$0 sm:$0xff]  ;;  %v37_v3 = vmul.f32 %v113_v1, %v14_v0  ;;  %v38_v7 = vmul.f32 %v113_v1, %v15_v4  ;;  %v39_v8 = vmul.f32 %v113_v1, %v16_v5  ;;  %v40_v9 = vmul.f32 %v113_v1, %v17_v6  ;;  %v20_v12 = vld [vmem:[%s271_s0 + $0x30] sm:$0xff]  ;;  %v21_v17 = vld [vmem:[%s271_s0 + $0x38] sm:$0xff] }
   0x4   :  { %v18_v10 = vld [vmem:[%s271_s0 + $0x20] sm:$0xff]  ;;  %v42_v15 = vmul.f32 %v113_v1, %v19_v11  ;;  %v43_v16 = vmul.f32 %v113_v1, %v20_v12  ;;  %v44_v21 = vmul.f32 %v113_v1, %v21_v17  ;;  %v23_v27 = vld [vmem:[%s271_s0 + $0x48] sm:$0xff]  ;;  %v24_v28 = vld [vmem:[%s271_s0 + $0x50] sm:$0xff] }
   0x5   :  { %v60_v13 = vadd.f32 %v144_v2, %v37_v3  ;;  %v41_v14 = vmul.f32 %v113_v1, %v18_v10  ;;  %v61_v18 = vadd.f32 %v144_v2, %v38_v7  ;;  %v62_v19 = vadd.f32 %v144_v2, %v39_v8  ;;  %v22_v22 = vld [vmem:[%s271_s0 + $0x40] sm:$0xff]  ;;  %v25_v29 = vld [vmem:[%s271_s0 + $0x58] sm:$0xff]  ;;  %v27_v35 = vld [vmem:[%s271_s0 + $0x68] sm:$0xff] }
   0x6   :  { %v63_v20 = vadd.f32 %v144_v2, %v40_v9  ;;  %v65_v25 = vadd.f32 %v144_v2, %v42_v15  ;;  %v66_v26 = vadd.f32 %v144_v2, %v43_v16  ;;  %v67_v33 = vadd.f32 %v144_v2, %v44_v21  ;;  %v26_v34 = vld [vmem:[%s271_s0 + $0x60] sm:$0xff]  ;;  %v28_v36 = vld [vmem:[%s271_s0 + $0x70] sm:$0xff]  ;;  %v29_v41 = vld [vmem:[%s271_s0 + $0x78] sm:$0xff] }
   0x7   :  { %v76_v23 = vmax.f32 %v60_v13, 0.0  ;;  %v64_v24 = vadd.f32 %v144_v2, %v41_v14  ;;  %v77_v30 = vmax.f32 %v61_v18, 0.0  ;;  %v78_v31 = vmax.f32 %v62_v19, 0.0 }
   0x8   :  { %v79_v32 = vmax.f32 %v63_v20, 0.0  ;;  %v81_v38 = vmax.f32 %v65_v25, 0.0  ;;  %v82_v39 = vmax.f32 %v66_v26, 0.0  ;;  %v45_v40 = vmul.f32 %v113_v1, %v22_v22 }
   0x9   :  { %93 = vst.msk [vmem:[%s274_s3] sm:$0xff] %vm92_vm0, %v76_v23  ;;  %v80_v37 = vmax.f32 %v64_v24, 0.0  ;;  %94 = vst.msk [vmem:[%s274_s3 + $0x8] sm:$0xff] %vm92_vm0, %v77_v30  ;;  %v83_v42 = vmax.f32 %v67_v33, 0.0  ;;  %v46_v43 = vmul.f32 %v113_v1, %v23_v27  ;;  %v47_v44 = vmul.f32 %v113_v1, %v24_v28 }
   0xa   :  { %95 = vst.msk [vmem:[%s274_s3 + $0x10] sm:$0xff] %vm92_vm0, %v78_v31  ;;  %96 = vst.msk [vmem:[%s274_s3 + $0x18] sm:$0xff] %vm92_vm0, %v79_v32  ;;  %v48_v45 = vmul.f32 %v113_v1, %v25_v29  ;;  %v68_v46 = vadd.f32 %v144_v2, %v45_v40  ;;  %v49_v47 = vmul.f32 %v113_v1, %v26_v34 }
   0xb   :  { %97 = vst.msk [vmem:[%s274_s3 + $0x20] sm:$0xff] %vm92_vm0, %v80_v37  ;;  %98 = vst.msk [vmem:[%s274_s3 + $0x28] sm:$0xff] %vm92_vm0, %v81_v38  ;;  %v50_v48 = vmul.f32 %v113_v1, %v27_v35  ;;  %v51_v49 = vmul.f32 %v113_v1, %v28_v36  ;;  %v69_v50 = vadd.f32 %v144_v2, %v46_v43 }
   0xc   :  { %99 = vst.msk [vmem:[%s274_s3 + $0x30] sm:$0xff] %vm92_vm0, %v82_v39  ;;  %100 = vst.msk [vmem:[%s274_s3 + $0x38] sm:$0xff] %vm92_vm0, %v83_v42  ;;  %v70_v51 = vadd.f32 %v144_v2, %v47_v44  ;;  %v71_v52 = vadd.f32 %v144_v2, %v48_v45  ;;  %v52_v53 = vmul.f32 %v113_v1, %v29_v41  ;;  %v84_v54 = vmax.f32 %v68_v46, 0.0 }
   0xd   :  { %v72_v55 = vadd.f32 %v144_v2, %v49_v47  ;;  %v73_v56 = vadd.f32 %v144_v2, %v50_v48  ;;  %v74_v57 = vadd.f32 %v144_v2, %v51_v49  ;;  %v85_v58 = vmax.f32 %v69_v50, 0.0 }
   0xe   :  { %v86_v59 = vmax.f32 %v70_v51, 0.0  ;;  %v87_v60 = vmax.f32 %v71_v52, 0.0  ;;  %v75_v61 = vadd.f32 %v144_v2, %v52_v53  ;;  %101 = vst.msk [vmem:[%s274_s3 + $0x40] sm:$0xff] %vm92_vm0, %v84_v54 }
   0xf   :  { %v88_v62 = vmax.f32 %v72_v55, 0.0  ;;  %v89_v63 = vmax.f32 %v73_v56, 0.0  ;;  %v90_v0 = vmax.f32 %v74_v57, 0.0  ;;  %102 = vst.msk [vmem:[%s274_s3 + $0x48] sm:$0xff] %vm92_vm0, %v85_v58 }
  0x10   :  { %103 = vst.msk [vmem:[%s274_s3 + $0x50] sm:$0xff] %vm92_vm0, %v86_v59  ;;  %104 = vst.msk [vmem:[%s274_s3 + $0x58] sm:$0xff] %vm92_vm0, %v87_v60  ;;  %v91_v1 = vmax.f32 %v75_v61, 0.0 }
  0x11   :  { %105 = vst.msk [vmem:[%s274_s3 + $0x60] sm:$0xff] %vm92_vm0, %v88_v62  ;;  %106 = vst.msk [vmem:[%s274_s3 + $0x68] sm:$0xff] %vm92_vm0, %v89_v63 }
  0x12   :  { %107 = vst.msk [vmem:[%s274_s3 + $0x70] sm:$0xff] %vm92_vm0, %v90_v0  ;;  %108 = vst.msk [vmem:[%s274_s3 + $0x78] sm:$0xff] %vm92_vm0, %v91_v1 }

// kernel: classifier_net_forward.49
= control target key start
LH: loop header
LB: loop body
LE: loop exit
PB: predicated region body
PF: predicated region fallthrough
CT: control target
= control target key end

     0   :  { %vm127_vm0 = vcmask 523264   ;;  %s377_s0 = inlined_call_operand.vmem [shape: f32[128,64], index: 0, kind: input, shape index: {}]   ;;  %s378_s1 = inlined_call_operand.vmem [shape: f32[1,64], index: 1, kind: input, shape index: {}]   ;;  %s379_s2 = inlined_call_operand.vmem [shape: f32[1,64], index: 2, kind: input, shape index: {}]   ;;  %s380_s3 = inlined_call_operand.vmem [shape: f32[128,64], index: 3, kind: input, shape index: {}]   ;;  %s381_s4 = inlined_call_operand.vmem [shape: f32[128,64], index: 4, kind: output, shape index: {}]  }
   0x1   :  { %v17_v0 = vld [vmem:[%s377_s0] sm:$0xff]  ;;  %v18_v4 = vld [vmem:[%s377_s0 + $0x8] sm:$0xff]  ;;  %v19_v7 = vld [vmem:[%s377_s0 + $0x10] sm:$0xff] }
   0x2   :  { %v181_v1 = vld [vmem:[%s378_s1] ss:$0 sm:$0xff]  ;;  %v20_v8 = vld [vmem:[%s377_s0 + $0x18] sm:$0xff]  ;;  %v80_v10 = vld [vmem:[%s380_s3 + $0x8] sm:$0xff] }
   0x3   :  { %v186_v2 = vld [vmem:[%s379_s2] ss:$0 sm:$0xff]  ;;  %v40_v3 = vmul.f32 %v181_v1, %v17_v0  ;;  %v41_v6 = vmul.f32 %v181_v1, %v18_v4  ;;  %v42_v11 = vmul.f32 %v181_v1, %v19_v7  ;;  %v81_v12 = vld [vmem:[%s380_s3 + $0x10] sm:$0xff]  ;;  %v43_v13 = vmul.f32 %v181_v1, %v20_v8  ;;  %v82_v16 = vld [vmem:[%s380_s3 + $0x18] sm:$0xff] }
   0x4   :  { %v79_v5 = vld [vmem:[%s380_s3] sm:$0xff]  ;;  %v22_v18 = vld [vmem:[%s377_s0 + $0x28] sm:$0xff]  ;;  %v23_v19 = vld [vmem:[%s377_s0 + $0x30] sm:$0xff] }
   0x5   :  { %v63_v9 = vadd.f32 %v186_v2, %v40_v3  ;;  %v21_v14 = vld [vmem:[%s377_s0 + $0x20] sm:$0xff]  ;;  %v64_v15 = vadd.f32 %v186_v2, %v41_v6  ;;  %v65_v21 = vadd.f32 %v186_v2, %v42_v11  ;;  %v66_v22 = vadd.f32 %v186_v2, %v43_v13  ;;  %v24_v25 = vld [vmem:[%s377_s0 + $0x38] sm:$0xff]  ;;  %v84_v28 = vld [vmem:[%s380_s3 + $0x28] sm:$0xff] }
   0x6   :  { %v44_v17 = vmul.f32 %v181_v1, %v21_v14  ;;  %v83_v23 = vld [vmem:[%s380_s3 + $0x20] sm:$0xff]  ;;  %v45_v24 = vmul.f32 %v181_v1, %v22_v18  ;;  %v46_v29 = vmul.f32 %v181_v1, %v23_v19  ;;  %v47_v30 = vmul.f32 %v181_v1, %v24_v25  ;;  %v85_v36 = vld [vmem:[%s380_s3 + $0x30] sm:$0xff]  ;;  %v86_v37 = vld [vmem:[%s380_s3 + $0x38] sm:$0xff] }
   0x7   :  { %v95_v20 = vadd.f32 %v79_v5, %v63_v9  ;;  %v96_v26 = vadd.f32 %v80_v10, %v64_v15  ;;  %v25_v31 = vld [vmem:[%s377_s0 + $0x40] sm:$0xff]  ;;  %v97_v33 = vadd.f32 %v81_v12, %v65_v21  ;;  %v98_v34 = vadd.f32 %v82_v16, %v66_v22  ;;  %v26_v38 = vld [vmem:[%s377_s0 + $0x48] sm:$0xff]  ;;  %v27_v43 = vld [vmem:[%s377_s0 + $0x50] sm:$0xff] }
   0x8   :  { %v67_v27 = vadd.f32 %v186_v2, %v44_v17  ;;  %v68_v35 = vadd.f32 %v186_v2, %v45_v24  ;;  %v69_v41 = vadd.f32 %v186_v2, %v46_v29  ;;  %v70_v42 = vadd.f32 %v186_v2, %v47_v30  ;;  %v28_v44 = vld [vmem:[%s377_s0 + $0x58] sm:$0xff]  ;;  %v29_v49 = vld [vmem:[%s377_s0 + $0x60] sm:$0xff]  ;;  %v30_v55 = vld [vmem:[%s377_s0 + $0x68] sm:$0xff] }
   0x9   :  { %v111_v32 = vmax.f32 %v95_v20, 0.0  ;;  %v112_v39 = vmax.f32 %v96_v26, 0.0  ;;  %v113_v45 = vmax.f32 %v97_v33, 0.0  ;;  %v114_v46 = vmax.f32 %v98_v34, 0.0  ;;  %v87_v53 = vld [vmem:[%s380_s3 + $0x40] sm:$0xff]  ;;  %v88_v58 = vld [vmem:[%s380_s3 + $0x48] sm:$0xff] }
   0xa   :  { %v99_v40 = vadd.f32 %v83_v23, %v67_v27  ;;  %v100_v47 = vadd.f32 %v84_v28, %v68_v35  ;;  %v48_v48 = vmul.f32 %v181_v1, %v25_v31  ;;  %v101_v51 = vadd.f32 %v85_v36, %v69_v41  ;;  %v31_v61 = vld [vmem:[%s377_s0 + $0x70] sm:$0xff]  ;;  %v32_v62 = vld [vmem:[%s377_s0 + $0x78] sm:$0xff]  ;;  %v91_v10 = vld [vmem:[%s380_s3 + $0x60] sm:$0xff] }
   0xb   :  { %128 = vst.msk [vmem:[%s381_s4] sm:$0xff] %vm127_vm0, %v111_v32  ;;  %129 = vst.msk [vmem:[%s381_s4 + $0x8] sm:$0xff] %vm127_vm0, %v112_v39  ;;  %v102_v52 = vadd.f32 %v86_v37, %v70_v42  ;;  %v49_v54 = vmul.f32 %v181_v1, %v26_v38  ;;  %v50_v59 = vmul.f32 %v181_v1, %v27_v43  ;;  %v89_v4 = vld [vmem:[%s380_s3 + $0x50] sm:$0xff]  ;;  %v90_v5 = vld [vmem:[%s380_s3 + $0x58] sm:$0xff] }
   0xc   :  { %v115_v50 = vmax.f32 %v99_v40, 0.0  ;;  %130 = vst.msk [vmem:[%s381_s4 + $0x10] sm:$0xff] %vm127_vm0, %v113_v45  ;;  %131 = vst.msk [vmem:[%s381_s4 + $0x18] sm:$0xff] %vm127_vm0, %v114_v46  ;;  %v116_v56 = vmax.f32 %v100_v47, 0.0  ;;  %v71_v57 = vadd.f32 %v186_v2, %v48_v48  ;;  %v51_v60 = vmul.f32 %v181_v1, %v28_v44  ;;  %v92_v14 = vld [vmem:[%s380_s3 + $0x68] sm:$0xff]  ;;  %v93_v21 = vld [vmem:[%s380_s3 + $0x70] sm:$0xff] }
   0xd   :  { %v117_v63 = vmax.f32 %v101_v51, 0.0  ;;  %v118_v0 = vmax.f32 %v102_v52, 0.0  ;;  %v72_v3 = vadd.f32 %v186_v2, %v49_v54  ;;  %v52_v6 = vmul.f32 %v181_v1, %v29_v49  ;;  %v94_v22 = vld [vmem:[%s380_s3 + $0x78] sm:$0xff] }
   0xe   :  { %132 = vst.msk [vmem:[%s381_s4 + $0x20] sm:$0xff] %vm127_vm0, %v115_v50  ;;  %133 = vst.msk [vmem:[%s381_s4 + $0x28] sm:$0xff] %vm127_vm0, %v116_v56  ;;  %v103_v7 = vadd.f32 %v87_v53, %v71_v57  ;;  %v73_v8 = vadd.f32 %v186_v2, %v50_v59  ;;  %v74_v9 = vadd.f32 %v186_v2, %v51_v60 }
   0xf   :  { %v53_v11 = vmul.f32 %v181_v1, %v30_v55  ;;  %134 = vst.msk [vmem:[%s381_s4 + $0x30] sm:$0xff] %vm127_vm0, %v117_v63  ;;  %135 = vst.msk [vmem:[%s381_s4 + $0x38] sm:$0xff] %vm127_vm0, %v118_v0  ;;  %v104_v12 = vadd.f32 %v88_v58, %v72_v3  ;;  %v75_v13 = vadd.f32 %v186_v2, %v52_v6 }
  0x10   :  { %v54_v15 = vmul.f32 %v181_v1, %v31_v61  ;;  %v55_v16 = vmul.f32 %v181_v1, %v32_v62  ;;  %v119_v17 = vmax.f32 %v103_v7, 0.0  ;;  %v105_v18 = vadd.f32 %v89_v4, %v73_v8 }
  0x11   :  { %v106_v19 = vadd.f32 %v90_v5, %v74_v9  ;;  %v76_v20 = vadd.f32 %v186_v2, %v53_v11  ;;  %v120_v23 = vmax.f32 %v104_v12, 0.0  ;;  %v107_v24 = vadd.f32 %v91_v10, %v75_v13 }
  0x12   :  { %v77_v25 = vadd.f32 %v186_v2, %v54_v15  ;;  %v78_v26 = vadd.f32 %v186_v2, %v55_v16  ;;  %136 = vst.msk [vmem:[%s381_s4 + $0x40] sm:$0xff] %vm127_vm0, %v119_v17  ;;  %v121_v1 = vmax.f32 %v105_v18, 0.0 }
  0x13   :  { %v122_v27 = vmax.f32 %v106_v19, 0.0  ;;  %v108_v28 = vadd.f32 %v92_v14, %v76_v20  ;;  %137 = vst.msk [vmem:[%s381_s4 + $0x48] sm:$0xff] %vm127_vm0, %v120_v23  ;;  %v123_v29 = vmax.f32 %v107_v24, 0.0 }
  0x14   :  { %v109_v30 = vadd.f32 %v93_v21, %v77_v25  ;;  %v110_v31 = vadd.f32 %v94_v22, %v78_v26  ;;  %138 = vst.msk [vmem:[%s381_s4 + $0x50] sm:$0xff] %vm127_vm0, %v121_v1 }
  0x15   :  { %139 = vst.msk [vmem:[%s381_s4 + $0x58] sm:$0xff] %vm127_vm0, %v122_v27  ;;  %v124_v2 = vmax.f32 %v108_v28, 0.0  ;;  %140 = vst.msk [vmem:[%s381_s4 + $0x60] sm:$0xff] %vm127_vm0, %v123_v29 }
  0x16   :  { %v125_v32 = vmax.f32 %v109_v30, 0.0  ;;  %v126_v33 = vmax.f32 %v110_v31, 0.0 }
  0x17   :  { %141 = vst.msk [vmem:[%s381_s4 + $0x68] sm:$0xff] %vm127_vm0, %v124_v2 }
  0x18   :  { %142 = vst.msk [vmem:[%s381_s4 + $0x70] sm:$0xff] %vm127_vm0, %v125_v32  ;;  %143 = vst.msk [vmem:[%s381_s4 + $0x78] sm:$0xff] %vm127_vm0, %v126_v33 }

// kernel: classifier_net_forward.46
= control target key start
LH: loop header
LB: loop body
LE: loop exit
PB: predicated region body
PF: predicated region fallthrough
CT: control target
= control target key end

     0   :  { %vm19_vm0 = vcmask 523264   ;;  %vm1008_vm1 = vcmask 516096   ;;  %s1887_s1 = inlined_call_operand.vmem [shape: bf16[576,64], index: 1, kind: input, shape index: {}]   ;;  %s1888_s0 = inlined_call_operand.vmem [shape: bf16[128,576], index: 0, kind: input, shape index: {}]   ;;  %s1889_s2 = inlined_call_operand.vmem [shape: f32[128,64], index: 2, kind: output, shape index: {0}]   ;;  %s1890_s3 = inlined_call_operand.vmem [shape: f32[1,1,64], index: 3, kind: output, shape index: {1}]   ;;  %s1891_s4 = inlined_call_operand.vmem [shape: f32[1,1,64], index: 4, kind: output, shape index: {2}]  }
   0x1   :  { %v1333_v0 = vld [vmem:[%s1887_s1 + $0x40] sm:$0xff]   ;;  %v1337_v4 = vld [vmem:[%s1887_s1 + $0x48] sm:$0xff]   ;;  %v1341_v8 = vld [vmem:[%s1887_s1 + $0x50] sm:$0xff]  }
   0x2   :  { %v1334_v1 = vld [vmem:[%s1887_s1 + $0xc0] sm:$0xff]   ;;  %1160 = vmatprep.subr.bf16.mxu0 %v1333_v0  ;;  %v1338_v5 = vld [vmem:[%s1887_s1 + $0xc8] sm:$0xff]   ;;  %v1342_v9 = vld [vmem:[%s1887_s1 + $0xd0] sm:$0xff]  }
   0x3   :  { %v1335_v2 = vld [vmem:[%s1887_s1] sm:$0xff]   ;;  %1224 = vmatprep.subr.bf16.mxu1 %v1334_v1  ;;  %v1339_v6 = vld [vmem:[%s1887_s1 + $0x8] sm:$0xff]   ;;  %v1343_v10 = vld [vmem:[%s1887_s1 + $0x10] sm:$0xff]  }
   0x4   :  { %v1336_v3 = vld [vmem:[%s1887_s1 + $0x80] sm:$0xff]   ;;  %1161 = vmatpush3.bf16.msra.mxu0 %v1335_v2  ;;  %v1340_v7 = vld [vmem:[%s1887_s1 + $0x88] sm:$0xff]   ;;  %v1344_v11 = vld [vmem:[%s1887_s1 + $0x90] sm:$0xff]  }
   0x5   :  { %1225 = vmatpush3.bf16.msra.mxu1 %v1336_v3  ;;  %1162 = vmatprep.subr.bf16.mxu0 %v1337_v4  ;;  %v1345_v12 = vld [vmem:[%s1887_s1 + $0x58] sm:$0xff]   ;;  %v1349_v16 = vld [vmem:[%s1887_s1 + $0x60] sm:$0xff]   ;;  %v1353_v20 = vld [vmem:[%s1887_s1 + $0x68] sm:$0xff]  }
   0x6   :  { %1226 = vmatprep.subr.bf16.mxu1 %v1338_v5  ;;  %v1346_v13 = vld [vmem:[%s1887_s1 + $0xd8] sm:$0xff]   ;;  %v1350_v17 = vld [vmem:[%s1887_s1 + $0xe0] sm:$0xff]   ;;  %v1354_v21 = vld [vmem:[%s1887_s1 + $0xe8] sm:$0xff]  }
   0x7   :  { %v1347_v14 = vld [vmem:[%s1887_s1 + $0x18] sm:$0xff]   ;;  %v1351_v18 = vld [vmem:[%s1887_s1 + $0x20] sm:$0xff]   ;;  %v1355_v22 = vld [vmem:[%s1887_s1 + $0x28] sm:$0xff]  }
   0x8   :  { %1163 = vmatpush3.bf16.msra.mxu0 %v1339_v6  ;;  %v1348_v15 = vld [vmem:[%s1887_s1 + $0x98] sm:$0xff]   ;;  %v1352_v19 = vld [vmem:[%s1887_s1 + $0xa0] sm:$0xff]   ;;  %v1356_v23 = vld [vmem:[%s1887_s1 + $0xa8] sm:$0xff]  }
   0x9   :  { %1227 = vmatpush3.bf16.msra.mxu1 %v1340_v7  ;;  %1164 = vmatprep.subr.bf16.mxu0 %v1341_v8  ;;  %v1357_v24 = vld [vmem:[%s1887_s1 + $0x70] sm:$0xff]   ;;  %v1361_v28 = vld [vmem:[%s1887_s1 + $0x78] sm:$0xff]   ;;  %v1370_v35 = vld [vmem:[%s1888_s0 + $0xc] ss:$20 sps:$4 sm:$0xff]  }
   0xa   :  { %1228 = vmatprep.subr.bf16.mxu1 %v1342_v9  ;;  %v1358_v25 = vld [vmem:[%s1887_s1 + $0xf0] sm:$0xff]   ;;  %v1362_v29 = vld [vmem:[%s1887_s1 + $0xf8] sm:$0xff]   ;;  %v1371_v36 = vld [vmem:[%s1887_s1 + $0x100] sm:$0xff]   ;;  %742 = vmatprep.mubr.bf16.mxu1 %v1370_v35 }
   0xb   :  { %v1359_v26 = vld [vmem:[%s1887_s1 + $0x30] sm:$0xff]   ;;  %v1363_v30 = vld [vmem:[%s1887_s1 + $0x38] sm:$0xff]   ;;  %v1372_v37 = vld [vmem:[%s1888_s0 + $0x2c] ss:$20 sps:$4 sm:$0xff]  }
   0xc   :  { %1165 = vmatpush3.bf16.msra.mxu0 %v1343_v10  ;;  %v1360_v27 = vld [vmem:[%s1887_s1 + $0xb0] sm:$0xff]   ;;  %v1364_v31 = vld [vmem:[%s1887_s1 + $0xb8] sm:$0xff]   ;;  %v1384_v42 = vld [vmem:[%s1887_s1 + $0x108] sm:$0xff]  }
   0xd   :  { %1229 = vmatpush3.bf16.msra.mxu1 %v1344_v11  ;;  %1166 = vmatprep.subr.bf16.mxu0 %v1345_v12  ;;  %v1365_v32 = vld [vmem:[%s1888_s0] ss:$20 sps:$4 sm:$0xff]   ;;  %v1367_v33 = vld [vmem:[%s1888_s0 + $0x4] ss:$20 sps:$4 sm:$0xff]   ;;  %v1368_v34 = vld [vmem:[%s1888_s0 + $0x8] ss:$20 sps:$4 sm:$0xff]  }
   0xe   :  { %1230 = vmatprep.subr.bf16.mxu1 %v1346_v13  ;;  %645 = vmatprep.mubr.bf16.mxu0 %v1367_v33  ;;  %v1374_v38 = vld [vmem:[%s1888_s0 + $0x34] ss:$20 sps:$4 sm:$0xff]   ;;  %v1377_v40 = vld [vmem:[%s1888_s0 + $0x30] ss:$20 sps:$4 sm:$0xff]   ;;  %v1383_v45 = vld [vmem:[%s1888_s0 + $0x58] ss:$20 sps:$4 sm:$0xff]  }
   0xf   :  { %v1376_v39 = vld [vmem:[%s1888_s0 + $0x28] ss:$20 sps:$4 sm:$0xff]   ;;  %v1382_v44 = vld [vmem:[%s1888_s0 + $0x50] ss:$20 sps:$4 sm:$0xff]   ;;  %v1389_v50 = vld [vmem:[%s1888_s0 + $0x78] ss:$20 sps:$4 sm:$0xff]  }
  0x10   :  { %1167 = vmatpush3.bf16.msra.mxu0 %v1347_v14  ;;  %v1378_v41 = vld [vmem:[%s1888_s0 + $0x54] ss:$20 sps:$4 sm:$0xff]   ;;  %v1380_v43 = vld [vmem:[%s1888_s0 + $0x5c] ss:$20 sps:$4 sm:$0xff]   ;;  %v1387_v48 = vld [vmem:[%s1888_s0 + $0x84] ss:$20 sps:$4 sm:$0xff]  }
  0x11   :  { %1231 = vmatpush3.bf16.msra.mxu1 %v1348_v15  ;;  %1168 = vmatprep.subr.bf16.mxu0 %v1349_v16  ;;  %v1397_v46 = vld [vmem:[%s1887_s1 + $0x110] sm:$0xff]   ;;  %v1410_v49 = vld [vmem:[%s1887_s1 + $0x118] sm:$0xff]   ;;  %v1393_v53 = vld [vmem:[%s1888_s0 + $0xac] ss:$20 sps:$4 sm:$0xff]   ;;  %v1425_v12 = vmov 0.0  }
  0x12   :  { %1232 = vmatprep.subr.bf16.mxu1 %v1350_v17  ;;  %v1385_v47 = vld [vmem:[%s1888_s0 + $0x7c] ss:$20 sps:$4 sm:$0xff]   ;;  %v1390_v51 = vld [vmem:[%s1888_s0 + $0x80] ss:$20 sps:$4 sm:$0xff]   ;;  %v1391_v52 = vld [vmem:[%s1888_s0 + $0xa4] ss:$20 sps:$4 sm:$0xff]  }
  0x13   :  { %v1395_v54 = vld [vmem:[%s1888_s0 + $0xa0] ss:$20 sps:$4 sm:$0xff]   ;;  %v1396_v55 = vld [vmem:[%s1888_s0 + $0xa8] ss:$20 sps:$4 sm:$0xff]   ;;  %v1403_v59 = vld [vmem:[%s1888_s0 + $0xd0] ss:$20 sps:$4 sm:$0xff]  }
  0x14   :  { %1169 = vmatpush3.bf16.msra.mxu0 %v1351_v18  ;;  %v1398_v56 = vld [vmem:[%s1888_s0 + $0xcc] ss:$20 sps:$4 sm:$0xff]   ;;  %v1400_v57 = vld [vmem:[%s1888_s0 + $0xd4] ss:$20 sps:$4 sm:$0xff]   ;;  %v1406_v61 = vld [vmem:[%s1888_s0 + $0xfc] ss:$20 sps:$4 sm:$0xff]  }
  0x15   :  { %1233 = vmatpush3.bf16.msra.mxu1 %v1352_v19  ;;  %1170 = vmatprep.subr.bf16.mxu0 %v1353_v20  ;;  %v1402_v58 = vld [vmem:[%s1888_s0 + $0xc8] ss:$20 sps:$4 sm:$0xff]   ;;  %v1408_v62 = vld [vmem:[%s1888_s0 + $0xf0] ss:$20 sps:$4 sm:$0xff]   ;;  %v1409_v63 = vld [vmem:[%s1888_s0 + $0xf8] ss:$20 sps:$4 sm:$0xff]  }
  0x16   :  { %1234 = vmatprep.subr.bf16.mxu1 %v1354_v21  ;;  %v1404_v60 = vld [vmem:[%s1888_s0 + $0xf4] ss:$20 sps:$4 sm:$0xff]   ;;  %v1411_v0 = vld [vmem:[%s1888_s0 + $0x11c] ss:$20 sps:$4 sm:$0xff]   ;;  %v1413_v1 = vld [vmem:[%s1888_s0 + $0x124] ss:$20 sps:$4 sm:$0xff]  }
  0x17   :  { %v1415_v2 = vld [vmem:[%s1888_s0 + $0x118] ss:$20 sps:$4 sm:$0xff]   ;;  %v1416_v3 = vld [vmem:[%s1888_s0 + $0x120] ss:$20 sps:$4 sm:$0xff]   ;;  %v1417_v4 = vld [vmem:[%s1888_s0 + $0x10] ss:$20 sps:$4 sm:$0xff]  }
  0x18   :  { %1171 = vmatpush3.bf16.msra.mxu0 %v1355_v22  ;;  %v1418_v5 = vld [vmem:[%s1888_s0 + $0xb0] ss:$20 sps:$4 sm:$0xff]   ;;  %v1419_v6 = vld [vmem:[%s1888_s0 + $0x38] ss:$20 sps:$4 sm:$0xff]   ;;  %v1421_v8 = vld [vmem:[%s1888_s0 + $0x60] ss:$20 sps:$4 sm:$0xff]  }
  0x19   :  { %1235 = vmatpush3.bf16.msra.mxu1 %v1356_v23  ;;  %1172 = vmatprep.subr.bf16.mxu0 %v1357_v24  ;;  %v1420_v7 = vld [vmem:[%s1888_s0 + $0xd8] ss:$20 sps:$4 sm:$0xff]   ;;  %v1422_v9 = vld [vmem:[%s1888_s0 + $0x100] ss:$20 sps:$4 sm:$0xff]   ;;  %v1423_v10 = vld [vmem:[%s1888_s0 + $0x88] ss:$20 sps:$4 sm:$0xff]  }
  0x1a   :  { %1236 = vmatprep.subr.bf16.mxu1 %v1358_v25  ;;  %v1424_v11 = vld [vmem:[%s1888_s0 + $0x128] ss:$20 sps:$4 sm:$0xff]   ;;  %22 = vst.msk [vmem:[#allocation2 + $0x10] sm:$0xff] %vm19_vm0, %v1425_v12  ;;  %20 = vst.msk [vmem:[#allocation2] sm:$0xff] %vm19_vm0, %v1425_v12 }
  0x1b   :  { %21 = vst.msk [vmem:[#allocation2 + $0x8] sm:$0xff] %vm19_vm0, %v1425_v12  ;;  %23 = vst.msk [vmem:[#allocation2 + $0x18] sm:$0xff] %vm19_vm0, %v1425_v12 }
  0x1c   :  { %1173 = vmatpush3.bf16.msra.mxu0 %v1359_v26  ;;  %24 = vst.msk [vmem:[#allocation2 + $0x20] sm:$0xff] %vm19_vm0, %v1425_v12  ;;  %25 = vst.msk [vmem:[#allocation2 + $0x28] sm:$0xff] %vm19_vm0, %v1425_v12 }
  0x1d   :  { %1237 = vmatpush3.bf16.msra.mxu1 %v1360_v27  ;;  %1174 = vmatprep.subr.bf16.mxu0 %v1361_v28  ;;  %26 = vst.msk [vmem:[#allocation2 + $0x30] sm:$0xff] %vm19_vm0, %v1425_v12  ;;  %27 = vst.msk [vmem:[#allocation2 + $0x38] sm:$0xff] %vm19_vm0, %v1425_v12 }
  0x1e   :  { %1238 = vmatprep.subr.bf16.mxu1 %v1362_v29  ;;  %28 = vst.msk [vmem:[#allocation2 + $0x40] sm:$0xff] %vm19_vm0, %v1425_v12  ;;  %29 = vst.msk [vmem:[#allocation2 + $0x48] sm:$0xff] %vm19_vm0, %v1425_v12 }
  0x1f   :  { %30 = vst.msk [vmem:[#allocation2 + $0x50] sm:$0xff] %vm19_vm0, %v1425_v12  ;;  %31 = vst.msk [vmem:[#allocation2 + $0x58] sm:$0xff] %vm19_vm0, %v1425_v12 }
  0x20   :  { %1175 = vmatpush3.bf16.msra.mxu0 %v1363_v30  ;;  %32 = vst.msk [vmem:[#allocation2 + $0x60] sm:$0xff] %vm19_vm0, %v1425_v12  ;;  %33 = vst.msk [vmem:[#allocation2 + $0x68] sm:$0xff] %vm19_vm0, %v1425_v12 }
  0x21   :  { %1239 = vmatpush3.bf16.msra.mxu1 %v1364_v31  ;;  %1300 = vmatprep.subr.bf16.mxu0 %v1371_v36  ;;  %34 = vst.msk [vmem:[#allocation2 + $0x70] sm:$0xff] %vm19_vm0, %v1425_v12  ;;  %35 = vst.msk [vmem:[#allocation2 + $0x78] sm:$0xff] %vm19_vm0, %v1425_v12 }
  0x22   :  { %1324 = vmatprep.subr.bf16.mxu1 %v1371_v36 }
  0x23   :  { %646 = vmatmul.mubr.bf16.vlgmr.msra.gmra.mrb[0].mxu0 %v1365_v32 }
  0x24   :  { %743 = vmatmul.mubr.bf16.vlgmr.msra.gmra.mrb[0].mxu1 %v1368_v34  ;;  %1301 = vmatpush3.bf16.msra.mxu0 %v1371_v36 }
  0x25   :  { %653 = vmatprep.mubr.bf16.mxu0 %v1372_v37  ;;  %750 = vmatprep.mubr.bf16.mxu1 %v1374_v38 }
  0x26   :  { %1328 = vmatpush3.bf16.msra.mxu1 %v1371_v36  ;;  %1302 = vmatprep.subr.bf16.mxu0 %v1384_v42 }
  0x27   :  { %1325 = vmatprep.subr.bf16.mxu1 %v1384_v42 }
  0x28   :  { %1303 = vmatpush3.bf16.msra.mxu0 %v1384_v42 }
  0x29   :  { %1304 = vmatprep.subr.bf16.mxu0 %v1397_v46 }
  0x2a   :  { %1329 = vmatpush3.bf16.msra.mxu1 %v1384_v42 }
  0x2b   :  { %654 = vmatmul.mubr.bf16.gmra.mrb[4].mxu0 %v1376_v39  ;;  %1326 = vmatprep.subr.bf16.mxu1 %v1397_v46 }
  0x2c   :  { %751 = vmatmul.mubr.bf16.gmra.mrb[4].mxu1 %v1377_v40  ;;  %661 = vmatprep.mubr.bf16.mxu0 %v1378_v41 }
  0x2d   :  { %758 = vmatprep.mubr.bf16.mxu1 %v1380_v43  ;;  %1305 = vmatpush3.bf16.msra.mxu0 %v1397_v46 }
  0x2e   :  { %1330 = vmatpush3.bf16.msra.mxu1 %v1397_v46  ;;  %1306 = vmatprep.subr.bf16.mxu0 %v1410_v49 }
  0x2f   :  { %1327 = vmatprep.subr.bf16.mxu1 %v1410_v49 }
  0x31   :  { %1307 = vmatpush3.bf16.msra.mxu0 %v1410_v49 }
  0x32   :  { %1331 = vmatpush3.bf16.msra.mxu1 %v1410_v49 }
  0x33   :  { %662 = vmatmul.mubr.bf16.gmra.mrb[8].mxu0 %v1382_v44 }
  0x34   :  { %759 = vmatmul.mubr.bf16.gmra.mrb[8].mxu1 %v1383_v45  ;;  %669 = vmatprep.mubr.bf16.mxu0 %v1385_v47 }
  0x35   :  { %766 = vmatprep.mubr.bf16.mxu1 %v1387_v48 }
  0x3b   :  { %670 = vmatmul.mubr.bf16.gmra.mrb[12].mxu0 %v1389_v50 }
  0x3c   :  { %767 = vmatmul.mubr.bf16.gmra.mrb[12].mxu1 %v1390_v51  ;;  %677 = vmatprep.mubr.bf16.mxu0 %v1391_v52 }
  0x3d   :  { %774 = vmatprep.mubr.bf16.mxu1 %v1393_v53 }
  0x43   :  { %678 = vmatmul.mubr.bf16.gmra.mrb[16].mxu0 %v1395_v54 }
  0x44   :  { %775 = vmatmul.mubr.bf16.gmra.mrb[16].mxu1 %v1396_v55  ;;  %685 = vmatprep.mubr.bf16.mxu0 %v1398_v56 }
  0x45   :  { %782 = vmatprep.mubr.bf16.mxu1 %v1400_v57 }
  0x4b   :  { %686 = vmatmul.mubr.bf16.gmra.mrb[20].mxu0 %v1402_v58 }
  0x4c   :  { %783 = vmatmul.mubr.bf16.gmra.mrb[20].mxu1 %v1403_v59  ;;  %693 = vmatprep.mubr.bf16.mxu0 %v1404_v60 }
  0x4d   :  { %790 = vmatprep.mubr.bf16.mxu1 %v1406_v61 }
  0x53   :  { %694 = vmatmul.mubr.bf16.gmra.mrb[24].mxu0 %v1408_v62 }
  0x54   :  { %791 = vmatmul.mubr.bf16.gmra.mrb[24].mxu1 %v1409_v63  ;;  %701 = vmatprep.mubr.bf16.mxu0 %v1411_v0 }
  0x55   :  { %798 = vmatprep.mubr.bf16.mxu1 %v1413_v1 }
  0x5b   :  { %702 = vmatmul.mubr.bf16.gmra.mrb[28].mxu0 %v1415_v2 }
  0x5c   :  { %799 = vmatmul.mubr.bf16.gmra.mrb[28].mxu1 %v1416_v3  ;;  %1308 = vmatprep.mubr.msk.bf16.mxu0 %vm19_vm0, %v1417_v4 }
  0x5d   :  { %1316 = vmatprep.mubr.msk.bf16.mxu1 %vm19_vm0, %v1418_v5 }
  0x63   :  { %1309 = vmatmul.mubr.msk.bf16.vlgmr.msra.gmra.mrb[32].mxu0 %vm19_vm0, %v1419_v6 }
  0x64   :  { %1317 = vmatmul.mubr.msk.bf16.vlgmr.msra.gmra.mrb[32].mxu1 %vm19_vm0, %v1420_v7  ;;  %1312 = vmatprep.mubr.msk.bf16.mxu0 %vm19_vm0, %v1421_v8 }
  0x65   :  { %1320 = vmatprep.mubr.msk.bf16.mxu1 %vm19_vm0, %v1422_v9 }
  0x6b   :  { %1313 = vmatmul.mubr.msk.bf16.gmra.mrb[36].mxu0 %vm19_vm0, %v1423_v10 }
  0x6c   :  { %1321 = vmatmul.mubr.msk.bf16.gmra.mrb[36].mxu1 %vm19_vm0, %v1424_v11 }
  0xf6   :  { %v1176_v13 = vpop.f32.mrb[0].mxu0 }
  0xf7   :  { %v1240_v14 = vpop.f32.mrb[0].mxu1  ;;  %v1177_v15 = vpop.f32.mrb[1].mxu0 }
  0xf8   :  { %v1178_v16 = vadd.f32 %v1177_v15, %v1176_v13  ;;  %v1241_v17 = vpop.f32.mrb[1].mxu1  ;;  %v1179_v18 = vpop.f32.mrb[2].mxu0 }
  0xf9   :  { %v1242_v19 = vadd.f32 %v1241_v17, %v1240_v14  ;;  %v1243_v20 = vpop.f32.mrb[2].mxu1  ;;  %v1180_v21 = vpop.f32.mrb[3].mxu0 }
  0xfa   :  { %v1181_v22 = vadd.f32 %v1180_v21, %v1179_v18  ;;  %v1244_v23 = vpop.f32.mrb[3].mxu1 }
  0xfb   :  { %v1245_v24 = vadd.f32 %v1244_v23, %v1243_v20  ;;  %v1703_v25 = vadd.f32 %v1242_v19, %v1178_v16 }
  0xfd   :  { %v1705_v26 = vadd.f32 %v1245_v24, %v1181_v22 }
  0xfe   :  { %v1182_v27 = vpop.f32.mrb[4].mxu0 }
  0xff   :  { %v1246_v28 = vpop.f32.mrb[4].mxu1  ;;  %v1183_v29 = vpop.f32.mrb[5].mxu0 }
 0x100   :  { %v1184_v30 = vadd.f32 %v1183_v29, %v1182_v27  ;;  %v1247_v31 = vpop.f32.mrb[5].mxu1  ;;  %v1185_v32 = vpop.f32.mrb[6].mxu0 }
 0x101   :  { %v1248_v33 = vadd.f32 %v1247_v31, %v1246_v28  ;;  %v1249_v34 = vpop.f32.mrb[6].mxu1  ;;  %v1186_v35 = vpop.f32.mrb[7].mxu0 }
 0x102   :  { %v1187_v36 = vadd.f32 %v1186_v35, %v1185_v32  ;;  %v1250_v37 = vpop.f32.mrb[7].mxu1 }
 0x103   :  { %v1251_v38 = vadd.f32 %v1250_v37, %v1249_v34  ;;  %v1707_v39 = vadd.f32 %v1248_v33, %v1184_v30 }
 0x105   :  { %v1709_v40 = vadd.f32 %v1251_v38, %v1187_v36 }
 0x106   :  { %v1188_v41 = vpop.f32.mrb[8].mxu0 }
 0x107   :  { %v1252_v42 = vpop.f32.mrb[8].mxu1  ;;  %v1189_v43 = vpop.f32.mrb[9].mxu0 }
 0x108   :  { %v1190_v44 = vadd.f32 %v1189_v43, %v1188_v41  ;;  %v1253_v45 = vpop.f32.mrb[9].mxu1  ;;  %v1191_v46 = vpop.f32.mrb[10].mxu0 }
 0x109   :  { %v1254_v47 = vadd.f32 %v1253_v45, %v1252_v42  ;;  %v1255_v48 = vpop.f32.mrb[10].mxu1  ;;  %v1192_v49 = vpop.f32.mrb[11].mxu0 }
 0x10a   :  { %v1193_v50 = vadd.f32 %v1192_v49, %v1191_v46  ;;  %v1256_v51 = vpop.f32.mrb[11].mxu1 }
 0x10b   :  { %v1257_v52 = vadd.f32 %v1256_v51, %v1255_v48  ;;  %v1711_v53 = vadd.f32 %v1254_v47, %v1190_v44 }
 0x10d   :  { %v1713_v54 = vadd.f32 %v1257_v52, %v1193_v50 }
 0x10e   :  { %v1194_v55 = vpop.f32.mrb[12].mxu0 }
 0x10f   :  { %v1258_v56 = vpop.f32.mrb[12].mxu1  ;;  %v1195_v57 = vpop.f32.mrb[13].mxu0 }
 0x110   :  { %v1196_v58 = vadd.f32 %v1195_v57, %v1194_v55  ;;  %v1259_v59 = vpop.f32.mrb[13].mxu1  ;;  %v1197_v60 = vpop.f32.mrb[14].mxu0 }
 0x111   :  { %v1260_v61 = vadd.f32 %v1259_v59, %v1258_v56  ;;  %v1261_v62 = vpop.f32.mrb[14].mxu1  ;;  %v1198_v63 = vpop.f32.mrb[15].mxu0 }
 0x112   :  { %v1199_v0 = vadd.f32 %v1198_v63, %v1197_v60  ;;  %v1262_v1 = vpop.f32.mrb[15].mxu1 }
 0x113   :  { %v1263_v2 = vadd.f32 %v1262_v1, %v1261_v62  ;;  %v1715_v3 = vadd.f32 %v1260_v61, %v1196_v58 }
 0x115   :  { %v1717_v4 = vadd.f32 %v1263_v2, %v1199_v0 }
 0x116   :  { %v1200_v5 = vpop.f32.mrb[16].mxu0 }
 0x117   :  { %v1264_v6 = vpop.f32.mrb[16].mxu1  ;;  %v1201_v7 = vpop.f32.mrb[17].mxu0 }
 0x118   :  { %v1202_v8 = vadd.f32 %v1201_v7, %v1200_v5  ;;  %v1265_v9 = vpop.f32.mrb[17].mxu1  ;;  %v1203_v10 = vpop.f32.mrb[18].mxu0  ;;  %v38_v5 = vld [vmem:[#allocation2 + $0x10] sm:$0xff] }
 0x119   :  { %v1266_v11 = vadd.f32 %v1265_v9, %v1264_v6  ;;  %v1267_v12 = vpop.f32.mrb[18].mxu1  ;;  %v1204_v13 = vpop.f32.mrb[19].mxu0 }
 0x11a   :  { %v1205_v14 = vadd.f32 %v1204_v13, %v1203_v10  ;;  %v1268_v15 = vpop.f32.mrb[19].mxu1  ;;  %v36_v10 = vld [vmem:[#allocation2] sm:$0xff] }
 0x11b   :  { %v1269_v16 = vadd.f32 %v1268_v15, %v1267_v12  ;;  %v777_v17 = vadd.f32 %v1266_v11, %v1202_v8  ;;  %v46_v8 = vld [vmem:[#allocation2 + $0x50] sm:$0xff] }
 0x11d   :  { %v1719_v18 = vadd.f32 %v1269_v16, %v1205_v14  ;;  %v44_v14 = vld [vmem:[#allocation2 + $0x40] sm:$0xff]  ;;  %v39_v16 = vld [vmem:[#allocation2 + $0x18] sm:$0xff] }
 0x11e   :  { %v1206_v19 = vpop.f32.mrb[20].mxu0 }
 0x11f   :  { %v1270_v20 = vpop.f32.mrb[20].mxu1  ;;  %v1207_v21 = vpop.f32.mrb[21].mxu0 }
 0x120   :  { %v1208_v22 = vadd.f32 %v1207_v21, %v1206_v19  ;;  %v1271_v23 = vpop.f32.mrb[21].mxu1  ;;  %v1209_v24 = vpop.f32.mrb[22].mxu0 }
 0x121   :  { %v1272_v27 = vadd.f32 %v1271_v23, %v1270_v20  ;;  %v1273_v28 = vpop.f32.mrb[22].mxu1  ;;  %v1210_v29 = vpop.f32.mrb[23].mxu0  ;;  %v47_v23 = vld [vmem:[#allocation2 + $0x58] sm:$0xff] }
 0x122   :  { %v1211_v30 = vadd.f32 %v1210_v29, %v1209_v24  ;;  %v1274_v31 = vpop.f32.mrb[23].mxu1 }
 0x123   :  { %v1275_v32 = vadd.f32 %v1274_v31, %v1273_v28  ;;  %v785_v33 = vadd.f32 %v1272_v27, %v1208_v22  ;;  %v37_v27 = vld [vmem:[#allocation2 + $0x8] sm:$0xff] }
 0x125   :  { %v788_v34 = vadd.f32 %v1275_v32, %v1211_v30  ;;  %v45_v32 = vld [vmem:[#allocation2 + $0x48] sm:$0xff] }
 0x126   :  { %v1212_v35 = vpop.f32.mrb[24].mxu0 }
 0x127   :  { %v1276_v36 = vpop.f32.mrb[24].mxu1  ;;  %v1213_v37 = vpop.f32.mrb[25].mxu0 }
 0x128   :  { %v1214_v38 = vadd.f32 %v1213_v37, %v1212_v35  ;;  %v1277_v41 = vpop.f32.mrb[25].mxu1  ;;  %v1215_v42 = vpop.f32.mrb[26].mxu0 }
 0x129   :  { %v1278_v43 = vadd.f32 %v1277_v41, %v1276_v36  ;;  %v1279_v44 = vpop.f32.mrb[26].mxu1  ;;  %v1216_v45 = vpop.f32.mrb[27].mxu0 }
 0x12a   :  { %v1217_v46 = vadd.f32 %v1216_v45, %v1215_v42  ;;  %v1280_v47 = vpop.f32.mrb[27].mxu1  ;;  %v40_v42 = vld [vmem:[#allocation2 + $0x20] sm:$0xff] }
 0x12b   :  { %v1281_v48 = vadd.f32 %v1280_v47, %v1279_v44  ;;  %v1721_v49 = vadd.f32 %v1278_v43, %v1214_v38  ;;  %v50_v38 = vld [vmem:[#allocation2 + $0x70] sm:$0xff] }
 0x12d   :  { %v1723_v50 = vadd.f32 %v1281_v48, %v1217_v46  ;;  %v48_v46 = vld [vmem:[#allocation2 + $0x60] sm:$0xff]  ;;  %v43_v48 = vld [vmem:[#allocation2 + $0x38] sm:$0xff] }
 0x12e   :  { %v1218_v51 = vpop.f32.mrb[28].mxu0 }
 0x12f   :  { %v1282_v52 = vpop.f32.mrb[28].mxu1  ;;  %v1219_v55 = vpop.f32.mrb[29].mxu0 }
 0x130   :  { %v1220_v56 = vadd.f32 %v1219_v55, %v1218_v51  ;;  %v1283_v57 = vpop.f32.mrb[29].mxu1  ;;  %v1221_v58 = vpop.f32.mrb[30].mxu0 }
 0x131   :  { %v1284_v59 = vadd.f32 %v1283_v57, %v1282_v52  ;;  %v1285_v60 = vpop.f32.mrb[30].mxu1  ;;  %v1222_v61 = vpop.f32.mrb[31].mxu0 }
 0x132   :  { %v1223_v62 = vadd.f32 %v1222_v61, %v1221_v58  ;;  %v1286_v63 = vpop.f32.mrb[31].mxu1 }
 0x133   :  { %v1287_v0 = vadd.f32 %v1286_v63, %v1285_v60  ;;  %v801_v1 = vadd.f32 %v1284_v59, %v1220_v56 }
 0x135   :  { %v1725_v2 = vadd.f32 %v1287_v0, %v1223_v62 }
 0x136   :  { %v1310_v6 = vpop.f32.mrb[32].mxu0 }
 0x137   :  { %v850_v7 = vadd.f32 %v1310_v6, %v1707_v39  ;;  %v1318_v9 = vpop.f32.mrb[32].mxu1  ;;  %v841_v11 = vpop.f32.mrb[33].mxu0 }
 0x138   :  { %v882_v12 = vadd.f32 %v1318_v9, %v785_v33  ;;  %v842_v13 = vadd.f32 %v841_v11, %v1703_v25  ;;  %v873_v15 = vpop.f32.mrb[33].mxu1  ;;  %v1311_v19 = vpop.f32.mrb[34].mxu0  ;;  %v41_v9 = vld [vmem:[#allocation2 + $0x28] sm:$0xff] }
 0x139   :  { %v906_v20 = vadd.f32 %v850_v7, %v38_v5  ;;  %v874_v21 = vadd.f32 %v873_v15, %v777_v17  ;;  %v853_v22 = vadd.f32 %v1311_v19, %v1709_v40  ;;  %v1319_v24 = vpop.f32.mrb[34].mxu1  ;;  %v844_v28 = vpop.f32.mrb[35].mxu0 }
 0x13a   :  { %v914_v39 = vadd.f32 %v882_v12, %v46_v8  ;;  %v904_v29 = vadd.f32 %v842_v13, %v36_v10  ;;  %v885_v30 = vadd.f32 %v1319_v24, %v788_v34  ;;  %v845_v31 = vadd.f32 %v844_v28, %v1705_v26  ;;  %v876_v33 = vpop.f32.mrb[35].mxu1  ;;  %v42_v26 = vld [vmem:[#allocation2 + $0x30] sm:$0xff]  ;;  %v51_v8 = vld [vmem:[#allocation2 + $0x78] sm:$0xff] }
 0x13b   :  { %922 = vst.msk [vmem:[#allocation2 + $0x10] sm:$0xff] %vm19_vm0, %v906_v20  ;;  %v912_v25 = vadd.f32 %v874_v21, %v44_v14  ;;  %v907_v35 = vadd.f32 %v853_v22, %v39_v16  ;;  %v877_v36 = vadd.f32 %v876_v33, %v1719_v18 }
 0x13c   :  { %930 = vst.msk [vmem:[#allocation2 + $0x50] sm:$0xff] %vm19_vm0, %v914_v39  ;;  %920 = vst.msk [vmem:[#allocation2] sm:$0xff] %vm19_vm0, %v904_v29  ;;  %v915_v40 = vadd.f32 %v885_v30, %v47_v23  ;;  %v905_v17 = vadd.f32 %v845_v31, %v37_v27 }
 0x13d   :  { %928 = vst.msk [vmem:[#allocation2 + $0x40] sm:$0xff] %vm19_vm0, %v912_v25  ;;  %923 = vst.msk [vmem:[#allocation2 + $0x18] sm:$0xff] %vm19_vm0, %v907_v35  ;;  %v913_v34 = vadd.f32 %v877_v36, %v45_v32  ;;  %v49_v35 = vld [vmem:[#allocation2 + $0x68] sm:$0xff] }
 0x13e   :  { %931 = vst.msk [vmem:[#allocation2 + $0x58] sm:$0xff] %vm19_vm0, %v915_v40  ;;  %921 = vst.msk [vmem:[#allocation2 + $0x8] sm:$0xff] %vm19_vm0, %v905_v17  ;;  %v1314_v37 = vpop.f32.mrb[36].mxu0 }
 0x13f   :  { %929 = vst.msk [vmem:[#allocation2 + $0x48] sm:$0xff] %vm19_vm0, %v913_v34  ;;  %v866_v18 = vadd.f32 %v1314_v37, %v1715_v3  ;;  %v1322_v41 = vpop.f32.mrb[36].mxu1  ;;  %v857_v43 = vpop.f32.mrb[37].mxu0 }
 0x140   :  { %v898_v44 = vadd.f32 %v1322_v41, %v801_v1  ;;  %v858_v45 = vadd.f32 %v857_v43, %v1711_v53  ;;  %v889_v47 = vpop.f32.mrb[37].mxu1  ;;  %v1315_v51 = vpop.f32.mrb[38].mxu0 }
 0x141   :  { %v910_v52 = vadd.f32 %v866_v18, %v42_v26  ;;  %v890_v55 = vadd.f32 %v889_v47, %v1721_v49  ;;  %v869_v56 = vadd.f32 %v1315_v51, %v1717_v4  ;;  %v1323_v57 = vpop.f32.mrb[38].mxu1  ;;  %v860_v58 = vpop.f32.mrb[39].mxu0 }
 0x142   :  { %v941_v59 = vld [vmem:[#allocation2 + $0x10] sm:$0xff]  ;;  %v918_v3 = vadd.f32 %v898_v44, %v50_v38  ;;  %v908_v60 = vadd.f32 %v858_v45, %v40_v42  ;;  %v901_v61 = vadd.f32 %v1323_v57, %v1725_v2  ;;  %v861_v62 = vadd.f32 %v860_v58, %v1713_v54  ;;  %v892_v63 = vpop.f32.mrb[39].mxu1 }
 0x143   :  { %957 = vst.msk [vmem:[%s1889_s2 + $0x10] sm:$0xff] %vm19_vm0, %v941_v59  ;;  %v1750_v53 = vld [vmem:[#allocation2 + $0x50] sm:$0xff]  ;;  %v939_v49 = vld [vmem:[#allocation2] sm:$0xff]  ;;  %926 = vst.msk [vmem:[#allocation2 + $0x30] sm:$0xff] %vm19_vm0, %v910_v52  ;;  %v916_v4 = vadd.f32 %v890_v55, %v48_v46  ;;  %v911_v0 = vadd.f32 %v869_v56, %v43_v48  ;;  %v1012_v10 = vmul.f32 %v941_v59, %v941_v59  ;;  %v974_v14 = vsel %vm19_vm0, %v941_v59, 0.0 }
 0x144   :  { %965 = vst.msk [vmem:[%s1889_s2 + $0x50] sm:$0xff] %vm19_vm0, %v1750_v53  ;;  %955 = vst.msk [vmem:[%s1889_s2] sm:$0xff] %vm19_vm0, %v939_v49  ;;  %v1010_v54 = vmul.f32 %v939_v49, %v939_v49  ;;  %v1762_v1 = vld [vmem:[#allocation2 + $0x40] sm:$0xff]  ;;  %v942_v2 = vld [vmem:[#allocation2 + $0x18] sm:$0xff]  ;;  %v971_v11 = vsel %vm19_vm0, %v939_v49, 0.0  ;;  %v919_v21 = vadd.f32 %v901_v61, %v51_v8  ;;  %v909_v22 = vadd.f32 %v861_v62, %v41_v9 }
 0x145   :  { %934 = vst.msk [vmem:[#allocation2 + $0x70] sm:$0xff] %vm19_vm0, %v918_v3  ;;  %924 = vst.msk [vmem:[#allocation2 + $0x20] sm:$0xff] %vm19_vm0, %v908_v60  ;;  %v1775_v5 = vld [vmem:[#allocation2 + $0x58] sm:$0xff]  ;;  %v940_v6 = vld [vmem:[#allocation2 + $0x8] sm:$0xff]  ;;  %v1013_v19 = vmul.f32 %v942_v2, %v942_v2  ;;  %v893_v28 = vadd.f32 %v892_v63, %v1723_v50  ;;  %v1029_v39 = vsel %vm19_vm0, %v1012_v10, 0.0  ;;  %v976_v29 = vsel %vm19_vm0, %v942_v2, 0.0 }
 0x146   :  { %963 = vst.msk [vmem:[%s1889_s2 + $0x40] sm:$0xff] %vm19_vm0, %v1762_v1  ;;  %958 = vst.msk [vmem:[%s1889_s2 + $0x18] sm:$0xff] %vm19_vm0, %v942_v2  ;;  %v1788_v7 = vld [vmem:[#allocation2 + $0x48] sm:$0xff]  ;;  %v972_v12 = vsel %vm19_vm0, %v940_v6, 0.0  ;;  %v1011_v13 = vmul.f32 %v940_v6, %v940_v6  ;;  %v1026_v15 = vsel %vm19_vm0, %v1010_v54, 0.0  ;;  %v1018_v56 = vmul.f32 %v1762_v1, %v1762_v1 }
 0x147   :  { %932 = vst.msk [vmem:[#allocation2 + $0x60] sm:$0xff] %vm19_vm0, %v916_v4  ;;  %927 = vst.msk [vmem:[#allocation2 + $0x38] sm:$0xff] %vm19_vm0, %v911_v0  ;;  %v973_v16 = vadd.f32 %v972_v12, %v971_v11  ;;  %v1031_v36 = vsel %vm19_vm0, %v1013_v19, 0.0  ;;  %v917_v37 = vadd.f32 %v893_v28, %v49_v35  ;;  %v986_v61 = vsel %vm19_vm0, %v1762_v1, 0.0 }
 0x148   :  { %966 = vst.msk [vmem:[%s1889_s2 + $0x58] sm:$0xff] %vm19_vm0, %v1775_v5  ;;  %956 = vst.msk [vmem:[%s1889_s2 + $0x8] sm:$0xff] %vm19_vm0, %v940_v6  ;;  %v1027_v20 = vsel %vm19_vm0, %v1011_v13, 0.0  ;;  %v1019_v62 = vmul.f32 %v1788_v7, %v1788_v7  ;;  %v1020_v0 = vmul.f32 %v1750_v53, %v1750_v53  ;;  %v1041_v54 = vsel %vm19_vm0, %v1018_v56, 0.0 }
 0x149   :  { %964 = vst.msk [vmem:[%s1889_s2 + $0x48] sm:$0xff] %vm19_vm0, %v1788_v7  ;;  %v975_v23 = vadd.f32 %v974_v14, %v973_v16  ;;  %v1028_v24 = vadd.f32 %v1027_v20, %v1026_v15  ;;  %935 = vst.msk [vmem:[#allocation2 + $0x78] sm:$0xff] %vm19_vm0, %v919_v21  ;;  %v988_v1 = vsel %vm19_vm0, %v1788_v7, 0.0  ;;  %v990_v8 = vsel %vm19_vm0, %v1750_v53, 0.0 }
 0x14a   :  { %v945_v27 = vld [vmem:[#allocation2 + $0x30] sm:$0xff]  ;;  %925 = vst.msk [vmem:[#allocation2 + $0x28] sm:$0xff] %vm19_vm0, %v909_v22  ;;  %933 = vst.msk [vmem:[#allocation2 + $0x68] sm:$0xff] %vm19_vm0, %v917_v37  ;;  %v1021_v9 = vmul.f32 %v1775_v5, %v1775_v5  ;;  %v1043_v10 = vsel %vm19_vm0, %v1019_v62, 0.0  ;;  %v1045_v13 = vsel %vm19_vm0, %v1020_v0, 0.0  ;;  %v992_v14 = vsel %vm19_vm0, %v1775_v5, 0.0 }
 0x14b   :  { %961 = vst.msk [vmem:[%s1889_s2 + $0x30] sm:$0xff] %vm19_vm0, %v945_v27  ;;  %v1030_v32 = vadd.f32 %v1029_v39, %v1028_v24  ;;  %v977_v50 = vadd.f32 %v976_v29, %v975_v23  ;;  %v1016_v43 = vmul.f32 %v945_v27, %v945_v27  ;;  %v982_v47 = vsel %vm19_vm0, %v945_v27, 0.0 }
 0x14c   :  { %v1807_v30 = vld [vmem:[#allocation2 + $0x70] sm:$0xff]  ;;  %v943_v31 = vld [vmem:[#allocation2 + $0x20] sm:$0xff]  ;;  %v1047_v19 = vsel %vm19_vm0, %v1021_v9, 0.0 }
 0x14d   :  { %969 = vst.msk [vmem:[%s1889_s2 + $0x70] sm:$0xff] %vm19_vm0, %v1807_v30  ;;  %959 = vst.msk [vmem:[%s1889_s2 + $0x20] sm:$0xff] %vm19_vm0, %v943_v31  ;;  %v978_v40 = vsel %vm19_vm0, %v943_v31, 0.0  ;;  %v1014_v17 = vmul.f32 %v943_v31, %v943_v31  ;;  %v1032_v34 = vadd.f32 %v1031_v36, %v1030_v32  ;;  %v1037_v57 = vsel %vm19_vm0, %v1016_v43, 0.0 }
 0x14e   :  { %v951_v33 = vld [vmem:[#allocation2 + $0x60] sm:$0xff]  ;;  %v946_v25 = vld [vmem:[#allocation2 + $0x38] sm:$0xff]  ;;  %v979_v18 = vadd.f32 %v978_v40, %v977_v50  ;;  %v1024_v23 = vmul.f32 %v1807_v30, %v1807_v30  ;;  %v998_v5 = vsel %vm19_vm0, %v1807_v30, 0.0 }
 0x14f   :  { %967 = vst.msk [vmem:[%s1889_s2 + $0x60] sm:$0xff] %vm19_vm0, %v951_v33  ;;  %962 = vst.msk [vmem:[%s1889_s2 + $0x38] sm:$0xff] %vm19_vm0, %v946_v25  ;;  %v1033_v26 = vsel %vm19_vm0, %v1014_v17, 0.0  ;;  %v1017_v48 = vmul.f32 %v946_v25, %v946_v25  ;;  %v984_v58 = vsel %vm19_vm0, %v946_v25, 0.0  ;;  %v1022_v15 = vmul.f32 %v951_v33, %v951_v33 }
 0x150   :  { %v1034_v38 = vadd.f32 %v1033_v26, %v1032_v34  ;;  %v954_v41 = vld [vmem:[#allocation2 + $0x78] sm:$0xff]  ;;  %v994_v20 = vsel %vm19_vm0, %v951_v33, 0.0  ;;  %v1053_v33 = vsel %vm19_vm0, %v1024_v23, 0.0 }
 0x151   :  { %v944_v42 = vld [vmem:[#allocation2 + $0x28] sm:$0xff]  ;;  %970 = vst.msk [vmem:[%s1889_s2 + $0x78] sm:$0xff] %vm19_vm0, %v954_v41  ;;  %v1039_v63 = vsel %vm19_vm0, %v1017_v48, 0.0  ;;  %v1049_v24 = vsel %vm19_vm0, %v1022_v15, 0.0  ;;  %v1025_v29 = vmul.f32 %v954_v41, %v954_v41  ;;  %v1000_v25 = vsel %vm19_vm0, %v954_v41, 0.0 }
 0x152   :  { %960 = vst.msk [vmem:[%s1889_s2 + $0x28] sm:$0xff] %vm19_vm0, %v944_v42  ;;  %v980_v44 = vsel %vm19_vm0, %v944_v42, 0.0  ;;  %v1015_v45 = vmul.f32 %v944_v42, %v944_v42  ;;  %v952_v60 = vld [vmem:[#allocation2 + $0x68] sm:$0xff] }
 0x153   :  { %v981_v46 = vadd.f32 %v980_v44, %v979_v18  ;;  %968 = vst.msk [vmem:[%s1889_s2 + $0x68] sm:$0xff] %vm19_vm0, %v952_v60  ;;  %v1023_v53 = vmul.f32 %v952_v60, %v952_v60  ;;  %v996_v27 = vsel %vm19_vm0, %v952_v60, 0.0  ;;  %v1055_v40 = vsel %vm19_vm0, %v1025_v29, 0.0 }
 0x154   :  { %v1035_v51 = vsel %vm19_vm0, %v1015_v45, 0.0 }
 0x155   :  { %v983_v52 = vadd.f32 %v982_v47, %v981_v46  ;;  %v1036_v55 = vadd.f32 %v1035_v51, %v1034_v38  ;;  %v1051_v31 = vsel %vm19_vm0, %v1023_v53, 0.0 }
 0x157   :  { %v985_v59 = vadd.f32 %v984_v58, %v983_v52  ;;  %v1038_v3 = vadd.f32 %v1037_v57, %v1036_v55 }
 0x159   :  { %v987_v49 = vadd.f32 %v986_v61, %v985_v59  ;;  %v1040_v4 = vadd.f32 %v1039_v63, %v1038_v3 }
 0x15b   :  { %v1042_v2 = vadd.f32 %v1041_v54, %v1040_v4  ;;  %v989_v6 = vadd.f32 %v988_v1, %v987_v49 }
 0x15d   :  { %v991_v11 = vadd.f32 %v990_v8, %v989_v6  ;;  %v1044_v12 = vadd.f32 %v1043_v10, %v1042_v2 }
 0x15f   :  { %v993_v16 = vadd.f32 %v992_v14, %v991_v11  ;;  %v1046_v7 = vadd.f32 %v1045_v13, %v1044_v12 }
 0x161   :  { %v995_v21 = vadd.f32 %v994_v20, %v993_v16  ;;  %v1048_v22 = vadd.f32 %v1047_v19, %v1046_v7 }
 0x163   :  { %v997_v28 = vadd.f32 %v996_v27, %v995_v21  ;;  %v1050_v39 = vadd.f32 %v1049_v24, %v1048_v22 }
 0x165   :  { %v999_v32 = vadd.f32 %v998_v5, %v997_v28  ;;  %v1052_v50 = vadd.f32 %v1051_v31, %v1050_v39 }
 0x167   :  { %v1001_v35 = vadd.f32 %v1000_v25, %v999_v32  ;;  %v1054_v36 = vadd.f32 %v1053_v33, %v1052_v50 }
 0x169   :  { %v1002_v17 = vrot.slane %v1001_v35, 4  ;;  %v1056_v34 = vadd.f32 %v1055_v40, %v1054_v36 }
 0x16b   :  { %v1003_v26 = vadd.f32 %v1002_v17, %v1001_v35  ;;  %v1057_v37 = vrot.slane %v1056_v34, 4 }
 0x16d   :  { %v1004_v18 = vrot.slane %v1003_v26, 2  ;;  %v1058_v38 = vadd.f32 %v1057_v37, %v1056_v34 }
 0x16f   :  { %v1005_v30 = vadd.f32 %v1004_v18, %v1003_v26  ;;  %v1059_v42 = vrot.slane %v1058_v38, 2 }
 0x171   :  { %v1006_v43 = vrot.slane %v1005_v30, 1  ;;  %v1060_v44 = vadd.f32 %v1059_v42, %v1058_v38 }
 0x173   :  { %v1007_v45 = vadd.f32 %v1006_v43, %v1005_v30  ;;  %v1061_v46 = vrot.slane %v1060_v44, 1 }
 0x175   :  { %1009 = vst.msk [vmem:[%s1890_s3] sm:$0x1] %vm1008_vm1, %v1007_v45  ;;  %v1062_v41 = vadd.f32 %v1061_v46, %v1060_v44 }
 0x177   :  { %1063 = vst.msk [vmem:[%s1891_s4] sm:$0x1] %vm1008_vm1, %v1062_v41 }

// kernel: classifier_net_forward.54
= control target key start
LH: loop header
LB: loop body
LE: loop exit
PB: predicated region body
PF: predicated region fallthrough
CT: control target
= control target key end

     0   :  { %vm73_vm0 = vcmask 523264   ;;  %s277_s1 = inlined_call_operand.vmem [shape: bf16[64,128], index: 1, kind: input, shape index: {}]   ;;  %s278_s0 = inlined_call_operand.vmem [shape: bf16[32,64], index: 0, kind: input, shape index: {}]   ;;  %s279_s2 = inlined_call_operand.vmem [shape: f32[32,128], index: 2, kind: output, shape index: {0}]   ;;  %s280_s3 = inlined_call_operand.vmem [shape: f32[1,1,128], index: 3, kind: output, shape index: {1}]   ;;  %s281_s4 = inlined_call_operand.vmem [shape: f32[1,1,128], index: 4, kind: output, shape index: {2}]  }
   0x1   :  { %v210_v0 = vld [vmem:[%s277_s1] sm:$0xff]   ;;  %v211_v1 = vld [vmem:[%s277_s1 + $0x8] sm:$0xff]   ;;  %v212_v2 = vld [vmem:[%s277_s1 + $0x10] sm:$0xff]  }
   0x2   :  { %198 = vmatprep.subr.bf16.mxu0 %v210_v0  ;;  %v214_v3 = vld [vmem:[%s278_s0] sm:$0xff]   ;;  %v213_v4 = vld [vmem:[%s277_s1 + $0x18] sm:$0xff]   ;;  %v215_v5 = vld [vmem:[%s278_s0 + $0x8] sm:$0xff]  }
   0x3   :  { %199 = vmatpush3.bf16.msra.mxu0 %v210_v0  ;;  %206 = vmatprep.mubr.msk.bf16.mxu0 %vm73_vm0, %v214_v3 }
   0x4   :  { %200 = vmatprep.subr.bf16.mxu0 %v211_v1 }
   0x7   :  { %201 = vmatpush3.bf16.msra.mxu0 %v211_v1 }
   0x8   :  { %202 = vmatprep.subr.bf16.mxu0 %v212_v2 }
   0xb   :  { %203 = vmatpush3.bf16.msra.mxu0 %v212_v2 }
   0xc   :  { %204 = vmatprep.subr.bf16.mxu0 %v213_v4 }
   0xf   :  { %205 = vmatpush3.bf16.msra.mxu0 %v213_v4 }
  0x12   :  { %207 = vmatmul.mubr.msk.bf16.vlgmr.msra.gmra.mrb[0].mxu0 %vm73_vm0, %v215_v5 }
  0xe5   :  { %v208_v6 = vpop.f32.mrb[0].mxu0 }
  0xe6   :  { %146 = vst [vmem:[%s279_s2 + $0x10] sm:$0xff] %v208_v6  ;;  %v114_v7 = vpop.f32.mrb[1].mxu0  ;;  %v160_v13 = vmul.f32 %v208_v6, %v208_v6 }
  0xe7   :  { %144 = vst [vmem:[%s279_s2] sm:$0xff] %v114_v7  ;;  %v209_v8 = vpop.f32.mrb[2].mxu0  ;;  %v158_v10 = vmul.f32 %v114_v7, %v114_v7 }
  0xe8   :  { %147 = vst [vmem:[%s279_s2 + $0x18] sm:$0xff] %v209_v8  ;;  %v117_v9 = vpop.f32.mrb[3].mxu0  ;;  %v161_v16 = vmul.f32 %v209_v8, %v209_v8 }
  0xe9   :  { %145 = vst [vmem:[%s279_s2 + $0x8] sm:$0xff] %v117_v9  ;;  %v148_v11 = vadd.f32 %v117_v9, %v114_v7  ;;  %v159_v12 = vmul.f32 %v117_v9, %v117_v9 }
  0xeb   :  { %v149_v14 = vadd.f32 %v208_v6, %v148_v11  ;;  %v162_v15 = vadd.f32 %v159_v12, %v158_v10 }
  0xed   :  { %v150_v17 = vadd.f32 %v209_v8, %v149_v14  ;;  %v163_v18 = vadd.f32 %v162_v15, %v160_v13 }
  0xef   :  { %v151_v19 = vrot.slane %v150_v17, 4  ;;  %v164_v20 = vadd.f32 %v163_v18, %v161_v16 }
  0xf1   :  { %v152_v21 = vadd.f32 %v151_v19, %v150_v17  ;;  %v165_v22 = vrot.slane %v164_v20, 4 }
  0xf3   :  { %v153_v23 = vrot.slane %v152_v21, 2  ;;  %v166_v24 = vadd.f32 %v165_v22, %v164_v20 }
  0xf5   :  { %v154_v25 = vadd.f32 %v153_v23, %v152_v21  ;;  %v167_v26 = vrot.slane %v166_v24, 2 }
  0xf7   :  { %v155_v27 = vrot.slane %v154_v25, 1  ;;  %v168_v28 = vadd.f32 %v167_v26, %v166_v24 }
  0xf9   :  { %v156_v29 = vadd.f32 %v155_v27, %v154_v25  ;;  %v169_v30 = vrot.slane %v168_v28, 1 }
  0xfb   :  { %157 = vst [vmem:[%s280_s3] sm:$0x1] %v156_v29  ;;  %v170_v31 = vadd.f32 %v169_v30, %v168_v28 }
  0xfd   :  { %171 = vst [vmem:[%s281_s4] sm:$0x1] %v170_v31 }

// kernel: classifier_net_forward.55
= control target key start
LH: loop header
LB: loop body
LE: loop exit
PB: predicated region body
PF: predicated region fallthrough
CT: control target
= control target key end

     0   :  { %s100_s0 = inlined_call_operand.vmem [shape: f32[32,128], index: 0, kind: input, shape index: {}]   ;;  %s101_s1 = inlined_call_operand.vmem [shape: f32[1,128], index: 1, kind: input, shape index: {}]   ;;  %s102_s2 = inlined_call_operand.vmem [shape: f32[1,128], index: 2, kind: input, shape index: {}]   ;;  %s103_s3 = inlined_call_operand.vmem [shape: f32[32,128], index: 3, kind: output, shape index: {}]  }
   0x1   :  { %v14_v0 = vld [vmem:[%s100_s0] sm:$0xff]  ;;  %v15_v4 = vld [vmem:[%s100_s0 + $0x8] sm:$0xff]  ;;  %v16_v5 = vld [vmem:[%s100_s0 + $0x10] sm:$0xff] }
   0x2   :  { %v48_v1 = vld [vmem:[%s101_s1] ss:$0 sm:$0xff]  ;;  %v17_v6 = vld [vmem:[%s100_s0 + $0x18] sm:$0xff] }
   0x3   :  { %v49_v2 = vld [vmem:[%s102_s2] ss:$0 sm:$0xff]  ;;  %v25_v3 = vmul.f32 %v48_v1, %v14_v0  ;;  %v26_v7 = vmul.f32 %v48_v1, %v15_v4  ;;  %v27_v8 = vmul.f32 %v48_v1, %v16_v5  ;;  %v28_v9 = vmul.f32 %v48_v1, %v17_v6 }
   0x5   :  { %v36_v10 = vadd.f32 %v49_v2, %v25_v3  ;;  %v37_v11 = vadd.f32 %v49_v2, %v26_v7  ;;  %v38_v12 = vadd.f32 %v49_v2, %v27_v8  ;;  %v39_v13 = vadd.f32 %v49_v2, %v28_v9 }
   0x7   :  { %40 = vst [vmem:[%s103_s3] sm:$0xff] %v36_v10  ;;  %41 = vst [vmem:[%s103_s3 + $0x8] sm:$0xff] %v37_v11 }
   0x8   :  { %42 = vst [vmem:[%s103_s3 + $0x10] sm:$0xff] %v38_v12  ;;  %43 = vst [vmem:[%s103_s3 + $0x18] sm:$0xff] %v39_v13 }

// kernel: classifier_net_forward.57
= control target key start
LH: loop header
LB: loop body
LE: loop exit
PB: predicated region body
PF: predicated region fallthrough
CT: control target
= control target key end

     0   :  { %s104_s0 = inlined_call_operand.vmem [shape: f32[32,128], index: 0, kind: input, shape index: {}]   ;;  %s105_s1 = inlined_call_operand.vmem [shape: f32[1,128], index: 1, kind: input, shape index: {}]   ;;  %s106_s2 = inlined_call_operand.vmem [shape: f32[1,128], index: 2, kind: input, shape index: {}]   ;;  %s107_s3 = inlined_call_operand.vmem [shape: f32[32,128], index: 3, kind: output, shape index: {}]  }
   0x1   :  { %v14_v0 = vld [vmem:[%s104_s0] sm:$0xff]  ;;  %v15_v4 = vld [vmem:[%s104_s0 + $0x8] sm:$0xff]  ;;  %v16_v5 = vld [vmem:[%s104_s0 + $0x10] sm:$0xff] }
   0x2   :  { %v52_v1 = vld [vmem:[%s105_s1] ss:$0 sm:$0xff]  ;;  %v17_v6 = vld [vmem:[%s104_s0 + $0x18] sm:$0xff] }
   0x3   :  { %v53_v2 = vld [vmem:[%s106_s2] ss:$0 sm:$0xff]  ;;  %v25_v3 = vmul.f32 %v52_v1, %v14_v0  ;;  %v26_v7 = vmul.f32 %v52_v1, %v15_v4  ;;  %v27_v8 = vmul.f32 %v52_v1, %v16_v5  ;;  %v28_v9 = vmul.f32 %v52_v1, %v17_v6 }
   0x5   :  { %v36_v10 = vadd.f32 %v53_v2, %v25_v3  ;;  %v37_v11 = vadd.f32 %v53_v2, %v26_v7  ;;  %v38_v12 = vadd.f32 %v53_v2, %v27_v8  ;;  %v39_v13 = vadd.f32 %v53_v2, %v28_v9 }
   0x7   :  { %v40_v14 = vmax.f32 %v36_v10, 0.0  ;;  %v41_v15 = vmax.f32 %v37_v11, 0.0  ;;  %v42_v16 = vmax.f32 %v38_v12, 0.0  ;;  %v43_v17 = vmax.f32 %v39_v13, 0.0 }
   0x9   :  { %44 = vst [vmem:[%s107_s3] sm:$0xff] %v40_v14  ;;  %45 = vst [vmem:[%s107_s3 + $0x8] sm:$0xff] %v41_v15 }
   0xa   :  { %46 = vst [vmem:[%s107_s3 + $0x10] sm:$0xff] %v42_v16  ;;  %47 = vst [vmem:[%s107_s3 + $0x18] sm:$0xff] %v43_v17 }

// kernel: classifier_net_forward.56
= control target key start
LH: loop header
LB: loop body
LE: loop exit
PB: predicated region body
PF: predicated region fallthrough
CT: control target
= control target key end

     0   :  { %vm377_vm0 = vcmask 523264   ;;  %s939_s1 = inlined_call_operand.vmem [shape: bf16[576,128], index: 1, kind: input, shape index: {}]   ;;  %s940_s0 = inlined_call_operand.vmem [shape: bf16[32,576], index: 0, kind: input, shape index: {}]   ;;  %s941_s2 = inlined_call_operand.vmem [shape: f32[32,128], index: 2, kind: output, shape index: {0}]   ;;  %s942_s3 = inlined_call_operand.vmem [shape: f32[1,1,128], index: 3, kind: output, shape index: {1}]   ;;  %s943_s4 = inlined_call_operand.vmem [shape: f32[1,1,128], index: 4, kind: output, shape index: {2}]  }
   0x1   :  { %v708_v0 = vld [vmem:[%s939_s1 + $0x40] sm:$0xff]   ;;  %v712_v4 = vld [vmem:[%s939_s1 + $0x48] sm:$0xff]   ;;  %v716_v8 = vld [vmem:[%s939_s1 + $0x50] sm:$0xff]  }
   0x2   :  { %v709_v1 = vld [vmem:[%s939_s1 + $0xc0] sm:$0xff]   ;;  %634 = vmatprep.subr.bf16.mxu0 %v708_v0  ;;  %v713_v5 = vld [vmem:[%s939_s1 + $0xc8] sm:$0xff]   ;;  %v717_v9 = vld [vmem:[%s939_s1 + $0xd0] sm:$0xff]  }
   0x3   :  { %v710_v2 = vld [vmem:[%s939_s1] sm:$0xff]   ;;  %662 = vmatprep.subr.bf16.mxu1 %v709_v1  ;;  %v714_v6 = vld [vmem:[%s939_s1 + $0x8] sm:$0xff]   ;;  %v718_v10 = vld [vmem:[%s939_s1 + $0x10] sm:$0xff]  }
   0x4   :  { %v711_v3 = vld [vmem:[%s939_s1 + $0x80] sm:$0xff]   ;;  %635 = vmatpush3.bf16.msra.mxu0 %v710_v2  ;;  %v715_v7 = vld [vmem:[%s939_s1 + $0x88] sm:$0xff]   ;;  %v719_v11 = vld [vmem:[%s939_s1 + $0x90] sm:$0xff]  }
   0x5   :  { %663 = vmatpush3.bf16.msra.mxu1 %v711_v3  ;;  %636 = vmatprep.subr.bf16.mxu0 %v712_v4  ;;  %v720_v12 = vld [vmem:[%s939_s1 + $0x58] sm:$0xff]   ;;  %v724_v16 = vld [vmem:[%s939_s1 + $0x60] sm:$0xff]   ;;  %v728_v20 = vld [vmem:[%s939_s1 + $0x68] sm:$0xff]  }
   0x6   :  { %664 = vmatprep.subr.bf16.mxu1 %v713_v5  ;;  %v721_v13 = vld [vmem:[%s939_s1 + $0xd8] sm:$0xff]   ;;  %v725_v17 = vld [vmem:[%s939_s1 + $0xe0] sm:$0xff]   ;;  %v729_v21 = vld [vmem:[%s939_s1 + $0xe8] sm:$0xff]  }
   0x7   :  { %v722_v14 = vld [vmem:[%s939_s1 + $0x18] sm:$0xff]   ;;  %v726_v18 = vld [vmem:[%s939_s1 + $0x20] sm:$0xff]   ;;  %v730_v22 = vld [vmem:[%s939_s1 + $0x28] sm:$0xff]  }
   0x8   :  { %637 = vmatpush3.bf16.msra.mxu0 %v714_v6  ;;  %v723_v15 = vld [vmem:[%s939_s1 + $0x98] sm:$0xff]   ;;  %v727_v19 = vld [vmem:[%s939_s1 + $0xa0] sm:$0xff]   ;;  %v731_v23 = vld [vmem:[%s939_s1 + $0xa8] sm:$0xff]  }
   0x9   :  { %665 = vmatpush3.bf16.msra.mxu1 %v715_v7  ;;  %638 = vmatprep.subr.bf16.mxu0 %v716_v8  ;;  %v732_v24 = vld [vmem:[%s939_s1 + $0x70] sm:$0xff]   ;;  %v736_v28 = vld [vmem:[%s939_s1 + $0x78] sm:$0xff]   ;;  %v745_v35 = vld [vmem:[%s940_s0 + $0xc] ss:$20 sps:$4 sm:$0xff]  }
   0xa   :  { %666 = vmatprep.subr.bf16.mxu1 %v717_v9  ;;  %v733_v25 = vld [vmem:[%s939_s1 + $0xf0] sm:$0xff]   ;;  %v737_v29 = vld [vmem:[%s939_s1 + $0xf8] sm:$0xff]   ;;  %v746_v36 = vld [vmem:[%s939_s1 + $0x100] sm:$0xff]   ;;  %465 = vmatprep.mubr.bf16.mxu1 %v745_v35 }
   0xb   :  { %v734_v26 = vld [vmem:[%s939_s1 + $0x30] sm:$0xff]   ;;  %v738_v30 = vld [vmem:[%s939_s1 + $0x38] sm:$0xff]   ;;  %v747_v37 = vld [vmem:[%s939_s1 + $0x108] sm:$0xff]  }
   0xc   :  { %639 = vmatpush3.bf16.msra.mxu0 %v718_v10  ;;  %v735_v27 = vld [vmem:[%s939_s1 + $0xb0] sm:$0xff]   ;;  %v739_v31 = vld [vmem:[%s939_s1 + $0xb8] sm:$0xff]   ;;  %v748_v38 = vld [vmem:[%s940_s0 + $0x2c] ss:$20 sps:$4 sm:$0xff]  }
   0xd   :  { %667 = vmatpush3.bf16.msra.mxu1 %v719_v11  ;;  %640 = vmatprep.subr.bf16.mxu0 %v720_v12  ;;  %v740_v32 = vld [vmem:[%s940_s0] ss:$20 sps:$4 sm:$0xff]   ;;  %v742_v33 = vld [vmem:[%s940_s0 + $0x4] ss:$20 sps:$4 sm:$0xff]   ;;  %v743_v34 = vld [vmem:[%s940_s0 + $0x8] ss:$20 sps:$4 sm:$0xff]  }
   0xe   :  { %668 = vmatprep.subr.bf16.mxu1 %v721_v13  ;;  %416 = vmatprep.mubr.bf16.mxu0 %v742_v33  ;;  %v750_v39 = vld [vmem:[%s940_s0 + $0x34] ss:$20 sps:$4 sm:$0xff]   ;;  %v753_v42 = vld [vmem:[%s940_s0 + $0x30] ss:$20 sps:$4 sm:$0xff]   ;;  %v755_v44 = vld [vmem:[%s939_s1 + $0x118] sm:$0xff]  }
   0xf   :  { %v752_v40 = vld [vmem:[%s940_s0 + $0x28] ss:$20 sps:$4 sm:$0xff]   ;;  %v754_v41 = vld [vmem:[%s939_s1 + $0x110] sm:$0xff]   ;;  %v757_v45 = vld [vmem:[%s940_s0 + $0x38] ss:$20 sps:$4 sm:$0xff]  }
  0x10   :  { %641 = vmatpush3.bf16.msra.mxu0 %v722_v14  ;;  %v756_v43 = vld [vmem:[%s940_s0 + $0x10] ss:$20 sps:$4 sm:$0xff]  }
  0x11   :  { %669 = vmatpush3.bf16.msra.mxu1 %v723_v15  ;;  %642 = vmatprep.subr.bf16.mxu0 %v724_v16 }
  0x12   :  { %670 = vmatprep.subr.bf16.mxu1 %v725_v17 }
  0x14   :  { %643 = vmatpush3.bf16.msra.mxu0 %v726_v18 }
  0x15   :  { %671 = vmatpush3.bf16.msra.mxu1 %v727_v19  ;;  %644 = vmatprep.subr.bf16.mxu0 %v728_v20 }
  0x16   :  { %672 = vmatprep.subr.bf16.mxu1 %v729_v21 }
  0x18   :  { %645 = vmatpush3.bf16.msra.mxu0 %v730_v22 }
  0x19   :  { %673 = vmatpush3.bf16.msra.mxu1 %v731_v23  ;;  %646 = vmatprep.subr.bf16.mxu0 %v732_v24 }
  0x1a   :  { %674 = vmatprep.subr.bf16.mxu1 %v733_v25 }
  0x1c   :  { %647 = vmatpush3.bf16.msra.mxu0 %v734_v26 }
  0x1d   :  { %675 = vmatpush3.bf16.msra.mxu1 %v735_v27  ;;  %648 = vmatprep.subr.bf16.mxu0 %v736_v28 }
  0x1e   :  { %676 = vmatprep.subr.bf16.mxu1 %v737_v29 }
  0x20   :  { %649 = vmatpush3.bf16.msra.mxu0 %v738_v30 }
  0x21   :  { %677 = vmatpush3.bf16.msra.mxu1 %v739_v31  ;;  %696 = vmatprep.subr.bf16.mxu0 %v746_v36 }
  0x23   :  { %417 = vmatmul.mubr.bf16.vlgmr.msra.gmra.mrb[0].mxu0 %v740_v32 }
  0x24   :  { %466 = vmatmul.mubr.bf16.vlgmr.msra.gmra.mrb[0].mxu1 %v743_v34  ;;  %697 = vmatpush3.bf16.msra.mxu0 %v746_v36 }
  0x25   :  { %698 = vmatprep.subr.bf16.mxu0 %v747_v37  ;;  %424 = vmatprep.mubr.bf16.mxu0 %v748_v38 }
  0x26   :  { %473 = vmatprep.mubr.bf16.mxu1 %v750_v39 }
  0x28   :  { %699 = vmatpush3.bf16.msra.mxu0 %v747_v37 }
  0x29   :  { %700 = vmatprep.subr.bf16.mxu0 %v754_v41 }
  0x2b   :  { %425 = vmatmul.mubr.bf16.gmra.mrb[4].mxu0 %v752_v40 }
  0x2c   :  { %474 = vmatmul.mubr.bf16.gmra.mrb[4].mxu1 %v753_v42  ;;  %704 = vmatprep.mubr.msk.bf16.mxu0 %vm377_vm0, %v756_v43 }
  0x2d   :  { %701 = vmatpush3.bf16.msra.mxu0 %v754_v41 }
  0x2e   :  { %702 = vmatprep.subr.bf16.mxu0 %v755_v44 }
  0x31   :  { %703 = vmatpush3.bf16.msra.mxu0 %v755_v44 }
  0x34   :  { %705 = vmatmul.mubr.msk.bf16.vlgmr.msra.gmra.mrb[8].mxu0 %vm377_vm0, %v757_v45 }
  0xf6   :  { %v650_v46 = vpop.f32.mrb[0].mxu0 }
  0xf7   :  { %v678_v47 = vpop.f32.mrb[0].mxu1  ;;  %v651_v48 = vpop.f32.mrb[1].mxu0 }
  0xf8   :  { %v652_v49 = vadd.f32 %v651_v48, %v650_v46  ;;  %v679_v50 = vpop.f32.mrb[1].mxu1  ;;  %v653_v51 = vpop.f32.mrb[2].mxu0 }
  0xf9   :  { %v680_v52 = vadd.f32 %v679_v50, %v678_v47  ;;  %v681_v53 = vpop.f32.mrb[2].mxu1  ;;  %v654_v54 = vpop.f32.mrb[3].mxu0 }
  0xfa   :  { %v655_v55 = vadd.f32 %v654_v54, %v653_v51  ;;  %v682_v56 = vpop.f32.mrb[3].mxu1 }
  0xfb   :  { %v683_v57 = vadd.f32 %v682_v56, %v681_v53  ;;  %v468_v58 = vadd.f32 %v680_v52, %v652_v49 }
  0xfd   :  { %v471_v59 = vadd.f32 %v683_v57, %v655_v55 }
  0xfe   :  { %v656_v60 = vpop.f32.mrb[4].mxu0 }
  0xff   :  { %v684_v61 = vpop.f32.mrb[4].mxu1  ;;  %v657_v62 = vpop.f32.mrb[5].mxu0 }
 0x100   :  { %v658_v63 = vadd.f32 %v657_v62, %v656_v60  ;;  %v685_v0 = vpop.f32.mrb[5].mxu1  ;;  %v659_v1 = vpop.f32.mrb[6].mxu0 }
 0x101   :  { %v686_v2 = vadd.f32 %v685_v0, %v684_v61  ;;  %v687_v3 = vpop.f32.mrb[6].mxu1  ;;  %v660_v4 = vpop.f32.mrb[7].mxu0 }
 0x102   :  { %v661_v5 = vadd.f32 %v660_v4, %v659_v1  ;;  %v688_v6 = vpop.f32.mrb[7].mxu1 }
 0x103   :  { %v689_v7 = vadd.f32 %v688_v6, %v687_v3  ;;  %v476_v8 = vadd.f32 %v686_v2, %v658_v63 }
 0x105   :  { %v479_v9 = vadd.f32 %v689_v7, %v661_v5 }
 0x107   :  { %v706_v10 = vpop.f32.mrb[8].mxu0 }
 0x108   :  { %v525_v11 = vadd.f32 %v706_v10, %v476_v8  ;;  %v516_v12 = vpop.f32.mrb[9].mxu0 }
 0x109   :  { %v517_v13 = vadd.f32 %v516_v12, %v468_v58  ;;  %v707_v14 = vpop.f32.mrb[10].mxu0 }
 0x10a   :  { %548 = vst [vmem:[%s941_s2 + $0x10] sm:$0xff] %v525_v11  ;;  %v528_v15 = vadd.f32 %v707_v14, %v479_v9  ;;  %v519_v16 = vpop.f32.mrb[11].mxu0  ;;  %v562_v21 = vmul.f32 %v525_v11, %v525_v11 }
 0x10b   :  { %546 = vst [vmem:[%s941_s2] sm:$0xff] %v517_v13  ;;  %v520_v17 = vadd.f32 %v519_v16, %v471_v59  ;;  %v560_v18 = vmul.f32 %v517_v13, %v517_v13 }
 0x10c   :  { %549 = vst [vmem:[%s941_s2 + $0x18] sm:$0xff] %v528_v15  ;;  %v563_v24 = vmul.f32 %v528_v15, %v528_v15 }
 0x10d   :  { %547 = vst [vmem:[%s941_s2 + $0x8] sm:$0xff] %v520_v17  ;;  %v550_v19 = vadd.f32 %v520_v17, %v517_v13  ;;  %v561_v20 = vmul.f32 %v520_v17, %v520_v17 }
 0x10f   :  { %v551_v22 = vadd.f32 %v550_v19, %v525_v11  ;;  %v564_v23 = vadd.f32 %v561_v20, %v560_v18 }
 0x111   :  { %v552_v25 = vadd.f32 %v551_v22, %v528_v15  ;;  %v565_v26 = vadd.f32 %v564_v23, %v562_v21 }
 0x113   :  { %v553_v27 = vrot.slane %v552_v25, 4  ;;  %v566_v28 = vadd.f32 %v565_v26, %v563_v24 }
 0x115   :  { %v554_v29 = vadd.f32 %v553_v27, %v552_v25  ;;  %v567_v30 = vrot.slane %v566_v28, 4 }
 0x117   :  { %v555_v31 = vrot.slane %v554_v29, 2  ;;  %v568_v32 = vadd.f32 %v567_v30, %v566_v28 }
 0x119   :  { %v556_v33 = vadd.f32 %v555_v31, %v554_v29  ;;  %v569_v34 = vrot.slane %v568_v32, 2 }
 0x11b   :  { %v557_v35 = vrot.slane %v556_v33, 1  ;;  %v570_v36 = vadd.f32 %v569_v34, %v568_v32 }
 0x11d   :  { %v558_v37 = vadd.f32 %v557_v35, %v556_v33  ;;  %v571_v38 = vrot.slane %v570_v36, 1 }
 0x11f   :  { %559 = vst [vmem:[%s942_s3] sm:$0x1] %v558_v37  ;;  %v572_v39 = vadd.f32 %v571_v38, %v570_v36 }
 0x121   :  { %573 = vst [vmem:[%s943_s4] sm:$0x1] %v572_v39 }

// kernel: classifier_net_forward.59
= control target key start
LH: loop header
LB: loop body
LE: loop exit
PB: predicated region body
PF: predicated region fallthrough
CT: control target
= control target key end

     0   :  { %s132_s0 = inlined_call_operand.vmem [shape: f32[32,128], index: 0, kind: input, shape index: {}]   ;;  %s133_s1 = inlined_call_operand.vmem [shape: f32[1,128], index: 1, kind: input, shape index: {}]   ;;  %s134_s2 = inlined_call_operand.vmem [shape: f32[1,128], index: 2, kind: input, shape index: {}]   ;;  %s135_s3 = inlined_call_operand.vmem [shape: f32[32,128], index: 3, kind: input, shape index: {}]   ;;  %s136_s4 = inlined_call_operand.vmem [shape: f32[32,128], index: 4, kind: output, shape index: {}]  }
   0x1   :  { %v17_v0 = vld [vmem:[%s132_s0] sm:$0xff]  ;;  %v18_v4 = vld [vmem:[%s132_s0 + $0x8] sm:$0xff]  ;;  %v19_v7 = vld [vmem:[%s132_s0 + $0x10] sm:$0xff] }
   0x2   :  { %v63_v1 = vld [vmem:[%s133_s1] ss:$0 sm:$0xff]  ;;  %v20_v8 = vld [vmem:[%s132_s0 + $0x18] sm:$0xff]  ;;  %v44_v10 = vld [vmem:[%s135_s3 + $0x8] sm:$0xff] }
   0x3   :  { %v64_v2 = vld [vmem:[%s134_s2] ss:$0 sm:$0xff]  ;;  %v28_v3 = vmul.f32 %v63_v1, %v17_v0  ;;  %v29_v6 = vmul.f32 %v63_v1, %v18_v4  ;;  %v30_v11 = vmul.f32 %v63_v1, %v19_v7  ;;  %v31_v12 = vmul.f32 %v63_v1, %v20_v8  ;;  %v45_v14 = vld [vmem:[%s135_s3 + $0x10] sm:$0xff]  ;;  %v46_v15 = vld [vmem:[%s135_s3 + $0x18] sm:$0xff] }
   0x4   :  { %v43_v5 = vld [vmem:[%s135_s3] sm:$0xff] }
   0x5   :  { %v39_v9 = vadd.f32 %v64_v2, %v28_v3  ;;  %v40_v13 = vadd.f32 %v64_v2, %v29_v6  ;;  %v41_v17 = vadd.f32 %v64_v2, %v30_v11  ;;  %v42_v18 = vadd.f32 %v64_v2, %v31_v12 }
   0x7   :  { %v47_v16 = vadd.f32 %v43_v5, %v39_v9  ;;  %v48_v19 = vadd.f32 %v44_v10, %v40_v13  ;;  %v49_v21 = vadd.f32 %v45_v14, %v41_v17  ;;  %v50_v22 = vadd.f32 %v46_v15, %v42_v18 }
   0x9   :  { %v51_v20 = vmax.f32 %v47_v16, 0.0  ;;  %v52_v23 = vmax.f32 %v48_v19, 0.0  ;;  %v53_v24 = vmax.f32 %v49_v21, 0.0  ;;  %v54_v25 = vmax.f32 %v50_v22, 0.0 }
   0xb   :  { %55 = vst [vmem:[%s136_s4] sm:$0xff] %v51_v20  ;;  %56 = vst [vmem:[%s136_s4 + $0x8] sm:$0xff] %v52_v23 }
   0xc   :  { %57 = vst [vmem:[%s136_s4 + $0x10] sm:$0xff] %v53_v24  ;;  %58 = vst [vmem:[%s136_s4 + $0x18] sm:$0xff] %v54_v25 }

// kernel: classifier_net_forward.65
= control target key start
LH: loop header
LB: loop body
LE: loop exit
PB: predicated region body
PF: predicated region fallthrough
CT: control target
= control target key end

     0   :  { %v18_v0 = vlaneseq  ;;  %s88_s1 = inlined_call_operand.vmem [shape: f32[1,256], index: 1, kind: input, shape index: {}]   ;;  %s89_s2 = inlined_call_operand.vmem [shape: f32[1,256], index: 2, kind: input, shape index: {}]   ;;  %s90_s0 = inlined_call_operand.vmem [shape: f32[8,256], index: 0, kind: input, shape index: {}]   ;;  %s91_s3 = inlined_call_operand.vmem [shape: f32[8,256], index: 3, kind: output, shape index: {}]  }
   0x1   :  { %v16_v2 = vld [vmem:[%s88_s1] sm:$0x3]  ;;  %v15_v7 = vld [vmem:[%s90_s0 + $0x8] sm:$0xff] }
   0x2   :  { %v19_v1 = vshrl.u32 %v18_v0, 7  ;;  %v30_v3 = vld [vmem:[%s89_s2] sm:$0x3] }
   0x3   :  { %v14_v6 = vld [vmem:[%s90_s0] sm:$0xff] }
   0x4   :  { %v20_v4 = vsub.s32 0, %v19_v1  ;;  %v24_v5 = vsub.s32 1, %v19_v1 }
   0x6   :  { %v21_v8 = vrot.slane %v16_v2, %v20_v4  ;;  %v35_v9 = vrot.slane %v30_v3, %v20_v4  ;;  %v25_v10 = vrot.slane %v16_v2, %v24_v5  ;;  %v39_v11 = vrot.slane %v30_v3, %v24_v5 }
   0x8   :  { %v28_v12 = vmul.f32 %v21_v8, %v14_v6  ;;  %v29_v13 = vmul.f32 %v25_v10, %v15_v7 }
   0xa   :  { %v42_v14 = vadd.f32 %v35_v9, %v28_v12  ;;  %v43_v15 = vadd.f32 %v39_v11, %v29_v13 }
   0xc   :  { %44 = vst [vmem:[%s91_s3] sm:$0xff] %v42_v14  ;;  %45 = vst [vmem:[%s91_s3 + $0x8] sm:$0xff] %v43_v15 }

// kernel: classifier_net_forward.58
= control target key start
LH: loop header
LB: loop body
LE: loop exit
PB: predicated region body
PF: predicated region fallthrough
CT: control target
= control target key end

     0   :  { %s1658_s1 = inlined_call_operand.vmem [shape: bf16[1152,128], index: 1, kind: input, shape index: {}]   ;;  %s1659_s0 = inlined_call_operand.vmem [shape: bf16[32,1152], index: 0, kind: input, shape index: {}]   ;;  %s1660_s2 = inlined_call_operand.vmem [shape: f32[32,128], index: 2, kind: output, shape index: {0}]   ;;  %s1661_s3 = inlined_call_operand.vmem [shape: f32[1,1,128], index: 3, kind: output, shape index: {1}]   ;;  %s1662_s4 = inlined_call_operand.vmem [shape: f32[1,1,128], index: 4, kind: output, shape index: {2}]  }
   0x1   :  { %v1247_v0 = vld [vmem:[%s1658_s1 + $0x40] sm:$0xff]   ;;  %v1251_v4 = vld [vmem:[%s1658_s1 + $0x48] sm:$0xff]   ;;  %v1255_v8 = vld [vmem:[%s1658_s1 + $0x50] sm:$0xff]  }
   0x2   :  { %v1248_v1 = vld [vmem:[%s1658_s1 + $0xc0] sm:$0xff]   ;;  %1105 = vmatprep.subr.bf16.mxu0 %v1247_v0  ;;  %v1252_v5 = vld [vmem:[%s1658_s1 + $0xc8] sm:$0xff]   ;;  %v1256_v9 = vld [vmem:[%s1658_s1 + $0xd0] sm:$0xff]  }
   0x3   :  { %v1249_v2 = vld [vmem:[%s1658_s1] sm:$0xff]   ;;  %1133 = vmatprep.subr.bf16.mxu1 %v1248_v1  ;;  %v1253_v6 = vld [vmem:[%s1658_s1 + $0x8] sm:$0xff]   ;;  %v1257_v10 = vld [vmem:[%s1658_s1 + $0x10] sm:$0xff]  }
   0x4   :  { %v1250_v3 = vld [vmem:[%s1658_s1 + $0x80] sm:$0xff]   ;;  %1106 = vmatpush3.bf16.msra.mxu0 %v1249_v2  ;;  %v1254_v7 = vld [vmem:[%s1658_s1 + $0x88] sm:$0xff]   ;;  %v1258_v11 = vld [vmem:[%s1658_s1 + $0x90] sm:$0xff]  }
   0x5   :  { %1134 = vmatpush3.bf16.msra.mxu1 %v1250_v3  ;;  %1107 = vmatprep.subr.bf16.mxu0 %v1251_v4  ;;  %v1259_v12 = vld [vmem:[%s1658_s1 + $0x58] sm:$0xff]   ;;  %v1263_v16 = vld [vmem:[%s1658_s1 + $0x60] sm:$0xff]   ;;  %v1267_v20 = vld [vmem:[%s1658_s1 + $0x68] sm:$0xff]  }
   0x6   :  { %1135 = vmatprep.subr.bf16.mxu1 %v1252_v5  ;;  %v1260_v13 = vld [vmem:[%s1658_s1 + $0xd8] sm:$0xff]   ;;  %v1264_v17 = vld [vmem:[%s1658_s1 + $0xe0] sm:$0xff]   ;;  %v1268_v21 = vld [vmem:[%s1658_s1 + $0xe8] sm:$0xff]  }
   0x7   :  { %v1261_v14 = vld [vmem:[%s1658_s1 + $0x18] sm:$0xff]   ;;  %v1265_v18 = vld [vmem:[%s1658_s1 + $0x20] sm:$0xff]   ;;  %v1269_v22 = vld [vmem:[%s1658_s1 + $0x28] sm:$0xff]  }
   0x8   :  { %1108 = vmatpush3.bf16.msra.mxu0 %v1253_v6  ;;  %v1262_v15 = vld [vmem:[%s1658_s1 + $0x98] sm:$0xff]   ;;  %v1266_v19 = vld [vmem:[%s1658_s1 + $0xa0] sm:$0xff]   ;;  %v1270_v23 = vld [vmem:[%s1658_s1 + $0xa8] sm:$0xff]  }
   0x9   :  { %1136 = vmatpush3.bf16.msra.mxu1 %v1254_v7  ;;  %1109 = vmatprep.subr.bf16.mxu0 %v1255_v8  ;;  %v1271_v24 = vld [vmem:[%s1658_s1 + $0x70] sm:$0xff]   ;;  %v1275_v28 = vld [vmem:[%s1658_s1 + $0x78] sm:$0xff]   ;;  %v1279_v32 = vld [vmem:[%s1659_s0] ss:$36 sps:$4 sm:$0xff]  }
   0xa   :  { %1137 = vmatprep.subr.bf16.mxu1 %v1256_v9  ;;  %v1272_v25 = vld [vmem:[%s1658_s1 + $0xf0] sm:$0xff]   ;;  %v1276_v29 = vld [vmem:[%s1658_s1 + $0xf8] sm:$0xff]   ;;  %v1281_v33 = vld [vmem:[%s1659_s0 + $0x4] ss:$36 sps:$4 sm:$0xff]  }
   0xb   :  { %v1273_v26 = vld [vmem:[%s1658_s1 + $0x30] sm:$0xff]   ;;  %v1277_v30 = vld [vmem:[%s1658_s1 + $0x38] sm:$0xff]   ;;  %v1282_v34 = vld [vmem:[%s1659_s0 + $0x8] ss:$36 sps:$4 sm:$0xff]   ;;  %747 = vmatprep.mubr.bf16.mxu0 %v1281_v33 }
   0xc   :  { %1110 = vmatpush3.bf16.msra.mxu0 %v1257_v10  ;;  %v1274_v27 = vld [vmem:[%s1658_s1 + $0xb0] sm:$0xff]   ;;  %v1278_v31 = vld [vmem:[%s1658_s1 + $0xb8] sm:$0xff]   ;;  %v1285_v36 = vld [vmem:[%s1658_s1 + $0x140] sm:$0xff]  }
   0xd   :  { %1138 = vmatpush3.bf16.msra.mxu1 %v1258_v11  ;;  %1111 = vmatprep.subr.bf16.mxu0 %v1259_v12  ;;  %v1284_v35 = vld [vmem:[%s1659_s0 + $0xc] ss:$36 sps:$4 sm:$0xff]   ;;  %v1286_v37 = vld [vmem:[%s1658_s1 + $0x100] sm:$0xff]   ;;  %v1297_v48 = vld [vmem:[%s1658_s1 + $0x158] sm:$0xff]  }
   0xe   :  { %1139 = vmatprep.subr.bf16.mxu1 %v1260_v13  ;;  %796 = vmatprep.mubr.bf16.mxu1 %v1284_v35  ;;  %v1287_v38 = vld [vmem:[%s1658_s1 + $0x1c0] sm:$0xff]   ;;  %v1289_v40 = vld [vmem:[%s1658_s1 + $0x148] sm:$0xff]   ;;  %v1293_v44 = vld [vmem:[%s1658_s1 + $0x150] sm:$0xff]  }
   0xf   :  { %v1288_v39 = vld [vmem:[%s1658_s1 + $0x180] sm:$0xff]   ;;  %v1290_v41 = vld [vmem:[%s1658_s1 + $0x108] sm:$0xff]   ;;  %v1294_v45 = vld [vmem:[%s1658_s1 + $0x110] sm:$0xff]  }
  0x10   :  { %1112 = vmatpush3.bf16.msra.mxu0 %v1261_v14  ;;  %v1291_v42 = vld [vmem:[%s1658_s1 + $0x1c8] sm:$0xff]   ;;  %v1295_v46 = vld [vmem:[%s1658_s1 + $0x1d0] sm:$0xff]   ;;  %v1298_v49 = vld [vmem:[%s1658_s1 + $0x118] sm:$0xff]  }
  0x11   :  { %1140 = vmatpush3.bf16.msra.mxu1 %v1262_v15  ;;  %1113 = vmatprep.subr.bf16.mxu0 %v1263_v16  ;;  %v1292_v43 = vld [vmem:[%s1658_s1 + $0x188] sm:$0xff]   ;;  %v1296_v47 = vld [vmem:[%s1658_s1 + $0x190] sm:$0xff]   ;;  %v1299_v50 = vld [vmem:[%s1658_s1 + $0x1d8] sm:$0xff]  }
  0x12   :  { %1141 = vmatprep.subr.bf16.mxu1 %v1264_v17  ;;  %v1300_v51 = vld [vmem:[%s1658_s1 + $0x198] sm:$0xff]   ;;  %v1301_v52 = vld [vmem:[%s1658_s1 + $0x160] sm:$0xff]   ;;  %v1305_v56 = vld [vmem:[%s1658_s1 + $0x168] sm:$0xff]  }
  0x13   :  { %v1302_v53 = vld [vmem:[%s1658_s1 + $0x120] sm:$0xff]   ;;  %v1306_v57 = vld [vmem:[%s1659_s0 + $0x4c] ss:$36 sps:$4 sm:$0xff]   ;;  %v1308_v58 = vld [vmem:[%s1659_s0 + $0x54] ss:$36 sps:$4 sm:$0xff]  }
  0x14   :  { %1114 = vmatpush3.bf16.msra.mxu0 %v1265_v18  ;;  %v1303_v54 = vld [vmem:[%s1658_s1 + $0x1e0] sm:$0xff]   ;;  %v1310_v59 = vld [vmem:[%s1658_s1 + $0x128] sm:$0xff]   ;;  %v1312_v61 = vld [vmem:[%s1659_s0 + $0x50] ss:$36 sps:$4 sm:$0xff]  }
  0x15   :  { %1142 = vmatpush3.bf16.msra.mxu1 %v1266_v19  ;;  %1115 = vmatprep.subr.bf16.mxu0 %v1267_v20  ;;  %v1304_v55 = vld [vmem:[%s1658_s1 + $0x1a0] sm:$0xff]   ;;  %v1311_v60 = vld [vmem:[%s1659_s0 + $0x48] ss:$36 sps:$4 sm:$0xff]   ;;  %v1315_v0 = vld [vmem:[%s1658_s1 + $0x170] sm:$0xff]  }
  0x16   :  { %1143 = vmatprep.subr.bf16.mxu1 %v1268_v21  ;;  %v1313_v62 = vld [vmem:[%s1658_s1 + $0x1e8] sm:$0xff]   ;;  %v1316_v1 = vld [vmem:[%s1658_s1 + $0x130] sm:$0xff]   ;;  %v1319_v4 = vld [vmem:[%s1658_s1 + $0x178] sm:$0xff]  }
  0x17   :  { %v1314_v63 = vld [vmem:[%s1658_s1 + $0x1a8] sm:$0xff]   ;;  %v1317_v2 = vld [vmem:[%s1658_s1 + $0x1f0] sm:$0xff]   ;;  %v1320_v5 = vld [vmem:[%s1658_s1 + $0x138] sm:$0xff]  }
  0x18   :  { %1116 = vmatpush3.bf16.msra.mxu0 %v1269_v22  ;;  %v1318_v3 = vld [vmem:[%s1658_s1 + $0x1b0] sm:$0xff]   ;;  %v1321_v6 = vld [vmem:[%s1658_s1 + $0x1f8] sm:$0xff]   ;;  %v1326_v10 = vld [vmem:[%s1658_s1 + $0x200] sm:$0xff]  }
  0x19   :  { %1144 = vmatpush3.bf16.msra.mxu1 %v1270_v23  ;;  %1117 = vmatprep.subr.bf16.mxu0 %v1271_v24  ;;  %v1322_v7 = vld [vmem:[%s1659_s0 + $0x10] ss:$36 sps:$4 sm:$0xff]   ;;  %v1325_v9 = vld [vmem:[%s1658_s1 + $0x1b8] sm:$0xff]   ;;  %v1330_v13 = vld [vmem:[%s1658_s1 + $0x208] sm:$0xff]  }
  0x1a   :  { %1145 = vmatprep.subr.bf16.mxu1 %v1272_v25  ;;  %v1324_v8 = vld [vmem:[%s1659_s0 + $0x14] ss:$36 sps:$4 sm:$0xff]   ;;  %v1329_v12 = vld [vmem:[%s1659_s0 + $0x1c] ss:$36 sps:$4 sm:$0xff]   ;;  %v1335_v17 = vld [vmem:[%s1659_s0 + $0x64] ss:$36 sps:$4 sm:$0xff]  }
  0x1b   :  { %v1327_v11 = vld [vmem:[%s1659_s0 + $0x18] ss:$36 sps:$4 sm:$0xff]   ;;  %v1334_v16 = vld [vmem:[%s1658_s1 + $0x210] sm:$0xff]   ;;  %v1337_v18 = vld [vmem:[%s1659_s0 + $0x60] ss:$36 sps:$4 sm:$0xff]  }
  0x1c   :  { %1118 = vmatpush3.bf16.msra.mxu0 %v1273_v26  ;;  %v1331_v14 = vld [vmem:[%s1659_s0 + $0x5c] ss:$36 sps:$4 sm:$0xff]   ;;  %v1340_v22 = vld [vmem:[%s1658_s1 + $0x228] sm:$0xff]   ;;  %v1341_v23 = vld [vmem:[%s1658_s1 + $0x230] sm:$0xff]  }
  0x1d   :  { %1146 = vmatpush3.bf16.msra.mxu1 %v1274_v27  ;;  %1119 = vmatprep.subr.bf16.mxu0 %v1275_v28  ;;  %v1333_v15 = vld [vmem:[%s1659_s0 + $0x58] ss:$36 sps:$4 sm:$0xff]   ;;  %v1339_v20 = vld [vmem:[%s1658_s1 + $0x220] sm:$0xff]   ;;  %v1344_v25 = vld [vmem:[%s1659_s0 + $0x68] ss:$36 sps:$4 sm:$0xff]  }
  0x1e   :  { %1147 = vmatprep.subr.bf16.mxu1 %v1276_v29  ;;  %v1338_v19 = vld [vmem:[%s1658_s1 + $0x218] sm:$0xff]   ;;  %v1343_v21 = vld [vmem:[%s1659_s0 + $0x20] ss:$36 sps:$4 sm:$0xff]  }
  0x1f   :  { %v1342_v24 = vld [vmem:[%s1658_s1 + $0x238] sm:$0xff]  }
  0x20   :  { %1120 = vmatpush3.bf16.msra.mxu0 %v1277_v30 }
  0x21   :  { %1148 = vmatpush3.bf16.msra.mxu1 %v1278_v31  ;;  %1161 = vmatprep.subr.bf16.mxu0 %v1285_v36 }
  0x22   :  { %1189 = vmatprep.subr.bf16.mxu1 %v1287_v38 }
  0x23   :  { %748 = vmatmul.mubr.bf16.vlgmr.msra.gmra.mrb[0].mxu0 %v1279_v32 }
  0x24   :  { %797 = vmatmul.mubr.bf16.vlgmr.msra.gmra.mrb[0].mxu1 %v1282_v34  ;;  %1162 = vmatpush3.bf16.msra.mxu0 %v1286_v37 }
  0x25   :  { %1190 = vmatpush3.bf16.msra.mxu1 %v1288_v39  ;;  %1163 = vmatprep.subr.bf16.mxu0 %v1289_v40 }
  0x26   :  { %1191 = vmatprep.subr.bf16.mxu1 %v1291_v42  ;;  %755 = vmatprep.mubr.bf16.mxu0 %v1306_v57 }
  0x27   :  { %804 = vmatprep.mubr.bf16.mxu1 %v1308_v58 }
  0x28   :  { %1164 = vmatpush3.bf16.msra.mxu0 %v1290_v41 }
  0x29   :  { %1192 = vmatpush3.bf16.msra.mxu1 %v1292_v43  ;;  %1165 = vmatprep.subr.bf16.mxu0 %v1293_v44 }
  0x2a   :  { %1193 = vmatprep.subr.bf16.mxu1 %v1295_v46 }
  0x2b   :  { %756 = vmatmul.mubr.bf16.gmra.mrb[4].mxu0 %v1311_v60 }
  0x2c   :  { %1166 = vmatpush3.bf16.msra.mxu0 %v1294_v45  ;;  %805 = vmatmul.mubr.bf16.gmra.mrb[4].mxu1 %v1312_v61 }
  0x2d   :  { %1194 = vmatpush3.bf16.msra.mxu1 %v1296_v47  ;;  %1167 = vmatprep.subr.bf16.mxu0 %v1297_v48 }
  0x2e   :  { %1195 = vmatprep.subr.bf16.mxu1 %v1299_v50  ;;  %845 = vmatprep.mubr.bf16.mxu0 %v1324_v8 }
  0x2f   :  { %894 = vmatprep.mubr.bf16.mxu1 %v1329_v12 }
  0x30   :  { %1168 = vmatpush3.bf16.msra.mxu0 %v1298_v49 }
  0x31   :  { %1196 = vmatpush3.bf16.msra.mxu1 %v1300_v51  ;;  %1169 = vmatprep.subr.bf16.mxu0 %v1301_v52 }
  0x32   :  { %1197 = vmatprep.subr.bf16.mxu1 %v1303_v54 }
  0x34   :  { %1170 = vmatpush3.bf16.msra.mxu0 %v1302_v53 }
  0x35   :  { %1198 = vmatpush3.bf16.msra.mxu1 %v1304_v55  ;;  %1171 = vmatprep.subr.bf16.mxu0 %v1305_v56 }
  0x36   :  { %1199 = vmatprep.subr.bf16.mxu1 %v1313_v62 }
  0x38   :  { %1172 = vmatpush3.bf16.msra.mxu0 %v1310_v59 }
  0x39   :  { %1200 = vmatpush3.bf16.msra.mxu1 %v1314_v63  ;;  %1173 = vmatprep.subr.bf16.mxu0 %v1315_v0 }
  0x3a   :  { %1201 = vmatprep.subr.bf16.mxu1 %v1317_v2 }
  0x3c   :  { %1174 = vmatpush3.bf16.msra.mxu0 %v1316_v1 }
  0x3d   :  { %1202 = vmatpush3.bf16.msra.mxu1 %v1318_v3  ;;  %1175 = vmatprep.subr.bf16.mxu0 %v1319_v4 }
  0x3e   :  { %1203 = vmatprep.subr.bf16.mxu1 %v1321_v6 }
  0x40   :  { %1176 = vmatpush3.bf16.msra.mxu0 %v1320_v5 }
  0x41   :  { %1204 = vmatpush3.bf16.msra.mxu1 %v1325_v9  ;;  %1227 = vmatprep.subr.bf16.mxu0 %v1326_v10 }
  0x43   :  { %846 = vmatmul.mubr.bf16.vlgmr.msra.gmra.mrb[8].mxu0 %v1322_v7 }
  0x44   :  { %1228 = vmatpush3.bf16.msra.mxu0 %v1326_v10  ;;  %895 = vmatmul.mubr.bf16.vlgmr.msra.gmra.mrb[8].mxu1 %v1327_v11 }
  0x45   :  { %1229 = vmatprep.subr.bf16.mxu0 %v1330_v13  ;;  %853 = vmatprep.mubr.bf16.mxu0 %v1331_v14 }
  0x46   :  { %902 = vmatprep.mubr.bf16.mxu1 %v1335_v17 }
  0x48   :  { %1230 = vmatpush3.bf16.msra.mxu0 %v1330_v13 }
  0x49   :  { %1231 = vmatprep.subr.bf16.mxu0 %v1334_v16 }
  0x4b   :  { %854 = vmatmul.mubr.bf16.gmra.mrb[12].mxu0 %v1333_v15 }
  0x4c   :  { %1232 = vmatpush3.bf16.msra.mxu0 %v1334_v16  ;;  %903 = vmatmul.mubr.bf16.gmra.mrb[12].mxu1 %v1337_v18 }
  0x4d   :  { %1233 = vmatprep.subr.bf16.mxu0 %v1338_v19  ;;  %1243 = vmatprep.mubr.bf16.mxu0 %v1343_v21 }
  0x50   :  { %1234 = vmatpush3.bf16.msra.mxu0 %v1338_v19 }
  0x51   :  { %1235 = vmatprep.subr.bf16.mxu0 %v1339_v20 }
  0x54   :  { %1236 = vmatpush3.bf16.msra.mxu0 %v1339_v20 }
  0x55   :  { %1237 = vmatprep.subr.bf16.mxu0 %v1340_v22 }
  0x58   :  { %1238 = vmatpush3.bf16.msra.mxu0 %v1340_v22 }
  0x59   :  { %1239 = vmatprep.subr.bf16.mxu0 %v1341_v23 }
  0x5c   :  { %1240 = vmatpush3.bf16.msra.mxu0 %v1341_v23 }
  0x5d   :  { %1241 = vmatprep.subr.bf16.mxu0 %v1342_v24 }
  0x60   :  { %1242 = vmatpush3.bf16.msra.mxu0 %v1342_v24 }
  0x63   :  { %1244 = vmatmul.mubr.bf16.vlgmr.msra.gmra.mrb[16].mxu0 %v1344_v25 }
  0xf6   :  { %v1121_v26 = vpop.f32.mrb[0].mxu0 }
  0xf7   :  { %v1149_v27 = vpop.f32.mrb[0].mxu1  ;;  %v1122_v28 = vpop.f32.mrb[1].mxu0 }
  0xf8   :  { %v1123_v29 = vadd.f32 %v1122_v28, %v1121_v26  ;;  %v1150_v30 = vpop.f32.mrb[1].mxu1  ;;  %v1124_v31 = vpop.f32.mrb[2].mxu0 }
  0xf9   :  { %v1151_v32 = vadd.f32 %v1150_v30, %v1149_v27  ;;  %v1152_v33 = vpop.f32.mrb[2].mxu1  ;;  %v1125_v34 = vpop.f32.mrb[3].mxu0 }
  0xfa   :  { %v1126_v35 = vadd.f32 %v1125_v34, %v1124_v31  ;;  %v1153_v36 = vpop.f32.mrb[3].mxu1 }
  0xfb   :  { %v799_v37 = vadd.f32 %v1151_v32, %v1123_v29  ;;  %v1154_v38 = vadd.f32 %v1153_v36, %v1152_v33 }
  0xfd   :  { %v802_v39 = vadd.f32 %v1154_v38, %v1126_v35 }
  0xfe   :  { %v1127_v40 = vpop.f32.mrb[4].mxu0 }
  0xff   :  { %v1155_v41 = vpop.f32.mrb[4].mxu1  ;;  %v1128_v42 = vpop.f32.mrb[5].mxu0 }
 0x100   :  { %v1156_v43 = vpop.f32.mrb[5].mxu1  ;;  %v1129_v44 = vadd.f32 %v1128_v42, %v1127_v40  ;;  %v1130_v46 = vpop.f32.mrb[6].mxu0 }
 0x101   :  { %v1157_v45 = vadd.f32 %v1156_v43, %v1155_v41  ;;  %v1158_v47 = vpop.f32.mrb[6].mxu1  ;;  %v1131_v48 = vpop.f32.mrb[7].mxu0 }
 0x102   :  { %v1159_v49 = vpop.f32.mrb[7].mxu1  ;;  %v1132_v51 = vadd.f32 %v1131_v48, %v1130_v46 }
 0x103   :  { %v807_v50 = vadd.f32 %v1157_v45, %v1129_v44  ;;  %v1160_v52 = vadd.f32 %v1159_v49, %v1158_v47 }
 0x105   :  { %v810_v53 = vadd.f32 %v1160_v52, %v1132_v51 }
 0x116   :  { %v1177_v54 = vpop.f32.mrb[8].mxu0 }
 0x117   :  { %v1178_v55 = vpop.f32.mrb[9].mxu0  ;;  %v1205_v58 = vpop.f32.mrb[8].mxu1 }
 0x118   :  { %v1179_v56 = vadd.f32 %v1178_v55, %v1177_v54  ;;  %v1180_v57 = vpop.f32.mrb[10].mxu0  ;;  %v1206_v62 = vpop.f32.mrb[9].mxu1 }
 0x119   :  { %v1181_v59 = vpop.f32.mrb[11].mxu0  ;;  %v1207_v63 = vadd.f32 %v1206_v62, %v1205_v58  ;;  %v1208_v0 = vpop.f32.mrb[10].mxu1 }
 0x11a   :  { %v848_v60 = vadd.f32 %v1179_v56, %v799_v37  ;;  %v1182_v61 = vadd.f32 %v1181_v59, %v1180_v57  ;;  %v1209_v2 = vpop.f32.mrb[11].mxu1 }
 0x11b   :  { %v1210_v3 = vadd.f32 %v1209_v2, %v1208_v0 }
 0x11c   :  { %v851_v1 = vadd.f32 %v1182_v61, %v802_v39  ;;  %v897_v4 = vadd.f32 %v1207_v63, %v848_v60 }
 0x11e   :  { %v1183_v5 = vpop.f32.mrb[12].mxu0  ;;  %v900_v7 = vadd.f32 %v1210_v3, %v851_v1 }
 0x11f   :  { %v1184_v6 = vpop.f32.mrb[13].mxu0  ;;  %v1211_v10 = vpop.f32.mrb[12].mxu1 }
 0x120   :  { %v1185_v8 = vadd.f32 %v1184_v6, %v1183_v5  ;;  %v1186_v9 = vpop.f32.mrb[14].mxu0  ;;  %v1212_v14 = vpop.f32.mrb[13].mxu1 }
 0x121   :  { %v1187_v11 = vpop.f32.mrb[15].mxu0  ;;  %v1213_v15 = vadd.f32 %v1212_v14, %v1211_v10  ;;  %v1214_v16 = vpop.f32.mrb[14].mxu1 }
 0x122   :  { %v856_v12 = vadd.f32 %v1185_v8, %v807_v50  ;;  %v1188_v13 = vadd.f32 %v1187_v11, %v1186_v9  ;;  %v1215_v18 = vpop.f32.mrb[15].mxu1 }
 0x123   :  { %v1216_v19 = vadd.f32 %v1215_v18, %v1214_v16 }
 0x124   :  { %v859_v17 = vadd.f32 %v1188_v13, %v810_v53  ;;  %v905_v20 = vadd.f32 %v1213_v15, %v856_v12 }
 0x126   :  { %v908_v21 = vadd.f32 %v1216_v19, %v859_v17 }
 0x136   :  { %v1245_v22 = vpop.f32.mrb[16].mxu0 }
 0x137   :  { %v954_v23 = vadd.f32 %v1245_v22, %v905_v20  ;;  %v945_v24 = vpop.f32.mrb[17].mxu0 }
 0x138   :  { %v946_v25 = vadd.f32 %v945_v24, %v897_v4  ;;  %v1246_v26 = vpop.f32.mrb[18].mxu0 }
 0x139   :  { %977 = vst [vmem:[%s1660_s2 + $0x10] sm:$0xff] %v954_v23  ;;  %v957_v27 = vadd.f32 %v1246_v26, %v908_v21  ;;  %v948_v28 = vpop.f32.mrb[19].mxu0  ;;  %v991_v33 = vmul.f32 %v954_v23, %v954_v23 }
 0x13a   :  { %975 = vst [vmem:[%s1660_s2] sm:$0xff] %v946_v25  ;;  %v949_v29 = vadd.f32 %v948_v28, %v900_v7  ;;  %v989_v30 = vmul.f32 %v946_v25, %v946_v25 }
 0x13b   :  { %978 = vst [vmem:[%s1660_s2 + $0x18] sm:$0xff] %v957_v27  ;;  %v992_v36 = vmul.f32 %v957_v27, %v957_v27 }
 0x13c   :  { %976 = vst [vmem:[%s1660_s2 + $0x8] sm:$0xff] %v949_v29  ;;  %v979_v31 = vadd.f32 %v949_v29, %v946_v25  ;;  %v990_v32 = vmul.f32 %v949_v29, %v949_v29 }
 0x13e   :  { %v980_v34 = vadd.f32 %v979_v31, %v954_v23  ;;  %v993_v35 = vadd.f32 %v990_v32, %v989_v30 }
 0x140   :  { %v981_v37 = vadd.f32 %v980_v34, %v957_v27  ;;  %v994_v38 = vadd.f32 %v993_v35, %v991_v33 }
 0x142   :  { %v982_v39 = vrot.slane %v981_v37, 4  ;;  %v995_v40 = vadd.f32 %v994_v38, %v992_v36 }
 0x144   :  { %v983_v41 = vadd.f32 %v982_v39, %v981_v37  ;;  %v996_v42 = vrot.slane %v995_v40, 4 }
 0x146   :  { %v984_v43 = vrot.slane %v983_v41, 2  ;;  %v997_v44 = vadd.f32 %v996_v42, %v995_v40 }
 0x148   :  { %v985_v45 = vadd.f32 %v984_v43, %v983_v41  ;;  %v998_v46 = vrot.slane %v997_v44, 2 }
 0x14a   :  { %v986_v47 = vrot.slane %v985_v45, 1  ;;  %v999_v48 = vadd.f32 %v998_v46, %v997_v44 }
 0x14c   :  { %v987_v49 = vadd.f32 %v986_v47, %v985_v45  ;;  %v1000_v50 = vrot.slane %v999_v48, 1 }
 0x14e   :  { %988 = vst [vmem:[%s1661_s3] sm:$0x1] %v987_v49  ;;  %v1001_v51 = vadd.f32 %v1000_v50, %v999_v48 }
 0x150   :  { %1002 = vst [vmem:[%s1662_s4] sm:$0x1] %v1001_v51 }

// kernel: classifier_net_forward.64
= control target key start
LH: loop header
LB: loop body
LE: loop exit
PB: predicated region body
PF: predicated region fallthrough
CT: control target
= control target key end

     0   :  { %v294_v1 = vmov 0   ;;  %v295_v29 = vmov 1966171168   ;;  %v190_v31 = vlaneseq  ;;  %s384_s1 = inlined_call_operand.vmem [shape: bf16[128,256], index: 1, kind: input, shape index: {}]   ;;  %s385_s0 = inlined_call_operand.vmem [shape: bf16[8,128], index: 0, kind: input, shape index: {}]   ;;  %s386_s2 = inlined_call_operand.vmem [shape: f32[8,256], index: 2, kind: output, shape index: {0}]   ;;  %s387_s3 = inlined_call_operand.vmem [shape: f32[1,1,256], index: 3, kind: output, shape index: {1}]   ;;  %s388_s4 = inlined_call_operand.vmem [shape: f32[1,1,256], index: 4, kind: output, shape index: {2}]  }
   0x1   :  { %v270_v0 = vld [vmem:[%s384_s1 + $0x4] ss:$8 sps:$4 sm:$0xff]   ;;  %152 = vmatprep.mubr.bf16.mxu0 %v294_v1  ;;  %v272_v2 = vld [vmem:[%s384_s1] ss:$8 sps:$4 sm:$0xff]   ;;  %v273_v3 = vld [vmem:[%s384_s1 + $0x14] ss:$8 sps:$4 sm:$0xff]   ;;  %v188_v30 = vunpack.c.l.s4 %v295_v29 }
   0x2   :  { %120 = vmatprep.subr.bf16.mxu0 %v270_v0  ;;  %v275_v4 = vld [vmem:[%s384_s1 + $0x10] ss:$8 sps:$4 sm:$0xff]   ;;  %v276_v5 = vld [vmem:[%s384_s1 + $0x24] ss:$8 sps:$4 sm:$0xff]   ;;  %v278_v6 = vld [vmem:[%s384_s1 + $0x20] ss:$8 sps:$4 sm:$0xff]  }
   0x3   :  { %121 = vmatpush1.bf16.msra.mxu0 %v272_v2  ;;  %v279_v7 = vld [vmem:[%s384_s1 + $0x34] ss:$8 sps:$4 sm:$0xff]   ;;  %v281_v8 = vld [vmem:[%s384_s1 + $0x30] ss:$8 sps:$4 sm:$0xff]   ;;  %v282_v9 = vld [vmem:[%s384_s1 + $0x44] ss:$8 sps:$4 sm:$0xff]   ;;  %v189_v40 = vunpack.c.0.s8 %v188_v30 }
   0x4   :  { %122 = vmatprep.subr.bf16.mxu0 %v273_v3  ;;  %v284_v10 = vld [vmem:[%s384_s1 + $0x40] ss:$8 sps:$4 sm:$0xff]   ;;  %v285_v11 = vld [vmem:[%s384_s1 + $0x54] ss:$8 sps:$4 sm:$0xff]   ;;  %v287_v12 = vld [vmem:[%s384_s1 + $0x50] ss:$8 sps:$4 sm:$0xff]  }
   0x5   :  { %v288_v13 = vld [vmem:[%s384_s1 + $0x64] ss:$8 sps:$4 sm:$0xff]   ;;  %v290_v14 = vld [vmem:[%s384_s1 + $0x60] ss:$8 sps:$4 sm:$0xff]   ;;  %v291_v15 = vld [vmem:[%s384_s1 + $0x74] ss:$8 sps:$4 sm:$0xff]  }
   0x6   :  { %v293_v16 = vld [vmem:[%s384_s1 + $0x70] ss:$8 sps:$4 sm:$0xff]   ;;  %v23_v17 = vld [vmem:[%s385_s0] sm:$0xf]  ;;  %v191_v41 = vshrl.u32 %v190_v31, 7  ;;  %vm204_vm0 = vcmp.lt.s32.totalorder %v190_v31, 256 }
   0x7   :  { %123 = vmatpush1.bf16.msra.mxu0 %v275_v4 }
   0x8   :  { %124 = vmatprep.subr.bf16.mxu0 %v276_v5  ;;  %v192_v50 = vsub.s32 %v189_v40, %v191_v41 }
   0xb   :  { %125 = vmatpush1.bf16.msra.mxu0 %v278_v6 }
   0xc   :  { %126 = vmatprep.subr.bf16.mxu0 %v279_v7 }
   0xf   :  { %127 = vmatpush1.bf16.msra.mxu0 %v281_v8 }
  0x10   :  { %128 = vmatprep.subr.bf16.mxu0 %v282_v9 }
  0x13   :  { %129 = vmatpush1.bf16.msra.mxu0 %v284_v10 }
  0x14   :  { %130 = vmatprep.subr.bf16.mxu0 %v285_v11 }
  0x17   :  { %131 = vmatpush1.bf16.msra.mxu0 %v287_v12 }
  0x18   :  { %132 = vmatprep.subr.bf16.mxu0 %v288_v13 }
  0x1b   :  { %133 = vmatpush1.bf16.msra.mxu0 %v290_v14 }
  0x1c   :  { %134 = vmatprep.subr.bf16.mxu0 %v291_v15 }
  0x1f   :  { %135 = vmatpush1.bf16.msra.mxu0 %v293_v16 }
  0x22   :  { %153 = vmatmul.mubr.bf16.vlgmr.msra.gmra.mrb[0].mxu0 %v23_v17 }
  0xf5   :  { %v154_v18 = vpop.f32.mrb[0].mxu0 }
  0xf6   :  { %170 = vst [vmem:[%s386_s2] sm:$0xff] %v154_v18  ;;  %v172_v19 = vrot.slane %v154_v18, 4  ;;  %v207_v20 = vmul.f32 %v154_v18, %v154_v18  ;;  %v156_v21 = vpop.f32.mrb[1].mxu0 }
  0xf7   :  { %171 = vst [vmem:[%s386_s2 + $0x8] sm:$0xff] %v156_v21  ;;  %v178_v22 = vrot.slane %v156_v21, 4  ;;  %v208_v23 = vmul.f32 %v156_v21, %v156_v21  ;;  %v158_v24 = vpop.f32.mrb[2].mxu0 }
  0xf8   :  { %v173_v25 = vadd.f32 %v172_v19, %v154_v18  ;;  %v209_v26 = vrot.slane %v207_v20, 4  ;;  %v159_v27 = vpop.f32.mrb[3].mxu0 }
  0xf9   :  { %v179_v28 = vadd.f32 %v178_v22, %v156_v21  ;;  %v215_v32 = vrot.slane %v208_v23, 4 }
  0xfa   :  { %v174_v33 = vrot.slane %v173_v25, 2  ;;  %v210_v34 = vadd.f32 %v209_v26, %v207_v20 }
  0xfb   :  { %v180_v35 = vrot.slane %v179_v28, 2  ;;  %v216_v36 = vadd.f32 %v215_v32, %v208_v23 }
  0xfc   :  { %v175_v37 = vadd.f32 %v174_v33, %v173_v25  ;;  %v211_v38 = vrot.slane %v210_v34, 2 }
  0xfd   :  { %v181_v39 = vadd.f32 %v180_v35, %v179_v28  ;;  %v217_v42 = vrot.slane %v216_v36, 2 }
  0xfe   :  { %v176_v43 = vrot.slane %v175_v37, 1  ;;  %v212_v44 = vadd.f32 %v211_v38, %v210_v34 }
  0xff   :  { %v182_v45 = vrot.slane %v181_v39, 1  ;;  %v218_v46 = vadd.f32 %v217_v42, %v216_v36 }
 0x100   :  { %v177_v47 = vadd.f32 %v176_v43, %v175_v37  ;;  %v213_v48 = vrot.slane %v212_v44, 1 }
 0x101   :  { %v183_v49 = vadd.f32 %v182_v45, %v181_v39  ;;  %v219_v51 = vrot.slane %v218_v46, 1 }
 0x102   :  { %v214_v52 = vadd.f32 %v213_v48, %v212_v44 }
 0x103   :  { %v186_v53 = vcombine.low %v177_v47, %v183_v49  ;;  %v220_v54 = vadd.f32 %v219_v51, %v218_v46 }
 0x105   :  { %v193_v55 = vrot.slane %v186_v53, %v192_v50  ;;  %v223_v56 = vcombine.low %v214_v52, %v220_v54 }
 0x107   :  { %v200_v57 = vrot.slane %v193_v55, %v192_v50  ;;  %v230_v58 = vrot.slane %v223_v56, %v192_v50 }
 0x109   :  { %206 = vst.msk [vmem:[%s387_s3] sm:$0x3] %vm204_vm0, %v200_v57  ;;  %v237_v59 = vrot.slane %v230_v58, %v192_v50 }
 0x10b   :  { %239 = vst.msk [vmem:[%s388_s4] sm:$0x3] %vm204_vm0, %v237_v59 }

// kernel: classifier_net_forward.67
= control target key start
LH: loop header
LB: loop body
LE: loop exit
PB: predicated region body
PF: predicated region fallthrough
CT: control target
= control target key end

     0   :  { %v18_v0 = vlaneseq  ;;  %s90_s1 = inlined_call_operand.vmem [shape: f32[1,256], index: 1, kind: input, shape index: {}]   ;;  %s91_s2 = inlined_call_operand.vmem [shape: f32[1,256], index: 2, kind: input, shape index: {}]   ;;  %s92_s0 = inlined_call_operand.vmem [shape: f32[8,256], index: 0, kind: input, shape index: {}]   ;;  %s93_s3 = inlined_call_operand.vmem [shape: f32[8,256], index: 3, kind: output, shape index: {}]  }
   0x1   :  { %v16_v2 = vld [vmem:[%s90_s1] sm:$0x3]  ;;  %v15_v7 = vld [vmem:[%s92_s0 + $0x8] sm:$0xff] }
   0x2   :  { %v19_v1 = vshrl.u32 %v18_v0, 7  ;;  %v30_v3 = vld [vmem:[%s91_s2] sm:$0x3] }
   0x3   :  { %v14_v6 = vld [vmem:[%s92_s0] sm:$0xff] }
   0x4   :  { %v20_v4 = vsub.s32 0, %v19_v1  ;;  %v24_v5 = vsub.s32 1, %v19_v1 }
   0x6   :  { %v21_v8 = vrot.slane %v16_v2, %v20_v4  ;;  %v35_v9 = vrot.slane %v30_v3, %v20_v4  ;;  %v25_v10 = vrot.slane %v16_v2, %v24_v5  ;;  %v39_v11 = vrot.slane %v30_v3, %v24_v5 }
   0x8   :  { %v28_v12 = vmul.f32 %v21_v8, %v14_v6  ;;  %v29_v13 = vmul.f32 %v25_v10, %v15_v7 }
   0xa   :  { %v42_v14 = vadd.f32 %v35_v9, %v28_v12  ;;  %v43_v15 = vadd.f32 %v39_v11, %v29_v13 }
   0xc   :  { %v44_v16 = vmax.f32 %v42_v14, 0.0  ;;  %v45_v17 = vmax.f32 %v43_v15, 0.0 }
   0xe   :  { %46 = vst [vmem:[%s93_s3] sm:$0xff] %v44_v16  ;;  %47 = vst [vmem:[%s93_s3 + $0x8] sm:$0xff] %v45_v17 }

// kernel: classifier_net_forward.66
= control target key start
LH: loop header
LB: loop body
LE: loop exit
PB: predicated region body
PF: predicated region fallthrough
CT: control target
= control target key end

     0   :  { %s2112_s1 = inlined_call_operand.vmem [shape: bf16[1152,256], index: 1, kind: input, shape index: {}]   ;;  %s2113_s0 = inlined_call_operand.vmem [shape: bf16[8,1152], index: 0, kind: input, shape index: {}]   ;;  %s2114_s2 = inlined_call_operand.vmem [shape: f32[8,256], index: 2, kind: output, shape index: {0}]   ;;  %s2115_s3 = inlined_call_operand.vmem [shape: f32[1,1,256], index: 3, kind: output, shape index: {1}]   ;;  %s2116_s4 = inlined_call_operand.vmem [shape: f32[1,1,256], index: 4, kind: output, shape index: {2}]  }
   0x1   :  { %v1389_v0 = vld [vmem:[%s2112_s1 + $0x4] ss:$8 sps:$4 sm:$0xff]   ;;  %v1393_v2 = vld [vmem:[%s2112_s1] ss:$8 sps:$4 sm:$0xff]   ;;  %v1395_v4 = vld [vmem:[%s2112_s1 + $0x14] ss:$8 sps:$4 sm:$0xff]  }
   0x2   :  { %v1391_v1 = vld [vmem:[%s2112_s1 + $0x204] ss:$8 sps:$4 sm:$0xff]   ;;  %924 = vmatprep.subr.bf16.mxu1 %v1389_v0  ;;  %v1394_v3 = vld [vmem:[%s2112_s1 + $0x200] ss:$8 sps:$4 sm:$0xff]   ;;  %v1397_v5 = vld [vmem:[%s2112_s1 + $0x214] ss:$8 sps:$4 sm:$0xff]  }
   0x3   :  { %1006 = vmatprep.subr.bf16.mxu0 %v1391_v1  ;;  %925 = vmatpush1.bf16.msra.mxu1 %v1393_v2  ;;  %v1399_v6 = vld [vmem:[%s2112_s1 + $0x10] ss:$8 sps:$4 sm:$0xff]   ;;  %v1401_v8 = vld [vmem:[%s2112_s1 + $0x24] ss:$8 sps:$4 sm:$0xff]   ;;  %v1405_v10 = vld [vmem:[%s2112_s1 + $0x20] ss:$8 sps:$4 sm:$0xff]  }
   0x4   :  { %1007 = vmatpush1.bf16.msra.mxu0 %v1394_v3  ;;  %926 = vmatprep.subr.bf16.mxu1 %v1395_v4  ;;  %v1400_v7 = vld [vmem:[%s2112_s1 + $0x210] ss:$8 sps:$4 sm:$0xff]   ;;  %v1403_v9 = vld [vmem:[%s2112_s1 + $0x224] ss:$8 sps:$4 sm:$0xff]   ;;  %v1406_v11 = vld [vmem:[%s2112_s1 + $0x220] ss:$8 sps:$4 sm:$0xff]  }
   0x5   :  { %1008 = vmatprep.subr.bf16.mxu0 %v1397_v5  ;;  %v1407_v12 = vld [vmem:[%s2112_s1 + $0x34] ss:$8 sps:$4 sm:$0xff]   ;;  %v1411_v14 = vld [vmem:[%s2112_s1 + $0x30] ss:$8 sps:$4 sm:$0xff]   ;;  %v1413_v16 = vld [vmem:[%s2112_s1 + $0x44] ss:$8 sps:$4 sm:$0xff]  }
   0x6   :  { %v1409_v13 = vld [vmem:[%s2112_s1 + $0x234] ss:$8 sps:$4 sm:$0xff]   ;;  %v1412_v15 = vld [vmem:[%s2112_s1 + $0x230] ss:$8 sps:$4 sm:$0xff]   ;;  %v1415_v17 = vld [vmem:[%s2112_s1 + $0x244] ss:$8 sps:$4 sm:$0xff]  }
   0x7   :  { %927 = vmatpush1.bf16.msra.mxu1 %v1399_v6  ;;  %v1417_v18 = vld [vmem:[%s2112_s1 + $0x40] ss:$8 sps:$4 sm:$0xff]   ;;  %v1419_v20 = vld [vmem:[%s2112_s1 + $0x54] ss:$8 sps:$4 sm:$0xff]   ;;  %v1423_v22 = vld [vmem:[%s2112_s1 + $0x50] ss:$8 sps:$4 sm:$0xff]  }
   0x8   :  { %1009 = vmatpush1.bf16.msra.mxu0 %v1400_v7  ;;  %928 = vmatprep.subr.bf16.mxu1 %v1401_v8  ;;  %v1418_v19 = vld [vmem:[%s2112_s1 + $0x240] ss:$8 sps:$4 sm:$0xff]   ;;  %v1421_v21 = vld [vmem:[%s2112_s1 + $0x254] ss:$8 sps:$4 sm:$0xff]   ;;  %v1424_v23 = vld [vmem:[%s2112_s1 + $0x250] ss:$8 sps:$4 sm:$0xff]  }
   0x9   :  { %1010 = vmatprep.subr.bf16.mxu0 %v1403_v9  ;;  %v1425_v24 = vld [vmem:[%s2112_s1 + $0x64] ss:$8 sps:$4 sm:$0xff]   ;;  %v1429_v26 = vld [vmem:[%s2112_s1 + $0x60] ss:$8 sps:$4 sm:$0xff]   ;;  %v1431_v28 = vld [vmem:[%s2112_s1 + $0x74] ss:$8 sps:$4 sm:$0xff]  }
   0xa   :  { %v1427_v25 = vld [vmem:[%s2112_s1 + $0x264] ss:$8 sps:$4 sm:$0xff]   ;;  %v1430_v27 = vld [vmem:[%s2112_s1 + $0x260] ss:$8 sps:$4 sm:$0xff]   ;;  %v1433_v29 = vld [vmem:[%s2112_s1 + $0x274] ss:$8 sps:$4 sm:$0xff]  }
   0xb   :  { %929 = vmatpush1.bf16.msra.mxu1 %v1405_v10  ;;  %v1435_v30 = vld [vmem:[%s2112_s1 + $0x70] ss:$8 sps:$4 sm:$0xff]   ;;  %v1437_v32 = vld [vmem:[%s2112_s1 + $0x84] ss:$8 sps:$4 sm:$0xff]   ;;  %v1441_v34 = vld [vmem:[%s2112_s1 + $0x80] ss:$8 sps:$4 sm:$0xff]  }
   0xc   :  { %1011 = vmatpush1.bf16.msra.mxu0 %v1406_v11  ;;  %930 = vmatprep.subr.bf16.mxu1 %v1407_v12  ;;  %v1436_v31 = vld [vmem:[%s2112_s1 + $0x270] ss:$8 sps:$4 sm:$0xff]   ;;  %v1439_v33 = vld [vmem:[%s2112_s1 + $0x284] ss:$8 sps:$4 sm:$0xff]   ;;  %v1442_v35 = vld [vmem:[%s2112_s1 + $0x280] ss:$8 sps:$4 sm:$0xff]  }
   0xd   :  { %1012 = vmatprep.subr.bf16.mxu0 %v1409_v13  ;;  %v1443_v36 = vld [vmem:[%s2112_s1 + $0x94] ss:$8 sps:$4 sm:$0xff]   ;;  %v1447_v38 = vld [vmem:[%s2112_s1 + $0x90] ss:$8 sps:$4 sm:$0xff]   ;;  %v1449_v40 = vld [vmem:[%s2112_s1 + $0xa4] ss:$8 sps:$4 sm:$0xff]  }
   0xe   :  { %v1445_v37 = vld [vmem:[%s2112_s1 + $0x294] ss:$8 sps:$4 sm:$0xff]   ;;  %v1448_v39 = vld [vmem:[%s2112_s1 + $0x290] ss:$8 sps:$4 sm:$0xff]   ;;  %v1451_v41 = vld [vmem:[%s2112_s1 + $0x2a4] ss:$8 sps:$4 sm:$0xff]  }
   0xf   :  { %931 = vmatpush1.bf16.msra.mxu1 %v1411_v14  ;;  %v1453_v42 = vld [vmem:[%s2112_s1 + $0xa0] ss:$8 sps:$4 sm:$0xff]   ;;  %v1455_v44 = vld [vmem:[%s2112_s1 + $0xb4] ss:$8 sps:$4 sm:$0xff]   ;;  %v1459_v47 = vld [vmem:[%s2112_s1 + $0xb0] ss:$8 sps:$4 sm:$0xff]  }
  0x10   :  { %1013 = vmatpush1.bf16.msra.mxu0 %v1412_v15  ;;  %932 = vmatprep.subr.bf16.mxu1 %v1413_v16  ;;  %v1454_v43 = vld [vmem:[%s2112_s1 + $0x2a0] ss:$8 sps:$4 sm:$0xff]   ;;  %v1457_v45 = vld [vmem:[%s2112_s1 + $0x2b4] ss:$8 sps:$4 sm:$0xff]   ;;  %v1460_v49 = vld [vmem:[%s2112_s1 + $0x2b0] ss:$8 sps:$4 sm:$0xff]  }
  0x11   :  { %1014 = vmatprep.subr.bf16.mxu0 %v1415_v17  ;;  %v23_v46 = vld [vmem:[%s2113_s0] sm:$0xff]  ;;  %v25_v50 = vld [vmem:[%s2113_s0 + $0x10] sm:$0xff] }
  0x12   :  { %v1221_v48 = vcombine.high %v23_v46, %v23_v46  ;;  %v1461_v51 = vld [vmem:[%s2112_s1 + $0xc4] ss:$8 sps:$4 sm:$0xff]   ;;  %v1225_v53 = vcombine.high %v25_v50, %v25_v50  ;;  %v1465_v54 = vld [vmem:[%s2112_s1 + $0xc0] ss:$8 sps:$4 sm:$0xff]   ;;  %v1467_v56 = vld [vmem:[%s2112_s1 + $0xd4] ss:$8 sps:$4 sm:$0xff]   ;;  %v1220_v6 = vcombine.low %v23_v46, %v23_v46  ;;  %v1224_v7 = vcombine.low %v25_v50, %v25_v50 }
  0x13   :  { %933 = vmatpush1.bf16.msra.mxu1 %v1417_v18  ;;  %v1463_v52 = vld [vmem:[%s2112_s1 + $0x2c4] ss:$8 sps:$4 sm:$0xff]   ;;  %v1466_v55 = vld [vmem:[%s2112_s1 + $0x2c0] ss:$8 sps:$4 sm:$0xff]   ;;  %v1469_v57 = vld [vmem:[%s2112_s1 + $0x2d4] ss:$8 sps:$4 sm:$0xff]  }
  0x14   :  { %1015 = vmatpush1.bf16.msra.mxu0 %v1418_v19  ;;  %934 = vmatprep.subr.bf16.mxu1 %v1419_v20  ;;  %v1471_v58 = vld [vmem:[%s2112_s1 + $0xd0] ss:$8 sps:$4 sm:$0xff]   ;;  %v1473_v60 = vld [vmem:[%s2112_s1 + $0xe4] ss:$8 sps:$4 sm:$0xff]   ;;  %v1477_v62 = vld [vmem:[%s2112_s1 + $0xe0] ss:$8 sps:$4 sm:$0xff]  }
  0x15   :  { %1016 = vmatprep.subr.bf16.mxu0 %v1421_v21  ;;  %956 = vmatprep.mubr.bf16.mxu1 %v1221_v48  ;;  %v1472_v59 = vld [vmem:[%s2112_s1 + $0x2d0] ss:$8 sps:$4 sm:$0xff]   ;;  %v1475_v61 = vld [vmem:[%s2112_s1 + $0x2e4] ss:$8 sps:$4 sm:$0xff]   ;;  %v1478_v63 = vld [vmem:[%s2112_s1 + $0x2e0] ss:$8 sps:$4 sm:$0xff]  }
  0x16   :  { %1038 = vmatprep.mubr.bf16.mxu0 %v1225_v53  ;;  %v1479_v0 = vld [vmem:[%s2112_s1 + $0xf4] ss:$8 sps:$4 sm:$0xff]   ;;  %v1483_v2 = vld [vmem:[%s2112_s1 + $0xf0] ss:$8 sps:$4 sm:$0xff]   ;;  %v1489_v4 = vld [vmem:[%s2112_s1 + $0x104] ss:$8 sps:$4 sm:$0xff]  }
  0x17   :  { %935 = vmatpush1.bf16.msra.mxu1 %v1423_v22  ;;  %v1481_v1 = vld [vmem:[%s2112_s1 + $0x2f4] ss:$8 sps:$4 sm:$0xff]   ;;  %v1484_v3 = vld [vmem:[%s2112_s1 + $0x2f0] ss:$8 sps:$4 sm:$0xff]   ;;  %v1494_v5 = vld [vmem:[%s2112_s1 + $0x304] ss:$8 sps:$4 sm:$0xff]  }
  0x18   :  { %1017 = vmatpush1.bf16.msra.mxu0 %v1424_v23  ;;  %936 = vmatprep.subr.bf16.mxu1 %v1425_v24  ;;  %v1487_v8 = vld [vmem:[%s2112_s1 + $0x100] ss:$8 sps:$4 sm:$0xff]   ;;  %v1497_v10 = vld [vmem:[%s2112_s1 + $0x114] ss:$8 sps:$4 sm:$0xff]   ;;  %v1495_v12 = vld [vmem:[%s2112_s1 + $0x110] ss:$8 sps:$4 sm:$0xff]  }
  0x19   :  { %1018 = vmatprep.subr.bf16.mxu0 %v1427_v25  ;;  %v1492_v9 = vld [vmem:[%s2112_s1 + $0x300] ss:$8 sps:$4 sm:$0xff]   ;;  %v1500_v11 = vld [vmem:[%s2112_s1 + $0x314] ss:$8 sps:$4 sm:$0xff]   ;;  %v1498_v13 = vld [vmem:[%s2112_s1 + $0x310] ss:$8 sps:$4 sm:$0xff]  }
  0x1a   :  { %v1503_v14 = vld [vmem:[%s2112_s1 + $0x124] ss:$8 sps:$4 sm:$0xff]   ;;  %v1501_v16 = vld [vmem:[%s2112_s1 + $0x120] ss:$8 sps:$4 sm:$0xff]   ;;  %v1509_v18 = vld [vmem:[%s2112_s1 + $0x134] ss:$8 sps:$4 sm:$0xff]  }
  0x1b   :  { %937 = vmatpush1.bf16.msra.mxu1 %v1429_v26  ;;  %v1506_v15 = vld [vmem:[%s2112_s1 + $0x324] ss:$8 sps:$4 sm:$0xff]   ;;  %v1504_v17 = vld [vmem:[%s2112_s1 + $0x320] ss:$8 sps:$4 sm:$0xff]   ;;  %v1512_v19 = vld [vmem:[%s2112_s1 + $0x334] ss:$8 sps:$4 sm:$0xff]  }
  0x1c   :  { %1019 = vmatpush1.bf16.msra.mxu0 %v1430_v27  ;;  %938 = vmatprep.subr.bf16.mxu1 %v1431_v28  ;;  %v1507_v20 = vld [vmem:[%s2112_s1 + $0x130] ss:$8 sps:$4 sm:$0xff]   ;;  %v1515_v22 = vld [vmem:[%s2112_s1 + $0x144] ss:$8 sps:$4 sm:$0xff]   ;;  %v1513_v24 = vld [vmem:[%s2112_s1 + $0x140] ss:$8 sps:$4 sm:$0xff]  }
  0x1d   :  { %1020 = vmatprep.subr.bf16.mxu0 %v1433_v29  ;;  %v1510_v21 = vld [vmem:[%s2112_s1 + $0x330] ss:$8 sps:$4 sm:$0xff]   ;;  %v1518_v23 = vld [vmem:[%s2112_s1 + $0x344] ss:$8 sps:$4 sm:$0xff]   ;;  %v1516_v25 = vld [vmem:[%s2112_s1 + $0x340] ss:$8 sps:$4 sm:$0xff]  }
  0x1e   :  { %v1521_v26 = vld [vmem:[%s2112_s1 + $0x154] ss:$8 sps:$4 sm:$0xff]   ;;  %v1519_v28 = vld [vmem:[%s2112_s1 + $0x150] ss:$8 sps:$4 sm:$0xff]   ;;  %v1551_v50 = vld [vmem:[%s2112_s1 + $0x1a4] ss:$8 sps:$4 sm:$0xff]  }
  0x1f   :  { %939 = vmatpush1.bf16.msra.mxu1 %v1435_v30  ;;  %v1524_v27 = vld [vmem:[%s2112_s1 + $0x354] ss:$8 sps:$4 sm:$0xff]   ;;  %v1522_v29 = vld [vmem:[%s2112_s1 + $0x350] ss:$8 sps:$4 sm:$0xff]   ;;  %v1527_v30 = vld [vmem:[%s2112_s1 + $0x164] ss:$8 sps:$4 sm:$0xff]  }
  0x20   :  { %1021 = vmatpush1.bf16.msra.mxu0 %v1436_v31  ;;  %940 = vmatprep.subr.bf16.mxu1 %v1437_v32  ;;  %v1530_v31 = vld [vmem:[%s2112_s1 + $0x364] ss:$8 sps:$4 sm:$0xff]   ;;  %v1545_v46 = vld [vmem:[%s2112_s1 + $0x194] ss:$8 sps:$4 sm:$0xff]   ;;  %v1543_v48 = vld [vmem:[%s2112_s1 + $0x190] ss:$8 sps:$4 sm:$0xff]  }
  0x21   :  { %1022 = vmatprep.subr.bf16.mxu0 %v1439_v33  ;;  %v1920_v32 = vld [vmem:[%s2113_s0 + $0x8] sm:$0xff]  ;;  %v1925_v33 = vld [vmem:[%s2113_s0 + $0x18] sm:$0xff] }
  0x22   :  { %v1552_v53 = vld [vmem:[%s2112_s1 + $0x3a0] ss:$8 sps:$4 sm:$0xff]  }
  0x23   :  { %941 = vmatpush1.bf16.msra.mxu1 %v1441_v34  ;;  %v1525_v34 = vld [vmem:[%s2112_s1 + $0x160] ss:$8 sps:$4 sm:$0xff]  }
  0x24   :  { %1023 = vmatpush1.bf16.msra.mxu0 %v1442_v35  ;;  %942 = vmatprep.subr.bf16.mxu1 %v1443_v36  ;;  %v1528_v35 = vld [vmem:[%s2112_s1 + $0x360] ss:$8 sps:$4 sm:$0xff]   ;;  %v1223_v36 = vcombine.high %v1920_v32, %v1920_v32 }
  0x25   :  { %1024 = vmatprep.subr.bf16.mxu0 %v1445_v37  ;;  %v1227_v37 = vcombine.high %v1925_v33, %v1925_v33 }
  0x27   :  { %943 = vmatpush1.bf16.msra.mxu1 %v1447_v38  ;;  %v1533_v38 = vld [vmem:[%s2112_s1 + $0x174] ss:$8 sps:$4 sm:$0xff]  }
  0x28   :  { %1025 = vmatpush1.bf16.msra.mxu0 %v1448_v39  ;;  %944 = vmatprep.subr.bf16.mxu1 %v1449_v40  ;;  %v1536_v39 = vld [vmem:[%s2112_s1 + $0x374] ss:$8 sps:$4 sm:$0xff]   ;;  %v1531_v40 = vld [vmem:[%s2112_s1 + $0x170] ss:$8 sps:$4 sm:$0xff]  }
  0x29   :  { %1026 = vmatprep.subr.bf16.mxu0 %v1451_v41  ;;  %v1534_v41 = vld [vmem:[%s2112_s1 + $0x370] ss:$8 sps:$4 sm:$0xff]  }
  0x2b   :  { %945 = vmatpush1.bf16.msra.mxu1 %v1453_v42  ;;  %v1539_v42 = vld [vmem:[%s2112_s1 + $0x184] ss:$8 sps:$4 sm:$0xff]  }
  0x2c   :  { %1027 = vmatpush1.bf16.msra.mxu0 %v1454_v43  ;;  %946 = vmatprep.subr.bf16.mxu1 %v1455_v44  ;;  %v1542_v43 = vld [vmem:[%s2112_s1 + $0x384] ss:$8 sps:$4 sm:$0xff]   ;;  %v1537_v44 = vld [vmem:[%s2112_s1 + $0x180] ss:$8 sps:$4 sm:$0xff]  }
  0x2d   :  { %1028 = vmatprep.subr.bf16.mxu0 %v1457_v45  ;;  %v1540_v45 = vld [vmem:[%s2112_s1 + $0x380] ss:$8 sps:$4 sm:$0xff]  }
  0x2f   :  { %947 = vmatpush1.bf16.msra.mxu1 %v1459_v47  ;;  %v1548_v47 = vld [vmem:[%s2112_s1 + $0x394] ss:$8 sps:$4 sm:$0xff]  }
  0x30   :  { %1029 = vmatpush1.bf16.msra.mxu0 %v1460_v49  ;;  %948 = vmatprep.subr.bf16.mxu1 %v1461_v51  ;;  %v1546_v49 = vld [vmem:[%s2112_s1 + $0x390] ss:$8 sps:$4 sm:$0xff]   ;;  %v1554_v51 = vld [vmem:[%s2112_s1 + $0x3a4] ss:$8 sps:$4 sm:$0xff]  }
  0x31   :  { %1030 = vmatprep.subr.bf16.mxu0 %v1463_v52  ;;  %v1549_v52 = vld [vmem:[%s2112_s1 + $0x1a0] ss:$8 sps:$4 sm:$0xff]  }
  0x33   :  { %949 = vmatpush1.bf16.msra.mxu1 %v1465_v54  ;;  %v1557_v54 = vld [vmem:[%s2112_s1 + $0x1b4] ss:$8 sps:$4 sm:$0xff]  }
  0x34   :  { %1031 = vmatpush1.bf16.msra.mxu0 %v1466_v55  ;;  %950 = vmatprep.subr.bf16.mxu1 %v1467_v56  ;;  %v1560_v55 = vld [vmem:[%s2112_s1 + $0x3b4] ss:$8 sps:$4 sm:$0xff]   ;;  %v1555_v56 = vld [vmem:[%s2112_s1 + $0x1b0] ss:$8 sps:$4 sm:$0xff]  }
  0x35   :  { %1032 = vmatprep.subr.bf16.mxu0 %v1469_v57  ;;  %v1558_v57 = vld [vmem:[%s2112_s1 + $0x3b0] ss:$8 sps:$4 sm:$0xff]  }
  0x37   :  { %951 = vmatpush1.bf16.msra.mxu1 %v1471_v58  ;;  %v1563_v58 = vld [vmem:[%s2112_s1 + $0x1c4] ss:$8 sps:$4 sm:$0xff]  }
  0x38   :  { %1033 = vmatpush1.bf16.msra.mxu0 %v1472_v59  ;;  %952 = vmatprep.subr.bf16.mxu1 %v1473_v60  ;;  %v1566_v59 = vld [vmem:[%s2112_s1 + $0x3c4] ss:$8 sps:$4 sm:$0xff]   ;;  %v1561_v60 = vld [vmem:[%s2112_s1 + $0x1c0] ss:$8 sps:$4 sm:$0xff]  }
  0x39   :  { %1034 = vmatprep.subr.bf16.mxu0 %v1475_v61  ;;  %v1564_v61 = vld [vmem:[%s2112_s1 + $0x3c0] ss:$8 sps:$4 sm:$0xff]  }
  0x3b   :  { %953 = vmatpush1.bf16.msra.mxu1 %v1477_v62  ;;  %v1569_v62 = vld [vmem:[%s2112_s1 + $0x1d4] ss:$8 sps:$4 sm:$0xff]  }
  0x3c   :  { %1035 = vmatpush1.bf16.msra.mxu0 %v1478_v63  ;;  %954 = vmatprep.subr.bf16.mxu1 %v1479_v0  ;;  %v1572_v63 = vld [vmem:[%s2112_s1 + $0x3d4] ss:$8 sps:$4 sm:$0xff]   ;;  %v1567_v0 = vld [vmem:[%s2112_s1 + $0x1d0] ss:$8 sps:$4 sm:$0xff]  }
  0x3d   :  { %1036 = vmatprep.subr.bf16.mxu0 %v1481_v1  ;;  %v1570_v1 = vld [vmem:[%s2112_s1 + $0x3d0] ss:$8 sps:$4 sm:$0xff]  }
  0x3f   :  { %955 = vmatpush1.bf16.msra.mxu1 %v1483_v2  ;;  %v1575_v2 = vld [vmem:[%s2112_s1 + $0x1e4] ss:$8 sps:$4 sm:$0xff]  }
  0x40   :  { %1037 = vmatpush1.bf16.msra.mxu0 %v1484_v3  ;;  %965 = vmatprep.subr.bf16.mxu1 %v1489_v4  ;;  %v1578_v3 = vld [vmem:[%s2112_s1 + $0x3e4] ss:$8 sps:$4 sm:$0xff]   ;;  %v1573_v4 = vld [vmem:[%s2112_s1 + $0x1e0] ss:$8 sps:$4 sm:$0xff]  }
  0x41   :  { %1047 = vmatprep.subr.bf16.mxu0 %v1494_v5  ;;  %v1576_v5 = vld [vmem:[%s2112_s1 + $0x3e0] ss:$8 sps:$4 sm:$0xff]  }
  0x42   :  { %957 = vmatmul.mubr.bf16.vlgmr.msra.gmra.mrb[0].mxu1 %v1220_v6  ;;  %v1581_v6 = vld [vmem:[%s2112_s1 + $0x1f4] ss:$8 sps:$4 sm:$0xff]  }
  0x43   :  { %1039 = vmatmul.mubr.bf16.vlgmr.msra.gmra.mrb[0].mxu0 %v1224_v7  ;;  %966 = vmatpush1.bf16.msra.mxu1 %v1487_v8  ;;  %v1584_v7 = vld [vmem:[%s2112_s1 + $0x3f4] ss:$8 sps:$4 sm:$0xff]   ;;  %v1579_v8 = vld [vmem:[%s2112_s1 + $0x1f0] ss:$8 sps:$4 sm:$0xff]  }
  0x44   :  { %1048 = vmatpush1.bf16.msra.mxu0 %v1492_v9  ;;  %967 = vmatprep.subr.bf16.mxu1 %v1497_v10  ;;  %v1582_v9 = vld [vmem:[%s2112_s1 + $0x3f0] ss:$8 sps:$4 sm:$0xff]   ;;  %v1591_v10 = vld [vmem:[%s2112_s1 + $0x404] ss:$8 sps:$4 sm:$0xff]  }
  0x45   :  { %1049 = vmatprep.subr.bf16.mxu0 %v1500_v11  ;;  %997 = vmatprep.mubr.bf16.mxu1 %v1223_v36  ;;  %v1222_v11 = vcombine.low %v1920_v32, %v1920_v32 }
  0x46   :  { %1079 = vmatprep.mubr.bf16.mxu0 %v1227_v37 }
  0x47   :  { %968 = vmatpush1.bf16.msra.mxu1 %v1495_v12  ;;  %v1226_v12 = vcombine.low %v1925_v33, %v1925_v33 }
  0x48   :  { %1050 = vmatpush1.bf16.msra.mxu0 %v1498_v13  ;;  %969 = vmatprep.subr.bf16.mxu1 %v1503_v14  ;;  %v1589_v13 = vld [vmem:[%s2112_s1 + $0x400] ss:$8 sps:$4 sm:$0xff]   ;;  %v1594_v14 = vld [vmem:[%s2112_s1 + $0x414] ss:$8 sps:$4 sm:$0xff]  }
  0x49   :  { %1051 = vmatprep.subr.bf16.mxu0 %v1506_v15  ;;  %v1592_v15 = vld [vmem:[%s2112_s1 + $0x410] ss:$8 sps:$4 sm:$0xff]  }
  0x4b   :  { %970 = vmatpush1.bf16.msra.mxu1 %v1501_v16  ;;  %v1614_v16 = vmov 0  }
  0x4c   :  { %1052 = vmatpush1.bf16.msra.mxu0 %v1504_v17  ;;  %971 = vmatprep.subr.bf16.mxu1 %v1509_v18  ;;  %v1597_v17 = vld [vmem:[%s2112_s1 + $0x424] ss:$8 sps:$4 sm:$0xff]   ;;  %v1595_v18 = vld [vmem:[%s2112_s1 + $0x420] ss:$8 sps:$4 sm:$0xff]  }
  0x4d   :  { %1053 = vmatprep.subr.bf16.mxu0 %v1512_v19  ;;  %v1600_v19 = vld [vmem:[%s2112_s1 + $0x434] ss:$8 sps:$4 sm:$0xff]  }
  0x4f   :  { %972 = vmatpush1.bf16.msra.mxu1 %v1507_v20  ;;  %v1598_v20 = vld [vmem:[%s2112_s1 + $0x430] ss:$8 sps:$4 sm:$0xff]  }
  0x50   :  { %1054 = vmatpush1.bf16.msra.mxu0 %v1510_v21  ;;  %973 = vmatprep.subr.bf16.mxu1 %v1515_v22  ;;  %v1603_v21 = vld [vmem:[%s2112_s1 + $0x444] ss:$8 sps:$4 sm:$0xff]   ;;  %v1601_v22 = vld [vmem:[%s2112_s1 + $0x440] ss:$8 sps:$4 sm:$0xff]  }
  0x51   :  { %1055 = vmatprep.subr.bf16.mxu0 %v1518_v23  ;;  %v1606_v23 = vld [vmem:[%s2112_s1 + $0x454] ss:$8 sps:$4 sm:$0xff]  }
  0x53   :  { %974 = vmatpush1.bf16.msra.mxu1 %v1513_v24  ;;  %v1604_v24 = vld [vmem:[%s2112_s1 + $0x450] ss:$8 sps:$4 sm:$0xff]  }
  0x54   :  { %1056 = vmatpush1.bf16.msra.mxu0 %v1516_v25  ;;  %975 = vmatprep.subr.bf16.mxu1 %v1521_v26  ;;  %v1609_v25 = vld [vmem:[%s2112_s1 + $0x464] ss:$8 sps:$4 sm:$0xff]   ;;  %v1607_v26 = vld [vmem:[%s2112_s1 + $0x460] ss:$8 sps:$4 sm:$0xff]  }
  0x55   :  { %1057 = vmatprep.subr.bf16.mxu0 %v1524_v27  ;;  %v1612_v27 = vld [vmem:[%s2112_s1 + $0x474] ss:$8 sps:$4 sm:$0xff]  }
  0x57   :  { %976 = vmatpush1.bf16.msra.mxu1 %v1519_v28  ;;  %v1610_v28 = vld [vmem:[%s2112_s1 + $0x470] ss:$8 sps:$4 sm:$0xff]  }
  0x58   :  { %1058 = vmatpush1.bf16.msra.mxu0 %v1522_v29  ;;  %977 = vmatprep.subr.bf16.mxu1 %v1527_v30  ;;  %v1613_v29 = vld [vmem:[%s2113_s0 + $0x20] ss:$0 sps:$4 sm:$0xff]  }
  0x59   :  { %1059 = vmatprep.subr.bf16.mxu0 %v1530_v31 }
  0x5b   :  { %978 = vmatpush1.bf16.msra.mxu1 %v1525_v34 }
  0x5c   :  { %1060 = vmatpush1.bf16.msra.mxu0 %v1528_v35  ;;  %979 = vmatprep.subr.bf16.mxu1 %v1533_v38 }
  0x5d   :  { %1061 = vmatprep.subr.bf16.mxu0 %v1536_v39 }
  0x5f   :  { %980 = vmatpush1.bf16.msra.mxu1 %v1531_v40 }
  0x60   :  { %1062 = vmatpush1.bf16.msra.mxu0 %v1534_v41  ;;  %981 = vmatprep.subr.bf16.mxu1 %v1539_v42 }
  0x61   :  { %1063 = vmatprep.subr.bf16.mxu0 %v1542_v43 }
  0x63   :  { %982 = vmatpush1.bf16.msra.mxu1 %v1537_v44 }
  0x64   :  { %1064 = vmatpush1.bf16.msra.mxu0 %v1540_v45  ;;  %983 = vmatprep.subr.bf16.mxu1 %v1545_v46 }
  0x65   :  { %1065 = vmatprep.subr.bf16.mxu0 %v1548_v47  ;;  %v1615_v47 = vmov 1966171168  }
  0x67   :  { %984 = vmatpush1.bf16.msra.mxu1 %v1543_v48  ;;  %v1156_v48 = vunpack.c.l.s4 %v1615_v47 }
  0x68   :  { %1066 = vmatpush1.bf16.msra.mxu0 %v1546_v49  ;;  %985 = vmatprep.subr.bf16.mxu1 %v1551_v50  ;;  %v1158_v49 = vlaneseq }
  0x69   :  { %1067 = vmatprep.subr.bf16.mxu0 %v1554_v51 }
  0x6a   :  { %vm1172_vm0 = vcmp.lt.s32.totalorder %v1158_v49, 256 }
  0x6b   :  { %986 = vmatpush1.bf16.msra.mxu1 %v1549_v52 }
  0x6c   :  { %1068 = vmatpush1.bf16.msra.mxu0 %v1552_v53  ;;  %987 = vmatprep.subr.bf16.mxu1 %v1557_v54 }
  0x6d   :  { %1069 = vmatprep.subr.bf16.mxu0 %v1560_v55 }
  0x6f   :  { %988 = vmatpush1.bf16.msra.mxu1 %v1555_v56 }
  0x70   :  { %1070 = vmatpush1.bf16.msra.mxu0 %v1558_v57  ;;  %989 = vmatprep.subr.bf16.mxu1 %v1563_v58  ;;  %v1157_v58 = vunpack.c.0.s8 %v1156_v48 }
  0x71   :  { %1071 = vmatprep.subr.bf16.mxu0 %v1566_v59  ;;  %v1159_v59 = vshrl.u32 %v1158_v49, 7 }
  0x73   :  { %990 = vmatpush1.bf16.msra.mxu1 %v1561_v60 }
  0x74   :  { %1072 = vmatpush1.bf16.msra.mxu0 %v1564_v61  ;;  %991 = vmatprep.subr.bf16.mxu1 %v1569_v62 }
  0x75   :  { %1073 = vmatprep.subr.bf16.mxu0 %v1572_v63 }
  0x77   :  { %992 = vmatpush1.bf16.msra.mxu1 %v1567_v0 }
  0x78   :  { %1074 = vmatpush1.bf16.msra.mxu0 %v1570_v1  ;;  %993 = vmatprep.subr.bf16.mxu1 %v1575_v2 }
  0x79   :  { %1075 = vmatprep.subr.bf16.mxu0 %v1578_v3 }
  0x7b   :  { %994 = vmatpush1.bf16.msra.mxu1 %v1573_v4  ;;  %v1160_v4 = vsub.s32 %v1157_v58, %v1159_v59 }
  0x7c   :  { %1076 = vmatpush1.bf16.msra.mxu0 %v1576_v5  ;;  %995 = vmatprep.subr.bf16.mxu1 %v1581_v6 }
  0x7d   :  { %1077 = vmatprep.subr.bf16.mxu0 %v1584_v7 }
  0x7f   :  { %996 = vmatpush1.bf16.msra.mxu1 %v1579_v8 }
  0x80   :  { %1078 = vmatpush1.bf16.msra.mxu0 %v1582_v9 }
  0x81   :  { %1088 = vmatprep.subr.bf16.mxu0 %v1591_v10 }
  0x82   :  { %998 = vmatmul.mubr.bf16.vlgmr.msra.gmra.mrb[0].mxu1 %v1222_v11 }
  0x83   :  { %1080 = vmatmul.mubr.bf16.vlgmr.msra.gmra.mrb[0].mxu0 %v1226_v12 }
  0x84   :  { %1089 = vmatpush1.bf16.msra.mxu0 %v1589_v13  ;;  %1120 = vmatprep.mubr.bf16.mxu0 %v1614_v16 }
  0x85   :  { %1090 = vmatprep.subr.bf16.mxu0 %v1594_v14 }
  0x88   :  { %1091 = vmatpush1.bf16.msra.mxu0 %v1592_v15 }
  0x89   :  { %1092 = vmatprep.subr.bf16.mxu0 %v1597_v17 }
  0x8c   :  { %1093 = vmatpush1.bf16.msra.mxu0 %v1595_v18 }
  0x8d   :  { %1094 = vmatprep.subr.bf16.mxu0 %v1600_v19 }
  0x90   :  { %1095 = vmatpush1.bf16.msra.mxu0 %v1598_v20 }
  0x91   :  { %1096 = vmatprep.subr.bf16.mxu0 %v1603_v21 }
  0x94   :  { %1097 = vmatpush1.bf16.msra.mxu0 %v1601_v22 }
  0x95   :  { %1098 = vmatprep.subr.bf16.mxu0 %v1606_v23 }
  0x98   :  { %1099 = vmatpush1.bf16.msra.mxu0 %v1604_v24 }
  0x99   :  { %1100 = vmatprep.subr.bf16.mxu0 %v1609_v25 }
  0x9c   :  { %1101 = vmatpush1.bf16.msra.mxu0 %v1607_v26 }
  0x9d   :  { %1102 = vmatprep.subr.bf16.mxu0 %v1612_v27 }
  0xa0   :  { %1103 = vmatpush1.bf16.msra.mxu0 %v1610_v28 }
  0xa3   :  { %1121 = vmatmul.mubr.bf16.vlgmr.msra.gmra.mrb[0].mxu0 %v1613_v29 }
 0x155   :  { %v999_v30 = vpop.f32.mrb[0].mxu1 }
 0x156   :  { %v1001_v31 = vpop.f32.mrb[1].mxu1 }
 0x157   :  { %v1003_v32 = vpop.f32.mrb[2].mxu1 }
 0x158   :  { %v1004_v33 = vpop.f32.mrb[3].mxu1 }
 0x176   :  { %v1122_v34 = vpop.f32.mrb[0].mxu0 }
 0x177   :  { %v1373_v35 = vadd.f32 %v1122_v34, %v999_v30  ;;  %v1124_v36 = vpop.f32.mrb[1].mxu0 }
 0x178   :  { %v1374_v37 = vadd.f32 %v1124_v36, %v1001_v31  ;;  %v1126_v38 = vpop.f32.mrb[2].mxu0 }
 0x179   :  { %1138 = vst [vmem:[%s2114_s2] sm:$0xff] %v1373_v35  ;;  %v1140_v39 = vrot.slane %v1373_v35, 4  ;;  %v1175_v40 = vmul.f32 %v1373_v35, %v1373_v35  ;;  %v1127_v41 = vpop.f32.mrb[3].mxu0 }
 0x17a   :  { %1139 = vst [vmem:[%s2114_s2 + $0x8] sm:$0xff] %v1374_v37  ;;  %v1146_v42 = vrot.slane %v1374_v37, 4  ;;  %v1176_v43 = vmul.f32 %v1374_v37, %v1374_v37 }
 0x17b   :  { %v1141_v44 = vadd.f32 %v1373_v35, %v1140_v39  ;;  %v1177_v45 = vrot.slane %v1175_v40, 4 }
 0x17c   :  { %v1147_v46 = vadd.f32 %v1374_v37, %v1146_v42  ;;  %v1183_v50 = vrot.slane %v1176_v43, 4 }
 0x17d   :  { %v1142_v51 = vrot.slane %v1141_v44, 2  ;;  %v1178_v52 = vadd.f32 %v1177_v45, %v1175_v40 }
 0x17e   :  { %v1148_v53 = vrot.slane %v1147_v46, 2  ;;  %v1184_v54 = vadd.f32 %v1183_v50, %v1176_v43 }
 0x17f   :  { %v1143_v55 = vadd.f32 %v1142_v51, %v1141_v44  ;;  %v1179_v56 = vrot.slane %v1178_v52, 2 }
 0x180   :  { %v1149_v57 = vadd.f32 %v1148_v53, %v1147_v46  ;;  %v1185_v60 = vrot.slane %v1184_v54, 2 }
 0x181   :  { %v1144_v61 = vrot.slane %v1143_v55, 1  ;;  %v1180_v62 = vadd.f32 %v1179_v56, %v1178_v52 }
 0x182   :  { %v1150_v63 = vrot.slane %v1149_v57, 1  ;;  %v1186_v0 = vadd.f32 %v1185_v60, %v1184_v54 }
 0x183   :  { %v1145_v1 = vadd.f32 %v1144_v61, %v1143_v55  ;;  %v1181_v2 = vrot.slane %v1180_v62, 1 }
 0x184   :  { %v1151_v3 = vadd.f32 %v1150_v63, %v1149_v57  ;;  %v1187_v5 = vrot.slane %v1186_v0, 1 }
 0x185   :  { %v1182_v6 = vadd.f32 %v1181_v2, %v1180_v62 }
 0x186   :  { %v1154_v7 = vcombine.low %v1145_v1, %v1151_v3  ;;  %v1188_v8 = vadd.f32 %v1187_v5, %v1186_v0 }
 0x188   :  { %v1161_v9 = vrot.slane %v1154_v7, %v1160_v4  ;;  %v1191_v10 = vcombine.low %v1182_v6, %v1188_v8 }
 0x18a   :  { %v1168_v11 = vrot.slane %v1161_v9, %v1160_v4  ;;  %v1198_v12 = vrot.slane %v1191_v10, %v1160_v4 }
 0x18c   :  { %1174 = vst.msk [vmem:[%s2115_s3] sm:$0x3] %vm1172_vm0, %v1168_v11  ;;  %v1205_v13 = vrot.slane %v1198_v12, %v1160_v4 }
 0x18e   :  { %1207 = vst.msk [vmem:[%s2116_s4] sm:$0x3] %vm1172_vm0, %v1205_v13 }

// kernel: classifier_net_forward.69
= control target key start
LH: loop header
LB: loop body
LE: loop exit
PB: predicated region body
PF: predicated region fallthrough
CT: control target
= control target key end

     0   :  { %v21_v0 = vlaneseq  ;;  %s108_s1 = inlined_call_operand.vmem [shape: f32[1,256], index: 1, kind: input, shape index: {}]   ;;  %s109_s2 = inlined_call_operand.vmem [shape: f32[1,256], index: 2, kind: input, shape index: {}]   ;;  %s110_s0 = inlined_call_operand.vmem [shape: f32[8,256], index: 0, kind: input, shape index: {}]   ;;  %s111_s3 = inlined_call_operand.vmem [shape: f32[8,256], index: 3, kind: input, shape index: {}]   ;;  %s112_s4 = inlined_call_operand.vmem [shape: f32[8,256], index: 4, kind: output, shape index: {}]  }
   0x1   :  { %v19_v2 = vld [vmem:[%s108_s1] sm:$0x3]  ;;  %v18_v7 = vld [vmem:[%s110_s0 + $0x8] sm:$0xff] }
   0x2   :  { %v22_v1 = vshrl.u32 %v21_v0, 7  ;;  %v33_v3 = vld [vmem:[%s109_s2] sm:$0x3]  ;;  %v48_v15 = vld [vmem:[%s111_s3 + $0x8] sm:$0xff] }
   0x3   :  { %v17_v6 = vld [vmem:[%s110_s0] sm:$0xff] }
   0x4   :  { %v23_v4 = vsub.s32 0, %v22_v1  ;;  %v27_v5 = vsub.s32 1, %v22_v1  ;;  %v47_v14 = vld [vmem:[%s111_s3] sm:$0xff] }
   0x6   :  { %v24_v8 = vrot.slane %v19_v2, %v23_v4  ;;  %v38_v9 = vrot.slane %v33_v3, %v23_v4  ;;  %v28_v10 = vrot.slane %v19_v2, %v27_v5  ;;  %v42_v11 = vrot.slane %v33_v3, %v27_v5 }
   0x8   :  { %v31_v12 = vmul.f32 %v24_v8, %v17_v6  ;;  %v32_v13 = vmul.f32 %v28_v10, %v18_v7 }
   0xa   :  { %v45_v16 = vadd.f32 %v38_v9, %v31_v12  ;;  %v46_v17 = vadd.f32 %v42_v11, %v32_v13 }
   0xc   :  { %v49_v18 = vadd.f32 %v47_v14, %v45_v16  ;;  %v50_v19 = vadd.f32 %v48_v15, %v46_v17 }
   0xe   :  { %v51_v20 = vmax.f32 %v49_v18, 0.0  ;;  %v52_v21 = vmax.f32 %v50_v19, 0.0 }
  0x10   :  { %53 = vst [vmem:[%s112_s4] sm:$0xff] %v51_v20  ;;  %54 = vst [vmem:[%s112_s4 + $0x8] sm:$0xff] %v52_v21 }

// kernel: classifier_net_forward.68
= control target key start
LH: loop header
LB: loop body
LE: loop exit
PB: predicated region body
PF: predicated region fallthrough
CT: control target
= control target key end

     0   :  { %s1025_s15 = smov 0   ;;  %s1027_s16 = smov 0   ;;  %s1113_s0 = inlined_call_operand.vmem [shape: bf16[8,2304], index: 0, kind: input, shape index: {}]   ;;  %s1114_s1 = inlined_call_operand.vmem [shape: bf16[2304,256], index: 1, kind: input, shape index: {}]   ;;  %s1115_s2 = inlined_call_operand.vmem [shape: f32[8,256], index: 2, kind: output, shape index: {0}]   ;;  %s1116_s3 = inlined_call_operand.vmem [shape: f32[1,1,256], index: 3, kind: output, shape index: {1}]   ;;  %s1117_s4 = inlined_call_operand.vmem [shape: f32[1,1,256], index: 4, kind: output, shape index: {2}]  }
   0x1   :  { %s1029_s17 = smov 0  }
   0x2 LB: > { %s27_s18 = sadd.s32 1, %s992_s16  ;;  %p847_p0 = scmp.ge.s32.totalorder %s996_s17, 1  ;;  %s996_s17 = sphi %s1029_s17, %s15_s17   ;;  %s992_s16 = sphi %s1027_s16, %s1119_s16   ;;  %s988_s15 = sphi %s1025_s15, %s1118_s15  }
   0x3   : > { %p28_p1 = scmp.ge.s32.totalorder %s27_s18, 9  ;;  %p218_p2 = scmp.lt.s32.totalorder %s996_s17, 10 }
   0x5   : > { %s1121_s18 = smov (%p28_p1, %s27_s18), 0  ;;  %p219_p3 = pnand %p847_p0, %p218_p2 }
   0x6   : > { %s848_s19 = sshll.u32 (!%p219_p3), %s988_s15, 1  ;;  %s850_s20 = sshll.u32 (!%p219_p3), %s988_s15, 5 }
   0x7   : > { %222 = sbr.rel (%p219_p3) target bundleno = 333 (0x14d), region = 28  ;;  %p281_p4 = scmp.lt.s32.totalorder (!%p219_p3), %s848_s19, 17 }
   0x8   : > { %p290_p5 = scmp.lt.s32.totalorder (!%p219_p3), %s850_s20, 287  ;;  %p853_p6 = scmp.ne.s32.totalorder (!%p219_p3), %s988_s15, 0 }
   0xe   : > { %s1123_s19 = smov (!%p281_p4, %s848_s19), 17  ;;  %s1125_s20 = smov (!%p290_p5, %s850_s20), 287 }
   0xf   : > { %s849_s21 = sshll.u32 %s1123_s19, 2  ;;  %s897_s25 = sshll.u32 %s1125_s20, 3  ;;  %v998_v0 = vmov (!%p853_p6), 0.0  }
  0x10   : > { %s1050_s24 = scalar_lea.vmem %s1113_s0, %s849_s21  ;;  %s1055_s28 = scalar_lea.vmem %s1114_s1, %s897_s25  ;;  %332 = vst [vmem:[#allocation2] sm:$0xff] (!%p853_p6), %v998_v0  ;;  %333 = vst [vmem:[#allocation2 + $0x8] sm:$0xff] (!%p853_p6), %v998_v0 }
  0x11   : > { %331 = sbr.rel (%p853_p6) target bundleno = 24 (0x18), region = 32 }
  0x18 PF: > { %v924_v1 = vld [vmem:[%s1055_s28 + $0x4] ss:$8 sps:$4 sm:$0xff]   ;;  %v926_v2 = vld [vmem:[%s1055_s28] ss:$8 sps:$4 sm:$0xff]   ;;  %v927_v3 = vld [vmem:[%s1055_s28 + $0x14] ss:$8 sps:$4 sm:$0xff]  }
  0x19   : > { %536 = vmatprep.subr.bf16.mxu0 %v924_v1  ;;  %v929_v4 = vld [vmem:[%s1055_s28 + $0x10] ss:$8 sps:$4 sm:$0xff]   ;;  %v930_v5 = vld [vmem:[%s1055_s28 + $0x24] ss:$8 sps:$4 sm:$0xff]   ;;  %v932_v6 = vld [vmem:[%s1055_s28 + $0x20] ss:$8 sps:$4 sm:$0xff]  }
  0x1a   : > { %537 = vmatpush1.bf16.msra.mxu0 %v926_v2  ;;  %v933_v7 = vld [vmem:[%s1055_s28 + $0x34] ss:$8 sps:$4 sm:$0xff]   ;;  %v935_v8 = vld [vmem:[%s1055_s28 + $0x30] ss:$8 sps:$4 sm:$0xff]   ;;  %v936_v9 = vld [vmem:[%s1055_s28 + $0x44] ss:$8 sps:$4 sm:$0xff]  }
  0x1b   : > { %538 = vmatprep.subr.bf16.mxu0 %v927_v3  ;;  %v938_v10 = vld [vmem:[%s1055_s28 + $0x40] ss:$8 sps:$4 sm:$0xff]   ;;  %v939_v11 = vld [vmem:[%s1055_s28 + $0x54] ss:$8 sps:$4 sm:$0xff]   ;;  %v941_v12 = vld [vmem:[%s1055_s28 + $0x50] ss:$8 sps:$4 sm:$0xff]  }
  0x1c   : > { %v942_v13 = vld [vmem:[%s1055_s28 + $0x64] ss:$8 sps:$4 sm:$0xff]   ;;  %v944_v16 = vld [vmem:[%s1055_s28 + $0x60] ss:$8 sps:$4 sm:$0xff]   ;;  %v945_v17 = vld [vmem:[%s1055_s28 + $0x74] ss:$8 sps:$4 sm:$0xff]  }
  0x1d   : > { %v336_v14 = vld [vmem:[%s1050_s24] sm:$0xff]  ;;  %v947_v18 = vld [vmem:[%s1055_s28 + $0x70] ss:$8 sps:$4 sm:$0xff]   ;;  %v951_v21 = vld [vmem:[%s1055_s28 + $0x94] ss:$8 sps:$4 sm:$0xff]   ;;  %p888_p7 = scmp.ne.s32.totalorder %s988_s15, 8 }
  0x1e   : > { %539 = vmatpush1.bf16.msra.mxu0 %v929_v4  ;;  %v855_v15 = vcombine.high %v336_v14, %v336_v14  ;;  %v948_v19 = vld [vmem:[%s1055_s28 + $0x84] ss:$8 sps:$4 sm:$0xff]   ;;  %v950_v20 = vld [vmem:[%s1055_s28 + $0x80] ss:$8 sps:$4 sm:$0xff]   ;;  %v953_v22 = vld [vmem:[%s1055_s28 + $0x90] ss:$8 sps:$4 sm:$0xff]   ;;  %v854_v35 = vcombine.low %v336_v14, %v336_v14  ;;  %v607_v52 = vlaneseq (!%p888_p7) }
  0x1f   : > { %540 = vmatprep.subr.bf16.mxu0 %v930_v5  ;;  %v954_v23 = vld [vmem:[%s1055_s28 + $0xa4] ss:$8 sps:$4 sm:$0xff]   ;;  %v956_v24 = vld [vmem:[%s1055_s28 + $0xa0] ss:$8 sps:$4 sm:$0xff]   ;;  %v957_v25 = vld [vmem:[%s1055_s28 + $0xb4] ss:$8 sps:$4 sm:$0xff]  }
  0x20   : > { %568 = vmatprep.mubr.bf16.mxu0 %v855_v15  ;;  %v959_v26 = vld [vmem:[%s1055_s28 + $0xb0] ss:$8 sps:$4 sm:$0xff]   ;;  %v960_v27 = vld [vmem:[%s1055_s28 + $0xc4] ss:$8 sps:$4 sm:$0xff]   ;;  %v962_v28 = vld [vmem:[%s1055_s28 + $0xc0] ss:$8 sps:$4 sm:$0xff]  }
  0x21   : > { %v963_v29 = vld [vmem:[%s1055_s28 + $0xd4] ss:$8 sps:$4 sm:$0xff]   ;;  %v965_v30 = vld [vmem:[%s1055_s28 + $0xd0] ss:$8 sps:$4 sm:$0xff]   ;;  %v966_v31 = vld [vmem:[%s1055_s28 + $0xe4] ss:$8 sps:$4 sm:$0xff]  }
  0x22   : > { %541 = vmatpush1.bf16.msra.mxu0 %v932_v6  ;;  %v968_v32 = vld [vmem:[%s1055_s28 + $0xe0] ss:$8 sps:$4 sm:$0xff]   ;;  %v969_v33 = vld [vmem:[%s1055_s28 + $0xf4] ss:$8 sps:$4 sm:$0xff]   ;;  %v971_v34 = vld [vmem:[%s1055_s28 + $0xf0] ss:$8 sps:$4 sm:$0xff]  }
  0x23   : > { %542 = vmatprep.subr.bf16.mxu0 %v933_v7  ;;  %v334_v36 = vld [vmem:[#allocation2] sm:$0xff]  ;;  %v335_v37 = vld [vmem:[#allocation2 + $0x8] sm:$0xff]  ;;  %v999_v50 = vmov (!%p888_p7), 1966171168   ;;  %v608_v62 = vshrl.u32 (!%p888_p7), %v607_v52, 7  ;;  %vm621_vm0 = vcmp.lt.s32.totalorder (!%p888_p7), %v607_v52, 256 }
  0x24   : > { %v605_v51 = vunpack.c.l.s4 (!%p888_p7), %v999_v50 }
  0x26   : > { %543 = vmatpush1.bf16.msra.mxu0 %v935_v8  ;;  %v606_v61 = vunpack.c.0.s8 (!%p888_p7), %v605_v51 }
  0x27   : > { %544 = vmatprep.subr.bf16.mxu0 %v936_v9 }
  0x28   : > { %v609_v7 = vsub.s32 (!%p888_p7), %v606_v61, %v608_v62 }
  0x2a   : > { %545 = vmatpush1.bf16.msra.mxu0 %v938_v10 }
  0x2b   : > { %546 = vmatprep.subr.bf16.mxu0 %v939_v11 }
  0x2e   : > { %547 = vmatpush1.bf16.msra.mxu0 %v941_v12 }
  0x2f   : > { %548 = vmatprep.subr.bf16.mxu0 %v942_v13 }
  0x32   : > { %549 = vmatpush1.bf16.msra.mxu0 %v944_v16 }
  0x33   : > { %550 = vmatprep.subr.bf16.mxu0 %v945_v17 }
  0x36   : > { %551 = vmatpush1.bf16.msra.mxu0 %v947_v18 }
  0x37   : > { %552 = vmatprep.subr.bf16.mxu0 %v948_v19 }
  0x3a   : > { %553 = vmatpush1.bf16.msra.mxu0 %v950_v20 }
  0x3b   : > { %554 = vmatprep.subr.bf16.mxu0 %v951_v21 }
  0x3e   : > { %555 = vmatpush1.bf16.msra.mxu0 %v953_v22 }
  0x3f   : > { %556 = vmatprep.subr.bf16.mxu0 %v954_v23 }
  0x42   : > { %557 = vmatpush1.bf16.msra.mxu0 %v956_v24 }
  0x43   : > { %558 = vmatprep.subr.bf16.mxu0 %v957_v25 }
  0x46   : > { %559 = vmatpush1.bf16.msra.mxu0 %v959_v26 }
  0x47   : > { %560 = vmatprep.subr.bf16.mxu0 %v960_v27 }
  0x4a   : > { %561 = vmatpush1.bf16.msra.mxu0 %v962_v28 }
  0x4b   : > { %562 = vmatprep.subr.bf16.mxu0 %v963_v29 }
  0x4e   : > { %563 = vmatpush1.bf16.msra.mxu0 %v965_v30 }
  0x4f   : > { %564 = vmatprep.subr.bf16.mxu0 %v966_v31 }
  0x52   : > { %565 = vmatpush1.bf16.msra.mxu0 %v968_v32 }
  0x53   : > { %566 = vmatprep.subr.bf16.mxu0 %v969_v33 }
  0x56   : > { %567 = vmatpush1.bf16.msra.mxu0 %v971_v34 }
  0x59   : > { %569 = vmatmul.mubr.bf16.vlgmr.msra.gmra.mrb[0].mxu0 %v854_v35 }
 0x12a   : > { %584 = sbr.rel (%p888_p7) target bundleno = 333 (0x14d), region = 36 }
 0x12c   : > { %v570_v38 = vpop.f32.mrb[0].mxu0 }
 0x12d   : > { %v577_v39 = vadd.f32 %v570_v38, %v334_v36  ;;  %v572_v40 = vpop.f32.mrb[1].mxu0 }
 0x12e   : > { %v578_v41 = vadd.f32 %v572_v40, %v335_v37  ;;  %v574_v42 = vpop.f32.mrb[2].mxu0 }
 0x12f   : > { %579 = vst [vmem:[#allocation2] sm:$0xff] %v577_v39  ;;  %v575_v43 = vpop.f32.mrb[3].mxu0 }
 0x130   : > { %580 = vst [vmem:[#allocation2 + $0x8] sm:$0xff] %v578_v41 }
 0x136   : > { %v585_v44 = vld [vmem:[#allocation2] sm:$0xff] }
 0x137   : > { %v586_v45 = vld [vmem:[#allocation2 + $0x8] sm:$0xff]  ;;  %587 = vst [vmem:[%s1115_s2] sm:$0xff] %v585_v44  ;;  %v589_v46 = vrot.slane %v585_v44, 4  ;;  %v624_v47 = vmul.f32 %v585_v44, %v585_v44 }
 0x138   : > { %588 = vst [vmem:[%s1115_s2 + $0x8] sm:$0xff] %v586_v45  ;;  %v595_v48 = vrot.slane %v586_v45, 4  ;;  %v625_v49 = vmul.f32 %v586_v45, %v586_v45 }
 0x139   : > { %v590_v53 = vadd.f32 %v589_v46, %v585_v44  ;;  %v626_v54 = vrot.slane %v624_v47, 4 }
 0x13a   : > { %v596_v55 = vadd.f32 %v595_v48, %v586_v45  ;;  %v632_v56 = vrot.slane %v625_v49, 4 }
 0x13b   : > { %v591_v57 = vrot.slane %v590_v53, 2  ;;  %v627_v58 = vadd.f32 %v626_v54, %v624_v47 }
 0x13c   : > { %v597_v59 = vrot.slane %v596_v55, 2  ;;  %v633_v60 = vadd.f32 %v632_v56, %v625_v49 }
 0x13d   : > { %v592_v63 = vadd.f32 %v591_v57, %v590_v53  ;;  %v628_v1 = vrot.slane %v627_v58, 2 }
 0x13e   : > { %v598_v0 = vadd.f32 %v597_v59, %v596_v55  ;;  %v634_v2 = vrot.slane %v633_v60, 2 }
 0x13f   : > { %v593_v3 = vrot.slane %v592_v63, 1  ;;  %v629_v5 = vadd.f32 %v628_v1, %v627_v58 }
 0x140   : > { %v599_v4 = vrot.slane %v598_v0, 1  ;;  %v635_v6 = vadd.f32 %v634_v2, %v633_v60 }
 0x141   : > { %v594_v8 = vadd.f32 %v593_v3, %v592_v63  ;;  %v630_v10 = vrot.slane %v629_v5, 1 }
 0x142   : > { %v600_v9 = vadd.f32 %v599_v4, %v598_v0  ;;  %v636_v11 = vrot.slane %v635_v6, 1 }
 0x143   : > { %v631_v13 = vadd.f32 %v630_v10, %v629_v5 }
 0x144   : > { %v603_v12 = vcombine.low %v594_v8, %v600_v9  ;;  %v637_v14 = vadd.f32 %v636_v11, %v635_v6 }
 0x146   : > { %v610_v15 = vrot.slane %v603_v12, %v609_v7  ;;  %v640_v16 = vcombine.low %v631_v13, %v637_v14 }
 0x148   : > { %v617_v17 = vrot.slane %v610_v15, %v609_v7  ;;  %v647_v18 = vrot.slane %v640_v16, %v609_v7 }
 0x14a   : > { %623 = vst.msk [vmem:[%s1116_s3] sm:$0x3] %vm621_vm0, %v617_v17  ;;  %v654_v19 = vrot.slane %v647_v18, %v609_v7 }
 0x14c   : > { %656 = vst.msk [vmem:[%s1117_s4] sm:$0x3] %vm621_vm0, %v654_v19 }
 0x14d PF: > { %s15_s17 = sadd.s32 1, %s996_s17   ;;  %s1118_s15 = smov %s992_s16 }
 0x14e   : > { %p12_p8 = scmp.ge.s32.totalorder %s15_s17, 11   ;;  %s1119_s16 = smov %s1121_s18 }
 0x150   :  { %14 = sbr.rel (!%p12_p8) target bundleno = 2 (0x2), region = 93 }

// kernel: classifier_net_forward.74
= control target key start
LH: loop header
LB: loop body
LE: loop exit
PB: predicated region body
PF: predicated region fallthrough
CT: control target
= control target key end

     0   :  { %s1255_s15 = smov 0   ;;  %s1257_s16 = smov 0   ;;  %s1455_s0 = inlined_call_operand.vmem [shape: bf16[2,256], index: 0, kind: input, shape index: {}]   ;;  %s1456_s1 = inlined_call_operand.vmem [shape: bf16[256,512], index: 1, kind: input, shape index: {}]   ;;  %s1457_s2 = inlined_call_operand.vmem [shape: f32[2,512], index: 2, kind: output, shape index: {0}]   ;;  %s1458_s3 = inlined_call_operand.vmem [shape: f32[1,1,512], index: 3, kind: output, shape index: {1}]   ;;  %s1459_s4 = inlined_call_operand.vmem [shape: f32[1,1,512], index: 4, kind: output, shape index: {2}]  }
   0x1   :  { %s1259_s17 = smov 0   ;;  %s1261_s18 = smov 0  }
   0x2   :  { %s1263_s19 = smov 0  }
   0x3 LB: > { %s30_s20 = sadd.s32 1, %s1221_s18  ;;  %p78_p1 = scmp.ne.s32.totalorder %s1213_s16, %s1209_s15  ;;  %s1225_s19 = sphi %s1263_s19, %s15_s19   ;;  %s1221_s18 = sphi %s1261_s18, %s1463_s18   ;;  %s1217_s17 = sphi %s1259_s17, %s1462_s17   ;;  %s1213_s16 = sphi %s1257_s16, %s1461_s16   ;;  %s1209_s15 = sphi %s1255_s15, %s1460_s15  }
   0x4   : > { %p32_p0 = scmp.ge.s32.totalorder %s30_s20, 2  ;;  %p79_p2 = scmp.eq.s32.totalorder %s1225_s19, 0 }
   0x5   : > { %s71_s22 = sadd.s32 1, %s1213_s16  ;;  %p1050_p5 = scmp.ge.s32.totalorder %s1225_s19, 2 }
   0x6   : > { %s1465_s20 = smov (%p32_p0, %s30_s20), 0  ;;  %p80_p3 = por %p79_p2, %p78_p1 }
   0x7   : > { %s67_s21 = ssub.s32 %s1221_s18, %s1465_s20  ;;  %200 = sbr.rel (%p1050_p5) target bundleno = 34 (0x22), region = 20 }
   0x8   : > { %p69_p4 = scmp.eq.s32.totalorder %s67_s21, 0 }
   0xa   : > { %s1290_s23 = scalar_select %p69_p4, %s1213_s16, %s71_s22  }
   0xe   : > { %203 = sbr.rel (!%p80_p3) target bundleno = 34 (0x22), region = 24  ;;  %s205_s24 = sand.u32 (%p80_p3), 1, %s1213_s16  }
   0xf   : > { %s1095_s25 = sshll.u32 (%p80_p3), %s1221_s18, 3  ;;  %s1051_s26 = sshll.u32 (%p80_p3), %s205_s24, 8 }
  0x10   : > { %s1298_s29 = scalar_lea.vmem (%p80_p3), %s1456_s1, %s1095_s25  ;;  %s1303_s30 = scalar_lea.vmem (%p80_p3), [#allocation3], %s1051_s26 }
  0x11   : > { %v303_v0 = vld [vmem:[%s1298_s29] sm:$0xff] (%p80_p3)  ;;  %v305_v1 = vld [vmem:[%s1298_s29 + $0x10] sm:$0xff] (%p80_p3) }
  0x12   : > { %v307_v2 = vld [vmem:[%s1298_s29 + $0x20] sm:$0xff] (%p80_p3)  ;;  %304 = vst [vmem:[%s1303_s30] sm:$0xff] (%p80_p3), %v303_v0  ;;  %306 = vst [vmem:[%s1303_s30 + $0x8] sm:$0xff] (%p80_p3), %v305_v1  ;;  %v309_v3 = vld [vmem:[%s1298_s29 + $0x30] sm:$0xff] (%p80_p3) }
  0x13   : > { %308 = vst [vmem:[%s1303_s30 + $0x10] sm:$0xff] (%p80_p3), %v307_v2  ;;  %v311_v4 = vld [vmem:[%s1298_s29 + $0x40] sm:$0xff] (%p80_p3)  ;;  %v313_v5 = vld [vmem:[%s1298_s29 + $0x50] sm:$0xff] (%p80_p3)  ;;  %310 = vst [vmem:[%s1303_s30 + $0x18] sm:$0xff] (%p80_p3), %v309_v3 }
  0x14   : > { %312 = vst [vmem:[%s1303_s30 + $0x20] sm:$0xff] (%p80_p3), %v311_v4  ;;  %314 = vst [vmem:[%s1303_s30 + $0x28] sm:$0xff] (%p80_p3), %v313_v5  ;;  %v315_v6 = vld [vmem:[%s1298_s29 + $0x60] sm:$0xff] (%p80_p3)  ;;  %v317_v7 = vld [vmem:[%s1298_s29 + $0x70] sm:$0xff] (%p80_p3) }
  0x15   : > { %v319_v8 = vld [vmem:[%s1298_s29 + $0x80] sm:$0xff]  ;;  %316 = vst [vmem:[%s1303_s30 + $0x30] sm:$0xff] %v315_v6  ;;  %318 = vst [vmem:[%s1303_s30 + $0x38] sm:$0xff] %v317_v7  ;;  %v321_v9 = vld [vmem:[%s1298_s29 + $0x90] sm:$0xff] }
  0x16   : > { %320 = vst [vmem:[%s1303_s30 + $0x40] sm:$0xff] %v319_v8  ;;  %v323_v10 = vld [vmem:[%s1298_s29 + $0xa0] sm:$0xff]  ;;  %v325_v11 = vld [vmem:[%s1298_s29 + $0xb0] sm:$0xff]  ;;  %322 = vst [vmem:[%s1303_s30 + $0x48] sm:$0xff] %v321_v9 }
  0x17   : > { %324 = vst [vmem:[%s1303_s30 + $0x50] sm:$0xff] %v323_v10  ;;  %326 = vst [vmem:[%s1303_s30 + $0x58] sm:$0xff] %v325_v11  ;;  %v327_v12 = vld [vmem:[%s1298_s29 + $0xc0] sm:$0xff]  ;;  %v329_v13 = vld [vmem:[%s1298_s29 + $0xd0] sm:$0xff] }
  0x18   : > { %v331_v14 = vld [vmem:[%s1298_s29 + $0xe0] sm:$0xff]  ;;  %328 = vst [vmem:[%s1303_s30 + $0x60] sm:$0xff] %v327_v12  ;;  %330 = vst [vmem:[%s1303_s30 + $0x68] sm:$0xff] %v329_v13  ;;  %v333_v15 = vld [vmem:[%s1298_s29 + $0xf0] sm:$0xff] }
  0x19   : > { %332 = vst [vmem:[%s1303_s30 + $0x70] sm:$0xff] %v331_v14  ;;  %v335_v16 = vld [vmem:[%s1298_s29 + $0x100] sm:$0xff]  ;;  %v337_v17 = vld [vmem:[%s1298_s29 + $0x110] sm:$0xff]  ;;  %334 = vst [vmem:[%s1303_s30 + $0x78] sm:$0xff] %v333_v15 }
  0x1a   : > { %336 = vst [vmem:[%s1303_s30 + $0x80] sm:$0xff] %v335_v16  ;;  %338 = vst [vmem:[%s1303_s30 + $0x88] sm:$0xff] %v337_v17  ;;  %v339_v18 = vld [vmem:[%s1298_s29 + $0x120] sm:$0xff]  ;;  %v341_v19 = vld [vmem:[%s1298_s29 + $0x130] sm:$0xff] }
  0x1b   : > { %v343_v20 = vld [vmem:[%s1298_s29 + $0x140] sm:$0xff]  ;;  %340 = vst [vmem:[%s1303_s30 + $0x90] sm:$0xff] %v339_v18  ;;  %342 = vst [vmem:[%s1303_s30 + $0x98] sm:$0xff] %v341_v19  ;;  %v345_v21 = vld [vmem:[%s1298_s29 + $0x150] sm:$0xff] }
  0x1c   : > { %344 = vst [vmem:[%s1303_s30 + $0xa0] sm:$0xff] %v343_v20  ;;  %v347_v22 = vld [vmem:[%s1298_s29 + $0x160] sm:$0xff]  ;;  %v349_v23 = vld [vmem:[%s1298_s29 + $0x170] sm:$0xff]  ;;  %346 = vst [vmem:[%s1303_s30 + $0xa8] sm:$0xff] %v345_v21 }
  0x1d   : > { %348 = vst [vmem:[%s1303_s30 + $0xb0] sm:$0xff] %v347_v22  ;;  %350 = vst [vmem:[%s1303_s30 + $0xb8] sm:$0xff] %v349_v23  ;;  %v351_v24 = vld [vmem:[%s1298_s29 + $0x180] sm:$0xff]  ;;  %v353_v25 = vld [vmem:[%s1298_s29 + $0x190] sm:$0xff] }
  0x1e   : > { %v355_v26 = vld [vmem:[%s1298_s29 + $0x1a0] sm:$0xff]  ;;  %352 = vst [vmem:[%s1303_s30 + $0xc0] sm:$0xff] %v351_v24  ;;  %354 = vst [vmem:[%s1303_s30 + $0xc8] sm:$0xff] %v353_v25  ;;  %v357_v27 = vld [vmem:[%s1298_s29 + $0x1b0] sm:$0xff] }
  0x1f   : > { %356 = vst [vmem:[%s1303_s30 + $0xd0] sm:$0xff] %v355_v26  ;;  %v359_v28 = vld [vmem:[%s1298_s29 + $0x1c0] sm:$0xff]  ;;  %v361_v29 = vld [vmem:[%s1298_s29 + $0x1d0] sm:$0xff]  ;;  %358 = vst [vmem:[%s1303_s30 + $0xd8] sm:$0xff] %v357_v27 }
  0x20   : > { %360 = vst [vmem:[%s1303_s30 + $0xe0] sm:$0xff] %v359_v28  ;;  %362 = vst [vmem:[%s1303_s30 + $0xe8] sm:$0xff] %v361_v29  ;;  %v363_v30 = vld [vmem:[%s1298_s29 + $0x1e0] sm:$0xff]  ;;  %v365_v31 = vld [vmem:[%s1298_s29 + $0x1f0] sm:$0xff] }
  0x21   : > { %364 = vst [vmem:[%s1303_s30 + $0xf0] sm:$0xff] %v363_v30  ;;  %366 = vst [vmem:[%s1303_s30 + $0xf8] sm:$0xff] %v365_v31 }
  0x22 PF: > { %p1054_p6 = scmp.ge.s32.totalorder %s1225_s19, 1  ;;  %p371_p7 = scmp.lt.s32.totalorder %s1225_s19, 3 }
  0x24   : > { %p372_p8 = pnand %p1054_p6, %p371_p7 }
  0x25   : > { %s378_s5 = sand.u32 (!%p372_p8), 1, %s1209_s15   ;;  %v1372_v32 = vld.sshfl [vmem:[%s1455_s0] sm:$0x11 pattern:$0x75316420] (!%p372_p8)  ;;  %v521_v33 = vlaneseq (!%p372_p8)  ;;  %v1228_v10 = vmov (!%p372_p8), 0.0  }
  0x26   : > { %375 = sbr.rel (%p372_p8) target bundleno = 358 (0x166), region = 62  ;;  %s1055_s8 = sshll.u32 (!%p372_p8), %s378_s5, 8  ;;  %v1227_v34 = vmov (!%p372_p8), 1966171168   ;;  %v517_v39 = vcombine.high (!%p372_p8), %v1372_v32, %v1372_v32  ;;  %474 = vst [vmem:[#allocation2] sm:$0xf] (!%p372_p8), %v1228_v10 }
  0x27   : > { %v519_v35 = vunpack.c.l.s4 (!%p372_p8), %v1227_v34  ;;  %v1375_v36 = vshrl.u32 (!%p372_p8), %v521_v33, 7  ;;  %s1377_s9 = scalar_lea.vmem (!%p372_p8), [#allocation3], %s1055_s8  ;;  %v1229_v11 = vmov (!%p372_p8), 1983009808   ;;  %s1056_s10 = sshll.u32 (!%p372_p8), %s1217_s17, 1  ;;  %vm764_vm0 = vcmask (!%p372_p8), 1041408  }
  0x28   : > { %v1139_v37 = vld [vmem:[%s1377_s9 + $0x4] ss:$8 sps:$4 sm:$0xff] (!%p372_p8)   ;;  %v1141_v38 = vld [vmem:[%s1377_s9] ss:$8 sps:$4 sm:$0xff] (!%p372_p8)   ;;  %v1142_v41 = vld [vmem:[%s1377_s9 + $0x14] ss:$8 sps:$4 sm:$0xff] (!%p372_p8)   ;;  %v739_v12 = vunpack.c.l.s4 (!%p372_p8), %v1229_v11 }
  0x29   : > { %v520_v40 = vunpack.c.0.s8 (!%p372_p8), %v519_v35  ;;  %694 = vmatprep.subr.bf16.mxu0 (!%p372_p8), %v1139_v37  ;;  %v1144_v42 = vld [vmem:[%s1377_s9 + $0x10] ss:$8 sps:$4 sm:$0xff] (!%p372_p8)   ;;  %v1145_v44 = vld [vmem:[%s1377_s9 + $0x24] ss:$8 sps:$4 sm:$0xff] (!%p372_p8)   ;;  %v1147_v46 = vld [vmem:[%s1377_s9 + $0x20] ss:$8 sps:$4 sm:$0xff] (!%p372_p8)  }
  0x2a   : > { %695 = vmatpush1.bf16.msra.mxu0 (!%p372_p8), %v1141_v38  ;;  %v1148_v47 = vld [vmem:[%s1377_s9 + $0x34] ss:$8 sps:$4 sm:$0xff] (!%p372_p8)   ;;  %v1150_v48 = vld [vmem:[%s1377_s9 + $0x30] ss:$8 sps:$4 sm:$0xff] (!%p372_p8)   ;;  %v1151_v49 = vld [vmem:[%s1377_s9 + $0x44] ss:$8 sps:$4 sm:$0xff] (!%p372_p8)   ;;  %v740_v13 = vunpack.c.0.s8 (!%p372_p8), %v739_v12 }
  0x2b   : > { %v1386_v43 = vsub.s32 (!%p372_p8), %v520_v40, %v1375_v36  ;;  %696 = vmatprep.subr.bf16.mxu0 (!%p372_p8), %v1142_v41  ;;  %v1153_v50 = vld [vmem:[%s1377_s9 + $0x40] ss:$8 sps:$4 sm:$0xff] (!%p372_p8)   ;;  %v1154_v51 = vld [vmem:[%s1377_s9 + $0x54] ss:$8 sps:$4 sm:$0xff] (!%p372_p8)   ;;  %v1156_v52 = vld [vmem:[%s1377_s9 + $0x50] ss:$8 sps:$4 sm:$0xff] (!%p372_p8)  }
  0x2c   : > { %v1157_v53 = vld [vmem:[%s1377_s9 + $0x64] ss:$8 sps:$4 sm:$0xff] (!%p372_p8)   ;;  %v1159_v54 = vld [vmem:[%s1377_s9 + $0x60] ss:$8 sps:$4 sm:$0xff] (!%p372_p8)   ;;  %v1160_v55 = vld [vmem:[%s1377_s9 + $0x74] ss:$8 sps:$4 sm:$0xff] (!%p372_p8)   ;;  %v743_v15 = vsub.s32 (!%p372_p8), %v740_v13, %v1375_v36 }
  0x2d   : > { %v531_v45 = vrot.slane %v517_v39, %v1386_v43  ;;  %v1162_v56 = vld [vmem:[%s1377_s9 + $0x70] ss:$8 sps:$4 sm:$0xff]   ;;  %v1163_v57 = vld [vmem:[%s1377_s9 + $0x84] ss:$8 sps:$4 sm:$0xff]   ;;  %v1165_v58 = vld [vmem:[%s1377_s9 + $0x80] ss:$8 sps:$4 sm:$0xff]   ;;  %v524_v9 = vrot.slane %v1372_v32, %v1386_v43 }
  0x2e   : > { %697 = vmatpush1.bf16.msra.mxu0 %v1144_v42  ;;  %v1166_v59 = vld [vmem:[%s1377_s9 + $0x94] ss:$8 sps:$4 sm:$0xff]   ;;  %v1168_v60 = vld [vmem:[%s1377_s9 + $0x90] ss:$8 sps:$4 sm:$0xff]   ;;  %v1169_v61 = vld [vmem:[%s1377_s9 + $0xa4] ss:$8 sps:$4 sm:$0xff]  }
  0x2f   : > { %726 = vmatprep.mubr.bf16.mxu0 %v531_v45  ;;  %698 = vmatprep.subr.bf16.mxu0 %v1145_v44  ;;  %v1171_v62 = vld [vmem:[%s1377_s9 + $0xa0] ss:$8 sps:$4 sm:$0xff]   ;;  %v1172_v63 = vld [vmem:[%s1377_s9 + $0xb4] ss:$8 sps:$4 sm:$0xff]   ;;  %v1174_v0 = vld [vmem:[%s1377_s9 + $0xb0] ss:$8 sps:$4 sm:$0xff]  }
  0x30   : > { %v1175_v1 = vld [vmem:[%s1377_s9 + $0xc4] ss:$8 sps:$4 sm:$0xff]   ;;  %v1177_v2 = vld [vmem:[%s1377_s9 + $0xc0] ss:$8 sps:$4 sm:$0xff]   ;;  %v1178_v3 = vld [vmem:[%s1377_s9 + $0xd4] ss:$8 sps:$4 sm:$0xff]  }
  0x31   : > { %v1180_v4 = vld [vmem:[%s1377_s9 + $0xd0] ss:$8 sps:$4 sm:$0xff]   ;;  %v1181_v5 = vld [vmem:[%s1377_s9 + $0xe4] ss:$8 sps:$4 sm:$0xff]   ;;  %v1183_v6 = vld [vmem:[%s1377_s9 + $0xe0] ss:$8 sps:$4 sm:$0xff]  }
  0x32   : > { %699 = vmatpush1.bf16.msra.mxu0 %v1147_v46  ;;  %v1184_v7 = vld [vmem:[%s1377_s9 + $0xf4] ss:$8 sps:$4 sm:$0xff]   ;;  %v1186_v8 = vld [vmem:[%s1377_s9 + $0xf0] ss:$8 sps:$4 sm:$0xff]   ;;  %p445_p9 = scmp.lt.s32.totalorder %s1056_s10, 3  ;;  %vm799_vm1 = vcmp.lt.s32.totalorder %v521_v33, 256 }
  0x33   : > { %700 = vmatprep.subr.bf16.mxu0 %v1148_v47  ;;  %v475_v19 = vld [vmem:[#allocation2] sm:$0xf] }
  0x34   : > { %s1467_s10 = smov (!%p445_p9, %s1056_s10), 3 }
  0x35   : > { %s1057_s11 = sshll.u32 %s1467_s10, 1  ;;  %s459_s21 = scalar_lea.vmem %s1458_s3, %s1467_s10 }
  0x36   : > { %701 = vmatpush1.bf16.msra.mxu0 %v1150_v48  ;;  %s450_s14 = scalar_lea.vmem %s1457_s2, %s1057_s11  ;;  %s468_s25 = scalar_lea.vmem %s1459_s4, %s1467_s10 }
  0x37   : > { %702 = vmatprep.subr.bf16.mxu0 %v1151_v49 }
  0x3a   : > { %703 = vmatpush1.bf16.msra.mxu0 %v1153_v50 }
  0x3b   : > { %704 = vmatprep.subr.bf16.mxu0 %v1154_v51 }
  0x3e   : > { %705 = vmatpush1.bf16.msra.mxu0 %v1156_v52 }
  0x3f   : > { %706 = vmatprep.subr.bf16.mxu0 %v1157_v53 }
  0x42   : > { %707 = vmatpush1.bf16.msra.mxu0 %v1159_v54 }
  0x43   : > { %708 = vmatprep.subr.bf16.mxu0 %v1160_v55 }
  0x46   : > { %709 = vmatpush1.bf16.msra.mxu0 %v1162_v56 }
  0x47   : > { %710 = vmatprep.subr.bf16.mxu0 %v1163_v57 }
  0x4a   : > { %711 = vmatpush1.bf16.msra.mxu0 %v1165_v58 }
  0x4b   : > { %712 = vmatprep.subr.bf16.mxu0 %v1166_v59 }
  0x4e   : > { %713 = vmatpush1.bf16.msra.mxu0 %v1168_v60 }
  0x4f   : > { %714 = vmatprep.subr.bf16.mxu0 %v1169_v61 }
  0x52   : > { %715 = vmatpush1.bf16.msra.mxu0 %v1171_v62 }
  0x53   : > { %716 = vmatprep.subr.bf16.mxu0 %v1172_v63 }
  0x56   : > { %717 = vmatpush1.bf16.msra.mxu0 %v1174_v0 }
  0x57   : > { %718 = vmatprep.subr.bf16.mxu0 %v1175_v1 }
  0x5a   : > { %719 = vmatpush1.bf16.msra.mxu0 %v1177_v2 }
  0x5b   : > { %720 = vmatprep.subr.bf16.mxu0 %v1178_v3 }
  0x5e   : > { %721 = vmatpush1.bf16.msra.mxu0 %v1180_v4 }
  0x5f   : > { %722 = vmatprep.subr.bf16.mxu0 %v1181_v5 }
  0x62   : > { %723 = vmatpush1.bf16.msra.mxu0 %v1183_v6 }
  0x63   : > { %724 = vmatprep.subr.bf16.mxu0 %v1184_v7 }
  0x66   : > { %725 = vmatpush1.bf16.msra.mxu0 %v1186_v8 }
  0x69   : > { %727 = vmatmul.mubr.bf16.vlgmr.msra.gmra.mrb[0].mxu0 %v524_v9 }
 0x13c   : > { %v728_v14 = vpop.f32.mrb[0].mxu0 }
 0x13d   : > { %v730_v16 = vpop.f32.mrb[1].mxu0 }
 0x13e   : > { %v737_v17 = vcombine.low %v728_v14, %v730_v16  ;;  %v732_v18 = vpop.f32.mrb[2].mxu0 }
 0x13f   : > { %v733_v20 = vpop.f32.mrb[3].mxu0 }
 0x140   : > { %v744_v21 = vrot.slane %v737_v17, %v743_v15 }
 0x142   : > { %v746_v22 = vadd.f32 %v744_v21, %v475_v19 }
 0x144   : > { %747 = vst [vmem:[#allocation2] sm:$0xf] %v746_v22 }
 0x14b   : > { %v751_v23 = vld [vmem:[#allocation2] sm:$0xf] }
 0x14c   : > { %752 = vst [vmem:[%s450_s14] sm:$0xf] %v751_v23  ;;  %v760_v24 = vrot.slane %v751_v23, %v743_v15  ;;  %v802_v25 = vmul.f32 %v751_v23, %v751_v23 }
 0x14e   : > { %v761_v26 = vcombine.high %v760_v24, %v760_v24  ;;  %v765_v27 = vsel %vm764_vm0, %v760_v24, 0.0  ;;  %v810_v28 = vrot.slane %v802_v25, %v743_v15 }
 0x14f   : > { %v766_v29 = vrot.slane %v765_v27, 4 }
 0x150   : > { %v772_v30 = vsel %vm764_vm0, %v761_v26, 0.0  ;;  %v811_v31 = vcombine.high %v810_v28, %v810_v28  ;;  %v814_v32 = vsel %vm764_vm0, %v810_v28, 0.0 }
 0x151   : > { %v767_v34 = vadd.f32 %v766_v29, %v765_v27  ;;  %v773_v35 = vrot.slane %v772_v30, 4  ;;  %v815_v36 = vrot.slane %v814_v32, 4 }
 0x152   : > { %v821_v37 = vsel %vm764_vm0, %v811_v31, 0.0 }
 0x153   : > { %v768_v38 = vrot.slane %v767_v34, 2  ;;  %v774_v39 = vadd.f32 %v773_v35, %v772_v30  ;;  %v816_v40 = vadd.f32 %v815_v36, %v814_v32  ;;  %v822_v41 = vrot.slane %v821_v37, 4 }
 0x155   : > { %v769_v42 = vadd.f32 %v768_v38, %v767_v34  ;;  %v775_v44 = vrot.slane %v774_v39, 2  ;;  %v817_v45 = vrot.slane %v816_v40, 2  ;;  %v823_v46 = vadd.f32 %v822_v41, %v821_v37 }
 0x157   : > { %v770_v47 = vrot.slane %v769_v42, 1  ;;  %v776_v48 = vadd.f32 %v775_v44, %v774_v39  ;;  %v818_v49 = vadd.f32 %v817_v45, %v816_v40  ;;  %v824_v50 = vrot.slane %v823_v46, 2 }
 0x159   : > { %v777_v51 = vrot.slane %v776_v48, 1  ;;  %v819_v52 = vrot.slane %v818_v49, 1  ;;  %v825_v53 = vadd.f32 %v824_v50, %v823_v46  ;;  %v771_v54 = vadd.f32 %v770_v47, %v769_v42 }
 0x15b   : > { %v778_v55 = vadd.f32 %v777_v51, %v776_v48  ;;  %v826_v56 = vrot.slane %v825_v53, 1  ;;  %v820_v58 = vadd.f32 %v819_v52, %v818_v49 }
 0x15d   : > { %v781_v57 = vcombine.low %v771_v54, %v778_v55  ;;  %v827_v59 = vadd.f32 %v826_v56, %v825_v53 }
 0x15f   : > { %v788_v60 = vrot.slane %v781_v57, %v1386_v43  ;;  %v830_v61 = vcombine.low %v820_v58, %v827_v59 }
 0x161   : > { %v795_v62 = vrot.slane %v788_v60, %v1386_v43  ;;  %v837_v63 = vrot.slane %v830_v61, %v1386_v43 }
 0x163   : > { %801 = vst.msk [vmem:[%s459_s21] sm:$0x3] %vm799_vm1, %v795_v62  ;;  %v844_v0 = vrot.slane %v837_v63, %v1386_v43 }
 0x165   : > { %846 = vst.msk [vmem:[%s468_s25] sm:$0x3] %vm799_vm1, %v844_v0 }
 0x166 PF: > { %s15_s19 = sadd.s32 1, %s1225_s19   ;;  %s1460_s15 = smov %s1213_s16 }
 0x167   : > { %p12_p10 = scmp.ge.s32.totalorder %s15_s19, 4   ;;  %s1461_s16 = smov %s1290_s23 }
 0x168   : > { %s1462_s17 = smov %s1221_s18  ;;  %s1463_s18 = smov %s1465_s20 }
 0x169   :  { %14 = sbr.rel (!%p12_p10) target bundleno = 3 (0x3), region = 136 }

// kernel: classifier_net_forward.75
= control target key start
LH: loop header
LB: loop body
LE: loop exit
PB: predicated region body
PF: predicated region fallthrough
CT: control target
= control target key end

     0   :  { %v17_v0 = vlaneseq  ;;  %v95_v1 = vmov 1983009808   ;;  %s128_s1 = inlined_call_operand.vmem [shape: f32[1,512], index: 1, kind: input, shape index: {}]   ;;  %s129_s2 = inlined_call_operand.vmem [shape: f32[1,512], index: 2, kind: input, shape index: {}]   ;;  %s130_s0 = inlined_call_operand.vmem [shape: f32[2,512], index: 0, kind: input, shape index: {}]   ;;  %s131_s3 = inlined_call_operand.vmem [shape: f32[2,512], index: 3, kind: output, shape index: {}]  }
   0x1   :  { %v36_v2 = vunpack.c.l.s4 %v95_v1  ;;  %v15_v4 = vld [vmem:[%s128_s1] sm:$0xf] }
   0x2   :  { %v18_v3 = vshrl.u32 %v17_v0, 7  ;;  %v52_v10 = vld [vmem:[%s129_s2] sm:$0xf] }
   0x3   :  { %v37_v5 = vunpack.c.0.s8 %v36_v2  ;;  %v14_v26 = vld [vmem:[%s130_s0] sm:$0xff] }
   0x4   :  { %v19_v6 = vsub.s32 0, %v18_v3  ;;  %v23_v7 = vsub.s32 1, %v18_v3  ;;  %v27_v8 = vsub.s32 2, %v18_v3  ;;  %v31_v9 = vsub.s32 3, %v18_v3 }
   0x5   :  { %v40_v11 = vsub.s32 %v37_v5, %v18_v3 }
   0x6   :  { %v20_v12 = vrot.slane %v15_v4, %v19_v6  ;;  %v24_v13 = vrot.slane %v15_v4, %v23_v7  ;;  %v28_v14 = vrot.slane %v15_v4, %v27_v8  ;;  %v32_v15 = vrot.slane %v15_v4, %v31_v9 }
   0x7   :  { %v57_v16 = vrot.slane %v52_v10, %v19_v6  ;;  %v61_v17 = vrot.slane %v52_v10, %v23_v7  ;;  %v65_v18 = vrot.slane %v52_v10, %v27_v8  ;;  %v69_v19 = vrot.slane %v52_v10, %v31_v9 }
   0x8   :  { %v33_v20 = vcombine.low %v20_v12, %v24_v13  ;;  %v34_v21 = vcombine.low %v28_v14, %v32_v15 }
   0x9   :  { %v70_v22 = vcombine.low %v57_v16, %v61_v17  ;;  %v71_v23 = vcombine.low %v65_v18, %v69_v19 }
   0xa   :  { %v41_v24 = vrot.slane %v33_v20, %v40_v11  ;;  %v48_v25 = vrot.slane %v34_v21, %v40_v11 }
   0xb   :  { %v78_v27 = vrot.slane %v70_v22, %v40_v11  ;;  %v85_v28 = vrot.slane %v71_v23, %v40_v11 }
   0xc   :  { %v49_v29 = vcombine.low %v41_v24, %v48_v25 }
   0xd   :  { %v86_v30 = vcombine.low %v78_v27, %v85_v28 }
   0xe   :  { %v51_v31 = vmul.f32 %v49_v29, %v14_v26 }
  0x10   :  { %v88_v32 = vadd.f32 %v86_v30, %v51_v31 }
  0x12   :  { %89 = vst [vmem:[%s131_s3] sm:$0xff] %v88_v32 }

// kernel: classifier_net_forward.77
= control target key start
LH: loop header
LB: loop body
LE: loop exit
PB: predicated region body
PF: predicated region fallthrough
CT: control target
= control target key end

     0   :  { %v17_v0 = vlaneseq  ;;  %v96_v1 = vmov 1983009808   ;;  %s129_s1 = inlined_call_operand.vmem [shape: f32[1,512], index: 1, kind: input, shape index: {}]   ;;  %s130_s2 = inlined_call_operand.vmem [shape: f32[1,512], index: 2, kind: input, shape index: {}]   ;;  %s131_s0 = inlined_call_operand.vmem [shape: f32[2,512], index: 0, kind: input, shape index: {}]   ;;  %s132_s3 = inlined_call_operand.vmem [shape: f32[2,512], index: 3, kind: output, shape index: {}]  }
   0x1   :  { %v36_v2 = vunpack.c.l.s4 %v96_v1  ;;  %v15_v4 = vld [vmem:[%s129_s1] sm:$0xf] }
   0x2   :  { %v18_v3 = vshrl.u32 %v17_v0, 7  ;;  %v52_v10 = vld [vmem:[%s130_s2] sm:$0xf] }
   0x3   :  { %v37_v5 = vunpack.c.0.s8 %v36_v2  ;;  %v14_v26 = vld [vmem:[%s131_s0] sm:$0xff] }
   0x4   :  { %v19_v6 = vsub.s32 0, %v18_v3  ;;  %v23_v7 = vsub.s32 1, %v18_v3  ;;  %v27_v8 = vsub.s32 2, %v18_v3  ;;  %v31_v9 = vsub.s32 3, %v18_v3 }
   0x5   :  { %v40_v11 = vsub.s32 %v37_v5, %v18_v3 }
   0x6   :  { %v20_v12 = vrot.slane %v15_v4, %v19_v6  ;;  %v24_v13 = vrot.slane %v15_v4, %v23_v7  ;;  %v28_v14 = vrot.slane %v15_v4, %v27_v8  ;;  %v32_v15 = vrot.slane %v15_v4, %v31_v9 }
   0x7   :  { %v57_v16 = vrot.slane %v52_v10, %v19_v6  ;;  %v61_v17 = vrot.slane %v52_v10, %v23_v7  ;;  %v65_v18 = vrot.slane %v52_v10, %v27_v8  ;;  %v69_v19 = vrot.slane %v52_v10, %v31_v9 }
   0x8   :  { %v33_v20 = vcombine.low %v20_v12, %v24_v13  ;;  %v34_v21 = vcombine.low %v28_v14, %v32_v15 }
   0x9   :  { %v70_v22 = vcombine.low %v57_v16, %v61_v17  ;;  %v71_v23 = vcombine.low %v65_v18, %v69_v19 }
   0xa   :  { %v41_v24 = vrot.slane %v33_v20, %v40_v11  ;;  %v48_v25 = vrot.slane %v34_v21, %v40_v11 }
   0xb   :  { %v78_v27 = vrot.slane %v70_v22, %v40_v11  ;;  %v85_v28 = vrot.slane %v71_v23, %v40_v11 }
   0xc   :  { %v49_v29 = vcombine.low %v41_v24, %v48_v25 }
   0xd   :  { %v86_v30 = vcombine.low %v78_v27, %v85_v28 }
   0xe   :  { %v51_v31 = vmul.f32 %v49_v29, %v14_v26 }
  0x10   :  { %v88_v32 = vadd.f32 %v86_v30, %v51_v31 }
  0x12   :  { %v89_v33 = vmax.f32 %v88_v32, 0.0 }
  0x14   :  { %90 = vst [vmem:[%s132_s3] sm:$0xff] %v89_v33 }

// kernel: classifier_net_forward.76
= control target key start
LH: loop header
LB: loop body
LE: loop exit
PB: predicated region body
PF: predicated region fallthrough
CT: control target
= control target key end

     0   :  { %s1292_s15 = smov 0   ;;  %s1294_s16 = smov 0   ;;  %s1530_s0 = inlined_call_operand.vmem [shape: bf16[2,2304], index: 0, kind: input, shape index: {}]   ;;  %s1531_s1 = inlined_call_operand.vmem [shape: bf16[2304,512], index: 1, kind: input, shape index: {}]   ;;  %s1532_s2 = inlined_call_operand.vmem [shape: f32[2,512], index: 2, kind: output, shape index: {0}]   ;;  %s1533_s3 = inlined_call_operand.vmem [shape: f32[1,1,512], index: 3, kind: output, shape index: {1}]   ;;  %s1534_s4 = inlined_call_operand.vmem [shape: f32[1,1,512], index: 4, kind: output, shape index: {2}]  }
   0x1   :  { %s1296_s17 = smov 0   ;;  %s1298_s18 = smov 0  }
   0x2   :  { %s1300_s19 = smov 0   ;;  %s1302_s20 = smov 0  }
   0x3   :  { %s1304_s21 = smov 0  }
   0x4 LB: > { %s27_s22 = sadd.s32 1, %s1254_s19  ;;  %s30_s23 = sadd.s32 1, %s1258_s20  ;;  %s1262_s21 = sphi %s1304_s21, %s15_s21   ;;  %s1258_s20 = sphi %s1302_s20, %s1540_s20   ;;  %s1254_s19 = sphi %s1300_s19, %s1539_s19   ;;  %s1250_s18 = sphi %s1298_s18, %s1538_s18   ;;  %s1246_s17 = sphi %s1296_s17, %s1537_s17   ;;  %s1242_s16 = sphi %s1294_s16, %s1536_s16   ;;  %s1238_s15 = sphi %s1292_s15, %s1535_s15  }
   0x5   : > { %p28_p0 = scmp.ge.s32.totalorder %s27_s22, 9  ;;  %p78_p1 = scmp.ne.s32.totalorder %s1242_s16, %s1238_s15 }
   0x6   : > { %p79_p2 = scmp.eq.s32.totalorder %s1262_s21, 0  ;;  %s71_s27 = sadd.s32 1, %s1242_s16 }
   0x7   : > { %s1542_s22 = smov (%p28_p0, %s27_s22), 0  ;;  %s1544_s23 = smov (!%p28_p0, %s30_s23), %s1258_s20 }
   0x8   : > { %p80_p3 = por %p79_p2, %p78_p1  ;;  %p32_p4 = scmp.ge.s32.totalorder %s1544_s23, 2 }
   0x9   : > { %s66_s24 = ssub.s32 %s1254_s19, %s1542_s22  ;;  %p1050_p6 = scmp.ge.s32.totalorder %s1262_s21, 18 }
   0xa   : > { %s1546_s23 = smov (%p32_p4, %s1544_s23), 0 }
   0xb   : > { %s67_s25 = ssub.s32 %s1258_s20, %s1546_s23  ;;  %188 = sbr.rel (%p1050_p6) target bundleno = 41 (0x29), region = 16 }
   0xc   : > { %s68_s26 = sor.u32 %s67_s25, %s66_s24 }
   0xd   : > { %p69_p5 = scmp.eq.s32.totalorder %s68_s26, 0 }
   0xf   : > { %s1343_s28 = scalar_select %p69_p5, %s1242_s16, %s71_s27  }
  0x12   : > { %203 = sbr.rel (!%p80_p3) target bundleno = 41 (0x29), region = 24  ;;  %s205_s29 = sand.u32 (%p80_p3), 1, %s1242_s16  }
  0x13   : > { %s1053_s30 = sshll.u32 (%p80_p3), %s1258_s20, 1  ;;  %s1051_s5 = sshll.u32 (%p80_p3), %s205_s29, 8 }
  0x14   : > { %s1100_s6 = sshll.u32 (%p80_p3), %s1254_s19, 7  ;;  %s1357_s12 = scalar_lea.vmem (%p80_p3), [#allocation3], %s1051_s5 }
  0x15   : > { %s211_s7 = sadd.s32 (%p80_p3), %s1100_s6, %s1053_s30 }
  0x16   : > { %s1055_s8 = sshll.u32 (%p80_p3), %s211_s7, 2 }
  0x17   : > { %s1352_s11 = scalar_lea.vmem (%p80_p3), %s1531_s1, %s1055_s8 }
  0x18   : > { %v303_v0 = vld [vmem:[%s1352_s11] sm:$0xff] (%p80_p3)  ;;  %v305_v1 = vld [vmem:[%s1352_s11 + $0x10] sm:$0xff] (%p80_p3) }
  0x19   : > { %v307_v2 = vld [vmem:[%s1352_s11 + $0x20] sm:$0xff]  ;;  %304 = vst [vmem:[%s1357_s12] sm:$0xff] %v303_v0  ;;  %306 = vst [vmem:[%s1357_s12 + $0x8] sm:$0xff] %v305_v1  ;;  %v309_v3 = vld [vmem:[%s1352_s11 + $0x30] sm:$0xff] }
  0x1a   : > { %308 = vst [vmem:[%s1357_s12 + $0x10] sm:$0xff] %v307_v2  ;;  %v311_v4 = vld [vmem:[%s1352_s11 + $0x40] sm:$0xff]  ;;  %v313_v5 = vld [vmem:[%s1352_s11 + $0x50] sm:$0xff]  ;;  %310 = vst [vmem:[%s1357_s12 + $0x18] sm:$0xff] %v309_v3 }
  0x1b   : > { %312 = vst [vmem:[%s1357_s12 + $0x20] sm:$0xff] %v311_v4  ;;  %314 = vst [vmem:[%s1357_s12 + $0x28] sm:$0xff] %v313_v5  ;;  %v315_v6 = vld [vmem:[%s1352_s11 + $0x60] sm:$0xff]  ;;  %v317_v7 = vld [vmem:[%s1352_s11 + $0x70] sm:$0xff] }
  0x1c   : > { %v319_v8 = vld [vmem:[%s1352_s11 + $0x80] sm:$0xff]  ;;  %316 = vst [vmem:[%s1357_s12 + $0x30] sm:$0xff] %v315_v6  ;;  %318 = vst [vmem:[%s1357_s12 + $0x38] sm:$0xff] %v317_v7  ;;  %v321_v9 = vld [vmem:[%s1352_s11 + $0x90] sm:$0xff] }
  0x1d   : > { %320 = vst [vmem:[%s1357_s12 + $0x40] sm:$0xff] %v319_v8  ;;  %v323_v10 = vld [vmem:[%s1352_s11 + $0xa0] sm:$0xff]  ;;  %v325_v11 = vld [vmem:[%s1352_s11 + $0xb0] sm:$0xff]  ;;  %322 = vst [vmem:[%s1357_s12 + $0x48] sm:$0xff] %v321_v9 }
  0x1e   : > { %324 = vst [vmem:[%s1357_s12 + $0x50] sm:$0xff] %v323_v10  ;;  %326 = vst [vmem:[%s1357_s12 + $0x58] sm:$0xff] %v325_v11  ;;  %v327_v12 = vld [vmem:[%s1352_s11 + $0xc0] sm:$0xff]  ;;  %v329_v13 = vld [vmem:[%s1352_s11 + $0xd0] sm:$0xff] }
  0x1f   : > { %v331_v14 = vld [vmem:[%s1352_s11 + $0xe0] sm:$0xff]  ;;  %328 = vst [vmem:[%s1357_s12 + $0x60] sm:$0xff] %v327_v12  ;;  %330 = vst [vmem:[%s1357_s12 + $0x68] sm:$0xff] %v329_v13  ;;  %v333_v15 = vld [vmem:[%s1352_s11 + $0xf0] sm:$0xff] }
  0x20   : > { %332 = vst [vmem:[%s1357_s12 + $0x70] sm:$0xff] %v331_v14  ;;  %v335_v16 = vld [vmem:[%s1352_s11 + $0x100] sm:$0xff]  ;;  %v337_v17 = vld [vmem:[%s1352_s11 + $0x110] sm:$0xff]  ;;  %334 = vst [vmem:[%s1357_s12 + $0x78] sm:$0xff] %v333_v15 }
  0x21   : > { %336 = vst [vmem:[%s1357_s12 + $0x80] sm:$0xff] %v335_v16  ;;  %338 = vst [vmem:[%s1357_s12 + $0x88] sm:$0xff] %v337_v17  ;;  %v339_v18 = vld [vmem:[%s1352_s11 + $0x120] sm:$0xff]  ;;  %v341_v19 = vld [vmem:[%s1352_s11 + $0x130] sm:$0xff] }
  0x22   : > { %v343_v20 = vld [vmem:[%s1352_s11 + $0x140] sm:$0xff]  ;;  %340 = vst [vmem:[%s1357_s12 + $0x90] sm:$0xff] %v339_v18  ;;  %342 = vst [vmem:[%s1357_s12 + $0x98] sm:$0xff] %v341_v19  ;;  %v345_v21 = vld [vmem:[%s1352_s11 + $0x150] sm:$0xff] }
  0x23   : > { %344 = vst [vmem:[%s1357_s12 + $0xa0] sm:$0xff] %v343_v20  ;;  %v347_v22 = vld [vmem:[%s1352_s11 + $0x160] sm:$0xff]  ;;  %v349_v23 = vld [vmem:[%s1352_s11 + $0x170] sm:$0xff]  ;;  %346 = vst [vmem:[%s1357_s12 + $0xa8] sm:$0xff] %v345_v21 }
  0x24   : > { %348 = vst [vmem:[%s1357_s12 + $0xb0] sm:$0xff] %v347_v22  ;;  %350 = vst [vmem:[%s1357_s12 + $0xb8] sm:$0xff] %v349_v23  ;;  %v351_v24 = vld [vmem:[%s1352_s11 + $0x180] sm:$0xff]  ;;  %v353_v25 = vld [vmem:[%s1352_s11 + $0x190] sm:$0xff] }
  0x25   : > { %v355_v26 = vld [vmem:[%s1352_s11 + $0x1a0] sm:$0xff]  ;;  %352 = vst [vmem:[%s1357_s12 + $0xc0] sm:$0xff] %v351_v24  ;;  %354 = vst [vmem:[%s1357_s12 + $0xc8] sm:$0xff] %v353_v25  ;;  %v357_v27 = vld [vmem:[%s1352_s11 + $0x1b0] sm:$0xff] }
  0x26   : > { %356 = vst [vmem:[%s1357_s12 + $0xd0] sm:$0xff] %v355_v26  ;;  %v359_v28 = vld [vmem:[%s1352_s11 + $0x1c0] sm:$0xff]  ;;  %v361_v29 = vld [vmem:[%s1352_s11 + $0x1d0] sm:$0xff]  ;;  %358 = vst [vmem:[%s1357_s12 + $0xd8] sm:$0xff] %v357_v27 }
  0x27   : > { %360 = vst [vmem:[%s1357_s12 + $0xe0] sm:$0xff] %v359_v28  ;;  %362 = vst [vmem:[%s1357_s12 + $0xe8] sm:$0xff] %v361_v29  ;;  %v363_v30 = vld [vmem:[%s1352_s11 + $0x1e0] sm:$0xff]  ;;  %v365_v31 = vld [vmem:[%s1352_s11 + $0x1f0] sm:$0xff] }
  0x28   : > { %364 = vst [vmem:[%s1357_s12 + $0xf0] sm:$0xff] %v363_v30  ;;  %366 = vst [vmem:[%s1357_s12 + $0xf8] sm:$0xff] %v365_v31 }
  0x29 PF: > { %p1056_p7 = scmp.ge.s32.totalorder %s1262_s21, 1  ;;  %p371_p8 = scmp.lt.s32.totalorder %s1262_s21, 19 }
  0x2b   : > { %p372_p9 = pnand %p1056_p7, %p371_p8 }
  0x2c   : > { %s378_s13 = sand.u32 (!%p372_p9), 1, %s1238_s15   ;;  %s1058_s14 = sshll.u32 (!%p372_p9), %s1246_s17, 1 }
  0x2d   : > { %375 = sbr.rel (%p372_p9) target bundleno = 380 (0x17c), region = 62  ;;  %s1057_s24 = sshll.u32 (!%p372_p9), %s378_s13, 8 }
  0x2e   : > { %p434_p10 = scmp.lt.s32.totalorder (!%p372_p9), %s1058_s14, 17  ;;  %s1059_s25 = sshll.u32 (!%p372_p9), %s1250_s18, 1 }
  0x2f   : > { %p445_p11 = scmp.lt.s32.totalorder (!%p372_p9), %s1059_s25, 3  ;;  %s1447_s12 = scalar_lea.vmem (!%p372_p9), [#allocation3], %s1057_s24 }
  0x30   : > { %p1063_p12 = scmp.ne.s32.totalorder (!%p372_p9), %s1246_s17, 0 }
  0x34   : > { %s1548_s14 = smov (!%p434_p10, %s1058_s14), 17  ;;  %s1550_s25 = smov (!%p445_p11, %s1059_s25), 3 }
  0x35   : > { %s438_s29 = scalar_lea.vmem %s1530_s0, %s1548_s14  ;;  %s1060_s30 = sshll.u32 %s1550_s25, 1  ;;  %v1264_v32 = vmov (!%p1063_p12), 0.0  }
  0x36   : > { %s459_s6 = scalar_lea.vmem %s1533_s3, %s1550_s25  ;;  %s1441_s8 = scalar_lea.vmem %s1532_s2, %s1060_s30  ;;  %474 = vst [vmem:[#allocation2] sm:$0xf] (!%p1063_p12), %v1264_v32 }
  0x37   : > { %s468_s11 = scalar_lea.vmem %s1534_s4, %s1550_s25  ;;  %473 = sbr.rel (%p1063_p12) target bundleno = 62 (0x3e), region = 70 }
  0x3e PF: > { %v1160_v33 = vld [vmem:[%s1447_s12 + $0x4] ss:$8 sps:$4 sm:$0xff]   ;;  %v1162_v34 = vld [vmem:[%s1447_s12] ss:$8 sps:$4 sm:$0xff]   ;;  %v1163_v35 = vld [vmem:[%s1447_s12 + $0x14] ss:$8 sps:$4 sm:$0xff]   ;;  %v521_v44 = vlaneseq }
  0x3f   : > { %694 = vmatprep.subr.bf16.mxu0 %v1160_v33  ;;  %v1165_v36 = vld [vmem:[%s1447_s12 + $0x10] ss:$8 sps:$4 sm:$0xff]   ;;  %v1166_v37 = vld [vmem:[%s1447_s12 + $0x24] ss:$8 sps:$4 sm:$0xff]   ;;  %v1168_v38 = vld [vmem:[%s1447_s12 + $0x20] ss:$8 sps:$4 sm:$0xff]  }
  0x40   : > { %695 = vmatpush1.bf16.msra.mxu0 %v1162_v34  ;;  %v1169_v39 = vld [vmem:[%s1447_s12 + $0x34] ss:$8 sps:$4 sm:$0xff]   ;;  %v1171_v40 = vld [vmem:[%s1447_s12 + $0x30] ss:$8 sps:$4 sm:$0xff]   ;;  %v1172_v41 = vld [vmem:[%s1447_s12 + $0x44] ss:$8 sps:$4 sm:$0xff]  }
  0x41   : > { %696 = vmatprep.subr.bf16.mxu0 %v1163_v35  ;;  %v1265_v42 = vmov 1966171168   ;;  %v1174_v45 = vld [vmem:[%s1447_s12 + $0x40] ss:$8 sps:$4 sm:$0xff]   ;;  %v1175_v46 = vld [vmem:[%s1447_s12 + $0x54] ss:$8 sps:$4 sm:$0xff]  }
  0x42   : > { %v519_v43 = vunpack.c.l.s4 %v1265_v42  ;;  %v522_v48 = vshrl.u32 %v521_v44, 7  ;;  %v1177_v49 = vld [vmem:[%s1447_s12 + $0x50] ss:$8 sps:$4 sm:$0xff]   ;;  %v1178_v50 = vld [vmem:[%s1447_s12 + $0x64] ss:$8 sps:$4 sm:$0xff]   ;;  %p1097_p13 = scmp.ne.s32.totalorder %s1246_s17, 8 }
  0x43   : > { %v1064_v52 = vld.sshfl [vmem:[%s438_s29] sm:$0x11 pattern:$0x75316420]  ;;  %v1180_v54 = vld [vmem:[%s1447_s12 + $0x60] ss:$8 sps:$4 sm:$0xff]  }
  0x44   : > { %697 = vmatpush1.bf16.msra.mxu0 %v1165_v36  ;;  %v520_v47 = vunpack.c.0.s8 %v519_v43  ;;  %v517_v53 = vcombine.high %v1064_v52, %v1064_v52  ;;  %v1181_v55 = vld [vmem:[%s1447_s12 + $0x74] ss:$8 sps:$4 sm:$0xff]   ;;  %v1183_v57 = vld [vmem:[%s1447_s12 + $0x70] ss:$8 sps:$4 sm:$0xff]   ;;  %v1184_v58 = vld [vmem:[%s1447_s12 + $0x84] ss:$8 sps:$4 sm:$0xff]  }
  0x45   : > { %698 = vmatprep.subr.bf16.mxu0 %v1166_v37  ;;  %v1186_v59 = vld [vmem:[%s1447_s12 + $0x80] ss:$8 sps:$4 sm:$0xff]   ;;  %v1187_v60 = vld [vmem:[%s1447_s12 + $0x94] ss:$8 sps:$4 sm:$0xff]   ;;  %v1189_v61 = vld [vmem:[%s1447_s12 + $0x90] ss:$8 sps:$4 sm:$0xff]  }
  0x46   : > { %v1464_v51 = vsub.s32 %v520_v47, %v522_v48  ;;  %v1190_v62 = vld [vmem:[%s1447_s12 + $0xa4] ss:$8 sps:$4 sm:$0xff]   ;;  %v1192_v63 = vld [vmem:[%s1447_s12 + $0xa0] ss:$8 sps:$4 sm:$0xff]   ;;  %v1193_v0 = vld [vmem:[%s1447_s12 + $0xb4] ss:$8 sps:$4 sm:$0xff]  }
  0x47   : > { %v1195_v1 = vld [vmem:[%s1447_s12 + $0xb0] ss:$8 sps:$4 sm:$0xff]   ;;  %v1196_v2 = vld [vmem:[%s1447_s12 + $0xc4] ss:$8 sps:$4 sm:$0xff]   ;;  %v1198_v3 = vld [vmem:[%s1447_s12 + $0xc0] ss:$8 sps:$4 sm:$0xff]  }
  0x48   : > { %699 = vmatpush1.bf16.msra.mxu0 %v1168_v38  ;;  %v531_v56 = vrot.slane %v517_v53, %v1464_v51  ;;  %v1199_v4 = vld [vmem:[%s1447_s12 + $0xd4] ss:$8 sps:$4 sm:$0xff]   ;;  %v1201_v5 = vld [vmem:[%s1447_s12 + $0xd0] ss:$8 sps:$4 sm:$0xff]   ;;  %v1202_v6 = vld [vmem:[%s1447_s12 + $0xe4] ss:$8 sps:$4 sm:$0xff]   ;;  %v524_v10 = vrot.slane %v1064_v52, %v1464_v51 }
  0x49   : > { %700 = vmatprep.subr.bf16.mxu0 %v1169_v39  ;;  %v1204_v7 = vld [vmem:[%s1447_s12 + $0xe0] ss:$8 sps:$4 sm:$0xff]   ;;  %v1205_v8 = vld [vmem:[%s1447_s12 + $0xf4] ss:$8 sps:$4 sm:$0xff]   ;;  %v1207_v9 = vld [vmem:[%s1447_s12 + $0xf0] ss:$8 sps:$4 sm:$0xff]  }
  0x4a   : > { %726 = vmatprep.mubr.bf16.mxu0 %v531_v56  ;;  %v1266_v11 = vmov 1983009808   ;;  %v475_v19 = vld [vmem:[#allocation2] sm:$0xf]  ;;  %vm765_vm0 = vcmask (!%p1097_p13), 1041408   ;;  %vm800_vm1 = vcmp.lt.s32.totalorder (!%p1097_p13), %v521_v44, 256 }
  0x4b   : > { %v739_v12 = vunpack.c.l.s4 %v1266_v11 }
  0x4c   : > { %701 = vmatpush1.bf16.msra.mxu0 %v1171_v40 }
  0x4d   : > { %702 = vmatprep.subr.bf16.mxu0 %v1172_v41  ;;  %v740_v13 = vunpack.c.0.s8 %v739_v12 }
  0x4f   : > { %v743_v15 = vsub.s32 %v740_v13, %v522_v48 }
  0x50   : > { %703 = vmatpush1.bf16.msra.mxu0 %v1174_v45 }
  0x51   : > { %704 = vmatprep.subr.bf16.mxu0 %v1175_v46 }
  0x54   : > { %705 = vmatpush1.bf16.msra.mxu0 %v1177_v49 }
  0x55   : > { %706 = vmatprep.subr.bf16.mxu0 %v1178_v50 }
  0x58   : > { %707 = vmatpush1.bf16.msra.mxu0 %v1180_v54 }
  0x59   : > { %708 = vmatprep.subr.bf16.mxu0 %v1181_v55 }
  0x5c   : > { %709 = vmatpush1.bf16.msra.mxu0 %v1183_v57 }
  0x5d   : > { %710 = vmatprep.subr.bf16.mxu0 %v1184_v58 }
  0x60   : > { %711 = vmatpush1.bf16.msra.mxu0 %v1186_v59 }
  0x61   : > { %712 = vmatprep.subr.bf16.mxu0 %v1187_v60 }
  0x64   : > { %713 = vmatpush1.bf16.msra.mxu0 %v1189_v61 }
  0x65   : > { %714 = vmatprep.subr.bf16.mxu0 %v1190_v62 }
  0x68   : > { %715 = vmatpush1.bf16.msra.mxu0 %v1192_v63 }
  0x69   : > { %716 = vmatprep.subr.bf16.mxu0 %v1193_v0 }
  0x6c   : > { %717 = vmatpush1.bf16.msra.mxu0 %v1195_v1 }
  0x6d   : > { %718 = vmatprep.subr.bf16.mxu0 %v1196_v2 }
  0x70   : > { %719 = vmatpush1.bf16.msra.mxu0 %v1198_v3 }
  0x71   : > { %720 = vmatprep.subr.bf16.mxu0 %v1199_v4 }
  0x74   : > { %721 = vmatpush1.bf16.msra.mxu0 %v1201_v5 }
  0x75   : > { %722 = vmatprep.subr.bf16.mxu0 %v1202_v6 }
  0x78   : > { %723 = vmatpush1.bf16.msra.mxu0 %v1204_v7 }
  0x79   : > { %724 = vmatprep.subr.bf16.mxu0 %v1205_v8 }
  0x7c   : > { %725 = vmatpush1.bf16.msra.mxu0 %v1207_v9 }
  0x7f   : > { %727 = vmatmul.mubr.bf16.vlgmr.msra.gmra.mrb[0].mxu0 %v524_v10 }
 0x152   : > { %v728_v14 = vpop.f32.mrb[0].mxu0 }
 0x153   : > { %v730_v16 = vpop.f32.mrb[1].mxu0 }
 0x154   : > { %v737_v17 = vcombine.low %v728_v14, %v730_v16  ;;  %v732_v18 = vpop.f32.mrb[2].mxu0  ;;  %751 = sbr.rel (%p1097_p13) target bundleno = 380 (0x17c), region = 74 }
 0x155   : > { %v733_v20 = vpop.f32.mrb[3].mxu0 }
 0x156   : > { %v744_v21 = vrot.slane %v737_v17, %v743_v15 }
 0x158   : > { %v746_v22 = vadd.f32 %v744_v21, %v475_v19 }
 0x15a   : > { %747 = vst [vmem:[#allocation2] sm:$0xf] %v746_v22 }
 0x161   : > { %v752_v23 = vld [vmem:[#allocation2] sm:$0xf] }
 0x162   : > { %753 = vst [vmem:[%s1441_s8] sm:$0xf] %v752_v23  ;;  %v761_v24 = vrot.slane %v752_v23, %v743_v15  ;;  %v803_v25 = vmul.f32 %v752_v23, %v752_v23 }
 0x164   : > { %v762_v26 = vcombine.high %v761_v24, %v761_v24  ;;  %v766_v27 = vsel %vm765_vm0, %v761_v24, 0.0  ;;  %v811_v28 = vrot.slane %v803_v25, %v743_v15 }
 0x165   : > { %v767_v29 = vrot.slane %v766_v27, 4 }
 0x166   : > { %v773_v30 = vsel %vm765_vm0, %v762_v26, 0.0  ;;  %v812_v31 = vcombine.high %v811_v28, %v811_v28  ;;  %v815_v32 = vsel %vm765_vm0, %v811_v28, 0.0 }
 0x167   : > { %v768_v33 = vadd.f32 %v767_v29, %v766_v27  ;;  %v774_v34 = vrot.slane %v773_v30, 4  ;;  %v816_v35 = vrot.slane %v815_v32, 4 }
 0x168   : > { %v822_v36 = vsel %vm765_vm0, %v812_v31, 0.0 }
 0x169   : > { %v817_v37 = vadd.f32 %v816_v35, %v815_v32  ;;  %v823_v38 = vrot.slane %v822_v36, 4  ;;  %v769_v39 = vrot.slane %v768_v33, 2  ;;  %v775_v40 = vadd.f32 %v774_v34, %v773_v30 }
 0x16b   : > { %v770_v41 = vadd.f32 %v769_v39, %v768_v33  ;;  %v776_v42 = vrot.slane %v775_v40, 2  ;;  %v818_v43 = vrot.slane %v817_v37, 2  ;;  %v824_v45 = vadd.f32 %v823_v38, %v822_v36 }
 0x16d   : > { %v771_v46 = vrot.slane %v770_v41, 1  ;;  %v777_v47 = vadd.f32 %v776_v42, %v775_v40  ;;  %v819_v48 = vadd.f32 %v818_v43, %v817_v37  ;;  %v825_v49 = vrot.slane %v824_v45, 2 }
 0x16f   : > { %v772_v50 = vadd.f32 %v771_v46, %v770_v41  ;;  %v778_v52 = vrot.slane %v777_v47, 1  ;;  %v820_v53 = vrot.slane %v819_v48, 1  ;;  %v826_v54 = vadd.f32 %v825_v49, %v824_v45 }
 0x171   : > { %v779_v55 = vadd.f32 %v778_v52, %v777_v47  ;;  %v821_v56 = vadd.f32 %v820_v53, %v819_v48  ;;  %v827_v57 = vrot.slane %v826_v54, 1 }
 0x173   : > { %v782_v58 = vcombine.low %v772_v50, %v779_v55  ;;  %v828_v59 = vadd.f32 %v827_v57, %v826_v54 }
 0x175   : > { %v789_v60 = vrot.slane %v782_v58, %v1464_v51  ;;  %v831_v61 = vcombine.low %v821_v56, %v828_v59 }
 0x177   : > { %v796_v62 = vrot.slane %v789_v60, %v1464_v51  ;;  %v838_v63 = vrot.slane %v831_v61, %v1464_v51 }
 0x179   : > { %802 = vst.msk [vmem:[%s459_s6] sm:$0x3] %vm800_vm1, %v796_v62  ;;  %v845_v0 = vrot.slane %v838_v63, %v1464_v51 }
 0x17b   : > { %847 = vst.msk [vmem:[%s468_s11] sm:$0x3] %vm800_vm1, %v845_v0 }
 0x17c PF: > { %s15_s21 = sadd.s32 1, %s1262_s21   ;;  %s1535_s15 = smov %s1242_s16 }
 0x17d   : > { %p12_p0 = scmp.ge.s32.totalorder %s15_s21, 20   ;;  %s1536_s16 = smov %s1343_s28 }
 0x17e   : > { %s1537_s17 = smov %s1254_s19  ;;  %s1538_s18 = smov %s1258_s20 }
 0x17f   : > { %s1539_s19 = smov %s1542_s22  ;;  %s1540_s20 = smov %s1546_s23 }
 0x180   :  { %14 = sbr.rel (!%p12_p0) target bundleno = 4 (0x4), region = 136 }

// kernel: classifier_net_forward.79
= control target key start
LH: loop header
LB: loop body
LE: loop exit
PB: predicated region body
PF: predicated region fallthrough
CT: control target
= control target key end

     0   :  { %v20_v0 = vlaneseq  ;;  %v101_v1 = vmov 1983009808   ;;  %s142_s1 = inlined_call_operand.vmem [shape: f32[1,512], index: 1, kind: input, shape index: {}]   ;;  %s143_s2 = inlined_call_operand.vmem [shape: f32[1,512], index: 2, kind: input, shape index: {}]   ;;  %s144_s0 = inlined_call_operand.vmem [shape: f32[2,512], index: 0, kind: input, shape index: {}]   ;;  %s145_s3 = inlined_call_operand.vmem [shape: f32[2,512], index: 3, kind: input, shape index: {}]   ;;  %s146_s4 = inlined_call_operand.vmem [shape: f32[2,512], index: 4, kind: output, shape index: {}]  }
   0x1   :  { %v39_v2 = vunpack.c.l.s4 %v101_v1  ;;  %v18_v4 = vld [vmem:[%s142_s1] sm:$0xf] }
   0x2   :  { %v21_v3 = vshrl.u32 %v20_v0, 7  ;;  %v55_v10 = vld [vmem:[%s143_s2] sm:$0xf] }
   0x3   :  { %v40_v5 = vunpack.c.0.s8 %v39_v2  ;;  %v17_v26 = vld [vmem:[%s144_s0] sm:$0xff] }
   0x4   :  { %v22_v6 = vsub.s32 0, %v21_v3  ;;  %v26_v7 = vsub.s32 1, %v21_v3  ;;  %v30_v8 = vsub.s32 2, %v21_v3  ;;  %v34_v9 = vsub.s32 3, %v21_v3  ;;  %v92_v32 = vld [vmem:[%s145_s3] sm:$0xff] }
   0x5   :  { %v43_v11 = vsub.s32 %v40_v5, %v21_v3 }
   0x6   :  { %v23_v12 = vrot.slane %v18_v4, %v22_v6  ;;  %v27_v13 = vrot.slane %v18_v4, %v26_v7  ;;  %v31_v14 = vrot.slane %v18_v4, %v30_v8  ;;  %v35_v15 = vrot.slane %v18_v4, %v34_v9 }
   0x7   :  { %v60_v16 = vrot.slane %v55_v10, %v22_v6  ;;  %v64_v17 = vrot.slane %v55_v10, %v26_v7  ;;  %v68_v18 = vrot.slane %v55_v10, %v30_v8  ;;  %v72_v19 = vrot.slane %v55_v10, %v34_v9 }
   0x8   :  { %v36_v20 = vcombine.low %v23_v12, %v27_v13  ;;  %v37_v21 = vcombine.low %v31_v14, %v35_v15 }
   0x9   :  { %v73_v22 = vcombine.low %v60_v16, %v64_v17  ;;  %v74_v23 = vcombine.low %v68_v18, %v72_v19 }
   0xa   :  { %v44_v24 = vrot.slane %v36_v20, %v43_v11  ;;  %v51_v25 = vrot.slane %v37_v21, %v43_v11 }
   0xb   :  { %v81_v27 = vrot.slane %v73_v22, %v43_v11  ;;  %v88_v28 = vrot.slane %v74_v23, %v43_v11 }
   0xc   :  { %v52_v29 = vcombine.low %v44_v24, %v51_v25 }
   0xd   :  { %v89_v30 = vcombine.low %v81_v27, %v88_v28 }
   0xe   :  { %v54_v31 = vmul.f32 %v52_v29, %v17_v26 }
  0x10   :  { %v91_v33 = vadd.f32 %v89_v30, %v54_v31 }
  0x12   :  { %v93_v34 = vadd.f32 %v92_v32, %v91_v33 }
  0x14   :  { %v94_v35 = vmax.f32 %v93_v34, 0.0 }
  0x16   :  { %95 = vst [vmem:[%s146_s4] sm:$0xff] %v94_v35 }

// kernel: classifier_net_forward.78
= control target key start
LH: loop header
LB: loop body
LE: loop exit
PB: predicated region body
PF: predicated region fallthrough
CT: control target
= control target key end

     0   :  { %s1739_s15 = smov 0   ;;  %s1741_s16 = smov 0   ;;  %s2077_s0 = inlined_call_operand.vmem [shape: bf16[2,4608], index: 0, kind: input, shape index: {}]   ;;  %s2078_s1 = inlined_call_operand.vmem [shape: bf16[4608,512], index: 1, kind: input, shape index: {}]   ;;  %s2079_s2 = inlined_call_operand.vmem [shape: f32[2,512], index: 2, kind: output, shape index: {0}]   ;;  %s2080_s3 = inlined_call_operand.vmem [shape: f32[1,1,512], index: 3, kind: output, shape index: {1}]   ;;  %s2081_s4 = inlined_call_operand.vmem [shape: f32[1,1,512], index: 4, kind: output, shape index: {2}]  }
   0x1   :  { %s1743_s17 = smov 0   ;;  %s1745_s18 = smov 0  }
   0x2   :  { %s1747_s19 = smov 0   ;;  %s1749_s20 = smov 0  }
   0x3   :  { %s1751_s21 = smov 0  }
   0x4 LB: > { %s27_s22 = sadd.s32 1, %s1701_s19  ;;  %s30_s23 = sadd.s32 1, %s1705_s20  ;;  %s1709_s21 = sphi %s1751_s21, %s15_s21   ;;  %s1705_s20 = sphi %s1749_s20, %s2087_s20   ;;  %s1701_s19 = sphi %s1747_s19, %s2086_s19   ;;  %s1697_s18 = sphi %s1745_s18, %s2085_s18   ;;  %s1693_s17 = sphi %s1743_s17, %s2084_s17   ;;  %s1689_s16 = sphi %s1741_s16, %s2083_s16   ;;  %s1685_s15 = sphi %s1739_s15, %s2082_s15  }
   0x5   : > { %p28_p0 = scmp.ge.s32.totalorder %s27_s22, 9  ;;  %p78_p1 = scmp.ne.s32.totalorder %s1689_s16, %s1685_s15 }
   0x6   : > { %p79_p2 = scmp.eq.s32.totalorder %s1709_s21, 0  ;;  %s71_s27 = sadd.s32 1, %s1689_s16 }
   0x7   : > { %s2089_s22 = smov (%p28_p0, %s27_s22), 0  ;;  %s2091_s23 = smov (!%p28_p0, %s30_s23), %s1705_s20 }
   0x8   : > { %p80_p3 = por %p79_p2, %p78_p1  ;;  %p32_p4 = scmp.ge.s32.totalorder %s2091_s23, 2 }
   0x9   : > { %s66_s24 = ssub.s32 %s1701_s19, %s2089_s22  ;;  %p1415_p6 = scmp.ge.s32.totalorder %s1709_s21, 18 }
   0xa   : > { %s2093_s23 = smov (%p32_p4, %s2091_s23), 0 }
   0xb   : > { %s67_s25 = ssub.s32 %s1705_s20, %s2093_s23  ;;  %188 = sbr.rel (%p1415_p6) target bundleno = 57 (0x39), region = 16 }
   0xc   : > { %s68_s26 = sor.u32 %s67_s25, %s66_s24 }
   0xd   : > { %p69_p5 = scmp.eq.s32.totalorder %s68_s26, 0 }
   0xf   : > { %s1790_s28 = scalar_select %p69_p5, %s1689_s16, %s71_s27  }
  0x12   : > { %203 = sbr.rel (!%p80_p3) target bundleno = 57 (0x39), region = 24  ;;  %s205_s29 = sand.u32 (%p80_p3), 1, %s1689_s16  }
  0x13   : > { %s1418_s30 = sshll.u32 (%p80_p3), %s1705_s20, 1  ;;  %s1416_s5 = sshll.u32 (%p80_p3), %s205_s29, 9 }
  0x14   : > { %s1497_s6 = sshll.u32 (%p80_p3), %s1701_s19, 8  ;;  %s1804_s12 = scalar_lea.vmem (%p80_p3), [#allocation3], %s1416_s5 }
  0x15   : > { %s211_s7 = sadd.s32 (%p80_p3), %s1497_s6, %s1418_s30 }
  0x16   : > { %s1420_s8 = sshll.u32 (%p80_p3), %s211_s7, 2 }
  0x17   : > { %s1799_s11 = scalar_lea.vmem (%p80_p3), %s2078_s1, %s1420_s8 }
  0x18   : > { %v367_v0 = vld [vmem:[%s1799_s11] sm:$0xff] (%p80_p3)  ;;  %v369_v1 = vld [vmem:[%s1799_s11 + $0x10] sm:$0xff] (%p80_p3) }
  0x19   : > { %v371_v2 = vld [vmem:[%s1799_s11 + $0x20] sm:$0xff]  ;;  %368 = vst [vmem:[%s1804_s12] sm:$0xff] %v367_v0  ;;  %370 = vst [vmem:[%s1804_s12 + $0x8] sm:$0xff] %v369_v1  ;;  %v373_v3 = vld [vmem:[%s1799_s11 + $0x30] sm:$0xff] }
  0x1a   : > { %372 = vst [vmem:[%s1804_s12 + $0x10] sm:$0xff] %v371_v2  ;;  %v375_v4 = vld [vmem:[%s1799_s11 + $0x40] sm:$0xff]  ;;  %v377_v5 = vld [vmem:[%s1799_s11 + $0x50] sm:$0xff]  ;;  %374 = vst [vmem:[%s1804_s12 + $0x18] sm:$0xff] %v373_v3 }
  0x1b   : > { %376 = vst [vmem:[%s1804_s12 + $0x20] sm:$0xff] %v375_v4  ;;  %378 = vst [vmem:[%s1804_s12 + $0x28] sm:$0xff] %v377_v5  ;;  %v379_v6 = vld [vmem:[%s1799_s11 + $0x60] sm:$0xff]  ;;  %v381_v7 = vld [vmem:[%s1799_s11 + $0x70] sm:$0xff] }
  0x1c   : > { %v383_v8 = vld [vmem:[%s1799_s11 + $0x80] sm:$0xff]  ;;  %380 = vst [vmem:[%s1804_s12 + $0x30] sm:$0xff] %v379_v6  ;;  %382 = vst [vmem:[%s1804_s12 + $0x38] sm:$0xff] %v381_v7  ;;  %v385_v9 = vld [vmem:[%s1799_s11 + $0x90] sm:$0xff] }
  0x1d   : > { %384 = vst [vmem:[%s1804_s12 + $0x40] sm:$0xff] %v383_v8  ;;  %v387_v10 = vld [vmem:[%s1799_s11 + $0xa0] sm:$0xff]  ;;  %v389_v11 = vld [vmem:[%s1799_s11 + $0xb0] sm:$0xff]  ;;  %386 = vst [vmem:[%s1804_s12 + $0x48] sm:$0xff] %v385_v9 }
  0x1e   : > { %388 = vst [vmem:[%s1804_s12 + $0x50] sm:$0xff] %v387_v10  ;;  %390 = vst [vmem:[%s1804_s12 + $0x58] sm:$0xff] %v389_v11  ;;  %v391_v12 = vld [vmem:[%s1799_s11 + $0xc0] sm:$0xff]  ;;  %v393_v13 = vld [vmem:[%s1799_s11 + $0xd0] sm:$0xff] }
  0x1f   : > { %v395_v14 = vld [vmem:[%s1799_s11 + $0xe0] sm:$0xff]  ;;  %392 = vst [vmem:[%s1804_s12 + $0x60] sm:$0xff] %v391_v12  ;;  %394 = vst [vmem:[%s1804_s12 + $0x68] sm:$0xff] %v393_v13  ;;  %v397_v15 = vld [vmem:[%s1799_s11 + $0xf0] sm:$0xff] }
  0x20   : > { %396 = vst [vmem:[%s1804_s12 + $0x70] sm:$0xff] %v395_v14  ;;  %v399_v16 = vld [vmem:[%s1799_s11 + $0x100] sm:$0xff]  ;;  %v401_v17 = vld [vmem:[%s1799_s11 + $0x110] sm:$0xff]  ;;  %398 = vst [vmem:[%s1804_s12 + $0x78] sm:$0xff] %v397_v15 }
  0x21   : > { %400 = vst [vmem:[%s1804_s12 + $0x80] sm:$0xff] %v399_v16  ;;  %402 = vst [vmem:[%s1804_s12 + $0x88] sm:$0xff] %v401_v17  ;;  %v403_v18 = vld [vmem:[%s1799_s11 + $0x120] sm:$0xff]  ;;  %v405_v19 = vld [vmem:[%s1799_s11 + $0x130] sm:$0xff] }
  0x22   : > { %v407_v20 = vld [vmem:[%s1799_s11 + $0x140] sm:$0xff]  ;;  %404 = vst [vmem:[%s1804_s12 + $0x90] sm:$0xff] %v403_v18  ;;  %406 = vst [vmem:[%s1804_s12 + $0x98] sm:$0xff] %v405_v19  ;;  %v409_v21 = vld [vmem:[%s1799_s11 + $0x150] sm:$0xff] }
  0x23   : > { %408 = vst [vmem:[%s1804_s12 + $0xa0] sm:$0xff] %v407_v20  ;;  %v411_v22 = vld [vmem:[%s1799_s11 + $0x160] sm:$0xff]  ;;  %v413_v23 = vld [vmem:[%s1799_s11 + $0x170] sm:$0xff]  ;;  %410 = vst [vmem:[%s1804_s12 + $0xa8] sm:$0xff] %v409_v21 }
  0x24   : > { %412 = vst [vmem:[%s1804_s12 + $0xb0] sm:$0xff] %v411_v22  ;;  %414 = vst [vmem:[%s1804_s12 + $0xb8] sm:$0xff] %v413_v23  ;;  %v415_v24 = vld [vmem:[%s1799_s11 + $0x180] sm:$0xff]  ;;  %v417_v25 = vld [vmem:[%s1799_s11 + $0x190] sm:$0xff] }
  0x25   : > { %v419_v26 = vld [vmem:[%s1799_s11 + $0x1a0] sm:$0xff]  ;;  %416 = vst [vmem:[%s1804_s12 + $0xc0] sm:$0xff] %v415_v24  ;;  %418 = vst [vmem:[%s1804_s12 + $0xc8] sm:$0xff] %v417_v25  ;;  %v421_v27 = vld [vmem:[%s1799_s11 + $0x1b0] sm:$0xff] }
  0x26   : > { %420 = vst [vmem:[%s1804_s12 + $0xd0] sm:$0xff] %v419_v26  ;;  %v423_v28 = vld [vmem:[%s1799_s11 + $0x1c0] sm:$0xff]  ;;  %v425_v29 = vld [vmem:[%s1799_s11 + $0x1d0] sm:$0xff]  ;;  %422 = vst [vmem:[%s1804_s12 + $0xd8] sm:$0xff] %v421_v27 }
  0x27   : > { %424 = vst [vmem:[%s1804_s12 + $0xe0] sm:$0xff] %v423_v28  ;;  %426 = vst [vmem:[%s1804_s12 + $0xe8] sm:$0xff] %v425_v29  ;;  %v427_v30 = vld [vmem:[%s1799_s11 + $0x1e0] sm:$0xff]  ;;  %v429_v31 = vld [vmem:[%s1799_s11 + $0x1f0] sm:$0xff] }
  0x28   : > { %v431_v32 = vld [vmem:[%s1799_s11 + $0x200] sm:$0xff]  ;;  %428 = vst [vmem:[%s1804_s12 + $0xf0] sm:$0xff] %v427_v30  ;;  %430 = vst [vmem:[%s1804_s12 + $0xf8] sm:$0xff] %v429_v31  ;;  %v433_v33 = vld [vmem:[%s1799_s11 + $0x210] sm:$0xff] }
  0x29   : > { %432 = vst [vmem:[%s1804_s12 + $0x100] sm:$0xff] %v431_v32  ;;  %v435_v34 = vld [vmem:[%s1799_s11 + $0x220] sm:$0xff]  ;;  %v437_v35 = vld [vmem:[%s1799_s11 + $0x230] sm:$0xff]  ;;  %434 = vst [vmem:[%s1804_s12 + $0x108] sm:$0xff] %v433_v33 }
  0x2a   : > { %436 = vst [vmem:[%s1804_s12 + $0x110] sm:$0xff] %v435_v34  ;;  %438 = vst [vmem:[%s1804_s12 + $0x118] sm:$0xff] %v437_v35  ;;  %v439_v36 = vld [vmem:[%s1799_s11 + $0x240] sm:$0xff]  ;;  %v441_v37 = vld [vmem:[%s1799_s11 + $0x250] sm:$0xff] }
  0x2b   : > { %v443_v38 = vld [vmem:[%s1799_s11 + $0x260] sm:$0xff]  ;;  %440 = vst [vmem:[%s1804_s12 + $0x120] sm:$0xff] %v439_v36  ;;  %442 = vst [vmem:[%s1804_s12 + $0x128] sm:$0xff] %v441_v37  ;;  %v445_v39 = vld [vmem:[%s1799_s11 + $0x270] sm:$0xff] }
  0x2c   : > { %444 = vst [vmem:[%s1804_s12 + $0x130] sm:$0xff] %v443_v38  ;;  %v447_v40 = vld [vmem:[%s1799_s11 + $0x280] sm:$0xff]  ;;  %v449_v41 = vld [vmem:[%s1799_s11 + $0x290] sm:$0xff]  ;;  %446 = vst [vmem:[%s1804_s12 + $0x138] sm:$0xff] %v445_v39 }
  0x2d   : > { %448 = vst [vmem:[%s1804_s12 + $0x140] sm:$0xff] %v447_v40  ;;  %450 = vst [vmem:[%s1804_s12 + $0x148] sm:$0xff] %v449_v41  ;;  %v451_v42 = vld [vmem:[%s1799_s11 + $0x2a0] sm:$0xff]  ;;  %v453_v43 = vld [vmem:[%s1799_s11 + $0x2b0] sm:$0xff] }
  0x2e   : > { %v455_v44 = vld [vmem:[%s1799_s11 + $0x2c0] sm:$0xff]  ;;  %452 = vst [vmem:[%s1804_s12 + $0x150] sm:$0xff] %v451_v42  ;;  %454 = vst [vmem:[%s1804_s12 + $0x158] sm:$0xff] %v453_v43  ;;  %v457_v45 = vld [vmem:[%s1799_s11 + $0x2d0] sm:$0xff] }
  0x2f   : > { %456 = vst [vmem:[%s1804_s12 + $0x160] sm:$0xff] %v455_v44  ;;  %v459_v46 = vld [vmem:[%s1799_s11 + $0x2e0] sm:$0xff]  ;;  %v461_v47 = vld [vmem:[%s1799_s11 + $0x2f0] sm:$0xff]  ;;  %458 = vst [vmem:[%s1804_s12 + $0x168] sm:$0xff] %v457_v45 }
  0x30   : > { %460 = vst [vmem:[%s1804_s12 + $0x170] sm:$0xff] %v459_v46  ;;  %462 = vst [vmem:[%s1804_s12 + $0x178] sm:$0xff] %v461_v47  ;;  %v463_v48 = vld [vmem:[%s1799_s11 + $0x300] sm:$0xff]  ;;  %v465_v49 = vld [vmem:[%s1799_s11 + $0x310] sm:$0xff] }
  0x31   : > { %v467_v50 = vld [vmem:[%s1799_s11 + $0x320] sm:$0xff]  ;;  %464 = vst [vmem:[%s1804_s12 + $0x180] sm:$0xff] %v463_v48  ;;  %466 = vst [vmem:[%s1804_s12 + $0x188] sm:$0xff] %v465_v49  ;;  %v469_v51 = vld [vmem:[%s1799_s11 + $0x330] sm:$0xff] }
  0x32   : > { %468 = vst [vmem:[%s1804_s12 + $0x190] sm:$0xff] %v467_v50  ;;  %v471_v52 = vld [vmem:[%s1799_s11 + $0x340] sm:$0xff]  ;;  %v473_v53 = vld [vmem:[%s1799_s11 + $0x350] sm:$0xff]  ;;  %470 = vst [vmem:[%s1804_s12 + $0x198] sm:$0xff] %v469_v51 }
  0x33   : > { %472 = vst [vmem:[%s1804_s12 + $0x1a0] sm:$0xff] %v471_v52  ;;  %474 = vst [vmem:[%s1804_s12 + $0x1a8] sm:$0xff] %v473_v53  ;;  %v475_v54 = vld [vmem:[%s1799_s11 + $0x360] sm:$0xff]  ;;  %v477_v55 = vld [vmem:[%s1799_s11 + $0x370] sm:$0xff] }
  0x34   : > { %v479_v56 = vld [vmem:[%s1799_s11 + $0x380] sm:$0xff]  ;;  %476 = vst [vmem:[%s1804_s12 + $0x1b0] sm:$0xff] %v475_v54  ;;  %478 = vst [vmem:[%s1804_s12 + $0x1b8] sm:$0xff] %v477_v55  ;;  %v481_v57 = vld [vmem:[%s1799_s11 + $0x390] sm:$0xff] }
  0x35   : > { %480 = vst [vmem:[%s1804_s12 + $0x1c0] sm:$0xff] %v479_v56  ;;  %v483_v58 = vld [vmem:[%s1799_s11 + $0x3a0] sm:$0xff]  ;;  %v485_v59 = vld [vmem:[%s1799_s11 + $0x3b0] sm:$0xff]  ;;  %482 = vst [vmem:[%s1804_s12 + $0x1c8] sm:$0xff] %v481_v57 }
  0x36   : > { %484 = vst [vmem:[%s1804_s12 + $0x1d0] sm:$0xff] %v483_v58  ;;  %486 = vst [vmem:[%s1804_s12 + $0x1d8] sm:$0xff] %v485_v59  ;;  %v487_v60 = vld [vmem:[%s1799_s11 + $0x3c0] sm:$0xff]  ;;  %v489_v61 = vld [vmem:[%s1799_s11 + $0x3d0] sm:$0xff] }
  0x37   : > { %v491_v62 = vld [vmem:[%s1799_s11 + $0x3e0] sm:$0xff]  ;;  %488 = vst [vmem:[%s1804_s12 + $0x1e0] sm:$0xff] %v487_v60  ;;  %490 = vst [vmem:[%s1804_s12 + $0x1e8] sm:$0xff] %v489_v61  ;;  %v493_v63 = vld [vmem:[%s1799_s11 + $0x3f0] sm:$0xff] }
  0x38   : > { %492 = vst [vmem:[%s1804_s12 + $0x1f0] sm:$0xff] %v491_v62  ;;  %494 = vst [vmem:[%s1804_s12 + $0x1f8] sm:$0xff] %v493_v63 }
  0x39 PF: > { %p1421_p7 = scmp.ge.s32.totalorder %s1709_s21, 1  ;;  %p499_p8 = scmp.lt.s32.totalorder %s1709_s21, 19 }
  0x3b   : > { %p500_p9 = pnand %p1421_p7, %p499_p8 }
  0x3c   : > { %s506_s13 = sand.u32 (!%p500_p9), 1, %s1685_s15   ;;  %s1423_s14 = sshll.u32 (!%p500_p9), %s1693_s17, 2 }
  0x3d   : > { %503 = sbr.rel (%p500_p9) target bundleno = 399 (0x18f), region = 62  ;;  %s1422_s24 = sshll.u32 (!%p500_p9), %s506_s13, 9 }
  0x3e   : > { %p562_p10 = scmp.lt.s32.totalorder (!%p500_p9), %s1423_s14, 35  ;;  %s1424_s25 = sshll.u32 (!%p500_p9), %s1697_s18, 1 }
  0x3f   : > { %p573_p11 = scmp.lt.s32.totalorder (!%p500_p9), %s1424_s25, 3  ;;  %s1958_s12 = scalar_lea.vmem (!%p500_p9), [#allocation3], %s1422_s24 }
  0x40   : > { %p1428_p12 = scmp.ne.s32.totalorder (!%p500_p9), %s1693_s17, 0 }
  0x44   : > { %s2095_s14 = smov (!%p562_p10, %s1423_s14), 35  ;;  %s2097_s25 = smov (!%p573_p11, %s1424_s25), 3 }
  0x45   : > { %s566_s29 = scalar_lea.vmem %s2077_s0, %s2095_s14  ;;  %s1425_s30 = sshll.u32 %s2097_s25, 1  ;;  %v1711_v0 = vmov (!%p1428_p12), 0.0  }
  0x46   : > { %s587_s6 = scalar_lea.vmem %s2080_s3, %s2097_s25  ;;  %s1952_s8 = scalar_lea.vmem %s2079_s2, %s1425_s30  ;;  %602 = vst [vmem:[#allocation2] sm:$0xf] (!%p1428_p12), %v1711_v0 }
  0x47   : > { %s596_s11 = scalar_lea.vmem %s2081_s4, %s2097_s25  ;;  %601 = sbr.rel (%p1428_p12) target bundleno = 78 (0x4e), region = 70 }
  0x4e PF: > { %v1559_v1 = vld [vmem:[%s1958_s12 + $0x4] ss:$8 sps:$4 sm:$0xff]   ;;  %v1563_v3 = vld [vmem:[%s1958_s12] ss:$8 sps:$4 sm:$0xff]   ;;  %v1565_v5 = vld [vmem:[%s1958_s12 + $0x14] ss:$8 sps:$4 sm:$0xff]   ;;  %v681_v41 = vlaneseq }
  0x4f   : > { %v1561_v2 = vld [vmem:[%s1958_s12 + $0x104] ss:$8 sps:$4 sm:$0xff]   ;;  %1018 = vmatprep.subr.bf16.mxu1 %v1559_v1  ;;  %v1564_v4 = vld [vmem:[%s1958_s12 + $0x100] ss:$8 sps:$4 sm:$0xff]   ;;  %v1567_v6 = vld [vmem:[%s1958_s12 + $0x114] ss:$8 sps:$4 sm:$0xff]  }
  0x50   : > { %1059 = vmatprep.subr.bf16.mxu0 %v1561_v2  ;;  %1019 = vmatpush1.bf16.msra.mxu1 %v1563_v3  ;;  %v1569_v7 = vld [vmem:[%s1958_s12 + $0x10] ss:$8 sps:$4 sm:$0xff]   ;;  %v1571_v9 = vld [vmem:[%s1958_s12 + $0x24] ss:$8 sps:$4 sm:$0xff]   ;;  %v1575_v11 = vld [vmem:[%s1958_s12 + $0x20] ss:$8 sps:$4 sm:$0xff]  }
  0x51   : > { %1060 = vmatpush1.bf16.msra.mxu0 %v1564_v4  ;;  %1020 = vmatprep.subr.bf16.mxu1 %v1565_v5  ;;  %v1570_v8 = vld [vmem:[%s1958_s12 + $0x110] ss:$8 sps:$4 sm:$0xff]   ;;  %v1573_v10 = vld [vmem:[%s1958_s12 + $0x124] ss:$8 sps:$4 sm:$0xff]   ;;  %v1576_v12 = vld [vmem:[%s1958_s12 + $0x120] ss:$8 sps:$4 sm:$0xff]  }
  0x52   : > { %1061 = vmatprep.subr.bf16.mxu0 %v1567_v6  ;;  %v1577_v13 = vld [vmem:[%s1958_s12 + $0x34] ss:$8 sps:$4 sm:$0xff]   ;;  %v1581_v15 = vld [vmem:[%s1958_s12 + $0x30] ss:$8 sps:$4 sm:$0xff]   ;;  %v1583_v17 = vld [vmem:[%s1958_s12 + $0x44] ss:$8 sps:$4 sm:$0xff]  }
  0x53   : > { %v1579_v14 = vld [vmem:[%s1958_s12 + $0x134] ss:$8 sps:$4 sm:$0xff]   ;;  %v1582_v16 = vld [vmem:[%s1958_s12 + $0x130] ss:$8 sps:$4 sm:$0xff]   ;;  %v1585_v18 = vld [vmem:[%s1958_s12 + $0x144] ss:$8 sps:$4 sm:$0xff]  }
  0x54   : > { %1021 = vmatpush1.bf16.msra.mxu1 %v1569_v7  ;;  %v1587_v19 = vld [vmem:[%s1958_s12 + $0x40] ss:$8 sps:$4 sm:$0xff]   ;;  %v1589_v21 = vld [vmem:[%s1958_s12 + $0x54] ss:$8 sps:$4 sm:$0xff]   ;;  %v1593_v23 = vld [vmem:[%s1958_s12 + $0x50] ss:$8 sps:$4 sm:$0xff]  }
  0x55   : > { %1062 = vmatpush1.bf16.msra.mxu0 %v1570_v8  ;;  %1022 = vmatprep.subr.bf16.mxu1 %v1571_v9  ;;  %v1588_v20 = vld [vmem:[%s1958_s12 + $0x140] ss:$8 sps:$4 sm:$0xff]   ;;  %v1591_v22 = vld [vmem:[%s1958_s12 + $0x154] ss:$8 sps:$4 sm:$0xff]   ;;  %v1594_v24 = vld [vmem:[%s1958_s12 + $0x150] ss:$8 sps:$4 sm:$0xff]  }
  0x56   : > { %1063 = vmatprep.subr.bf16.mxu0 %v1573_v10  ;;  %v1595_v25 = vld [vmem:[%s1958_s12 + $0x64] ss:$8 sps:$4 sm:$0xff]   ;;  %v1599_v27 = vld [vmem:[%s1958_s12 + $0x60] ss:$8 sps:$4 sm:$0xff]   ;;  %v1601_v29 = vld [vmem:[%s1958_s12 + $0x74] ss:$8 sps:$4 sm:$0xff]  }
  0x57   : > { %v1597_v26 = vld [vmem:[%s1958_s12 + $0x164] ss:$8 sps:$4 sm:$0xff]   ;;  %v1600_v28 = vld [vmem:[%s1958_s12 + $0x160] ss:$8 sps:$4 sm:$0xff]   ;;  %v1603_v30 = vld [vmem:[%s1958_s12 + $0x174] ss:$8 sps:$4 sm:$0xff]  }
  0x58   : > { %1023 = vmatpush1.bf16.msra.mxu1 %v1575_v11  ;;  %v1605_v31 = vld [vmem:[%s1958_s12 + $0x70] ss:$8 sps:$4 sm:$0xff]   ;;  %v1607_v33 = vld [vmem:[%s1958_s12 + $0x84] ss:$8 sps:$4 sm:$0xff]   ;;  %v1611_v35 = vld [vmem:[%s1958_s12 + $0x80] ss:$8 sps:$4 sm:$0xff]  }
  0x59   : > { %1064 = vmatpush1.bf16.msra.mxu0 %v1576_v12  ;;  %1024 = vmatprep.subr.bf16.mxu1 %v1577_v13  ;;  %v1606_v32 = vld [vmem:[%s1958_s12 + $0x170] ss:$8 sps:$4 sm:$0xff]   ;;  %v1609_v34 = vld [vmem:[%s1958_s12 + $0x184] ss:$8 sps:$4 sm:$0xff]   ;;  %v1612_v36 = vld [vmem:[%s1958_s12 + $0x180] ss:$8 sps:$4 sm:$0xff]  }
  0x5a   : > { %1065 = vmatprep.subr.bf16.mxu0 %v1579_v14  ;;  %v1613_v37 = vld [vmem:[%s1958_s12 + $0x94] ss:$8 sps:$4 sm:$0xff]   ;;  %v1712_v39 = vmov 1966171168   ;;  %v1617_v42 = vld [vmem:[%s1958_s12 + $0x90] ss:$8 sps:$4 sm:$0xff]  }
  0x5b   : > { %v1615_v38 = vld [vmem:[%s1958_s12 + $0x194] ss:$8 sps:$4 sm:$0xff]   ;;  %v679_v40 = vunpack.c.l.s4 %v1712_v39  ;;  %v1618_v43 = vld [vmem:[%s1958_s12 + $0x190] ss:$8 sps:$4 sm:$0xff]   ;;  %v1619_v44 = vld [vmem:[%s1958_s12 + $0xa4] ss:$8 sps:$4 sm:$0xff]  }
  0x5c   : > { %1025 = vmatpush1.bf16.msra.mxu1 %v1581_v15  ;;  %v1621_v45 = vld [vmem:[%s1958_s12 + $0x1a4] ss:$8 sps:$4 sm:$0xff]   ;;  %v2004_v47 = vshrl.u32 %v681_v41, 7  ;;  %v1623_v48 = vld [vmem:[%s1958_s12 + $0xa0] ss:$8 sps:$4 sm:$0xff]   ;;  %p1494_p13 = scmp.ne.s32.totalorder %s1693_s17, 8 }
  0x5d   : > { %1066 = vmatpush1.bf16.msra.mxu0 %v1582_v16  ;;  %1026 = vmatprep.subr.bf16.mxu1 %v1583_v17  ;;  %v680_v46 = vunpack.c.0.s8 %v679_v40  ;;  %v1624_v49 = vld [vmem:[%s1958_s12 + $0x1a0] ss:$8 sps:$4 sm:$0xff]   ;;  %v1625_v50 = vld [vmem:[%s1958_s12 + $0xb4] ss:$8 sps:$4 sm:$0xff]   ;;  %v1629_v54 = vld [vmem:[%s1958_s12 + $0xb0] ss:$8 sps:$4 sm:$0xff]  }
  0x5e   : > { %1067 = vmatprep.subr.bf16.mxu0 %v1585_v18  ;;  %v1627_v51 = vld [vmem:[%s1958_s12 + $0x1b4] ss:$8 sps:$4 sm:$0xff]   ;;  %v1630_v55 = vld [vmem:[%s1958_s12 + $0x1b0] ss:$8 sps:$4 sm:$0xff]   ;;  %v1631_v57 = vld [vmem:[%s1958_s12 + $0xc4] ss:$8 sps:$4 sm:$0xff]  }
  0x5f   : > { %v2011_v52 = vsub.s32 %v680_v46, %v2004_v47  ;;  %v1429_v53 = vld.sshfl [vmem:[%s566_s29] sm:$0x33 pattern:$0x75316420]  ;;  %v1633_v58 = vld [vmem:[%s1958_s12 + $0x1c4] ss:$8 sps:$4 sm:$0xff]  }
  0x60   : > { %1027 = vmatpush1.bf16.msra.mxu1 %v1587_v19  ;;  %v677_v56 = vcombine.high %v1429_v53, %v1429_v53  ;;  %v1635_v60 = vld [vmem:[%s1958_s12 + $0xc0] ss:$8 sps:$4 sm:$0xff]   ;;  %v1637_v63 = vld [vmem:[%s1958_s12 + $0xd4] ss:$8 sps:$4 sm:$0xff]   ;;  %v1641_v1 = vld [vmem:[%s1958_s12 + $0xd0] ss:$8 sps:$4 sm:$0xff]  }
  0x61   : > { %1068 = vmatpush1.bf16.msra.mxu0 %v1588_v20  ;;  %1028 = vmatprep.subr.bf16.mxu1 %v1589_v21  ;;  %v1636_v61 = vld [vmem:[%s1958_s12 + $0x1c0] ss:$8 sps:$4 sm:$0xff]   ;;  %v1639_v0 = vld [vmem:[%s1958_s12 + $0x1d4] ss:$8 sps:$4 sm:$0xff]   ;;  %v1642_v2 = vld [vmem:[%s1958_s12 + $0x1d0] ss:$8 sps:$4 sm:$0xff]   ;;  %v684_v9 = vrot.slane %v1429_v53, %v2011_v52 }
  0x62   : > { %1069 = vmatprep.subr.bf16.mxu0 %v1591_v22  ;;  %v691_v59 = vrot.slane %v677_v56, %v2011_v52  ;;  %v1643_v3 = vld [vmem:[%s1958_s12 + $0xe4] ss:$8 sps:$4 sm:$0xff]   ;;  %v1647_v5 = vld [vmem:[%s1958_s12 + $0xe0] ss:$8 sps:$4 sm:$0xff]   ;;  %v1649_v7 = vld [vmem:[%s1958_s12 + $0xf4] ss:$8 sps:$4 sm:$0xff]  }
  0x63   : > { %v1645_v4 = vld [vmem:[%s1958_s12 + $0x1e4] ss:$8 sps:$4 sm:$0xff]   ;;  %v1648_v6 = vld [vmem:[%s1958_s12 + $0x1e0] ss:$8 sps:$4 sm:$0xff]   ;;  %v1651_v8 = vld [vmem:[%s1958_s12 + $0x1f4] ss:$8 sps:$4 sm:$0xff]   ;;  %v692_v12 = vcombine.high %v684_v9, %v684_v9 }
  0x64   : > { %1029 = vmatpush1.bf16.msra.mxu1 %v1593_v23  ;;  %v693_v62 = vcombine.high %v691_v59, %v691_v59  ;;  %1050 = vmatprep.mubr.bf16.mxu1 %v691_v59  ;;  %v1653_v10 = vld [vmem:[%s1958_s12 + $0xf0] ss:$8 sps:$4 sm:$0xff]   ;;  %v1713_v13 = vmov 1983009808   ;;  %vm1130_vm0 = vcmask (!%p1494_p13), 1041408   ;;  %vm1165_vm1 = vcmp.lt.s32.totalorder (!%p1494_p13), %v681_v41, 256 }
  0x65   : > { %1070 = vmatpush1.bf16.msra.mxu0 %v1594_v24  ;;  %1030 = vmatprep.subr.bf16.mxu1 %v1595_v25  ;;  %v1654_v11 = vld [vmem:[%s1958_s12 + $0x1f0] ss:$8 sps:$4 sm:$0xff]   ;;  %v1104_v14 = vunpack.c.l.s4 %v1713_v13 }
  0x66   : > { %1071 = vmatprep.subr.bf16.mxu0 %v1597_v26  ;;  %1091 = vmatprep.mubr.bf16.mxu0 %v693_v62 }
  0x67   : > { %v1105_v15 = vunpack.c.0.s8 %v1104_v14 }
  0x68   : > { %1031 = vmatpush1.bf16.msra.mxu1 %v1599_v27 }
  0x69   : > { %1072 = vmatpush1.bf16.msra.mxu0 %v1600_v28  ;;  %1032 = vmatprep.subr.bf16.mxu1 %v1601_v29  ;;  %v1108_v22 = vsub.s32 %v1105_v15, %v2004_v47  ;;  %v603_v28 = vld [vmem:[#allocation2] sm:$0xf] }
  0x6a   : > { %1073 = vmatprep.subr.bf16.mxu0 %v1603_v30 }
  0x6c   : > { %1033 = vmatpush1.bf16.msra.mxu1 %v1605_v31 }
  0x6d   : > { %1074 = vmatpush1.bf16.msra.mxu0 %v1606_v32  ;;  %1034 = vmatprep.subr.bf16.mxu1 %v1607_v33 }
  0x6e   : > { %1075 = vmatprep.subr.bf16.mxu0 %v1609_v34 }
  0x70   : > { %1035 = vmatpush1.bf16.msra.mxu1 %v1611_v35 }
  0x71   : > { %1076 = vmatpush1.bf16.msra.mxu0 %v1612_v36  ;;  %1036 = vmatprep.subr.bf16.mxu1 %v1613_v37 }
  0x72   : > { %1077 = vmatprep.subr.bf16.mxu0 %v1615_v38 }
  0x74   : > { %1037 = vmatpush1.bf16.msra.mxu1 %v1617_v42 }
  0x75   : > { %1078 = vmatpush1.bf16.msra.mxu0 %v1618_v43  ;;  %1038 = vmatprep.subr.bf16.mxu1 %v1619_v44 }
  0x76   : > { %1079 = vmatprep.subr.bf16.mxu0 %v1621_v45 }
  0x78   : > { %1039 = vmatpush1.bf16.msra.mxu1 %v1623_v48 }
  0x79   : > { %1080 = vmatpush1.bf16.msra.mxu0 %v1624_v49  ;;  %1040 = vmatprep.subr.bf16.mxu1 %v1625_v50 }
  0x7a   : > { %1081 = vmatprep.subr.bf16.mxu0 %v1627_v51 }
  0x7c   : > { %1041 = vmatpush1.bf16.msra.mxu1 %v1629_v54 }
  0x7d   : > { %1082 = vmatpush1.bf16.msra.mxu0 %v1630_v55  ;;  %1042 = vmatprep.subr.bf16.mxu1 %v1631_v57 }
  0x7e   : > { %1083 = vmatprep.subr.bf16.mxu0 %v1633_v58 }
  0x80   : > { %1043 = vmatpush1.bf16.msra.mxu1 %v1635_v60 }
  0x81   : > { %1084 = vmatpush1.bf16.msra.mxu0 %v1636_v61  ;;  %1044 = vmatprep.subr.bf16.mxu1 %v1637_v63 }
  0x82   : > { %1085 = vmatprep.subr.bf16.mxu0 %v1639_v0 }
  0x84   : > { %1045 = vmatpush1.bf16.msra.mxu1 %v1641_v1 }
  0x85   : > { %1086 = vmatpush1.bf16.msra.mxu0 %v1642_v2  ;;  %1046 = vmatprep.subr.bf16.mxu1 %v1643_v3 }
  0x86   : > { %1087 = vmatprep.subr.bf16.mxu0 %v1645_v4 }
  0x88   : > { %1047 = vmatpush1.bf16.msra.mxu1 %v1647_v5 }
  0x89   : > { %1088 = vmatpush1.bf16.msra.mxu0 %v1648_v6  ;;  %1048 = vmatprep.subr.bf16.mxu1 %v1649_v7 }
  0x8a   : > { %1089 = vmatprep.subr.bf16.mxu0 %v1651_v8 }
  0x8c   : > { %1049 = vmatpush1.bf16.msra.mxu1 %v1653_v10 }
  0x8d   : > { %1090 = vmatpush1.bf16.msra.mxu0 %v1654_v11 }
  0x8f   : > { %1051 = vmatmul.mubr.bf16.vlgmr.msra.gmra.mrb[0].mxu1 %v684_v9 }
  0x90   : > { %1092 = vmatmul.mubr.bf16.vlgmr.msra.gmra.mrb[0].mxu0 %v692_v12 }
 0x162   : > { %v1052_v16 = vpop.f32.mrb[0].mxu1 }
 0x163   : > { %v1093_v17 = vpop.f32.mrb[0].mxu0  ;;  %v1054_v19 = vpop.f32.mrb[1].mxu1 }
 0x164   : > { %v1094_v18 = vadd.f32 %v1093_v17, %v1052_v16  ;;  %v1095_v20 = vpop.f32.mrb[1].mxu0  ;;  %v1056_v23 = vpop.f32.mrb[2].mxu1 }
 0x165   : > { %v1096_v21 = vadd.f32 %v1095_v20, %v1054_v19  ;;  %v1097_v24 = vpop.f32.mrb[2].mxu0  ;;  %v1057_v25 = vpop.f32.mrb[3].mxu1 }
 0x166   : > { %v1098_v26 = vpop.f32.mrb[3].mxu0 }
 0x167   : > { %v1102_v27 = vcombine.low %v1094_v18, %v1096_v21  ;;  %1116 = sbr.rel (%p1494_p13) target bundleno = 399 (0x18f), region = 74 }
 0x169   : > { %v1109_v29 = vrot.slane %v1102_v27, %v1108_v22 }
 0x16b   : > { %v1111_v30 = vadd.f32 %v1109_v29, %v603_v28 }
 0x16d   : > { %1112 = vst [vmem:[#allocation2] sm:$0xf] %v1111_v30 }
 0x174   : > { %v1117_v31 = vld [vmem:[#allocation2] sm:$0xf] }
 0x175   : > { %1118 = vst [vmem:[%s1952_s8] sm:$0xf] %v1117_v31  ;;  %v1126_v32 = vrot.slane %v1117_v31, %v1108_v22  ;;  %v1168_v33 = vmul.f32 %v1117_v31, %v1117_v31 }
 0x177   : > { %v1127_v34 = vcombine.high %v1126_v32, %v1126_v32  ;;  %v1131_v35 = vsel %vm1130_vm0, %v1126_v32, 0.0  ;;  %v1176_v36 = vrot.slane %v1168_v33, %v1108_v22 }
 0x178   : > { %v1132_v37 = vrot.slane %v1131_v35, 4 }
 0x179   : > { %v1138_v38 = vsel %vm1130_vm0, %v1127_v34, 0.0  ;;  %v1177_v39 = vcombine.high %v1176_v36, %v1176_v36  ;;  %v1180_v40 = vsel %vm1130_vm0, %v1176_v36, 0.0 }
 0x17a   : > { %v1133_v42 = vadd.f32 %v1132_v37, %v1131_v35  ;;  %v1139_v43 = vrot.slane %v1138_v38, 4  ;;  %v1181_v44 = vrot.slane %v1180_v40, 4 }
 0x17b   : > { %v1187_v45 = vsel %vm1130_vm0, %v1177_v39, 0.0 }
 0x17c   : > { %v1182_v46 = vadd.f32 %v1181_v44, %v1180_v40  ;;  %v1188_v47 = vrot.slane %v1187_v45, 4  ;;  %v1134_v48 = vrot.slane %v1133_v42, 2  ;;  %v1140_v49 = vadd.f32 %v1139_v43, %v1138_v38 }
 0x17e   : > { %v1135_v50 = vadd.f32 %v1134_v48, %v1133_v42  ;;  %v1141_v51 = vrot.slane %v1140_v49, 2  ;;  %v1183_v53 = vrot.slane %v1182_v46, 2  ;;  %v1189_v54 = vadd.f32 %v1188_v47, %v1187_v45 }
 0x180   : > { %v1136_v55 = vrot.slane %v1135_v50, 1  ;;  %v1142_v56 = vadd.f32 %v1141_v51, %v1140_v49  ;;  %v1184_v57 = vadd.f32 %v1183_v53, %v1182_v46  ;;  %v1190_v58 = vrot.slane %v1189_v54, 2 }
 0x182   : > { %v1137_v59 = vadd.f32 %v1136_v55, %v1135_v50  ;;  %v1143_v60 = vrot.slane %v1142_v56, 1  ;;  %v1185_v61 = vrot.slane %v1184_v57, 1  ;;  %v1191_v62 = vadd.f32 %v1190_v58, %v1189_v54 }
 0x184   : > { %v1144_v63 = vadd.f32 %v1143_v60, %v1142_v56  ;;  %v1186_v0 = vadd.f32 %v1185_v61, %v1184_v57  ;;  %v1192_v1 = vrot.slane %v1191_v62, 1 }
 0x186   : > { %v1147_v2 = vcombine.low %v1137_v59, %v1144_v63  ;;  %v1193_v3 = vadd.f32 %v1192_v1, %v1191_v62 }
 0x188   : > { %v1154_v4 = vrot.slane %v1147_v2, %v2011_v52  ;;  %v1196_v5 = vcombine.low %v1186_v0, %v1193_v3 }
 0x18a   : > { %v1161_v6 = vrot.slane %v1154_v4, %v2011_v52  ;;  %v1203_v7 = vrot.slane %v1196_v5, %v2011_v52 }
 0x18c   : > { %1167 = vst.msk [vmem:[%s587_s6] sm:$0x3] %vm1165_vm1, %v1161_v6  ;;  %v1210_v8 = vrot.slane %v1203_v7, %v2011_v52 }
 0x18e   : > { %1212 = vst.msk [vmem:[%s596_s11] sm:$0x3] %vm1165_vm1, %v1210_v8 }
 0x18f PF: > { %s15_s21 = sadd.s32 1, %s1709_s21   ;;  %s2082_s15 = smov %s1689_s16 }
 0x190   : > { %p12_p0 = scmp.ge.s32.totalorder %s15_s21, 20   ;;  %s2083_s16 = smov %s1790_s28 }
 0x191   : > { %s2084_s17 = smov %s1701_s19  ;;  %s2085_s18 = smov %s1705_s20 }
 0x192   : > { %s2086_s19 = smov %s2089_s22  ;;  %s2087_s20 = smov %s2093_s23 }
 0x193   :  { %14 = sbr.rel (!%p12_p0) target bundleno = 4 (0x4), region = 136 }

// kernel: classifier_net_forward.84
= control target key start
LH: loop header
LB: loop body
LE: loop exit
PB: predicated region body
PF: predicated region fallthrough
CT: control target
= control target key end

     0   :  { %s46_s0 = inlined_call_operand.vmem [shape: f32[2,1,512], index: 0, kind: input, shape index: {}]   ;;  %s47_s1 = inlined_call_operand.vmem [shape: f32[2,512], index: 1, kind: output, shape index: {}]  }
   0x1   :  { %v29_v0 = vld [vmem:[%s46_s0] sm:$0xff]  }
   0x2   :  { %28 = vst.sshfl [vmem:[%s47_s1] sm:$0xff pattern:$0x75316420] %v29_v0 }

// kernel: classifier_net_forward.85
= control target key start
LH: loop header
LB: loop body
LE: loop exit
PB: predicated region body
PF: predicated region fallthrough
CT: control target
= control target key end

     0   :  { %v100_v30 = vlaneseq  ;;  %v556_v34 = vmov 1966171168   ;;  %s696_s0 = inlined_call_operand.vmem [shape: bf16[2,512], index: 0, kind: input, shape index: {}]   ;;  %s697_s1 = inlined_call_operand.vmem [shape: bf16[512,6], index: 1, kind: input, shape index: {}]   ;;  %s698_s2 = inlined_call_operand.vmem [shape: f32[1,6], index: 2, kind: input, shape index: {}]   ;;  %s699_s3 = inlined_call_operand.hbm [shape: f32[2,6], index: 3, kind: output, shape index: {}]  }
   0x1   :  { %v500_v0 = vld [vmem:[%s697_s1 + $0x40] sm:$0xff]   ;;  %v504_v4 = vld [vmem:[%s697_s1 + $0x48] sm:$0xff]   ;;  %v508_v8 = vld [vmem:[%s697_s1 + $0x50] sm:$0xff]   ;;  %v98_v35 = vunpack.c.l.s4 %v556_v34 }
   0x2   :  { %v501_v1 = vld [vmem:[%s697_s1 + $0xc0] sm:$0xff]   ;;  %453 = vmatprep.subr.bf16.mxu0 %v500_v0  ;;  %v505_v5 = vld [vmem:[%s697_s1 + $0xc8] sm:$0xff]   ;;  %v509_v9 = vld [vmem:[%s697_s1 + $0xd0] sm:$0xff]   ;;  %v101_v36 = vshrl.u32 %v100_v30, 7 }
   0x3   :  { %v502_v2 = vld [vmem:[%s697_s1] sm:$0xff]   ;;  %475 = vmatprep.subr.bf16.mxu1 %v501_v1  ;;  %v506_v6 = vld [vmem:[%s697_s1 + $0x8] sm:$0xff]   ;;  %v510_v10 = vld [vmem:[%s697_s1 + $0x10] sm:$0xff]  }
   0x4   :  { %v503_v3 = vld [vmem:[%s697_s1 + $0x80] sm:$0xff]   ;;  %454 = vmatpush3.bf16.msra.mxu0 %v502_v2  ;;  %v507_v7 = vld [vmem:[%s697_s1 + $0x88] sm:$0xff]   ;;  %v511_v11 = vld [vmem:[%s697_s1 + $0x90] sm:$0xff]  }
   0x5   :  { %476 = vmatpush3.bf16.msra.mxu1 %v503_v3  ;;  %455 = vmatprep.subr.bf16.mxu0 %v504_v4  ;;  %v512_v12 = vld [vmem:[%s697_s1 + $0x58] sm:$0xff]   ;;  %v516_v16 = vld [vmem:[%s697_s1 + $0x60] sm:$0xff]   ;;  %v520_v20 = vld [vmem:[%s697_s1 + $0x68] sm:$0xff]  }
   0x6   :  { %477 = vmatprep.subr.bf16.mxu1 %v505_v5  ;;  %v513_v13 = vld [vmem:[%s697_s1 + $0xd8] sm:$0xff]   ;;  %v517_v17 = vld [vmem:[%s697_s1 + $0xe0] sm:$0xff]   ;;  %v521_v21 = vld [vmem:[%s697_s1 + $0xe8] sm:$0xff]  }
   0x7   :  { %v514_v14 = vld [vmem:[%s697_s1 + $0x18] sm:$0xff]   ;;  %v518_v18 = vld [vmem:[%s697_s1 + $0x20] sm:$0xff]   ;;  %v522_v22 = vld [vmem:[%s697_s1 + $0x28] sm:$0xff]  }
   0x8   :  { %456 = vmatpush3.bf16.msra.mxu0 %v506_v6  ;;  %v515_v15 = vld [vmem:[%s697_s1 + $0x98] sm:$0xff]   ;;  %v519_v19 = vld [vmem:[%s697_s1 + $0xa0] sm:$0xff]   ;;  %v523_v23 = vld [vmem:[%s697_s1 + $0xa8] sm:$0xff]  }
   0x9   :  { %478 = vmatpush3.bf16.msra.mxu1 %v507_v7  ;;  %457 = vmatprep.subr.bf16.mxu0 %v508_v8  ;;  %v524_v24 = vld [vmem:[%s697_s1 + $0x70] sm:$0xff]   ;;  %v528_v28 = vld [vmem:[%s697_s1 + $0x78] sm:$0xff]   ;;  %v419_v33 = vld.sshfl [vmem:[%s696_s0] sm:$0x33 pattern:$0x75316420] }
   0xa   :  { %479 = vmatprep.subr.bf16.mxu1 %v509_v9  ;;  %v525_v25 = vld [vmem:[%s697_s1 + $0xf0] sm:$0xff]   ;;  %v529_v29 = vld [vmem:[%s697_s1 + $0xf8] sm:$0xff]  }
   0xb   :  { %v526_v26 = vld [vmem:[%s697_s1 + $0x30] sm:$0xff]   ;;  %v530_v31 = vld [vmem:[%s697_s1 + $0x38] sm:$0xff]  }
   0xc   :  { %458 = vmatpush3.bf16.msra.mxu0 %v510_v10  ;;  %v527_v27 = vld [vmem:[%s697_s1 + $0xb0] sm:$0xff]   ;;  %v531_v32 = vld [vmem:[%s697_s1 + $0xb8] sm:$0xff]  }
   0xd   :  { %480 = vmatpush3.bf16.msra.mxu1 %v511_v11  ;;  %459 = vmatprep.subr.bf16.mxu0 %v512_v12 }
   0xe   :  { %481 = vmatprep.subr.bf16.mxu1 %v513_v13 }
  0x10   :  { %460 = vmatpush3.bf16.msra.mxu0 %v514_v14 }
  0x11   :  { %482 = vmatpush3.bf16.msra.mxu1 %v515_v15  ;;  %461 = vmatprep.subr.bf16.mxu0 %v516_v16 }
  0x12   :  { %483 = vmatprep.subr.bf16.mxu1 %v517_v17 }
  0x14   :  { %462 = vmatpush3.bf16.msra.mxu0 %v518_v18 }
  0x15   :  { %484 = vmatpush3.bf16.msra.mxu1 %v519_v19  ;;  %463 = vmatprep.subr.bf16.mxu0 %v520_v20 }
  0x16   :  { %485 = vmatprep.subr.bf16.mxu1 %v521_v21 }
  0x18   :  { %464 = vmatpush3.bf16.msra.mxu0 %v522_v22 }
  0x19   :  { %486 = vmatpush3.bf16.msra.mxu1 %v523_v23  ;;  %465 = vmatprep.subr.bf16.mxu0 %v524_v24 }
  0x1a   :  { %487 = vmatprep.subr.bf16.mxu1 %v525_v25 }
  0x1c   :  { %466 = vmatpush3.bf16.msra.mxu0 %v526_v26 }
  0x1d   :  { %488 = vmatpush3.bf16.msra.mxu1 %v527_v27  ;;  %467 = vmatprep.subr.bf16.mxu0 %v528_v28 }
  0x1e   :  { %489 = vmatprep.subr.bf16.mxu1 %v529_v29 }
  0x20   :  { %468 = vmatpush3.bf16.msra.mxu0 %v530_v31 }
  0x21   :  { %490 = vmatpush3.bf16.msra.mxu1 %v531_v32 }
  0x22   :  { %8 = vsyncpa [#allocation4], 0  ;;  %v96_v37 = vcombine.high %v419_v33, %v419_v33  ;;  %v99_v38 = vunpack.c.0.s8 %v98_v35  ;;  %vm20_vm0 = vcmask 41984   ;;  %v557_v44 = vmov 0.0   ;;  %v452_v58 = vld [vmem:[%s698_s2] ss:$0 sm:$0xff] }
  0x23   :  { %21 = vst.msk [vmem:[#allocation2] sm:$0x3] %vm20_vm0, %v557_v44  ;;  %s558_s24 = smov [#allocation3]  }
  0x24   :  { %v102_v39 = vsub.s32 %v99_v38, %v101_v36  ;;  %s411_s25 = sshll.u32 %s558_s24, 4  ;;  %s412_s25 = int_to_ptr.vmem [resolvable:$true] %s411_s25 }
  0x25   :  { %s532_s26 = scalar_lea.vmem %s412_s25, 32  ;;  %p537_p1 = scmp.lt.s32.totalorder %s412_s25, %s412_s25 }
  0x26   :  { %v110_v40 = vrot.slane %v96_v37, %v102_v39  ;;  %v103_v41 = vrot.slane %v419_v33, %v102_v39  ;;  %p533_p0 = scmp.ne.s32.totalorder %s412_s25, %s532_s26  ;;  %p538_p2 = scmp.lt.s32.totalorder %s532_s26, %s532_s26 }
  0x28   :  { %341 = vmatprep.mubr.bf16.mxu0 %v110_v40  ;;  %v112_v42 = vcombine.high %v110_v40, %v110_v40  ;;  %v111_v43 = vcombine.high %v103_v41, %v103_v41  ;;  %p539_p3 = por %p538_p2, %p537_p1 }
  0x29   :  { %342 = vmatmul.mubr.bf16.vlgmr.msra.gmra.mrb[0].mxu0 %v103_v41 }
  0x2a   :  { %381 = vmatprep.mubr.bf16.mxu1 %v112_v42  ;;  %v22_v55 = vld [vmem:[#allocation2] sm:$0x3]  ;;  %p540_p4 = pnand %p539_p3, %p533_p0 }
  0x2b   :  { %382 = vmatmul.mubr.bf16.vlgmr.msra.gmra.mrb[0].mxu1 %v111_v43 }
  0xfc   :  { %v469_v45 = vpop.f32.mrb[0].mxu0 }
  0xfd   :  { %v470_v46 = vpop.f32.mrb[1].mxu0 }
  0xfe   :  { %v491_v47 = vpop.f32.mrb[0].mxu1  ;;  %v471_v48 = vadd.f32 %v470_v46, %v469_v45  ;;  %v472_v49 = vpop.f32.mrb[2].mxu0 }
  0xff   :  { %v492_v50 = vpop.f32.mrb[1].mxu1  ;;  %v473_v51 = vpop.f32.mrb[3].mxu0 }
 0x100   :  { %v493_v52 = vadd.f32 %v492_v50, %v491_v47  ;;  %v494_v53 = vpop.f32.mrb[2].mxu1 }
 0x101   :  { %v495_v54 = vpop.f32.mrb[3].mxu1 }
 0x102   :  { %v384_v56 = vadd.f32 %v493_v52, %v471_v48 }
 0x104   :  { %v389_v57 = vadd.f32 %v384_v56, %v22_v55 }
 0x106   :  { %391 = vst.msk [vmem:[#allocation2] sm:$0x3] %vm20_vm0, %v389_v57 }
 0x10d   :  { %v395_v59 = vld [vmem:[#allocation2] sm:$0x3] }
 0x10e   :  { %v403_v60 = vadd.f32 %v452_v58, %v395_v59 }
 0x110   :  { %404 = vst.msk [vmem:[#allocation3] sm:$0x3] %vm20_vm0, %v403_v60 }
 0x111   :  { %543 = shalt.err (!%p540_p4)
}
 0x112   :  { %s544_s29 = scalar_lea.hbm %s699_s3, 32 }
 0x113   :  { %p545_p5 = scmp.ne.s32.totalorder %s699_s3, %s544_s29  ;;  %p548_p6 = scmp.lt.u32.totalorder %s544_s29, %s699_s3 }
 0x115   :  { %p550_p7 = pnand %p548_p6, %p545_p5 }
 0x117   :  { %553 = shalt.err (!%p550_p7)
}
 0x118   :  { %414 = dma.vmem_to_hbm [thread:$0]  %s412_s25, 32, %s699_s3, [#allocation4]  }
 0x119   :  { %554 = dma.done.wait [#allocation4], 32  }
 0x11a   :  { %555 = vsyncadd [#allocation4], 4294967264 }
 0x11b   :  { %418 = vsyncpa [#allocation4], 1 }

</bundles_post_ra>
